<compile_context>
chip_gen: v6e
topology: v6e:2x2x1
jax: 0.10.0
libtpu: 0.0.40
codegen_flags: <defaults>
</compile_context>

<pallas_src>
import functools

import numpy as np
import jax
import jax.numpy as jnp
from jax.experimental import pallas as pl
from jax.experimental.pallas import tpu as pltpu


# ---------------------------------------------------------------------------
# Bilinear (align_corners=True) interpolation matrix, built on host.
# ---------------------------------------------------------------------------
def _bilinear_matrix(in_size, out_size):
    m = np.zeros((out_size, in_size), np.float32)
    if in_size == 1:
        m[:, 0] = 1.0
        return m
    scale = (in_size - 1) / (out_size - 1)
    for o in range(out_size):
        src = o * scale
        i0 = min(int(np.floor(src)), in_size - 1)
        i1 = min(i0 + 1, in_size - 1)
        f = src - i0
        m[o, i0] += 1.0 - f
        m[o, i1] += f
    return m


# Row indices inside the stacked per-width constant tables.
_KT0 = 0          # tconv 4x4 taps            rows  0..15   (in consts_out)
_KL4_0 = 16       # LiteConv dw5x5 (l4) taps  rows 16..40
_B1, _BT, _B2, _BL3, _BL4 = 41, 42, 43, 44, 45   # bias rows (in consts_out)
_BL1 = 25         # LiteConv dw5x5 (l1) bias  row  25       (in taps_in)


# ---------------------------------------------------------------------------
# Fully fused per-batch kernel.
#
# Layout: every activation is (rows, W*C) with C minor inside each column
# group (flattened channels-last).  The output is parity-separated:
#   out[n, dy, dx, a, b*Cout + c] = y[n, 2a+dy, 2b+dx, c].
# ---------------------------------------------------------------------------
def _upsample_kernel(x_ref, w_in_ref, w_out_ref, ry_ref, bx_ref,
                     taps_in_ref, consts_out_ref,
                     o_ref,
                     tp_ref, xp1_ref, xp2_ref,
                     *, h, w, cin, cout, lp_in, lp_out, top):
    f32 = jnp.float32
    bf16 = jnp.bfloat16
    wci = w * cin
    wco = w * cout

    # -- one-time halo zeroing: interiors are fully rewritten every grid step,
    #    halo strips are never written, so they stay zero after step 0. --
    @pl.when(pl.program_id(0) == 0)
    def _():
        tp_ref[...] = jnp.zeros_like(tp_ref)
        xp1_ref[...] = jnp.zeros_like(xp1_ref)
        xp2_ref[...] = jnp.zeros_like(xp2_ref)

    co = consts_out_ref[...]          # (46, wco) f32: tconv taps, l4 taps, biases
    ti = taps_in_ref[...]             # (26, wci) f32: l1 taps + l1 bias

    x = x_ref[0].astype(f32)                                    # (h, wci)

    # ======================= deconv branch =======================
    # d1: 1x1 conv + BN + ReLU6 (block-diagonal bf16 weight, lane-dense)
    t = jnp.dot(x.astype(bf16), w_in_ref[0], preferred_element_type=f32)
    t = jnp.clip(t + co[_B1:_B1 + 1, :], 0.0, 6.0)              # (h, wco)

    # depthwise ConvTranspose2d(4x4, s=2, p=1), BN2 scale folded into the taps.
    # Interior write starts at (top, lp_out): sublane- and lane-aligned.
    tp_ref[top:top + h, lp_out:lp_out + wco] = t
    t_pad = tp_ref[...]
    tb = lp_out - cout
    # hoisted lane shifts: one (rows, wco) band per x-neighbour (3, not 9)
    band_l = t_pad[:, tb:tb + wco]                       # x[.., b-1]
    band_c = t_pad[:, tb + cout:tb + cout + wco]         # x[.., b  ]
    band_r = t_pad[:, tb + 2 * cout:tb + 2 * cout + wco]  # x[.., b+1]

    def rows(band, dr):        # dr in {-1, 0, +1}  ->  x[a-1], x[a], x[a+1]
        r0 = top + dr
        return band[r0:r0 + h, :]

    def ktap(ky, kx):
        i = _KT0 + ky * 4 + kx
        return co[i:i + 1, :]

    C_ = rows(band_c, 0); UP = rows(band_c, -1); DN = rows(band_c, +1)
    LF = rows(band_l, 0); UL = rows(band_l, -1); DL = rows(band_l, +1)
    RT = rows(band_r, 0); UR = rows(band_r, -1); DR = rows(band_r, +1)

    ee = C_ * ktap(1, 1) + UP * ktap(3, 1) + LF * ktap(1, 3) + UL * ktap(3, 3)
    eo = C_ * ktap(1, 2) + RT * ktap(1, 0) + UP * ktap(3, 2) + UR * ktap(3, 0)
    oe = C_ * ktap(2, 1) + DN * ktap(0, 1) + LF * ktap(2, 3) + DL * ktap(0, 3)
    oo = C_ * ktap(2, 2) + RT * ktap(2, 0) + DN * ktap(0, 2) + DR * ktap(0, 0)

    # ==================== conv_up branch (LiteConv) ====================
    # l1: dw5x5 + BN + ReLU6 — lane shift hoisted per kx (5 shifts, not 25)
    xp1_ref[top:top + h, lp_in:lp_in + wci] = x
    x_pad = xp1_ref[...]
    base1 = lp_in - 2 * cin
    acc = jnp.zeros((h, wci), f32)
    for kx in range(5):
        band = x_pad[:, base1 + kx * cin:base1 + kx * cin + wci]
        for ky in range(5):
            tap = ti[ky * 5 + kx:ky * 5 + kx + 1, :]
            acc = acc + band[top - 2 + ky:top - 2 + ky + h, :] * tap
    u = jnp.clip(acc + ti[_BL1:_BL1 + 1, :], 0.0, 6.0)          # (h, wci)

    # l2, l3: 1x1 + BN + ReLU6 (block-diagonal bf16 weights)
    u = jnp.dot(u.astype(bf16), w_in_ref[1], preferred_element_type=f32)
    u = jnp.clip(u + co[_B2:_B2 + 1, :], 0.0, 6.0)              # (h, wco)
    u = jnp.dot(u.astype(bf16), w_out_ref[1], preferred_element_type=f32)
    u = jnp.clip(u + co[_BL3:_BL3 + 1, :], 0.0, 6.0)            # (h, wco)

    # l4: dw5x5 + BN + ReLU6
    xp2_ref[top:top + h, lp_out:lp_out + wco] = u
    u_pad = xp2_ref[...]
    base2 = lp_out - 2 * cout
    acc2 = jnp.zeros((h, wco), f32)
    for kx in range(5):
        band = u_pad[:, base2 + kx * cout:base2 + kx * cout + wco]
        for ky in range(5):
            tap = co[_KL4_0 + ky * 5 + kx:_KL4_0 + ky * 5 + kx + 1, :]
            acc2 = acc2 + band[top - 2 + ky:top - 2 + ky + h, :] * tap
    v = jnp.clip(acc2 + co[_BL4:_BL4 + 1, :], 0.0, 6.0)         # (h, wco)

    # ======================== batched epilogue ========================
    # deconv d3 (1x1 + folded BN2/BN3 bias + ReLU6) on all four parities at
    # once: M = 4h instead of four M = h matmuls.
    P = jnp.concatenate([ee, eo, oe, oo], axis=0)                # (4h, wco)
    dec = jnp.dot(P.astype(bf16), w_out_ref[0], preferred_element_type=f32)
    dec = jnp.clip(dec + co[_BT:_BT + 1, :], 0.0, 6.0)           # (4h, wco)

    # bilinear x2 (align_corners=True): one y-matmul for both row parities,
    # then one x-matmul per column parity (M = 2h each), fused residual add.
    th = jnp.dot(ry_ref[...], v, preferred_element_type=f32)     # (2h, wco)
    th_b = th.astype(bf16)
    ups = [jnp.dot(th_b, bx_ref[dx], preferred_element_type=f32)
           for dx in (0, 1)]                                     # 2 x (2h, wco)

    for dy in (0, 1):
        for dx in (0, 1):
            pidx = 2 * dy + dx
            o_ref[0, dy, dx] = (dec[pidx * h:(pidx + 1) * h, :]
                                + ups[dx][dy * h:(dy + 1) * h, :]
                                ).astype(o_ref.dtype)


# ---------------------------------------------------------------------------
# Parameter setup (deterministic, synthetic) and forward pass.
# ---------------------------------------------------------------------------
def _fold_bn(gamma, beta, mean, var, eps=1e-5):
    s = gamma / jnp.sqrt(var + eps)
    return s, beta - mean * s


def init_params(key, cin, cout):
    keys = iter(jax.random.split(key, 40))

    def conv_w(shape):
        return 0.1 * jax.random.normal(next(keys), shape, jnp.float32)

    def bn(c):
        g = 1.0 + 0.1 * jax.random.normal(next(keys), (c,), jnp.float32)
        b = 0.1 * jax.random.normal(next(keys), (c,), jnp.float32)
        m = 0.1 * jax.random.normal(next(keys), (c,), jnp.float32)
        v = 1.0 + 0.1 * jax.random.uniform(next(keys), (c,), jnp.float32)
        return g, b, m, v

    p = {}
    # deconv branch
    p['d1_w'] = conv_w((cout, cin));   p['d1_bn'] = bn(cout)   # 1x1 conv
    p['d2_w'] = conv_w((4, 4, cout));  p['d2_bn'] = bn(cout)   # dw tconv (kH,kW,C)
    p['d3_w'] = conv_w((cout, cout));  p['d3_bn'] = bn(cout)   # 1x1 conv
    # conv_up branch (LiteConv)
    p['l1_w'] = conv_w((5, 5, cin));   p['l1_bn'] = bn(cin)    # dw 5x5
    p['l2_w'] = conv_w((cout, cin));   p['l2_bn'] = bn(cout)   # 1x1
    p['l3_w'] = conv_w((cout, cout));  p['l3_bn'] = bn(cout)   # 1x1
    p['l4_w'] = conv_w((5, 5, cout));  p['l4_bn'] = bn(cout)   # dw 5x5
    return p


def upsample_forward(x_nchw, p):
    n, cin, h, w = x_nchw.shape
    cout = p['d1_w'].shape[0]
    wci, wco = w * cin, w * cout

    # aligned halo geometry: left pad multiple of 128 lanes, top pad 8 sublanes
    lp_in = ((2 * cin + 127) // 128) * 128
    lp_out = ((2 * cout + 127) // 128) * 128
    top = 8

    # single input relayout: NCHW -> flattened channels-last (N, H, W*Cin)
    x = jnp.transpose(x_nchw, (0, 2, 3, 1)).reshape(n, h, wci)

    eye_w = np.eye(w, dtype=np.float32)

    def tile_c(vec):          # (C,) -> (1, w*C), matching the (W, C) flattening
        return jnp.tile(vec, (w,)).reshape(1, -1)

    # ---- deconv branch weights (BN folded) ----
    s1, b1 = _fold_bn(*p['d1_bn'])
    W1K = jnp.kron(eye_w, p['d1_w'].T * s1[None, :])            # (wci, wco)
    s2, b2 = _fold_bn(*p['d2_bn'])
    KT = jnp.tile(p['d2_w'] * s2, (1, 1, w)).reshape(16, wco)   # tconv taps
    s3, b3 = _fold_bn(*p['d3_bn'])
    W3e = p['d3_w'].T * s3[None, :]
    W3K = jnp.kron(eye_w, W3e)                                  # (wco, wco)
    BTT = tile_c(b2 @ W3e + b3)   # no act between tconv BN and d3 -> fold exact

    # ---- conv_up branch (LiteConv) weights ----
    sl1, bl1 = _fold_bn(*p['l1_bn'])
    KL1 = jnp.tile(p['l1_w'] * sl1, (1, 1, w)).reshape(25, wci)
    sl2, bl2 = _fold_bn(*p['l2_bn'])
    W2K = jnp.kron(eye_w, p['l2_w'].T * sl2[None, :])           # (wci, wco)
    sl3, bl3 = _fold_bn(*p['l3_bn'])
    WL3K = jnp.kron(eye_w, p['l3_w'].T * sl3[None, :])          # (wco, wco)
    sl4, bl4 = _fold_bn(*p['l4_bn'])
    KL4 = jnp.tile(p['l4_w'] * sl4, (1, 1, w)).reshape(25, wco)

    # ---- bilinear x2 (align_corners=True == nn.UpsamplingBilinear2d) ----
    ry = _bilinear_matrix(h, 2 * h)                             # (2h, h)
    rx = _bilinear_matrix(w, 2 * w)                             # (2w, w)
    RY = jnp.asarray(np.concatenate([ry[0::2], ry[1::2]], 0), jnp.float32)  # (2h,h)
    eye_c = np.eye(cout, dtype=np.float32)
    BX = jnp.asarray(np.stack([np.kron(rx[0::2].T, eye_c),
                               np.kron(rx[1::2].T, eye_c)]),
                     jnp.bfloat16)                              # (2, wco, wco)

    # ---- consolidated constant operands (7 inputs instead of 16) ----
    bf = jnp.bfloat16
    w_in = jnp.stack([W1K, W2K]).astype(bf)                     # (2, wci, wco)
    w_out = jnp.stack([W3K, WL3K]).astype(bf)                   # (2, wco, wco)
    taps_in = jnp.concatenate([KL1, tile_c(bl1)], axis=0).astype(jnp.float32)
    consts_out = jnp.concatenate(
        [KT, KL4, tile_c(b1), BTT, tile_c(bl2), tile_c(bl3), tile_c(bl4)],
        axis=0).astype(jnp.float32)                             # (46, wco)

    def const_spec(shape):
        z = (0,) * len(shape)
        return pl.BlockSpec(shape, lambda i, _z=z: _z)

    out = pl.pallas_call(
        functools.partial(_upsample_kernel, h=h, w=w, cin=cin, cout=cout,
                          lp_in=lp_in, lp_out=lp_out, top=top),
        out_shape=jax.ShapeDtypeStruct((n, 2, 2, h, wco), x_nchw.dtype),
        grid=(n,),
        in_specs=[
            pl.BlockSpec((1, h, wci), lambda i: (i, 0, 0)),
            const_spec((2, wci, wco)),        # W1K, W2K      (bf16)
            const_spec((2, wco, wco)),        # W3K, WL3K     (bf16)
            const_spec((2 * h, h)),           # RY (parity-stacked, f32)
            const_spec((2, wco, wco)),        # BX per column parity (bf16)
            const_spec((26, wci)),            # l1 taps + bias
            const_spec((46, wco)),            # tconv/l4 taps + biases
        ],
        out_specs=pl.BlockSpec((1, 2, 2, h, wco), lambda i: (i, 0, 0, 0, 0)),
        scratch_shapes=[
            pltpu.VMEM((top + h + 1, lp_out + wco + cout), jnp.float32),      # tconv halo
            pltpu.VMEM((top + h + 2, lp_in + wci + 2 * cin), jnp.float32),    # dw5x5 l1 halo
            pltpu.VMEM((top + h + 2, lp_out + wco + 2 * cout), jnp.float32),  # dw5x5 l4 halo
        ],
        compiler_params=pltpu.CompilerParams(dimension_semantics=("parallel",)),
    )(x, w_in, w_out, RY, BX, taps_in, consts_out)

    # parity-separated (n, 2, 2, h, w*cout) -> NCHW in a single transpose pass
    out = out.reshape(n, 2, 2, h, w, cout)
    out = jnp.transpose(out, (0, 5, 3, 1, 4, 2))                # (n, c, h, 2, w, 2)
    return out.reshape(n, cout, 2 * h, 2 * w)


if __name__ == "__main__":
    key = jax.random.PRNGKey(0)
    kx, kp = jax.random.split(key)
    N, CIN, COUT, H, W = 2, 4, 8, 16, 16
    x = jax.random.normal(kx, (N, CIN, H, W), jnp.float32)
    params = init_params(kp, CIN, COUT)

    out = jax.jit(upsample_forward)(x, params)
    jax.block_until_ready(out)
    assert out.shape == (N, COUT, 2 * H, 2 * W), out.shape
    print("KERNEL_OK")
</pallas_src>

<mosaic_0001>
module attributes {stable_mosaic.version = 11 : i64} {
  func.func @_upsample_kernel(%arg0: i32, %arg1: memref<1x16x64xf32, #tpu.memory_space<vmem>>, %arg2: memref<2x64x128xbf16, #tpu.memory_space<vmem>>, %arg3: memref<2x128x128xbf16, #tpu.memory_space<vmem>>, %arg4: memref<32x16xf32, #tpu.memory_space<vmem>>, %arg5: memref<2x128x128xbf16, #tpu.memory_space<vmem>>, %arg6: memref<26x64xf32, #tpu.memory_space<vmem>>, %arg7: memref<46x128xf32, #tpu.memory_space<vmem>>, %arg8: memref<1x2x2x16x128xf32, #tpu.memory_space<vmem>>, %arg9: memref<25x264xf32, #tpu.memory_space<vmem>>, %arg10: memref<26x200xf32, #tpu.memory_space<vmem>>, %arg11: memref<26x272xf32, #tpu.memory_space<vmem>>) attributes {dimension_semantics = [#tpu.dimension_semantics<parallel>], iteration_bounds = array<i64: 2>, scalar_prefetch = 0 : i64, scratch_operands = 3 : i64, tpu.core_type = #tpu.core_type<tc>, window_params = [{transform_indices = @transform_0, window_bounds = array<i64: 1, 16, 64>}, {pipeline_mode = #tpu.pipeline_mode<synchronous>, transform_indices = @transform_1, window_bounds = array<i64: 2, 64, 128>}, {pipeline_mode = #tpu.pipeline_mode<synchronous>, transform_indices = @transform_2, window_bounds = array<i64: 2, 128, 128>}, {pipeline_mode = #tpu.pipeline_mode<synchronous>, transform_indices = @transform_3, window_bounds = array<i64: 32, 16>}, {pipeline_mode = #tpu.pipeline_mode<synchronous>, transform_indices = @transform_4, window_bounds = array<i64: 2, 128, 128>}, {pipeline_mode = #tpu.pipeline_mode<synchronous>, transform_indices = @transform_5, window_bounds = array<i64: 26, 64>}, {pipeline_mode = #tpu.pipeline_mode<synchronous>, transform_indices = @transform_6, window_bounds = array<i64: 46, 128>}, {transform_indices = @transform_7, window_bounds = array<i64: 1, 2, 2, 16, 128>}]} {
    %c0_i32 = arith.constant 0 : i32
    %0 = arith.cmpi eq, %arg0, %c0_i32 : i32
    %1 = arith.extui %0 : i1 to i32
    %c0_i32_0 = arith.constant 0 : i32
    %2 = arith.cmpi ne, %1, %c0_i32_0 : i32
    scf.if %2 {
      %cst_76 = arith.constant 0.000000e+00 : f32
      %439 = vector.broadcast %cst_76 : f32 to vector<25x264xf32>
      %c0_77 = arith.constant 0 : index
      %c0_78 = arith.constant 0 : index
      %440 = vector.load %arg9[%c0_77, %c0_78] : memref<25x264xf32, #tpu.memory_space<vmem>>, vector<25x264xf32>
      tpu.vector_store %arg9[%c0_77, %c0_78], %439 {strides = array<i32>} : memref<25x264xf32, #tpu.memory_space<vmem>>, vector<25x264xf32>,
      %cst_79 = arith.constant 0.000000e+00 : f32
      %441 = vector.broadcast %cst_79 : f32 to vector<26x200xf32>
      %c0_80 = arith.constant 0 : index
      %c0_81 = arith.constant 0 : index
      %442 = vector.load %arg10[%c0_80, %c0_81] : memref<26x200xf32, #tpu.memory_space<vmem>>, vector<26x200xf32>
      tpu.vector_store %arg10[%c0_80, %c0_81], %441 {strides = array<i32>} : memref<26x200xf32, #tpu.memory_space<vmem>>, vector<26x200xf32>,
      %cst_82 = arith.constant 0.000000e+00 : f32
      %443 = vector.broadcast %cst_82 : f32 to vector<26x272xf32>
      %c0_83 = arith.constant 0 : index
      %c0_84 = arith.constant 0 : index
      %444 = vector.load %arg11[%c0_83, %c0_84] : memref<26x272xf32, #tpu.memory_space<vmem>>, vector<26x272xf32>
      tpu.vector_store %arg11[%c0_83, %c0_84], %443 {strides = array<i32>} : memref<26x272xf32, #tpu.memory_space<vmem>>, vector<26x272xf32>,
    } else {
    }
    %c0 = arith.constant 0 : index
    %c0_1 = arith.constant 0 : index
    %3 = vector.load %arg7[%c0, %c0_1] : memref<46x128xf32, #tpu.memory_space<vmem>>, vector<46x128xf32>
    %c0_2 = arith.constant 0 : index
    %c0_3 = arith.constant 0 : index
    %4 = vector.load %arg6[%c0_2, %c0_3] : memref<26x64xf32, #tpu.memory_space<vmem>>, vector<26x64xf32>
    %c0_4 = arith.constant 0 : index
    %c0_5 = arith.constant 0 : index
    %c0_6 = arith.constant 0 : index
    %5 = vector.load %arg1[%c0_4, %c0_5, %c0_6] : memref<1x16x64xf32, #tpu.memory_space<vmem>>, vector<1x16x64xf32>
    %6 = vector.shape_cast %5 : vector<1x16x64xf32> to vector<16x64xf32>
    %7 = arith.truncf %6 : vector<16x64xf32> to vector<16x64xbf16>
    %c0_7 = arith.constant 0 : index
    %c0_8 = arith.constant 0 : index
    %c0_9 = arith.constant 0 : index
    %8 = vector.load %arg2[%c0_7, %c0_8, %c0_9] : memref<2x64x128xbf16, #tpu.memory_space<vmem>>, vector<1x64x128xbf16>
    %9 = vector.shape_cast %8 : vector<1x64x128xbf16> to vector<64x128xbf16>
    %cst = arith.constant dense<0.000000e+00> : vector<16x128xf32>
    %10 = tpu.matmul %7, %9, %cst {dimension_numbers = #tpu.dot_dimension_numbers<[1], [0], [0], [1], [0, 0, 1, 1], [], []>} : vector<16x64xbf16>, vector<64x128xbf16>, vector<16x128xf32> -> vector<16x128xf32>
    %11 = vector.extract_strided_slice %3 {offsets = [41, 0], sizes = [1, 128], strides = [1, 1]} : vector<46x128xf32> to vector<1x128xf32>
    %12 = vector.broadcast %11 : vector<1x128xf32> to vector<16x128xf32>
    %13 = arith.addf %10, %12 : vector<16x128xf32>
    %cst_10 = arith.constant 0.000000e+00 : f32
    %cst_11 = arith.constant 6.000000e+00 : f32
    %14 = vector.broadcast %cst_10 : f32 to vector<16x128xf32>
    %15 = arith.maximumf %14, %13 : vector<16x128xf32>
    %16 = vector.broadcast %cst_11 : f32 to vector<16x128xf32>
    %17 = arith.minimumf %16, %15 : vector<16x128xf32>
    %c8 = arith.constant 8 : index
    %c128 = arith.constant 128 : index
    %18 = vector.load %arg9[%c8, %c128] : memref<25x264xf32, #tpu.memory_space<vmem>>, vector<16x128xf32>
    tpu.vector_store %arg9[%c8, %c128], %17 {strides = array<i32>} : memref<25x264xf32, #tpu.memory_space<vmem>>, vector<16x128xf32>,
    %c0_12 = arith.constant 0 : index
    %c0_13 = arith.constant 0 : index
    %19 = vector.load %arg9[%c0_12, %c0_13] : memref<25x264xf32, #tpu.memory_space<vmem>>, vector<25x264xf32>
    %20 = vector.extract_strided_slice %19 {offsets = [0, 120], sizes = [25, 128], strides = [1, 1]} : vector<25x264xf32> to vector<25x128xf32>
    %21 = vector.extract_strided_slice %19 {offsets = [0, 128], sizes = [25, 128], strides = [1, 1]} : vector<25x264xf32> to vector<25x128xf32>
    %22 = vector.extract_strided_slice %19 {offsets = [0, 136], sizes = [25, 128], strides = [1, 1]} : vector<25x264xf32> to vector<25x128xf32>
    %23 = vector.extract_strided_slice %21 {offsets = [8, 0], sizes = [16, 128], strides = [1, 1]} : vector<25x128xf32> to vector<16x128xf32>
    %24 = vector.extract_strided_slice %21 {offsets = [7, 0], sizes = [16, 128], strides = [1, 1]} : vector<25x128xf32> to vector<16x128xf32>
    %25 = vector.extract_strided_slice %21 {offsets = [9, 0], sizes = [16, 128], strides = [1, 1]} : vector<25x128xf32> to vector<16x128xf32>
    %26 = vector.extract_strided_slice %20 {offsets = [8, 0], sizes = [16, 128], strides = [1, 1]} : vector<25x128xf32> to vector<16x128xf32>
    %27 = vector.extract_strided_slice %20 {offsets = [7, 0], sizes = [16, 128], strides = [1, 1]} : vector<25x128xf32> to vector<16x128xf32>
    %28 = vector.extract_strided_slice %20 {offsets = [9, 0], sizes = [16, 128], strides = [1, 1]} : vector<25x128xf32> to vector<16x128xf32>
    %29 = vector.extract_strided_slice %22 {offsets = [8, 0], sizes = [16, 128], strides = [1, 1]} : vector<25x128xf32> to vector<16x128xf32>
    %30 = vector.extract_strided_slice %22 {offsets = [7, 0], sizes = [16, 128], strides = [1, 1]} : vector<25x128xf32> to vector<16x128xf32>
    %31 = vector.extract_strided_slice %22 {offsets = [9, 0], sizes = [16, 128], strides = [1, 1]} : vector<25x128xf32> to vector<16x128xf32>
    %32 = vector.extract_strided_slice %3 {offsets = [5, 0], sizes = [1, 128], strides = [1, 1]} : vector<46x128xf32> to vector<1x128xf32>
    %33 = vector.broadcast %32 : vector<1x128xf32> to vector<16x128xf32>
    %34 = arith.mulf %23, %33 : vector<16x128xf32>
    %35 = vector.extract_strided_slice %3 {offsets = [13, 0], sizes = [1, 128], strides = [1, 1]} : vector<46x128xf32> to vector<1x128xf32>
    %36 = vector.broadcast %35 : vector<1x128xf32> to vector<16x128xf32>
    %37 = arith.mulf %24, %36 : vector<16x128xf32>
    %38 = arith.addf %34, %37 : vector<16x128xf32>
    %39 = vector.extract_strided_slice %3 {offsets = [7, 0], sizes = [1, 128], strides = [1, 1]} : vector<46x128xf32> to vector<1x128xf32>
    %40 = vector.broadcast %39 : vector<1x128xf32> to vector<16x128xf32>
    %41 = arith.mulf %26, %40 : vector<16x128xf32>
    %42 = arith.addf %38, %41 : vector<16x128xf32>
    %43 = vector.extract_strided_slice %3 {offsets = [15, 0], sizes = [1, 128], strides = [1, 1]} : vector<46x128xf32> to vector<1x128xf32>
    %44 = vector.broadcast %43 : vector<1x128xf32> to vector<16x128xf32>
    %45 = arith.mulf %27, %44 : vector<16x128xf32>
    %46 = arith.addf %42, %45 : vector<16x128xf32>
    %47 = vector.extract_strided_slice %3 {offsets = [6, 0], sizes = [1, 128], strides = [1, 1]} : vector<46x128xf32> to vector<1x128xf32>
    %48 = vector.broadcast %47 : vector<1x128xf32> to vector<16x128xf32>
    %49 = arith.mulf %23, %48 : vector<16x128xf32>
    %50 = vector.extract_strided_slice %3 {offsets = [4, 0], sizes = [1, 128], strides = [1, 1]} : vector<46x128xf32> to vector<1x128xf32>
    %51 = vector.broadcast %50 : vector<1x128xf32> to vector<16x128xf32>
    %52 = arith.mulf %29, %51 : vector<16x128xf32>
    %53 = arith.addf %49, %52 : vector<16x128xf32>
    %54 = vector.extract_strided_slice %3 {offsets = [14, 0], sizes = [1, 128], strides = [1, 1]} : vector<46x128xf32> to vector<1x128xf32>
    %55 = vector.broadcast %54 : vector<1x128xf32> to vector<16x128xf32>
    %56 = arith.mulf %24, %55 : vector<16x128xf32>
    %57 = arith.addf %53, %56 : vector<16x128xf32>
    %58 = vector.extract_strided_slice %3 {offsets = [12, 0], sizes = [1, 128], strides = [1, 1]} : vector<46x128xf32> to vector<1x128xf32>
    %59 = vector.broadcast %58 : vector<1x128xf32> to vector<16x128xf32>
    %60 = arith.mulf %30, %59 : vector<16x128xf32>
    %61 = arith.addf %57, %60 : vector<16x128xf32>
    %62 = vector.extract_strided_slice %3 {offsets = [9, 0], sizes = [1, 128], strides = [1, 1]} : vector<46x128xf32> to vector<1x128xf32>
    %63 = vector.broadcast %62 : vector<1x128xf32> to vector<16x128xf32>
    %64 = arith.mulf %23, %63 : vector<16x128xf32>
    %65 = vector.extract_strided_slice %3 {offsets = [1, 0], sizes = [1, 128], strides = [1, 1]} : vector<46x128xf32> to vector<1x128xf32>
    %66 = vector.broadcast %65 : vector<1x128xf32> to vector<16x128xf32>
    %67 = arith.mulf %25, %66 : vector<16x128xf32>
    %68 = arith.addf %64, %67 : vector<16x128xf32>
    %69 = vector.extract_strided_slice %3 {offsets = [11, 0], sizes = [1, 128], strides = [1, 1]} : vector<46x128xf32> to vector<1x128xf32>
    %70 = vector.broadcast %69 : vector<1x128xf32> to vector<16x128xf32>
    %71 = arith.mulf %26, %70 : vector<16x128xf32>
    %72 = arith.addf %68, %71 : vector<16x128xf32>
    %73 = vector.extract_strided_slice %3 {offsets = [3, 0], sizes = [1, 128], strides = [1, 1]} : vector<46x128xf32> to vector<1x128xf32>
    %74 = vector.broadcast %73 : vector<1x128xf32> to vector<16x128xf32>
    %75 = arith.mulf %28, %74 : vector<16x128xf32>
    %76 = arith.addf %72, %75 : vector<16x128xf32>
    %77 = vector.extract_strided_slice %3 {offsets = [10, 0], sizes = [1, 128], strides = [1, 1]} : vector<46x128xf32> to vector<1x128xf32>
    %78 = vector.broadcast %77 : vector<1x128xf32> to vector<16x128xf32>
    %79 = arith.mulf %23, %78 : vector<16x128xf32>
    %80 = vector.extract_strided_slice %3 {offsets = [8, 0], sizes = [1, 128], strides = [1, 1]} : vector<46x128xf32> to vector<1x128xf32>
    %81 = vector.broadcast %80 : vector<1x128xf32> to vector<16x128xf32>
    %82 = arith.mulf %29, %81 : vector<16x128xf32>
    %83 = arith.addf %79, %82 : vector<16x128xf32>
    %84 = vector.extract_strided_slice %3 {offsets = [2, 0], sizes = [1, 128], strides = [1, 1]} : vector<46x128xf32> to vector<1x128xf32>
    %85 = vector.broadcast %84 : vector<1x128xf32> to vector<16x128xf32>
    %86 = arith.mulf %25, %85 : vector<16x128xf32>
    %87 = arith.addf %83, %86 : vector<16x128xf32>
    %88 = vector.extract_strided_slice %3 {offsets = [0, 0], sizes = [1, 128], strides = [1, 1]} : vector<46x128xf32> to vector<1x128xf32>
    %89 = vector.broadcast %88 : vector<1x128xf32> to vector<16x128xf32>
    %90 = arith.mulf %31, %89 : vector<16x128xf32>
    %91 = arith.addf %87, %90 : vector<16x128xf32>
    %c8_14 = arith.constant 8 : index
    %c128_15 = arith.constant 128 : index
    %92 = vector.load %arg10[%c8_14, %c128_15] : memref<26x200xf32, #tpu.memory_space<vmem>>, vector<16x64xf32>
    tpu.vector_store %arg10[%c8_14, %c128_15], %6 {strides = array<i32>} : memref<26x200xf32, #tpu.memory_space<vmem>>, vector<16x64xf32>,
    %c0_16 = arith.constant 0 : index
    %c0_17 = arith.constant 0 : index
    %93 = vector.load %arg10[%c0_16, %c0_17] : memref<26x200xf32, #tpu.memory_space<vmem>>, vector<26x200xf32>
    %cst_18 = arith.constant 0.000000e+00 : f32
    %94 = vector.broadcast %cst_18 : f32 to vector<16x64xf32>
    %95 = vector.extract_strided_slice %93 {offsets = [0, 120], sizes = [26, 64], strides = [1, 1]} : vector<26x200xf32> to vector<26x64xf32>
    %96 = vector.extract_strided_slice %4 {offsets = [0, 0], sizes = [1, 64], strides = [1, 1]} : vector<26x64xf32> to vector<1x64xf32>
    %97 = vector.extract_strided_slice %95 {offsets = [6, 0], sizes = [16, 64], strides = [1, 1]} : vector<26x64xf32> to vector<16x64xf32>
    %98 = vector.broadcast %96 : vector<1x64xf32> to vector<16x64xf32>
    %99 = arith.mulf %97, %98 : vector<16x64xf32>
    %100 = arith.addf %94, %99 : vector<16x64xf32>
    %101 = vector.extract_strided_slice %4 {offsets = [5, 0], sizes = [1, 64], strides = [1, 1]} : vector<26x64xf32> to vector<1x64xf32>
    %102 = vector.extract_strided_slice %95 {offsets = [7, 0], sizes = [16, 64], strides = [1, 1]} : vector<26x64xf32> to vector<16x64xf32>
    %103 = vector.broadcast %101 : vector<1x64xf32> to vector<16x64xf32>
    %104 = arith.mulf %102, %103 : vector<16x64xf32>
    %105 = arith.addf %100, %104 : vector<16x64xf32>
    %106 = vector.extract_strided_slice %4 {offsets = [10, 0], sizes = [1, 64], strides = [1, 1]} : vector<26x64xf32> to vector<1x64xf32>
    %107 = vector.extract_strided_slice %95 {offsets = [8, 0], sizes = [16, 64], strides = [1, 1]} : vector<26x64xf32> to vector<16x64xf32>
    %108 = vector.broadcast %106 : vector<1x64xf32> to vector<16x64xf32>
    %109 = arith.mulf %107, %108 : vector<16x64xf32>
    %110 = arith.addf %105, %109 : vector<16x64xf32>
    %111 = vector.extract_strided_slice %4 {offsets = [15, 0], sizes = [1, 64], strides = [1, 1]} : vector<26x64xf32> to vector<1x64xf32>
    %112 = vector.extract_strided_slice %95 {offsets = [9, 0], sizes = [16, 64], strides = [1, 1]} : vector<26x64xf32> to vector<16x64xf32>
    %113 = vector.broadcast %111 : vector<1x64xf32> to vector<16x64xf32>
    %114 = arith.mulf %112, %113 : vector<16x64xf32>
    %115 = arith.addf %110, %114 : vector<16x64xf32>
    %116 = vector.extract_strided_slice %4 {offsets = [20, 0], sizes = [1, 64], strides = [1, 1]} : vector<26x64xf32> to vector<1x64xf32>
    %117 = vector.extract_strided_slice %95 {offsets = [10, 0], sizes = [16, 64], strides = [1, 1]} : vector<26x64xf32> to vector<16x64xf32>
    %118 = vector.broadcast %116 : vector<1x64xf32> to vector<16x64xf32>
    %119 = arith.mulf %117, %118 : vector<16x64xf32>
    %120 = arith.addf %115, %119 : vector<16x64xf32>
    %121 = vector.extract_strided_slice %93 {offsets = [0, 124], sizes = [26, 64], strides = [1, 1]} : vector<26x200xf32> to vector<26x64xf32>
    %122 = vector.extract_strided_slice %4 {offsets = [1, 0], sizes = [1, 64], strides = [1, 1]} : vector<26x64xf32> to vector<1x64xf32>
    %123 = vector.extract_strided_slice %121 {offsets = [6, 0], sizes = [16, 64], strides = [1, 1]} : vector<26x64xf32> to vector<16x64xf32>
    %124 = vector.broadcast %122 : vector<1x64xf32> to vector<16x64xf32>
    %125 = arith.mulf %123, %124 : vector<16x64xf32>
    %126 = arith.addf %120, %125 : vector<16x64xf32>
    %127 = vector.extract_strided_slice %4 {offsets = [6, 0], sizes = [1, 64], strides = [1, 1]} : vector<26x64xf32> to vector<1x64xf32>
    %128 = vector.extract_strided_slice %121 {offsets = [7, 0], sizes = [16, 64], strides = [1, 1]} : vector<26x64xf32> to vector<16x64xf32>
    %129 = vector.broadcast %127 : vector<1x64xf32> to vector<16x64xf32>
    %130 = arith.mulf %128, %129 : vector<16x64xf32>
    %131 = arith.addf %126, %130 : vector<16x64xf32>
    %132 = vector.extract_strided_slice %4 {offsets = [11, 0], sizes = [1, 64], strides = [1, 1]} : vector<26x64xf32> to vector<1x64xf32>
    %133 = vector.extract_strided_slice %121 {offsets = [8, 0], sizes = [16, 64], strides = [1, 1]} : vector<26x64xf32> to vector<16x64xf32>
    %134 = vector.broadcast %132 : vector<1x64xf32> to vector<16x64xf32>
    %135 = arith.mulf %133, %134 : vector<16x64xf32>
    %136 = arith.addf %131, %135 : vector<16x64xf32>
    %137 = vector.extract_strided_slice %4 {offsets = [16, 0], sizes = [1, 64], strides = [1, 1]} : vector<26x64xf32> to vector<1x64xf32>
    %138 = vector.extract_strided_slice %121 {offsets = [9, 0], sizes = [16, 64], strides = [1, 1]} : vector<26x64xf32> to vector<16x64xf32>
    %139 = vector.broadcast %137 : vector<1x64xf32> to vector<16x64xf32>
    %140 = arith.mulf %138, %139 : vector<16x64xf32>
    %141 = arith.addf %136, %140 : vector<16x64xf32>
    %142 = vector.extract_strided_slice %4 {offsets = [21, 0], sizes = [1, 64], strides = [1, 1]} : vector<26x64xf32> to vector<1x64xf32>
    %143 = vector.extract_strided_slice %121 {offsets = [10, 0], sizes = [16, 64], strides = [1, 1]} : vector<26x64xf32> to vector<16x64xf32>
    %144 = vector.broadcast %142 : vector<1x64xf32> to vector<16x64xf32>
    %145 = arith.mulf %143, %144 : vector<16x64xf32>
    %146 = arith.addf %141, %145 : vector<16x64xf32>
    %147 = vector.extract_strided_slice %93 {offsets = [0, 128], sizes = [26, 64], strides = [1, 1]} : vector<26x200xf32> to vector<26x64xf32>
    %148 = vector.extract_strided_slice %4 {offsets = [2, 0], sizes = [1, 64], strides = [1, 1]} : vector<26x64xf32> to vector<1x64xf32>
    %149 = vector.extract_strided_slice %147 {offsets = [6, 0], sizes = [16, 64], strides = [1, 1]} : vector<26x64xf32> to vector<16x64xf32>
    %150 = vector.broadcast %148 : vector<1x64xf32> to vector<16x64xf32>
    %151 = arith.mulf %149, %150 : vector<16x64xf32>
    %152 = arith.addf %146, %151 : vector<16x64xf32>
    %153 = vector.extract_strided_slice %4 {offsets = [7, 0], sizes = [1, 64], strides = [1, 1]} : vector<26x64xf32> to vector<1x64xf32>
    %154 = vector.extract_strided_slice %147 {offsets = [7, 0], sizes = [16, 64], strides = [1, 1]} : vector<26x64xf32> to vector<16x64xf32>
    %155 = vector.broadcast %153 : vector<1x64xf32> to vector<16x64xf32>
    %156 = arith.mulf %154, %155 : vector<16x64xf32>
    %157 = arith.addf %152, %156 : vector<16x64xf32>
    %158 = vector.extract_strided_slice %4 {offsets = [12, 0], sizes = [1, 64], strides = [1, 1]} : vector<26x64xf32> to vector<1x64xf32>
    %159 = vector.extract_strided_slice %147 {offsets = [8, 0], sizes = [16, 64], strides = [1, 1]} : vector<26x64xf32> to vector<16x64xf32>
    %160 = vector.broadcast %158 : vector<1x64xf32> to vector<16x64xf32>
    %161 = arith.mulf %159, %160 : vector<16x64xf32>
    %162 = arith.addf %157, %161 : vector<16x64xf32>
    %163 = vector.extract_strided_slice %4 {offsets = [17, 0], sizes = [1, 64], strides = [1, 1]} : vector<26x64xf32> to vector<1x64xf32>
    %164 = vector.extract_strided_slice %147 {offsets = [9, 0], sizes = [16, 64], strides = [1, 1]} : vector<26x64xf32> to vector<16x64xf32>
    %165 = vector.broadcast %163 : vector<1x64xf32> to vector<16x64xf32>
    %166 = arith.mulf %164, %165 : vector<16x64xf32>
    %167 = arith.addf %162, %166 : vector<16x64xf32>
    %168 = vector.extract_strided_slice %4 {offsets = [22, 0], sizes = [1, 64], strides = [1, 1]} : vector<26x64xf32> to vector<1x64xf32>
    %169 = vector.extract_strided_slice %147 {offsets = [10, 0], sizes = [16, 64], strides = [1, 1]} : vector<26x64xf32> to vector<16x64xf32>
    %170 = vector.broadcast %168 : vector<1x64xf32> to vector<16x64xf32>
    %171 = arith.mulf %169, %170 : vector<16x64xf32>
    %172 = arith.addf %167, %171 : vector<16x64xf32>
    %173 = vector.extract_strided_slice %93 {offsets = [0, 132], sizes = [26, 64], strides = [1, 1]} : vector<26x200xf32> to vector<26x64xf32>
    %174 = vector.extract_strided_slice %4 {offsets = [3, 0], sizes = [1, 64], strides = [1, 1]} : vector<26x64xf32> to vector<1x64xf32>
    %175 = vector.extract_strided_slice %173 {offsets = [6, 0], sizes = [16, 64], strides = [1, 1]} : vector<26x64xf32> to vector<16x64xf32>
    %176 = vector.broadcast %174 : vector<1x64xf32> to vector<16x64xf32>
    %177 = arith.mulf %175, %176 : vector<16x64xf32>
    %178 = arith.addf %172, %177 : vector<16x64xf32>
    %179 = vector.extract_strided_slice %4 {offsets = [8, 0], sizes = [1, 64], strides = [1, 1]} : vector<26x64xf32> to vector<1x64xf32>
    %180 = vector.extract_strided_slice %173 {offsets = [7, 0], sizes = [16, 64], strides = [1, 1]} : vector<26x64xf32> to vector<16x64xf32>
    %181 = vector.broadcast %179 : vector<1x64xf32> to vector<16x64xf32>
    %182 = arith.mulf %180, %181 : vector<16x64xf32>
    %183 = arith.addf %178, %182 : vector<16x64xf32>
    %184 = vector.extract_strided_slice %4 {offsets = [13, 0], sizes = [1, 64], strides = [1, 1]} : vector<26x64xf32> to vector<1x64xf32>
    %185 = vector.extract_strided_slice %173 {offsets = [8, 0], sizes = [16, 64], strides = [1, 1]} : vector<26x64xf32> to vector<16x64xf32>
    %186 = vector.broadcast %184 : vector<1x64xf32> to vector<16x64xf32>
    %187 = arith.mulf %185, %186 : vector<16x64xf32>
    %188 = arith.addf %183, %187 : vector<16x64xf32>
    %189 = vector.extract_strided_slice %4 {offsets = [18, 0], sizes = [1, 64], strides = [1, 1]} : vector<26x64xf32> to vector<1x64xf32>
    %190 = vector.extract_strided_slice %173 {offsets = [9, 0], sizes = [16, 64], strides = [1, 1]} : vector<26x64xf32> to vector<16x64xf32>
    %191 = vector.broadcast %189 : vector<1x64xf32> to vector<16x64xf32>
    %192 = arith.mulf %190, %191 : vector<16x64xf32>
    %193 = arith.addf %188, %192 : vector<16x64xf32>
    %194 = vector.extract_strided_slice %4 {offsets = [23, 0], sizes = [1, 64], strides = [1, 1]} : vector<26x64xf32> to vector<1x64xf32>
    %195 = vector.extract_strided_slice %173 {offsets = [10, 0], sizes = [16, 64], strides = [1, 1]} : vector<26x64xf32> to vector<16x64xf32>
    %196 = vector.broadcast %194 : vector<1x64xf32> to vector<16x64xf32>
    %197 = arith.mulf %195, %196 : vector<16x64xf32>
    %198 = arith.addf %193, %197 : vector<16x64xf32>
    %199 = vector.extract_strided_slice %93 {offsets = [0, 136], sizes = [26, 64], strides = [1, 1]} : vector<26x200xf32> to vector<26x64xf32>
    %200 = vector.extract_strided_slice %4 {offsets = [4, 0], sizes = [1, 64], strides = [1, 1]} : vector<26x64xf32> to vector<1x64xf32>
    %201 = vector.extract_strided_slice %199 {offsets = [6, 0], sizes = [16, 64], strides = [1, 1]} : vector<26x64xf32> to vector<16x64xf32>
    %202 = vector.broadcast %200 : vector<1x64xf32> to vector<16x64xf32>
    %203 = arith.mulf %201, %202 : vector<16x64xf32>
    %204 = arith.addf %198, %203 : vector<16x64xf32>
    %205 = vector.extract_strided_slice %4 {offsets = [9, 0], sizes = [1, 64], strides = [1, 1]} : vector<26x64xf32> to vector<1x64xf32>
    %206 = vector.extract_strided_slice %199 {offsets = [7, 0], sizes = [16, 64], strides = [1, 1]} : vector<26x64xf32> to vector<16x64xf32>
    %207 = vector.broadcast %205 : vector<1x64xf32> to vector<16x64xf32>
    %208 = arith.mulf %206, %207 : vector<16x64xf32>
    %209 = arith.addf %204, %208 : vector<16x64xf32>
    %210 = vector.extract_strided_slice %4 {offsets = [14, 0], sizes = [1, 64], strides = [1, 1]} : vector<26x64xf32> to vector<1x64xf32>
    %211 = vector.extract_strided_slice %199 {offsets = [8, 0], sizes = [16, 64], strides = [1, 1]} : vector<26x64xf32> to vector<16x64xf32>
    %212 = vector.broadcast %210 : vector<1x64xf32> to vector<16x64xf32>
    %213 = arith.mulf %211, %212 : vector<16x64xf32>
    %214 = arith.addf %209, %213 : vector<16x64xf32>
    %215 = vector.extract_strided_slice %4 {offsets = [19, 0], sizes = [1, 64], strides = [1, 1]} : vector<26x64xf32> to vector<1x64xf32>
    %216 = vector.extract_strided_slice %199 {offsets = [9, 0], sizes = [16, 64], strides = [1, 1]} : vector<26x64xf32> to vector<16x64xf32>
    %217 = vector.broadcast %215 : vector<1x64xf32> to vector<16x64xf32>
    %218 = arith.mulf %216, %217 : vector<16x64xf32>
    %219 = arith.addf %214, %218 : vector<16x64xf32>
    %220 = vector.extract_strided_slice %4 {offsets = [24, 0], sizes = [1, 64], strides = [1, 1]} : vector<26x64xf32> to vector<1x64xf32>
    %221 = vector.extract_strided_slice %199 {offsets = [10, 0], sizes = [16, 64], strides = [1, 1]} : vector<26x64xf32> to vector<16x64xf32>
    %222 = vector.broadcast %220 : vector<1x64xf32> to vector<16x64xf32>
    %223 = arith.mulf %221, %222 : vector<16x64xf32>
    %224 = arith.addf %219, %223 : vector<16x64xf32>
    %225 = vector.extract_strided_slice %4 {offsets = [25, 0], sizes = [1, 64], strides = [1, 1]} : vector<26x64xf32> to vector<1x64xf32>
    %226 = vector.broadcast %225 : vector<1x64xf32> to vector<16x64xf32>
    %227 = arith.addf %224, %226 : vector<16x64xf32>
    %cst_19 = arith.constant 0.000000e+00 : f32
    %cst_20 = arith.constant 6.000000e+00 : f32
    %228 = vector.broadcast %cst_19 : f32 to vector<16x64xf32>
    %229 = arith.maximumf %228, %227 : vector<16x64xf32>
    %230 = vector.broadcast %cst_20 : f32 to vector<16x64xf32>
    %231 = arith.minimumf %230, %229 : vector<16x64xf32>
    %232 = arith.truncf %231 : vector<16x64xf32> to vector<16x64xbf16>
    %c1 = arith.constant 1 : index
    %c0_21 = arith.constant 0 : index
    %c0_22 = arith.constant 0 : index
    %233 = vector.load %arg2[%c1, %c0_21, %c0_22] : memref<2x64x128xbf16, #tpu.memory_space<vmem>>, vector<1x64x128xbf16>
    %234 = vector.shape_cast %233 : vector<1x64x128xbf16> to vector<64x128xbf16>
    %cst_23 = arith.constant dense<0.000000e+00> : vector<16x128xf32>
    %235 = tpu.matmul %232, %234, %cst_23 {dimension_numbers = #tpu.dot_dimension_numbers<[1], [0], [0], [1], [0, 0, 1, 1], [], []>} : vector<16x64xbf16>, vector<64x128xbf16>, vector<16x128xf32> -> vector<16x128xf32>
    %236 = vector.extract_strided_slice %3 {offsets = [43, 0], sizes = [1, 128], strides = [1, 1]} : vector<46x128xf32> to vector<1x128xf32>
    %237 = vector.broadcast %236 : vector<1x128xf32> to vector<16x128xf32>
    %238 = arith.addf %235, %237 : vector<16x128xf32>
    %cst_24 = arith.constant 0.000000e+00 : f32
    %cst_25 = arith.constant 6.000000e+00 : f32
    %239 = vector.broadcast %cst_24 : f32 to vector<16x128xf32>
    %240 = arith.maximumf %239, %238 : vector<16x128xf32>
    %241 = vector.broadcast %cst_25 : f32 to vector<16x128xf32>
    %242 = arith.minimumf %241, %240 : vector<16x128xf32>
    %243 = arith.truncf %242 : vector<16x128xf32> to vector<16x128xbf16>
    %c1_26 = arith.constant 1 : index
    %c0_27 = arith.constant 0 : index
    %c0_28 = arith.constant 0 : index
    %244 = vector.load %arg3[%c1_26, %c0_27, %c0_28] : memref<2x128x128xbf16, #tpu.memory_space<vmem>>, vector<1x128x128xbf16>
    %245 = vector.shape_cast %244 : vector<1x128x128xbf16> to vector<128x128xbf16>
    %cst_29 = arith.constant dense<0.000000e+00> : vector<16x128xf32>
    %246 = tpu.matmul %243, %245, %cst_29 {dimension_numbers = #tpu.dot_dimension_numbers<[1], [0], [0], [1], [0, 0, 1, 1], [], []>} : vector<16x128xbf16>, vector<128x128xbf16>, vector<16x128xf32> -> vector<16x128xf32>
    %247 = vector.extract_strided_slice %3 {offsets = [44, 0], sizes = [1, 128], strides = [1, 1]} : vector<46x128xf32> to vector<1x128xf32>
    %248 = vector.broadcast %247 : vector<1x128xf32> to vector<16x128xf32>
    %249 = arith.addf %246, %248 : vector<16x128xf32>
    %cst_30 = arith.constant 0.000000e+00 : f32
    %cst_31 = arith.constant 6.000000e+00 : f32
    %250 = vector.broadcast %cst_30 : f32 to vector<16x128xf32>
    %251 = arith.maximumf %250, %249 : vector<16x128xf32>
    %252 = vector.broadcast %cst_31 : f32 to vector<16x128xf32>
    %253 = arith.minimumf %252, %251 : vector<16x128xf32>
    %c8_32 = arith.constant 8 : index
    %c128_33 = arith.constant 128 : index
    %254 = vector.load %arg11[%c8_32, %c128_33] : memref<26x272xf32, #tpu.memory_space<vmem>>, vector<16x128xf32>
    tpu.vector_store %arg11[%c8_32, %c128_33], %253 {strides = array<i32>} : memref<26x272xf32, #tpu.memory_space<vmem>>, vector<16x128xf32>,
    %c0_34 = arith.constant 0 : index
    %c0_35 = arith.constant 0 : index
    %255 = vector.load %arg11[%c0_34, %c0_35] : memref<26x272xf32, #tpu.memory_space<vmem>>, vector<26x272xf32>
    %cst_36 = arith.constant 0.000000e+00 : f32
    %256 = vector.broadcast %cst_36 : f32 to vector<16x128xf32>
    %257 = vector.extract_strided_slice %255 {offsets = [0, 112], sizes = [26, 128], strides = [1, 1]} : vector<26x272xf32> to vector<26x128xf32>
    %258 = vector.extract_strided_slice %3 {offsets = [16, 0], sizes = [1, 128], strides = [1, 1]} : vector<46x128xf32> to vector<1x128xf32>
    %259 = vector.extract_strided_slice %257 {offsets = [6, 0], sizes = [16, 128], strides = [1, 1]} : vector<26x128xf32> to vector<16x128xf32>
    %260 = vector.broadcast %258 : vector<1x128xf32> to vector<16x128xf32>
    %261 = arith.mulf %259, %260 : vector<16x128xf32>
    %262 = arith.addf %256, %261 : vector<16x128xf32>
    %263 = vector.extract_strided_slice %3 {offsets = [21, 0], sizes = [1, 128], strides = [1, 1]} : vector<46x128xf32> to vector<1x128xf32>
    %264 = vector.extract_strided_slice %257 {offsets = [7, 0], sizes = [16, 128], strides = [1, 1]} : vector<26x128xf32> to vector<16x128xf32>
    %265 = vector.broadcast %263 : vector<1x128xf32> to vector<16x128xf32>
    %266 = arith.mulf %264, %265 : vector<16x128xf32>
    %267 = arith.addf %262, %266 : vector<16x128xf32>
    %268 = vector.extract_strided_slice %3 {offsets = [26, 0], sizes = [1, 128], strides = [1, 1]} : vector<46x128xf32> to vector<1x128xf32>
    %269 = vector.extract_strided_slice %257 {offsets = [8, 0], sizes = [16, 128], strides = [1, 1]} : vector<26x128xf32> to vector<16x128xf32>
    %270 = vector.broadcast %268 : vector<1x128xf32> to vector<16x128xf32>
    %271 = arith.mulf %269, %270 : vector<16x128xf32>
    %272 = arith.addf %267, %271 : vector<16x128xf32>
    %273 = vector.extract_strided_slice %3 {offsets = [31, 0], sizes = [1, 128], strides = [1, 1]} : vector<46x128xf32> to vector<1x128xf32>
    %274 = vector.extract_strided_slice %257 {offsets = [9, 0], sizes = [16, 128], strides = [1, 1]} : vector<26x128xf32> to vector<16x128xf32>
    %275 = vector.broadcast %273 : vector<1x128xf32> to vector<16x128xf32>
    %276 = arith.mulf %274, %275 : vector<16x128xf32>
    %277 = arith.addf %272, %276 : vector<16x128xf32>
    %278 = vector.extract_strided_slice %3 {offsets = [36, 0], sizes = [1, 128], strides = [1, 1]} : vector<46x128xf32> to vector<1x128xf32>
    %279 = vector.extract_strided_slice %257 {offsets = [10, 0], sizes = [16, 128], strides = [1, 1]} : vector<26x128xf32> to vector<16x128xf32>
    %280 = vector.broadcast %278 : vector<1x128xf32> to vector<16x128xf32>
    %281 = arith.mulf %279, %280 : vector<16x128xf32>
    %282 = arith.addf %277, %281 : vector<16x128xf32>
    %283 = vector.extract_strided_slice %255 {offsets = [0, 120], sizes = [26, 128], strides = [1, 1]} : vector<26x272xf32> to vector<26x128xf32>
    %284 = vector.extract_strided_slice %3 {offsets = [17, 0], sizes = [1, 128], strides = [1, 1]} : vector<46x128xf32> to vector<1x128xf32>
    %285 = vector.extract_strided_slice %283 {offsets = [6, 0], sizes = [16, 128], strides = [1, 1]} : vector<26x128xf32> to vector<16x128xf32>
    %286 = vector.broadcast %284 : vector<1x128xf32> to vector<16x128xf32>
    %287 = arith.mulf %285, %286 : vector<16x128xf32>
    %288 = arith.addf %282, %287 : vector<16x128xf32>
    %289 = vector.extract_strided_slice %3 {offsets = [22, 0], sizes = [1, 128], strides = [1, 1]} : vector<46x128xf32> to vector<1x128xf32>
    %290 = vector.extract_strided_slice %283 {offsets = [7, 0], sizes = [16, 128], strides = [1, 1]} : vector<26x128xf32> to vector<16x128xf32>
    %291 = vector.broadcast %289 : vector<1x128xf32> to vector<16x128xf32>
    %292 = arith.mulf %290, %291 : vector<16x128xf32>
    %293 = arith.addf %288, %292 : vector<16x128xf32>
    %294 = vector.extract_strided_slice %3 {offsets = [27, 0], sizes = [1, 128], strides = [1, 1]} : vector<46x128xf32> to vector<1x128xf32>
    %295 = vector.extract_strided_slice %283 {offsets = [8, 0], sizes = [16, 128], strides = [1, 1]} : vector<26x128xf32> to vector<16x128xf32>
    %296 = vector.broadcast %294 : vector<1x128xf32> to vector<16x128xf32>
    %297 = arith.mulf %295, %296 : vector<16x128xf32>
    %298 = arith.addf %293, %297 : vector<16x128xf32>
    %299 = vector.extract_strided_slice %3 {offsets = [32, 0], sizes = [1, 128], strides = [1, 1]} : vector<46x128xf32> to vector<1x128xf32>
    %300 = vector.extract_strided_slice %283 {offsets = [9, 0], sizes = [16, 128], strides = [1, 1]} : vector<26x128xf32> to vector<16x128xf32>
    %301 = vector.broadcast %299 : vector<1x128xf32> to vector<16x128xf32>
    %302 = arith.mulf %300, %301 : vector<16x128xf32>
    %303 = arith.addf %298, %302 : vector<16x128xf32>
    %304 = vector.extract_strided_slice %3 {offsets = [37, 0], sizes = [1, 128], strides = [1, 1]} : vector<46x128xf32> to vector<1x128xf32>
    %305 = vector.extract_strided_slice %283 {offsets = [10, 0], sizes = [16, 128], strides = [1, 1]} : vector<26x128xf32> to vector<16x128xf32>
    %306 = vector.broadcast %304 : vector<1x128xf32> to vector<16x128xf32>
    %307 = arith.mulf %305, %306 : vector<16x128xf32>
    %308 = arith.addf %303, %307 : vector<16x128xf32>
    %309 = vector.extract_strided_slice %255 {offsets = [0, 128], sizes = [26, 128], strides = [1, 1]} : vector<26x272xf32> to vector<26x128xf32>
    %310 = vector.extract_strided_slice %3 {offsets = [18, 0], sizes = [1, 128], strides = [1, 1]} : vector<46x128xf32> to vector<1x128xf32>
    %311 = vector.extract_strided_slice %309 {offsets = [6, 0], sizes = [16, 128], strides = [1, 1]} : vector<26x128xf32> to vector<16x128xf32>
    %312 = vector.broadcast %310 : vector<1x128xf32> to vector<16x128xf32>
    %313 = arith.mulf %311, %312 : vector<16x128xf32>
    %314 = arith.addf %308, %313 : vector<16x128xf32>
    %315 = vector.extract_strided_slice %3 {offsets = [23, 0], sizes = [1, 128], strides = [1, 1]} : vector<46x128xf32> to vector<1x128xf32>
    %316 = vector.extract_strided_slice %309 {offsets = [7, 0], sizes = [16, 128], strides = [1, 1]} : vector<26x128xf32> to vector<16x128xf32>
    %317 = vector.broadcast %315 : vector<1x128xf32> to vector<16x128xf32>
    %318 = arith.mulf %316, %317 : vector<16x128xf32>
    %319 = arith.addf %314, %318 : vector<16x128xf32>
    %320 = vector.extract_strided_slice %3 {offsets = [28, 0], sizes = [1, 128], strides = [1, 1]} : vector<46x128xf32> to vector<1x128xf32>
    %321 = vector.extract_strided_slice %309 {offsets = [8, 0], sizes = [16, 128], strides = [1, 1]} : vector<26x128xf32> to vector<16x128xf32>
    %322 = vector.broadcast %320 : vector<1x128xf32> to vector<16x128xf32>
    %323 = arith.mulf %321, %322 : vector<16x128xf32>
    %324 = arith.addf %319, %323 : vector<16x128xf32>
    %325 = vector.extract_strided_slice %3 {offsets = [33, 0], sizes = [1, 128], strides = [1, 1]} : vector<46x128xf32> to vector<1x128xf32>
    %326 = vector.extract_strided_slice %309 {offsets = [9, 0], sizes = [16, 128], strides = [1, 1]} : vector<26x128xf32> to vector<16x128xf32>
    %327 = vector.broadcast %325 : vector<1x128xf32> to vector<16x128xf32>
    %328 = arith.mulf %326, %327 : vector<16x128xf32>
    %329 = arith.addf %324, %328 : vector<16x128xf32>
    %330 = vector.extract_strided_slice %3 {offsets = [38, 0], sizes = [1, 128], strides = [1, 1]} : vector<46x128xf32> to vector<1x128xf32>
    %331 = vector.extract_strided_slice %309 {offsets = [10, 0], sizes = [16, 128], strides = [1, 1]} : vector<26x128xf32> to vector<16x128xf32>
    %332 = vector.broadcast %330 : vector<1x128xf32> to vector<16x128xf32>
    %333 = arith.mulf %331, %332 : vector<16x128xf32>
    %334 = arith.addf %329, %333 : vector<16x128xf32>
    %335 = vector.extract_strided_slice %255 {offsets = [0, 136], sizes = [26, 128], strides = [1, 1]} : vector<26x272xf32> to vector<26x128xf32>
    %336 = vector.extract_strided_slice %3 {offsets = [19, 0], sizes = [1, 128], strides = [1, 1]} : vector<46x128xf32> to vector<1x128xf32>
    %337 = vector.extract_strided_slice %335 {offsets = [6, 0], sizes = [16, 128], strides = [1, 1]} : vector<26x128xf32> to vector<16x128xf32>
    %338 = vector.broadcast %336 : vector<1x128xf32> to vector<16x128xf32>
    %339 = arith.mulf %337, %338 : vector<16x128xf32>
    %340 = arith.addf %334, %339 : vector<16x128xf32>
    %341 = vector.extract_strided_slice %3 {offsets = [24, 0], sizes = [1, 128], strides = [1, 1]} : vector<46x128xf32> to vector<1x128xf32>
    %342 = vector.extract_strided_slice %335 {offsets = [7, 0], sizes = [16, 128], strides = [1, 1]} : vector<26x128xf32> to vector<16x128xf32>
    %343 = vector.broadcast %341 : vector<1x128xf32> to vector<16x128xf32>
    %344 = arith.mulf %342, %343 : vector<16x128xf32>
    %345 = arith.addf %340, %344 : vector<16x128xf32>
    %346 = vector.extract_strided_slice %3 {offsets = [29, 0], sizes = [1, 128], strides = [1, 1]} : vector<46x128xf32> to vector<1x128xf32>
    %347 = vector.extract_strided_slice %335 {offsets = [8, 0], sizes = [16, 128], strides = [1, 1]} : vector<26x128xf32> to vector<16x128xf32>
    %348 = vector.broadcast %346 : vector<1x128xf32> to vector<16x128xf32>
    %349 = arith.mulf %347, %348 : vector<16x128xf32>
    %350 = arith.addf %345, %349 : vector<16x128xf32>
    %351 = vector.extract_strided_slice %3 {offsets = [34, 0], sizes = [1, 128], strides = [1, 1]} : vector<46x128xf32> to vector<1x128xf32>
    %352 = vector.extract_strided_slice %335 {offsets = [9, 0], sizes = [16, 128], strides = [1, 1]} : vector<26x128xf32> to vector<16x128xf32>
    %353 = vector.broadcast %351 : vector<1x128xf32> to vector<16x128xf32>
    %354 = arith.mulf %352, %353 : vector<16x128xf32>
    %355 = arith.addf %350, %354 : vector<16x128xf32>
    %356 = vector.extract_strided_slice %3 {offsets = [39, 0], sizes = [1, 128], strides = [1, 1]} : vector<46x128xf32> to vector<1x128xf32>
    %357 = vector.extract_strided_slice %335 {offsets = [10, 0], sizes = [16, 128], strides = [1, 1]} : vector<26x128xf32> to vector<16x128xf32>
    %358 = vector.broadcast %356 : vector<1x128xf32> to vector<16x128xf32>
    %359 = arith.mulf %357, %358 : vector<16x128xf32>
    %360 = arith.addf %355, %359 : vector<16x128xf32>
    %361 = vector.extract_strided_slice %255 {offsets = [0, 144], sizes = [26, 128], strides = [1, 1]} : vector<26x272xf32> to vector<26x128xf32>
    %362 = vector.extract_strided_slice %3 {offsets = [20, 0], sizes = [1, 128], strides = [1, 1]} : vector<46x128xf32> to vector<1x128xf32>
    %363 = vector.extract_strided_slice %361 {offsets = [6, 0], sizes = [16, 128], strides = [1, 1]} : vector<26x128xf32> to vector<16x128xf32>
    %364 = vector.broadcast %362 : vector<1x128xf32> to vector<16x128xf32>
    %365 = arith.mulf %363, %364 : vector<16x128xf32>
    %366 = arith.addf %360, %365 : vector<16x128xf32>
    %367 = vector.extract_strided_slice %3 {offsets = [25, 0], sizes = [1, 128], strides = [1, 1]} : vector<46x128xf32> to vector<1x128xf32>
    %368 = vector.extract_strided_slice %361 {offsets = [7, 0], sizes = [16, 128], strides = [1, 1]} : vector<26x128xf32> to vector<16x128xf32>
    %369 = vector.broadcast %367 : vector<1x128xf32> to vector<16x128xf32>
    %370 = arith.mulf %368, %369 : vector<16x128xf32>
    %371 = arith.addf %366, %370 : vector<16x128xf32>
    %372 = vector.extract_strided_slice %3 {offsets = [30, 0], sizes = [1, 128], strides = [1, 1]} : vector<46x128xf32> to vector<1x128xf32>
    %373 = vector.extract_strided_slice %361 {offsets = [8, 0], sizes = [16, 128], strides = [1, 1]} : vector<26x128xf32> to vector<16x128xf32>
    %374 = vector.broadcast %372 : vector<1x128xf32> to vector<16x128xf32>
    %375 = arith.mulf %373, %374 : vector<16x128xf32>
    %376 = arith.addf %371, %375 : vector<16x128xf32>
    %377 = vector.extract_strided_slice %3 {offsets = [35, 0], sizes = [1, 128], strides = [1, 1]} : vector<46x128xf32> to vector<1x128xf32>
    %378 = vector.extract_strided_slice %361 {offsets = [9, 0], sizes = [16, 128], strides = [1, 1]} : vector<26x128xf32> to vector<16x128xf32>
    %379 = vector.broadcast %377 : vector<1x128xf32> to vector<16x128xf32>
    %380 = arith.mulf %378, %379 : vector<16x128xf32>
    %381 = arith.addf %376, %380 : vector<16x128xf32>
    %382 = vector.extract_strided_slice %3 {offsets = [40, 0], sizes = [1, 128], strides = [1, 1]} : vector<46x128xf32> to vector<1x128xf32>
    %383 = vector.extract_strided_slice %361 {offsets = [10, 0], sizes = [16, 128], strides = [1, 1]} : vector<26x128xf32> to vector<16x128xf32>
    %384 = vector.broadcast %382 : vector<1x128xf32> to vector<16x128xf32>
    %385 = arith.mulf %383, %384 : vector<16x128xf32>
    %386 = arith.addf %381, %385 : vector<16x128xf32>
    %387 = vector.extract_strided_slice %3 {offsets = [45, 0], sizes = [1, 128], strides = [1, 1]} : vector<46x128xf32> to vector<1x128xf32>
    %388 = vector.broadcast %387 : vector<1x128xf32> to vector<16x128xf32>
    %389 = arith.addf %386, %388 : vector<16x128xf32>
    %cst_37 = arith.constant 0.000000e+00 : f32
    %cst_38 = arith.constant 6.000000e+00 : f32
    %390 = vector.broadcast %cst_37 : f32 to vector<16x128xf32>
    %391 = arith.maximumf %390, %389 : vector<16x128xf32>
    %392 = vector.broadcast %cst_38 : f32 to vector<16x128xf32>
    %393 = arith.minimumf %392, %391 : vector<16x128xf32>
    %394 = tpu.concatenate %46, %61, %76, %91 in 0 : vector<16x128xf32>, vector<16x128xf32>, vector<16x128xf32>, vector<16x128xf32> -> vector<64x128xf32>
    %395 = arith.truncf %394 : vector<64x128xf32> to vector<64x128xbf16>
    %c0_39 = arith.constant 0 : index
    %c0_40 = arith.constant 0 : index
    %c0_41 = arith.constant 0 : index
    %396 = vector.load %arg3[%c0_39, %c0_40, %c0_41] : memref<2x128x128xbf16, #tpu.memory_space<vmem>>, vector<1x128x128xbf16>
    %397 = vector.shape_cast %396 : vector<1x128x128xbf16> to vector<128x128xbf16>
    %cst_42 = arith.constant dense<0.000000e+00> : vector<64x128xf32>
    %398 = tpu.matmul %395, %397, %cst_42 {dimension_numbers = #tpu.dot_dimension_numbers<[1], [0], [0], [1], [0, 0, 1, 1], [], []>} : vector<64x128xbf16>, vector<128x128xbf16>, vector<64x128xf32> -> vector<64x128xf32>
    %399 = vector.extract_strided_slice %3 {offsets = [42, 0], sizes = [1, 128], strides = [1, 1]} : vector<46x128xf32> to vector<1x128xf32>
    %400 = vector.broadcast %399 : vector<1x128xf32> to vector<64x128xf32>
    %401 = arith.addf %398, %400 : vector<64x128xf32>
    %cst_43 = arith.constant 0.000000e+00 : f32
    %cst_44 = arith.constant 6.000000e+00 : f32
    %402 = vector.broadcast %cst_43 : f32 to vector<64x128xf32>
    %403 = arith.maximumf %402, %401 : vector<64x128xf32>
    %404 = vector.broadcast %cst_44 : f32 to vector<64x128xf32>
    %405 = arith.minimumf %404, %403 : vector<64x128xf32>
    %c0_45 = arith.constant 0 : index
    %c0_46 = arith.constant 0 : index
    %406 = vector.load %arg4[%c0_45, %c0_46] : memref<32x16xf32, #tpu.memory_space<vmem>>, vector<32x16xf32>
    %cst_47 = arith.constant dense<0.000000e+00> : vector<32x128xf32>
    %407 = tpu.matmul %406, %393, %cst_47 {dimension_numbers = #tpu.dot_dimension_numbers<[1], [0], [0], [1], [0, 0, 1, 1], [], []>} : vector<32x16xf32>, vector<16x128xf32>, vector<32x128xf32> -> vector<32x128xf32>
    %408 = arith.truncf %407 : vector<32x128xf32> to vector<32x128xbf16>
    %c0_48 = arith.constant 0 : index
    %c0_49 = arith.constant 0 : index
    %c0_50 = arith.constant 0 : index
    %409 = vector.load %arg5[%c0_48, %c0_49, %c0_50] : memref<2x128x128xbf16, #tpu.memory_space<vmem>>, vector<1x128x128xbf16>
    %410 = vector.shape_cast %409 : vector<1x128x128xbf16> to vector<128x128xbf16>
    %cst_51 = arith.constant dense<0.000000e+00> : vector<32x128xf32>
    %411 = tpu.matmul %408, %410, %cst_51 {dimension_numbers = #tpu.dot_dimension_numbers<[1], [0], [0], [1], [0, 0, 1, 1], [], []>} : vector<32x128xbf16>, vector<128x128xbf16>, vector<32x128xf32> -> vector<32x128xf32>
    %c1_52 = arith.constant 1 : index
    %c0_53 = arith.constant 0 : index
    %c0_54 = arith.constant 0 : index
    %412 = vector.load %arg5[%c1_52, %c0_53, %c0_54] : memref<2x128x128xbf16, #tpu.memory_space<vmem>>, vector<1x128x128xbf16>
    %413 = vector.shape_cast %412 : vector<1x128x128xbf16> to vector<128x128xbf16>
    %cst_55 = arith.constant dense<0.000000e+00> : vector<32x128xf32>
    %414 = tpu.matmul %408, %413, %cst_55 {dimension_numbers = #tpu.dot_dimension_numbers<[1], [0], [0], [1], [0, 0, 1, 1], [], []>} : vector<32x128xbf16>, vector<128x128xbf16>, vector<32x128xf32> -> vector<32x128xf32>
    %415 = vector.extract_strided_slice %405 {offsets = [0, 0], sizes = [16, 128], strides = [1, 1]} : vector<64x128xf32> to vector<16x128xf32>
    %416 = vector.extract_strided_slice %411 {offsets = [0, 0], sizes = [16, 128], strides = [1, 1]} : vector<32x128xf32> to vector<16x128xf32>
    %417 = arith.addf %415, %416 : vector<16x128xf32>
    %c0_56 = arith.constant 0 : index
    %c0_57 = arith.constant 0 : index
    %c0_58 = arith.constant 0 : index
    %c0_59 = arith.constant 0 : index
    %c0_60 = arith.constant 0 : index
    %418 = vector.load %arg8[%c0_56, %c0_57, %c0_58, %c0_59, %c0_60] : memref<1x2x2x16x128xf32, #tpu.memory_space<vmem>>, vector<1x1x1x16x128xf32>
    %419 = vector.shape_cast %418 : vector<1x1x1x16x128xf32> to vector<16x128xf32>
    %420 = vector.shape_cast %417 : vector<16x128xf32> to vector<1x1x1x16x128xf32>
    tpu.vector_store %arg8[%c0_56, %c0_57, %c0_58, %c0_59, %c0_60], %420 {strides = array<i32>} : memref<1x2x2x16x128xf32, #tpu.memory_space<vmem>>, vector<1x1x1x16x128xf32>,
    %421 = vector.extract_strided_slice %405 {offsets = [16, 0], sizes = [16, 128], strides = [1, 1]} : vector<64x128xf32> to vector<16x128xf32>
    %422 = vector.extract_strided_slice %414 {offsets = [0, 0], sizes = [16, 128], strides = [1, 1]} : vector<32x128xf32> to vector<16x128xf32>
    %423 = arith.addf %421, %422 : vector<16x128xf32>
    %c0_61 = arith.constant 0 : index
    %c0_62 = arith.constant 0 : index
    %c1_63 = arith.constant 1 : index
    %c0_64 = arith.constant 0 : index
    %c0_65 = arith.constant 0 : index
    %424 = vector.load %arg8[%c0_61, %c0_62, %c1_63, %c0_64, %c0_65] : memref<1x2x2x16x128xf32, #tpu.memory_space<vmem>>, vector<1x1x1x16x128xf32>
    %425 = vector.shape_cast %424 : vector<1x1x1x16x128xf32> to vector<16x128xf32>
    %426 = vector.shape_cast %423 : vector<16x128xf32> to vector<1x1x1x16x128xf32>
    tpu.vector_store %arg8[%c0_61, %c0_62, %c1_63, %c0_64, %c0_65], %426 {strides = array<i32>} : memref<1x2x2x16x128xf32, #tpu.memory_space<vmem>>, vector<1x1x1x16x128xf32>,
    %427 = vector.extract_strided_slice %405 {offsets = [32, 0], sizes = [16, 128], strides = [1, 1]} : vector<64x128xf32> to vector<16x128xf32>
    %428 = vector.extract_strided_slice %411 {offsets = [16, 0], sizes = [16, 128], strides = [1, 1]} : vector<32x128xf32> to vector<16x128xf32>
    %429 = arith.addf %427, %428 : vector<16x128xf32>
    %c0_66 = arith.constant 0 : index
    %c1_67 = arith.constant 1 : index
    %c0_68 = arith.constant 0 : index
    %c0_69 = arith.constant 0 : index
    %c0_70 = arith.constant 0 : index
    %430 = vector.load %arg8[%c0_66, %c1_67, %c0_68, %c0_69, %c0_70] : memref<1x2x2x16x128xf32, #tpu.memory_space<vmem>>, vector<1x1x1x16x128xf32>
    %431 = vector.shape_cast %430 : vector<1x1x1x16x128xf32> to vector<16x128xf32>
    %432 = vector.shape_cast %429 : vector<16x128xf32> to vector<1x1x1x16x128xf32>
    tpu.vector_store %arg8[%c0_66, %c1_67, %c0_68, %c0_69, %c0_70], %432 {strides = array<i32>} : memref<1x2x2x16x128xf32, #tpu.memory_space<vmem>>, vector<1x1x1x16x128xf32>,
    %433 = vector.extract_strided_slice %405 {offsets = [48, 0], sizes = [16, 128], strides = [1, 1]} : vector<64x128xf32> to vector<16x128xf32>
    %434 = vector.extract_strided_slice %414 {offsets = [16, 0], sizes = [16, 128], strides = [1, 1]} : vector<32x128xf32> to vector<16x128xf32>
    %435 = arith.addf %433, %434 : vector<16x128xf32>
    %c0_71 = arith.constant 0 : index
    %c1_72 = arith.constant 1 : index
    %c1_73 = arith.constant 1 : index
    %c0_74 = arith.constant 0 : index
    %c0_75 = arith.constant 0 : index
    %436 = vector.load %arg8[%c0_71, %c1_72, %c1_73, %c0_74, %c0_75] : memref<1x2x2x16x128xf32, #tpu.memory_space<vmem>>, vector<1x1x1x16x128xf32>
    %437 = vector.shape_cast %436 : vector<1x1x1x16x128xf32> to vector<16x128xf32>
    %438 = vector.shape_cast %435 : vector<16x128xf32> to vector<1x1x1x16x128xf32>
    tpu.vector_store %arg8[%c0_71, %c1_72, %c1_73, %c0_74, %c0_75], %438 {strides = array<i32>} : memref<1x2x2x16x128xf32, #tpu.memory_space<vmem>>, vector<1x1x1x16x128xf32>,
    return
  }
  func.func @transform_0(%arg0: i32) -> (i32, i32, i32) {
    %c0_i32 = arith.constant 0 : i32
    %c0_i32_0 = arith.constant 0 : i32
    %c0_i32_1 = arith.constant 0 : i32
    return %arg0, %c0_i32, %c0_i32_0 : i32, i32, i32
  }
  func.func @transform_1(%arg0: i32) -> (i32, i32, i32) {
    %c0_i32 = arith.constant 0 : i32
    %c0_i32_0 = arith.constant 0 : i32
    %c0_i32_1 = arith.constant 0 : i32
    %c0_i32_2 = arith.constant 0 : i32
    return %c0_i32, %c0_i32_0, %c0_i32_1 : i32, i32, i32
  }
  func.func @transform_2(%arg0: i32) -> (i32, i32, i32) {
    %c0_i32 = arith.constant 0 : i32
    %c0_i32_0 = arith.constant 0 : i32
    %c0_i32_1 = arith.constant 0 : i32
    %c0_i32_2 = arith.constant 0 : i32
    return %c0_i32, %c0_i32_0, %c0_i32_1 : i32, i32, i32
  }
  func.func @transform_3(%arg0: i32) -> (i32, i32) {
    %c0_i32 = arith.constant 0 : i32
    %c0_i32_0 = arith.constant 0 : i32
    %c0_i32_1 = arith.constant 0 : i32
    return %c0_i32, %c0_i32_0 : i32, i32
  }
  func.func @transform_4(%arg0: i32) -> (i32, i32, i32) {
    %c0_i32 = arith.constant 0 : i32
    %c0_i32_0 = arith.constant 0 : i32
    %c0_i32_1 = arith.constant 0 : i32
    %c0_i32_2 = arith.constant 0 : i32
    return %c0_i32, %c0_i32_0, %c0_i32_1 : i32, i32, i32
  }
  func.func @transform_5(%arg0: i32) -> (i32, i32) {
    %c0_i32 = arith.constant 0 : i32
    %c0_i32_0 = arith.constant 0 : i32
    %c0_i32_1 = arith.constant 0 : i32
    return %c0_i32, %c0_i32_0 : i32, i32
  }
  func.func @transform_6(%arg0: i32) -> (i32, i32) {
    %c0_i32 = arith.constant 0 : i32
    %c0_i32_0 = arith.constant 0 : i32
    %c0_i32_1 = arith.constant 0 : i32
    return %c0_i32, %c0_i32_0 : i32, i32
  }
  func.func @transform_7(%arg0: i32) -> (i32, i32, i32, i32, i32) {
    %c0_i32 = arith.constant 0 : i32
    %c0_i32_0 = arith.constant 0 : i32
    %c0_i32_1 = arith.constant 0 : i32
    %c0_i32_2 = arith.constant 0 : i32
    %c0_i32_3 = arith.constant 0 : i32
    return %arg0, %c0_i32, %c0_i32_0, %c0_i32_1, %c0_i32_2 : i32, i32, i32, i32, i32
  }
}

</mosaic_0001>

<bundles_post_ra>
// kernel: tile.53
= control target key start
LH: loop header
LB: loop body
LE: loop exit
PB: predicated region body
PF: predicated region fallthrough
CT: control target
= control target key end

     0   :  { %s28_s0 = inlined_call_operand.vmem [shape: f32[8], index: 0, kind: input, shape index: {}]   ;;  %s29_s1 = inlined_call_operand.vmem [shape: f32[16,8], index: 1, kind: output, shape index: {}]  }
   0x1   :  { %v4_v0 = vld [vmem:[%s28_s0] ss:$0 sm:$0xff] }
   0x2   :  { %5 = vst [vmem:[%s29_s1] sm:$0xff] %v4_v0  ;;  %8 = vst [vmem:[%s29_s1 + $0x8] sm:$0xff] %v4_v0 }

// kernel: tile.68
= control target key start
LH: loop header
LB: loop body
LE: loop exit
PB: predicated region body
PF: predicated region fallthrough
CT: control target
= control target key end

     0   :  { %s28_s0 = inlined_call_operand.vmem [shape: f32[4], index: 0, kind: input, shape index: {}]   ;;  %s29_s1 = inlined_call_operand.vmem [shape: f32[16,4], index: 1, kind: output, shape index: {}]  }
   0x1   :  { %v4_v0 = vld [vmem:[%s28_s0] ss:$0 sm:$0xff] }
   0x2   :  { %5 = vst [vmem:[%s29_s1] sm:$0xff] %v4_v0  ;;  %8 = vst [vmem:[%s29_s1 + $0x8] sm:$0xff] %v4_v0 }

// kernel: tile.69
= control target key start
LH: loop header
LB: loop body
LE: loop exit
PB: predicated region body
PF: predicated region fallthrough
CT: control target
= control target key end

     0   :  { %s133_s10 = smov 60   ;;  %s134_s11 = smov 52   ;;  %vm3_vm0 = vcmask 31744   ;;  %vm9_vm1 = vcmask 523744   ;;  %vm15_vm2 = vcmask 490944   ;;  %vm21_vm3 = vcmask 458144   ;;  %s209_s0 = inlined_call_operand.vmem [shape: f32[16,4], index: 0, kind: input, shape index: {}]   ;;  %s210_s1 = inlined_call_operand.vmem [shape: f32[1,64], index: 1, kind: output, shape index: {}]  }
   0x1   :  { %v103_v0 = vld [vmem:[%s209_s0 + $0xf] sm:$0x1]   ;;  %v105_v1 = vld [vmem:[%s209_s0 + $0xd] sm:$0x1]   ;;  %v104_v2 = vld [vmem:[%s209_s0 + $0xe] sm:$0x1]  }
   0x2   :  { %7 = vrot.lane.b32.xlu0 %v103_v0, %s133_s10  ;;  %19 = vrot.lane.b32.xlu1 %v105_v1, %s134_s11  ;;  %v106_v3 = vld [vmem:[%s209_s0 + $0xc] sm:$0x1]   ;;  %s135_s16 = smov 56   ;;  %s136_s17 = smov 48   ;;  %v107_v4 = vld [vmem:[%s209_s0 + $0xb] sm:$0x1]  }
   0x3   :  { %v108_v5 = vld [vmem:[%s209_s0 + $0xa] sm:$0x1]   ;;  %v2_v6 = vld [vmem:[%s209_s0] sm:$0x1]   ;;  %s137_s24 = smov 44   ;;  %s138_s25 = smov 40  }
   0x4   :  { %4 = vst.msk [vmem:[#allocation0] sm:$0x1] %vm3_vm0, %v2_v6   ;;  %v109_v7 = vld [vmem:[%s209_s0 + $0x9] sm:$0x1]   ;;  %v110_v8 = vld [vmem:[%s209_s0 + $0x8] sm:$0x1]  }
   0x5   :  { %s139_s30 = smov 36   ;;  %s140_s2 = smov 32   ;;  %v111_v9 = vld [vmem:[%s209_s0 + $0x7] sm:$0x1]   ;;  %v112_v10 = vld [vmem:[%s209_s0 + $0x6] sm:$0x1]  }
   0x6   :  { %13 = vrot.lane.b32.xlu0 %v104_v2, %s135_s16  ;;  %25 = vrot.lane.b32.xlu1 %v106_v3, %s136_s17  ;;  %s141_s7 = smov 28   ;;  %s142_s8 = smov 24   ;;  %v113_v11 = vld [vmem:[%s209_s0 + $0x5] sm:$0x1]   ;;  %v114_v12 = vld [vmem:[%s209_s0 + $0x4] sm:$0x1]  }
   0x7   :  { %s143_s13 = smov 20   ;;  %s144_s14 = smov 16   ;;  %v115_v13 = vld [vmem:[%s209_s0 + $0x3] sm:$0x1]   ;;  %v116_v14 = vld [vmem:[%s209_s0 + $0x2] sm:$0x1]  }
   0x8   :  { %s145_s19 = smov 12   ;;  %s146_s20 = smov 8   ;;  %v117_v15 = vld [vmem:[%s209_s0 + $0x1] sm:$0x1]   ;;  %vm27_vm4 = vcmask 425344   ;;  %vm33_vm5 = vcmask 392544  }
   0x9   :  { %s147_s0 = smov 4   ;;  %vm39_vm6 = vcmask 359744   ;;  %vm45_vm7 = vcmask 326944   ;;  %vm51_vm8 = vcmask 294144   ;;  %vm57_vm9 = vcmask 261344  }
   0xa   :  { %31 = vrot.lane.b32.xlu0 %v107_v4, %s137_s24  ;;  %37 = vrot.lane.b32.xlu1 %v108_v5, %s138_s25  ;;  %vm63_vm10 = vcmask 228544   ;;  %vm69_vm11 = vcmask 195744   ;;  %vm75_vm12 = vcmask 162944   ;;  %vm81_vm13 = vcmask 130144  }
   0xb   :  { %vm87_vm14 = vcmask 97344   ;;  %vm93_vm15 = vcmask 64544  }
   0xe   :  { %43 = vrot.lane.b32.xlu0 %v109_v7, %s139_s30  ;;  %49 = vrot.lane.b32.xlu1 %v110_v8, %s140_s2 }
  0x12   :  { %55 = vrot.lane.b32.xlu0 %v111_v9, %s141_s7  ;;  %61 = vrot.lane.b32.xlu1 %v112_v10, %s142_s8 }
  0x16   :  { %67 = vrot.lane.b32.xlu0 %v113_v11, %s143_s13  ;;  %73 = vrot.lane.b32.xlu1 %v114_v12, %s144_s14 }
  0x1a   :  { %79 = vrot.lane.b32.xlu0 %v115_v13, %s145_s19  ;;  %85 = vrot.lane.b32.xlu1 %v116_v14, %s146_s20 }
  0x1e   :  { %91 = vrot.lane.b32.xlu0 %v117_v15, %s147_s0 }
  0x74   :  { %v8_v16 = vpop.permute.xlu0 %7   ;;  %v20_v17 = vpop.permute.xlu1 %19  }
  0x75   :  { %10 = vst.msk [vmem:[#allocation0] sm:$0x1] %vm9_vm1, %v8_v16  }
  0x78   :  { %v14_v18 = vpop.permute.xlu0 %13   ;;  %v26_v19 = vpop.permute.xlu1 %25  }
  0x79   :  { %16 = vst.msk [vmem:[#allocation0] sm:$0x1] %vm15_vm2, %v14_v18  }
  0x7a   :  { %22 = vst.msk [vmem:[#allocation0] sm:$0x1] %vm21_vm3, %v20_v17  }
  0x7b   :  { %28 = vst.msk [vmem:[#allocation0] sm:$0x1] %vm27_vm4, %v26_v19  }
  0x7c   :  { %v32_v20 = vpop.permute.xlu0 %31   ;;  %v38_v21 = vpop.permute.xlu1 %37  }
  0x7d   :  { %34 = vst.msk [vmem:[#allocation0] sm:$0x1] %vm33_vm5, %v32_v20  }
  0x7e   :  { %40 = vst.msk [vmem:[#allocation0] sm:$0x1] %vm39_vm6, %v38_v21  }
  0x80   :  { %v44_v22 = vpop.permute.xlu0 %43   ;;  %v50_v23 = vpop.permute.xlu1 %49  }
  0x81   :  { %46 = vst.msk [vmem:[#allocation0] sm:$0x1] %vm45_vm7, %v44_v22  }
  0x82   :  { %52 = vst.msk [vmem:[#allocation0] sm:$0x1] %vm51_vm8, %v50_v23  }
  0x84   :  { %v56_v24 = vpop.permute.xlu0 %55   ;;  %v62_v25 = vpop.permute.xlu1 %61  }
  0x85   :  { %58 = vst.msk [vmem:[#allocation0] sm:$0x1] %vm57_vm9, %v56_v24  }
  0x86   :  { %64 = vst.msk [vmem:[#allocation0] sm:$0x1] %vm63_vm10, %v62_v25  }
  0x88   :  { %v68_v26 = vpop.permute.xlu0 %67   ;;  %v74_v27 = vpop.permute.xlu1 %73  }
  0x89   :  { %70 = vst.msk [vmem:[#allocation0] sm:$0x1] %vm69_vm11, %v68_v26  }
  0x8a   :  { %76 = vst.msk [vmem:[#allocation0] sm:$0x1] %vm75_vm12, %v74_v27  }
  0x8c   :  { %v80_v28 = vpop.permute.xlu0 %79   ;;  %v86_v29 = vpop.permute.xlu1 %85  }
  0x8d   :  { %82 = vst.msk [vmem:[#allocation0] sm:$0x1] %vm81_vm13, %v80_v28  }
  0x8e   :  { %88 = vst.msk [vmem:[#allocation0] sm:$0x1] %vm87_vm14, %v86_v29  }
  0x90   :  { %v92_v30 = vpop.permute.xlu0 %91  }
  0x91   :  { %94 = vst.msk [vmem:[#allocation0] sm:$0x1] %vm93_vm15, %v92_v30  }
  0x98   :  { %v99_v31 = vld [vmem:[#allocation0] sm:$0x1] }
  0x99   :  { %102 = vst [vmem:[%s210_s1] sm:$0x1] %v99_v31 }

// kernel: tile.54
= control target key start
LH: loop header
LB: loop body
LE: loop exit
PB: predicated region body
PF: predicated region fallthrough
CT: control target
= control target key end

     0   :  { %s133_s10 = smov 120   ;;  %s134_s11 = smov 104   ;;  %vm3_vm0 = vcmask 64512   ;;  %vm9_vm1 = vcmask 1048512   ;;  %vm15_vm2 = vcmask 982912   ;;  %vm21_vm3 = vcmask 917312   ;;  %s209_s0 = inlined_call_operand.vmem [shape: f32[16,8], index: 0, kind: input, shape index: {}]   ;;  %s210_s1 = inlined_call_operand.vmem [shape: f32[1,128], index: 1, kind: output, shape index: {}]  }
   0x1   :  { %v103_v0 = vld [vmem:[%s209_s0 + $0xf] sm:$0x1]   ;;  %v105_v1 = vld [vmem:[%s209_s0 + $0xd] sm:$0x1]   ;;  %v104_v2 = vld [vmem:[%s209_s0 + $0xe] sm:$0x1]  }
   0x2   :  { %7 = vrot.lane.b32.xlu0 %v103_v0, %s133_s10  ;;  %19 = vrot.lane.b32.xlu1 %v105_v1, %s134_s11  ;;  %v106_v3 = vld [vmem:[%s209_s0 + $0xc] sm:$0x1]   ;;  %s135_s16 = smov 112   ;;  %s136_s17 = smov 96   ;;  %v107_v4 = vld [vmem:[%s209_s0 + $0xb] sm:$0x1]  }
   0x3   :  { %v108_v5 = vld [vmem:[%s209_s0 + $0xa] sm:$0x1]   ;;  %v2_v6 = vld [vmem:[%s209_s0] sm:$0x1]   ;;  %s137_s24 = smov 88   ;;  %s138_s25 = smov 80  }
   0x4   :  { %4 = vst.msk [vmem:[#allocation0] sm:$0x1] %vm3_vm0, %v2_v6   ;;  %v109_v7 = vld [vmem:[%s209_s0 + $0x9] sm:$0x1]   ;;  %v110_v8 = vld [vmem:[%s209_s0 + $0x8] sm:$0x1]  }
   0x5   :  { %s139_s30 = smov 72   ;;  %s140_s2 = smov 64   ;;  %v111_v9 = vld [vmem:[%s209_s0 + $0x7] sm:$0x1]   ;;  %v112_v10 = vld [vmem:[%s209_s0 + $0x6] sm:$0x1]  }
   0x6   :  { %13 = vrot.lane.b32.xlu0 %v104_v2, %s135_s16  ;;  %25 = vrot.lane.b32.xlu1 %v106_v3, %s136_s17  ;;  %s141_s7 = smov 56   ;;  %s142_s8 = smov 48   ;;  %v113_v11 = vld [vmem:[%s209_s0 + $0x5] sm:$0x1]   ;;  %v114_v12 = vld [vmem:[%s209_s0 + $0x4] sm:$0x1]  }
   0x7   :  { %s143_s13 = smov 40   ;;  %s144_s14 = smov 32   ;;  %v115_v13 = vld [vmem:[%s209_s0 + $0x3] sm:$0x1]   ;;  %v116_v14 = vld [vmem:[%s209_s0 + $0x2] sm:$0x1]  }
   0x8   :  { %s145_s19 = smov 24   ;;  %s146_s20 = smov 16   ;;  %v117_v15 = vld [vmem:[%s209_s0 + $0x1] sm:$0x1]   ;;  %vm27_vm4 = vcmask 851712   ;;  %vm33_vm5 = vcmask 786112  }
   0x9   :  { %s147_s0 = smov 8   ;;  %vm39_vm6 = vcmask 720512   ;;  %vm45_vm7 = vcmask 654912   ;;  %vm51_vm8 = vcmask 589312   ;;  %vm57_vm9 = vcmask 523712  }
   0xa   :  { %31 = vrot.lane.b32.xlu0 %v107_v4, %s137_s24  ;;  %37 = vrot.lane.b32.xlu1 %v108_v5, %s138_s25  ;;  %vm63_vm10 = vcmask 458112   ;;  %vm69_vm11 = vcmask 392512   ;;  %vm75_vm12 = vcmask 326912   ;;  %vm81_vm13 = vcmask 261312  }
   0xb   :  { %vm87_vm14 = vcmask 195712   ;;  %vm93_vm15 = vcmask 130112  }
   0xe   :  { %43 = vrot.lane.b32.xlu0 %v109_v7, %s139_s30  ;;  %49 = vrot.lane.b32.xlu1 %v110_v8, %s140_s2 }
  0x12   :  { %55 = vrot.lane.b32.xlu0 %v111_v9, %s141_s7  ;;  %61 = vrot.lane.b32.xlu1 %v112_v10, %s142_s8 }
  0x16   :  { %67 = vrot.lane.b32.xlu0 %v113_v11, %s143_s13  ;;  %73 = vrot.lane.b32.xlu1 %v114_v12, %s144_s14 }
  0x1a   :  { %79 = vrot.lane.b32.xlu0 %v115_v13, %s145_s19  ;;  %85 = vrot.lane.b32.xlu1 %v116_v14, %s146_s20 }
  0x1e   :  { %91 = vrot.lane.b32.xlu0 %v117_v15, %s147_s0 }
  0x74   :  { %v8_v16 = vpop.permute.xlu0 %7   ;;  %v20_v17 = vpop.permute.xlu1 %19  }
  0x75   :  { %10 = vst.msk [vmem:[#allocation0] sm:$0x1] %vm9_vm1, %v8_v16  }
  0x78   :  { %v14_v18 = vpop.permute.xlu0 %13   ;;  %v26_v19 = vpop.permute.xlu1 %25  }
  0x79   :  { %16 = vst.msk [vmem:[#allocation0] sm:$0x1] %vm15_vm2, %v14_v18  }
  0x7a   :  { %22 = vst.msk [vmem:[#allocation0] sm:$0x1] %vm21_vm3, %v20_v17  }
  0x7b   :  { %28 = vst.msk [vmem:[#allocation0] sm:$0x1] %vm27_vm4, %v26_v19  }
  0x7c   :  { %v32_v20 = vpop.permute.xlu0 %31   ;;  %v38_v21 = vpop.permute.xlu1 %37  }
  0x7d   :  { %34 = vst.msk [vmem:[#allocation0] sm:$0x1] %vm33_vm5, %v32_v20  }
  0x7e   :  { %40 = vst.msk [vmem:[#allocation0] sm:$0x1] %vm39_vm6, %v38_v21  }
  0x80   :  { %v44_v22 = vpop.permute.xlu0 %43   ;;  %v50_v23 = vpop.permute.xlu1 %49  }
  0x81   :  { %46 = vst.msk [vmem:[#allocation0] sm:$0x1] %vm45_vm7, %v44_v22  }
  0x82   :  { %52 = vst.msk [vmem:[#allocation0] sm:$0x1] %vm51_vm8, %v50_v23  }
  0x84   :  { %v56_v24 = vpop.permute.xlu0 %55   ;;  %v62_v25 = vpop.permute.xlu1 %61  }
  0x85   :  { %58 = vst.msk [vmem:[#allocation0] sm:$0x1] %vm57_vm9, %v56_v24  }
  0x86   :  { %64 = vst.msk [vmem:[#allocation0] sm:$0x1] %vm63_vm10, %v62_v25  }
  0x88   :  { %v68_v26 = vpop.permute.xlu0 %67   ;;  %v74_v27 = vpop.permute.xlu1 %73  }
  0x89   :  { %70 = vst.msk [vmem:[#allocation0] sm:$0x1] %vm69_vm11, %v68_v26  }
  0x8a   :  { %76 = vst.msk [vmem:[#allocation0] sm:$0x1] %vm75_vm12, %v74_v27  }
  0x8c   :  { %v80_v28 = vpop.permute.xlu0 %79   ;;  %v86_v29 = vpop.permute.xlu1 %85  }
  0x8d   :  { %82 = vst.msk [vmem:[#allocation0] sm:$0x1] %vm81_vm13, %v80_v28  }
  0x8e   :  { %88 = vst.msk [vmem:[#allocation0] sm:$0x1] %vm87_vm14, %v86_v29  }
  0x90   :  { %v92_v30 = vpop.permute.xlu0 %91  }
  0x91   :  { %94 = vst.msk [vmem:[#allocation0] sm:$0x1] %vm93_vm15, %v92_v30  }
  0x98   :  { %v99_v31 = vld [vmem:[#allocation0] sm:$0x1] }
  0x99   :  { %102 = vst [vmem:[%s210_s1] sm:$0x1] %v99_v31 }

// kernel: tile.49
= control target key start
LH: loop header
LB: loop body
LE: loop exit
PB: predicated region body
PF: predicated region fallthrough
CT: control target
= control target key end

     0   :  { %vm6_vm0 = vcmask 1043458   ;;  %vm10_vm1 = vcmask 1045508   ;;  %vm14_vm2 = vcmask 1047558   ;;  %s85_s6 = smov 3  ;;  %s88_s7 = smov 12  ;;  %vm16_vm3 = vcmask 64512   ;;  %s1472_s0 = inlined_call_operand.vmem [shape: f32[4,1,4,16,8], index: 0, kind: input, shape index: {}]   ;;  %s1473_s1 = inlined_call_operand.vmem [shape: f32[16,128], index: 1, kind: output, shape index: {}]  }
   0x1   :  { %v728_v0 = vld [vmem:[%s1472_s0 + $0xe] ss:$16 sm:%s85_s6]   ;;  %s93_s12 = smov 48  ;;  %s98_s13 = smov 192  ;;  %vm59_vm4 = vcmask 1048512   ;;  %vm104_vm5 = vcmask 982912  }
   0x2   :  { %v729_v1 = vld [vmem:[%s1472_s0 + $0xe] ss:$16 sm:%s88_s7]   ;;  %s40_s18 = smov 3  ;;  %s43_s21 = smov 12  ;;  %vm149_vm6 = vcmask 917312   ;;  %vm194_vm7 = vcmask 851712  }
   0x3   :  { %v91_v2 = vsel %vm6_vm0, %v729_v1, %v728_v0  ;;  %v730_v3 = vld [vmem:[%s1472_s0 + $0xe] ss:$16 sm:%s93_s12]   ;;  %v719_v6 = vld [vmem:[%s1472_s0 + $0xf] ss:$16 sm:%s40_s18]   ;;  %s48_s22 = smov 48  ;;  %s53_s27 = smov 192 }
   0x4   :  { %v731_v4 = vld [vmem:[%s1472_s0 + $0xe] ss:$16 sm:%s98_s13]   ;;  %v96_v5 = vsel %vm10_vm1, %v730_v3, %v91_v2  ;;  %v720_v8 = vld [vmem:[%s1472_s0 + $0xf] ss:$16 sm:%s43_s21]   ;;  %s869_s28 = smov 112   ;;  %s107_s2 = smov 3 }
   0x5   :  { %v101_v7 = vsel %vm14_vm2, %v731_v4, %v96_v5  ;;  %v721_v9 = vld [vmem:[%s1472_s0 + $0xf] ss:$16 sm:%s48_s22]   ;;  %v46_v10 = vsel %vm6_vm0, %v720_v8, %v719_v6  ;;  %s110_s3 = smov 12  ;;  %v732_v13 = vld [vmem:[%s1472_s0 + $0x8e] ss:$16 sm:%s107_s2]   ;;  %s115_s8 = smov 48 }
   0x6   :  { %102 = vrot.lane.b32.xlu1 %v101_v7, %s869_s28  ;;  %v722_v11 = vld [vmem:[%s1472_s0 + $0xf] ss:$16 sm:%s53_s27]   ;;  %v51_v12 = vsel %vm10_vm1, %v721_v9, %v46_v10  ;;  %s120_s9 = smov 192  ;;  %s62_s14 = smov 3  ;;  %vm239_vm8 = vcmask 786112   ;;  %vm284_vm9 = vcmask 720512  }
   0x7   :  { %v733_v14 = vld [vmem:[%s1472_s0 + $0x8e] ss:$16 sm:%s110_s3]   ;;  %v56_v15 = vsel %vm14_vm2, %v722_v11, %v51_v12  ;;  %s65_s15 = smov 12  ;;  %s870_s16 = smov 120   ;;  %v723_v20 = vld [vmem:[%s1472_s0 + $0x8f] ss:$16 sm:%s62_s14]  }
   0x8   :  { %v113_v16 = vsel %vm6_vm0, %v733_v14, %v732_v13  ;;  %v734_v17 = vld [vmem:[%s1472_s0 + $0x8e] ss:$16 sm:%s115_s8]   ;;  %57 = vrot.lane.b32.xlu0 %v56_v15, %s870_s16  ;;  %s70_s19 = smov 48  ;;  %s75_s20 = smov 192  ;;  %vm329_vm10 = vcmask 654912   ;;  %vm374_vm11 = vcmask 589312  }
   0x9   :  { %v735_v18 = vld [vmem:[%s1472_s0 + $0x8e] ss:$16 sm:%s120_s9]   ;;  %v118_v19 = vsel %vm10_vm1, %v734_v17, %v113_v16  ;;  %v724_v22 = vld [vmem:[%s1472_s0 + $0x8f] ss:$16 sm:%s65_s15]   ;;  %s152_s25 = smov 3  ;;  %s160_s29 = smov 48 }
   0xa   :  { %v123_v21 = vsel %vm14_vm2, %v735_v18, %v118_v19  ;;  %v725_v23 = vld [vmem:[%s1472_s0 + $0x8f] ss:$16 sm:%s70_s19]   ;;  %v68_v24 = vsel %vm6_vm0, %v724_v22, %v723_v20  ;;  %v741_v27 = vld [vmem:[%s1472_s0 + $0x8d] ss:$16 sm:%s152_s25]   ;;  %s165_s5 = smov 192  ;;  %s130_s6 = smov 3 }
   0xb   :  { %124 = vrot.lane.b32.xlu1 %v123_v21, %s869_s28  ;;  %v726_v25 = vld [vmem:[%s1472_s0 + $0x8f] ss:$16 sm:%s75_s20]   ;;  %s155_s28 = smov 12  ;;  %v73_v26 = vsel %vm10_vm1, %v725_v23, %v68_v24  ;;  %s133_s11 = smov 12  ;;  %vm419_vm12 = vcmask 523712   ;;  %vm464_vm13 = vcmask 458112  }
   0xc   :  { %v742_v28 = vld [vmem:[%s1472_s0 + $0x8d] ss:$16 sm:%s155_s28]   ;;  %v78_v29 = vsel %vm14_vm2, %v726_v25, %v73_v26  ;;  %s138_s12 = smov 48  ;;  %s143_s15 = smov 192  ;;  %vm509_vm14 = vcmask 392512   ;;  %vm554_vm15 = vcmask 326912  }
   0xd   :  { %v158_v30 = vsel %vm6_vm0, %v742_v28, %v741_v27  ;;  %v743_v31 = vld [vmem:[%s1472_s0 + $0x8d] ss:$16 sm:%s160_s29]   ;;  %79 = vrot.lane.b32.xlu0 %v78_v29, %s870_s16  ;;  %s197_s20 = smov 3  ;;  %s200_s21 = smov 12 }
   0xe   :  { %v744_v32 = vld [vmem:[%s1472_s0 + $0x8d] ss:$16 sm:%s165_s5]   ;;  %v163_v33 = vsel %vm10_vm1, %v743_v31, %v158_v30  ;;  %s871_s22 = smov 104   ;;  %s205_s25 = smov 48  ;;  %v750_v41 = vld [vmem:[%s1472_s0 + $0x8c] ss:$16 sm:%s197_s20]  }
   0xf   :  { %v737_v34 = vld [vmem:[%s1472_s0 + $0xd] ss:$16 sm:%s130_s6]   ;;  %v168_v35 = vsel %vm14_vm2, %v744_v32, %v163_v33  ;;  %s210_s26 = smov 192  ;;  %v751_v42 = vld [vmem:[%s1472_s0 + $0x8c] ss:$16 sm:%s200_s21]   ;;  %s175_s2 = smov 3 }
  0x10   :  { %v738_v36 = vld [vmem:[%s1472_s0 + $0xd] ss:$16 sm:%s133_s11]   ;;  %169 = vrot.lane.b32.xlu1 %v168_v35, %s871_s22  ;;  %s178_s3 = smov 12  ;;  %v203_v44 = vsel %vm6_vm0, %v751_v42, %v750_v41  ;;  %s183_s8 = smov 48 }
  0x11   :  { %v739_v37 = vld [vmem:[%s1472_s0 + $0xd] ss:$16 sm:%s138_s12]   ;;  %v136_v38 = vsel %vm6_vm0, %v738_v36, %v737_v34  ;;  %v752_v45 = vld [vmem:[%s1472_s0 + $0x8c] ss:$16 sm:%s205_s25]   ;;  %s188_s9 = smov 192  ;;  %s242_s12 = smov 3 }
  0x12   :  { %v740_v39 = vld [vmem:[%s1472_s0 + $0xd] ss:$16 sm:%s143_s15]   ;;  %v141_v40 = vsel %vm10_vm1, %v739_v37, %v136_v38  ;;  %v753_v46 = vld [vmem:[%s1472_s0 + $0x8c] ss:$16 sm:%s210_s26]   ;;  %v208_v47 = vsel %vm10_vm1, %v752_v45, %v203_v44  ;;  %s245_s17 = smov 12  ;;  %s250_s18 = smov 48 }
  0x13   :  { %v146_v43 = vsel %vm14_vm2, %v740_v39, %v141_v40  ;;  %v746_v48 = vld [vmem:[%s1472_s0 + $0xc] ss:$16 sm:%s175_s2]   ;;  %v213_v49 = vsel %vm14_vm2, %v753_v46, %v208_v47  ;;  %s872_s19 = smov 96   ;;  %s220_s23 = smov 3  ;;  %v759_v55 = vld [vmem:[%s1472_s0 + $0x8b] ss:$16 sm:%s242_s12]  }
  0x14   :  { %147 = vrot.lane.b32.xlu0 %v146_v43, %s871_s22  ;;  %v747_v50 = vld [vmem:[%s1472_s0 + $0xc] ss:$16 sm:%s178_s3]   ;;  %214 = vrot.lane.b32.xlu1 %v213_v49, %s872_s19  ;;  %s255_s22 = smov 192  ;;  %s223_s28 = smov 12 }
  0x15   :  { %v748_v51 = vld [vmem:[%s1472_s0 + $0xc] ss:$16 sm:%s183_s8]   ;;  %v181_v52 = vsel %vm6_vm0, %v747_v50, %v746_v48  ;;  %v760_v56 = vld [vmem:[%s1472_s0 + $0x8b] ss:$16 sm:%s245_s17]   ;;  %s228_s29 = smov 48  ;;  %s233_s5 = smov 192 }
  0x16   :  { %v749_v53 = vld [vmem:[%s1472_s0 + $0xc] ss:$16 sm:%s188_s9]   ;;  %v186_v54 = vsel %vm10_vm1, %v748_v51, %v181_v52  ;;  %v248_v58 = vsel %vm6_vm0, %v760_v56, %v759_v55  ;;  %v761_v59 = vld [vmem:[%s1472_s0 + $0x8b] ss:$16 sm:%s250_s18]   ;;  %s287_s8 = smov 3  ;;  %s290_s9 = smov 12 }
  0x17   :  { %v191_v57 = vsel %vm14_vm2, %v749_v53, %v186_v54  ;;  %v762_v60 = vld [vmem:[%s1472_s0 + $0x8b] ss:$16 sm:%s255_s22]   ;;  %v253_v61 = vsel %vm10_vm1, %v761_v59, %v248_v58  ;;  %s295_s14 = smov 48  ;;  %s300_s15 = smov 192  ;;  %v768_v5 = vld [vmem:[%s1472_s0 + $0x8a] ss:$16 sm:%s287_s8]  }
  0x18   :  { %192 = vrot.lane.b32.xlu0 %v191_v57, %s872_s19  ;;  %v755_v62 = vld [vmem:[%s1472_s0 + $0xb] ss:$16 sm:%s220_s23]   ;;  %v258_v63 = vsel %vm14_vm2, %v762_v60, %v253_v61  ;;  %s873_s16 = smov 88   ;;  %s265_s19 = smov 3 }
  0x19   :  { %v756_v0 = vld [vmem:[%s1472_s0 + $0xb] ss:$16 sm:%s223_s28]   ;;  %259 = vrot.lane.b32.xlu1 %v258_v63, %s873_s16  ;;  %s268_s24 = smov 12  ;;  %s273_s25 = smov 48 }
  0x1a   :  { %v757_v1 = vld [vmem:[%s1472_s0 + $0xb] ss:$16 sm:%s228_s29]   ;;  %v226_v2 = vsel %vm6_vm0, %v756_v0, %v755_v62  ;;  %v769_v6 = vld [vmem:[%s1472_s0 + $0x8a] ss:$16 sm:%s290_s9]   ;;  %s278_s30 = smov 192  ;;  %s332_s4 = smov 3 }
  0x1b   :  { %v758_v3 = vld [vmem:[%s1472_s0 + $0xb] ss:$16 sm:%s233_s5]   ;;  %v231_v4 = vsel %vm10_vm1, %v757_v1, %v226_v2  ;;  %v293_v8 = vsel %vm6_vm0, %v769_v6, %v768_v5  ;;  %v770_v9 = vld [vmem:[%s1472_s0 + $0x8a] ss:$16 sm:%s295_s14]   ;;  %s335_s5 = smov 12  ;;  %s340_s10 = smov 48 }
  0x1c   :  { %v236_v7 = vsel %vm14_vm2, %v758_v3, %v231_v4  ;;  %v771_v10 = vld [vmem:[%s1472_s0 + $0x8a] ss:$16 sm:%s300_s15]   ;;  %v298_v11 = vsel %vm10_vm1, %v770_v9, %v293_v8  ;;  %s345_s11 = smov 192  ;;  %s874_s12 = smov 80   ;;  %v777_v19 = vld [vmem:[%s1472_s0 + $0x89] ss:$16 sm:%s332_s4]  }
  0x1d   :  { %237 = vrot.lane.b32.xlu0 %v236_v7, %s873_s16  ;;  %v764_v12 = vld [vmem:[%s1472_s0 + $0xa] ss:$16 sm:%s265_s19]   ;;  %v303_v13 = vsel %vm14_vm2, %v771_v10, %v298_v11  ;;  %s310_s15 = smov 3  ;;  %s313_s20 = smov 12 }
  0x1e   :  { %v765_v14 = vld [vmem:[%s1472_s0 + $0xa] ss:$16 sm:%s268_s24]   ;;  %304 = vrot.lane.b32.xlu1 %v303_v13, %s874_s12  ;;  %s318_s21 = smov 48  ;;  %s323_s26 = smov 192 }
  0x1f   :  { %v766_v15 = vld [vmem:[%s1472_s0 + $0xa] ss:$16 sm:%s273_s25]   ;;  %v271_v16 = vsel %vm6_vm0, %v765_v14, %v764_v12  ;;  %v778_v20 = vld [vmem:[%s1472_s0 + $0x89] ss:$16 sm:%s335_s5]   ;;  %s377_s29 = smov 3  ;;  %s385_s6 = smov 48 }
  0x20   :  { %v767_v17 = vld [vmem:[%s1472_s0 + $0xa] ss:$16 sm:%s278_s30]   ;;  %v276_v18 = vsel %vm10_vm1, %v766_v15, %v271_v16  ;;  %v338_v22 = vsel %vm6_vm0, %v778_v20, %v777_v19  ;;  %v779_v23 = vld [vmem:[%s1472_s0 + $0x89] ss:$16 sm:%s340_s10]   ;;  %s380_s30 = smov 12  ;;  %s390_s7 = smov 192 }
  0x21   :  { %v281_v21 = vsel %vm14_vm2, %v767_v17, %v276_v18  ;;  %v780_v24 = vld [vmem:[%s1472_s0 + $0x89] ss:$16 sm:%s345_s11]   ;;  %v343_v25 = vsel %vm10_vm1, %v779_v23, %v338_v22  ;;  %s875_s8 = smov 72   ;;  %s355_s11 = smov 3  ;;  %v786_v33 = vld [vmem:[%s1472_s0 + $0x88] ss:$16 sm:%s377_s29]  }
  0x22   :  { %282 = vrot.lane.b32.xlu0 %v281_v21, %s874_s12  ;;  %v773_v26 = vld [vmem:[%s1472_s0 + $0x9] ss:$16 sm:%s310_s15]   ;;  %v348_v27 = vsel %vm14_vm2, %v780_v24, %v343_v25  ;;  %s358_s16 = smov 12  ;;  %s363_s17 = smov 48 }
  0x23   :  { %v774_v28 = vld [vmem:[%s1472_s0 + $0x9] ss:$16 sm:%s313_s20]   ;;  %349 = vrot.lane.b32.xlu1 %v348_v27, %s875_s8  ;;  %s368_s22 = smov 192  ;;  %s422_s25 = smov 3 }
  0x24   :  { %v775_v29 = vld [vmem:[%s1472_s0 + $0x9] ss:$16 sm:%s318_s21]   ;;  %v316_v30 = vsel %vm6_vm0, %v774_v28, %v773_v26  ;;  %v787_v34 = vld [vmem:[%s1472_s0 + $0x88] ss:$16 sm:%s380_s30]   ;;  %s430_s2 = smov 48  ;;  %s435_s3 = smov 192 }
  0x25   :  { %v776_v31 = vld [vmem:[%s1472_s0 + $0x9] ss:$16 sm:%s323_s26]   ;;  %v321_v32 = vsel %vm10_vm1, %v775_v29, %v316_v30  ;;  %v383_v36 = vsel %vm6_vm0, %v787_v34, %v786_v33  ;;  %v788_v37 = vld [vmem:[%s1472_s0 + $0x88] ss:$16 sm:%s385_s6]   ;;  %s425_s26 = smov 12  ;;  %s876_s4 = smov 64  }
  0x26   :  { %v326_v35 = vsel %vm14_vm2, %v776_v31, %v321_v32  ;;  %v789_v38 = vld [vmem:[%s1472_s0 + $0x88] ss:$16 sm:%s390_s7]   ;;  %v388_v39 = vsel %vm10_vm1, %v788_v37, %v383_v36  ;;  %s400_s7 = smov 3  ;;  %v795_v47 = vld [vmem:[%s1472_s0 + $0x87] ss:$16 sm:%s422_s25]   ;;  %s403_s12 = smov 12 }
  0x27   :  { %327 = vrot.lane.b32.xlu0 %v326_v35, %s875_s8  ;;  %v782_v40 = vld [vmem:[%s1472_s0 + $0x8] ss:$16 sm:%s355_s11]   ;;  %v393_v41 = vsel %vm14_vm2, %v789_v38, %v388_v39  ;;  %s408_s13 = smov 48  ;;  %s413_s18 = smov 192 }
  0x28   :  { %v783_v42 = vld [vmem:[%s1472_s0 + $0x8] ss:$16 sm:%s358_s16]   ;;  %394 = vrot.lane.b32.xlu1 %v393_v41, %s876_s4  ;;  %s467_s21 = smov 3  ;;  %s475_s27 = smov 48 }
  0x29   :  { %v784_v43 = vld [vmem:[%s1472_s0 + $0x8] ss:$16 sm:%s363_s17]   ;;  %v361_v44 = vsel %vm6_vm0, %v783_v42, %v782_v40  ;;  %v796_v48 = vld [vmem:[%s1472_s0 + $0x87] ss:$16 sm:%s425_s26]   ;;  %s480_s28 = smov 192  ;;  %s877_s29 = smov 56  }
  0x2a   :  { %v785_v45 = vld [vmem:[%s1472_s0 + $0x8] ss:$16 sm:%s368_s22]   ;;  %v366_v46 = vsel %vm10_vm1, %v784_v43, %v361_v44  ;;  %v428_v50 = vsel %vm6_vm0, %v796_v48, %v795_v47  ;;  %v797_v51 = vld [vmem:[%s1472_s0 + $0x87] ss:$16 sm:%s430_s2]   ;;  %s470_s22 = smov 12  ;;  %s448_s8 = smov 12 }
  0x2b   :  { %v371_v49 = vsel %vm14_vm2, %v785_v45, %v366_v46  ;;  %v798_v52 = vld [vmem:[%s1472_s0 + $0x87] ss:$16 sm:%s435_s3]   ;;  %v433_v53 = vsel %vm10_vm1, %v797_v51, %v428_v50  ;;  %s445_s3 = smov 3  ;;  %v804_v61 = vld [vmem:[%s1472_s0 + $0x86] ss:$16 sm:%s467_s21]   ;;  %s453_s9 = smov 48 }
  0x2c   :  { %372 = vrot.lane.b32.xlu0 %v371_v49, %s876_s4  ;;  %v791_v54 = vld [vmem:[%s1472_s0 + $0x7] ss:$16 sm:%s400_s7]   ;;  %v438_v55 = vsel %vm14_vm2, %v798_v52, %v433_v53  ;;  %s458_s14 = smov 192  ;;  %s512_s17 = smov 3 }
  0x2d   :  { %v792_v56 = vld [vmem:[%s1472_s0 + $0x7] ss:$16 sm:%s403_s12]   ;;  %439 = vrot.lane.b32.xlu1 %v438_v55, %s877_s29  ;;  %s520_s23 = smov 48  ;;  %s525_s24 = smov 192 }
  0x2e   :  { %v793_v57 = vld [vmem:[%s1472_s0 + $0x7] ss:$16 sm:%s408_s13]   ;;  %v406_v58 = vsel %vm6_vm0, %v792_v56, %v791_v54  ;;  %v805_v62 = vld [vmem:[%s1472_s0 + $0x86] ss:$16 sm:%s470_s22]   ;;  %s878_s25 = smov 48   ;;  %s493_s4 = smov 12 }
  0x2f   :  { %v794_v59 = vld [vmem:[%s1472_s0 + $0x7] ss:$16 sm:%s413_s18]   ;;  %v411_v60 = vsel %vm10_vm1, %v793_v57, %v406_v58  ;;  %v473_v0 = vsel %vm6_vm0, %v805_v62, %v804_v61  ;;  %v806_v1 = vld [vmem:[%s1472_s0 + $0x86] ss:$16 sm:%s475_s27]   ;;  %s515_s18 = smov 12  ;;  %s498_s5 = smov 48 }
  0x30   :  { %v416_v63 = vsel %vm14_vm2, %v794_v59, %v411_v60  ;;  %v807_v2 = vld [vmem:[%s1472_s0 + $0x86] ss:$16 sm:%s480_s28]   ;;  %v478_v3 = vsel %vm10_vm1, %v806_v1, %v473_v0  ;;  %s490_s28 = smov 3  ;;  %v813_v11 = vld [vmem:[%s1472_s0 + $0x85] ss:$16 sm:%s512_s17]   ;;  %s503_s10 = smov 192 }
  0x31   :  { %417 = vrot.lane.b32.xlu0 %v416_v63, %s877_s29  ;;  %v800_v4 = vld [vmem:[%s1472_s0 + $0x6] ss:$16 sm:%s445_s3]   ;;  %v483_v5 = vsel %vm14_vm2, %v807_v2, %v478_v3  ;;  %s557_s13 = smov 3  ;;  %s565_s19 = smov 48 }
  0x32   :  { %v801_v6 = vld [vmem:[%s1472_s0 + $0x6] ss:$16 sm:%s448_s8]   ;;  %484 = vrot.lane.b32.xlu1 %v483_v5, %s878_s25  ;;  %s570_s20 = smov 192  ;;  %s879_s21 = smov 40  }
  0x33   :  { %v802_v7 = vld [vmem:[%s1472_s0 + $0x6] ss:$16 sm:%s453_s9]   ;;  %v451_v8 = vsel %vm6_vm0, %v801_v6, %v800_v4  ;;  %v814_v12 = vld [vmem:[%s1472_s0 + $0x85] ss:$16 sm:%s515_s18]   ;;  %s538_s29 = smov 12  ;;  %s543_s30 = smov 48 }
  0x34   :  { %v803_v9 = vld [vmem:[%s1472_s0 + $0x6] ss:$16 sm:%s458_s14]   ;;  %v456_v10 = vsel %vm10_vm1, %v802_v7, %v451_v8  ;;  %v518_v14 = vsel %vm6_vm0, %v814_v12, %v813_v11  ;;  %v815_v15 = vld [vmem:[%s1472_s0 + $0x85] ss:$16 sm:%s520_s23]   ;;  %s560_s14 = smov 12  ;;  %s548_s6 = smov 192 }
  0x35   :  { %v461_v13 = vsel %vm14_vm2, %v803_v9, %v456_v10  ;;  %v816_v16 = vld [vmem:[%s1472_s0 + $0x85] ss:$16 sm:%s525_s24]   ;;  %v523_v17 = vsel %vm10_vm1, %v815_v15, %v518_v14  ;;  %s535_s24 = smov 3  ;;  %v822_v25 = vld [vmem:[%s1472_s0 + $0x84] ss:$16 sm:%s557_s13]   ;;  %s602_s9 = smov 3 }
  0x36   :  { %462 = vrot.lane.b32.xlu0 %v461_v13, %s878_s25  ;;  %v809_v18 = vld [vmem:[%s1472_s0 + $0x5] ss:$16 sm:%s490_s28]   ;;  %v528_v19 = vsel %vm14_vm2, %v816_v16, %v523_v17  ;;  %s610_s15 = smov 48  ;;  %s615_s16 = smov 192 }
  0x37   :  { %v810_v20 = vld [vmem:[%s1472_s0 + $0x5] ss:$16 sm:%s493_s4]   ;;  %529 = vrot.lane.b32.xlu1 %v528_v19, %s879_s21  ;;  %s880_s17 = smov 32   ;;  %s583_s25 = smov 12 }
  0x38   :  { %v811_v21 = vld [vmem:[%s1472_s0 + $0x5] ss:$16 sm:%s498_s5]   ;;  %v496_v22 = vsel %vm6_vm0, %v810_v20, %v809_v18  ;;  %v823_v26 = vld [vmem:[%s1472_s0 + $0x84] ss:$16 sm:%s560_s14]   ;;  %s588_s26 = smov 48  ;;  %s593_s2 = smov 192 }
  0x39   :  { %v812_v23 = vld [vmem:[%s1472_s0 + $0x5] ss:$16 sm:%s503_s10]   ;;  %v501_v24 = vsel %vm10_vm1, %v811_v21, %v496_v22  ;;  %v563_v28 = vsel %vm6_vm0, %v823_v26, %v822_v25  ;;  %v824_v29 = vld [vmem:[%s1472_s0 + $0x84] ss:$16 sm:%s565_s19]   ;;  %s605_s10 = smov 12  ;;  %s647_s5 = smov 3 }
  0x3a   :  { %v506_v27 = vsel %vm14_vm2, %v812_v23, %v501_v24  ;;  %v825_v30 = vld [vmem:[%s1472_s0 + $0x84] ss:$16 sm:%s570_s20]   ;;  %v568_v31 = vsel %vm10_vm1, %v824_v29, %v563_v28  ;;  %s580_s20 = smov 3  ;;  %v831_v39 = vld [vmem:[%s1472_s0 + $0x83] ss:$16 sm:%s602_s9]   ;;  %s655_s11 = smov 48 }
  0x3b   :  { %507 = vrot.lane.b32.xlu0 %v506_v27, %s879_s21  ;;  %v818_v32 = vld [vmem:[%s1472_s0 + $0x4] ss:$16 sm:%s535_s24]   ;;  %v573_v33 = vsel %vm14_vm2, %v825_v30, %v568_v31  ;;  %s660_s12 = smov 192  ;;  %s881_s13 = smov 24  }
  0x3c   :  { %v819_v34 = vld [vmem:[%s1472_s0 + $0x4] ss:$16 sm:%s538_s29]   ;;  %574 = vrot.lane.b32.xlu1 %v573_v33, %s880_s17  ;;  %s628_s21 = smov 12  ;;  %s633_s22 = smov 48 }
  0x3d   :  { %v820_v35 = vld [vmem:[%s1472_s0 + $0x4] ss:$16 sm:%s543_s30]   ;;  %v541_v36 = vsel %vm6_vm0, %v819_v34, %v818_v32  ;;  %v832_v40 = vld [vmem:[%s1472_s0 + $0x83] ss:$16 sm:%s605_s10]   ;;  %s638_s27 = smov 192  ;;  %s692_s30 = smov 3 }
  0x3e   :  { %v821_v37 = vld [vmem:[%s1472_s0 + $0x4] ss:$16 sm:%s548_s6]   ;;  %v546_v38 = vsel %vm10_vm1, %v820_v35, %v541_v36  ;;  %v608_v42 = vsel %vm6_vm0, %v832_v40, %v831_v39  ;;  %v833_v43 = vld [vmem:[%s1472_s0 + $0x83] ss:$16 sm:%s610_s15]   ;;  %s650_s6 = smov 12  ;;  %s700_s7 = smov 48 }
  0x3f   :  { %v551_v41 = vsel %vm14_vm2, %v821_v37, %v546_v38  ;;  %v834_v44 = vld [vmem:[%s1472_s0 + $0x83] ss:$16 sm:%s615_s16]   ;;  %v613_v45 = vsel %vm10_vm1, %v833_v43, %v608_v42  ;;  %s625_s16 = smov 3  ;;  %v840_v53 = vld [vmem:[%s1472_s0 + $0x82] ss:$16 sm:%s647_s5]   ;;  %s705_s8 = smov 192 }
  0x40   :  { %552 = vrot.lane.b32.xlu0 %v551_v41, %s880_s17  ;;  %v827_v46 = vld [vmem:[%s1472_s0 + $0x3] ss:$16 sm:%s580_s20]   ;;  %v618_v47 = vsel %vm14_vm2, %v834_v44, %v613_v45  ;;  %s882_s9 = smov 16   ;;  %s673_s17 = smov 12 }
  0x41   :  { %v828_v48 = vld [vmem:[%s1472_s0 + $0x3] ss:$16 sm:%s583_s25]   ;;  %619 = vrot.lane.b32.xlu1 %v618_v47, %s881_s13  ;;  %s678_s18 = smov 48  ;;  %s683_s23 = smov 192 }
  0x42   :  { %v829_v49 = vld [vmem:[%s1472_s0 + $0x3] ss:$16 sm:%s588_s26]   ;;  %v586_v50 = vsel %vm6_vm0, %v828_v48, %v827_v46  ;;  %v841_v54 = vld [vmem:[%s1472_s0 + $0x82] ss:$16 sm:%s650_s6]   ;;  %s2_s26 = smov 3  ;;  %s8_s3 = smov 48 }
  0x43   :  { %v830_v51 = vld [vmem:[%s1472_s0 + $0x3] ss:$16 sm:%s593_s2]   ;;  %v591_v52 = vsel %vm10_vm1, %v829_v49, %v586_v50  ;;  %v653_v56 = vsel %vm6_vm0, %v841_v54, %v840_v53  ;;  %v842_v57 = vld [vmem:[%s1472_s0 + $0x82] ss:$16 sm:%s655_s11]   ;;  %s695_s2 = smov 12  ;;  %s12_s4 = smov 192 }
  0x44   :  { %v596_v55 = vsel %vm14_vm2, %v830_v51, %v591_v52  ;;  %v843_v58 = vld [vmem:[%s1472_s0 + $0x82] ss:$16 sm:%s660_s12]   ;;  %v658_v59 = vsel %vm10_vm1, %v842_v57, %v653_v56  ;;  %s670_s12 = smov 3  ;;  %v849_v3 = vld [vmem:[%s1472_s0 + $0x81] ss:$16 sm:%s692_s30]   ;;  %s883_s5 = smov 8  }
  0x45   :  { %597 = vrot.lane.b32.xlu0 %v596_v55, %s881_s13  ;;  %v836_v60 = vld [vmem:[%s1472_s0 + $0x2] ss:$16 sm:%s625_s16]   ;;  %v663_v61 = vsel %vm14_vm2, %v843_v58, %v658_v59  ;;  %s22_s13 = smov 12  ;;  %s27_s14 = smov 48 }
  0x46   :  { %v837_v62 = vld [vmem:[%s1472_s0 + $0x2] ss:$16 sm:%s628_s21]   ;;  %664 = vrot.lane.b32.xlu1 %v663_v61, %s882_s9  ;;  %s32_s19 = smov 192 }
  0x47   :  { %v838_v63 = vld [vmem:[%s1472_s0 + $0x2] ss:$16 sm:%s633_s22]   ;;  %v631_v0 = vsel %vm6_vm0, %v837_v62, %v836_v60  ;;  %v850_v4 = vld [vmem:[%s1472_s0 + $0x81] ss:$16 sm:%s695_s2]  }
  0x48   :  { %v839_v1 = vld [vmem:[%s1472_s0 + $0x2] ss:$16 sm:%s638_s27]   ;;  %v636_v2 = vsel %vm10_vm1, %v838_v63, %v631_v0  ;;  %v698_v6 = vsel %vm6_vm0, %v850_v4, %v849_v3  ;;  %v851_v7 = vld [vmem:[%s1472_s0 + $0x81] ss:$16 sm:%s700_s7]   ;;  %s4_s27 = smov 12 }
  0x49   :  { %v641_v5 = vsel %vm14_vm2, %v839_v1, %v636_v2  ;;  %v852_v8 = vld [vmem:[%s1472_s0 + $0x81] ss:$16 sm:%s705_s8]   ;;  %v703_v9 = vsel %vm10_vm1, %v851_v7, %v698_v6  ;;  %s19_s8 = smov 3  ;;  %v3_v17 = vld [vmem:[%s1472_s0] ss:$16 sm:%s2_s26]  }
  0x4a   :  { %642 = vrot.lane.b32.xlu0 %v641_v5, %s882_s9  ;;  %v845_v10 = vld [vmem:[%s1472_s0 + $0x1] ss:$16 sm:%s670_s12]   ;;  %v708_v11 = vsel %vm14_vm2, %v852_v8, %v703_v9 }
  0x4b   :  { %v846_v12 = vld [vmem:[%s1472_s0 + $0x1] ss:$16 sm:%s673_s17]   ;;  %709 = vrot.lane.b32.xlu1 %v708_v11, %s883_s5 }
  0x4c   :  { %v847_v13 = vld [vmem:[%s1472_s0 + $0x1] ss:$16 sm:%s678_s18]   ;;  %v676_v14 = vsel %vm6_vm0, %v846_v12, %v845_v10  ;;  %v5_v18 = vld [vmem:[%s1472_s0] ss:$16 sm:%s4_s27]  }
  0x4d   :  { %v848_v15 = vld [vmem:[%s1472_s0 + $0x1] ss:$16 sm:%s683_s23]   ;;  %v681_v16 = vsel %vm10_vm1, %v847_v13, %v676_v14  ;;  %v7_v20 = vsel %vm6_vm0, %v5_v18, %v3_v17  ;;  %v9_v21 = vld [vmem:[%s1472_s0] ss:$16 sm:%s8_s3]  }
  0x4e   :  { %v686_v19 = vsel %vm14_vm2, %v848_v15, %v681_v16  ;;  %v13_v22 = vld [vmem:[%s1472_s0] ss:$16 sm:%s12_s4]   ;;  %v11_v23 = vsel %vm10_vm1, %v9_v21, %v7_v20 }
  0x4f   :  { %687 = vrot.lane.b32.xlu0 %v686_v19, %s883_s5  ;;  %v714_v24 = vld [vmem:[%s1472_s0 + $0x80] ss:$16 sm:%s19_s8]   ;;  %v15_v25 = vsel %vm14_vm2, %v13_v22, %v11_v23 }
  0x50   :  { %v715_v26 = vld [vmem:[%s1472_s0 + $0x80] ss:$16 sm:%s22_s13]   ;;  %17 = vst.msk [vmem:[%s1473_s1] sm:$0xff] %vm16_vm3, %v15_v25  }
  0x51   :  { %v716_v27 = vld [vmem:[%s1472_s0 + $0x80] ss:$16 sm:%s27_s14]   ;;  %v25_v28 = vsel %vm6_vm0, %v715_v26, %v714_v24  ;;  %vm599_vm0 = vcmask 261312  }
  0x52   :  { %v717_v29 = vld [vmem:[%s1472_s0 + $0x80] ss:$16 sm:%s32_s19]   ;;  %v30_v30 = vsel %vm10_vm1, %v716_v27, %v25_v28  ;;  %vm644_vm1 = vcmask 195712  }
  0x53   :  { %v35_v31 = vsel %vm14_vm2, %v717_v29, %v30_v30  ;;  %vm689_vm2 = vcmask 130112  }
  0x54   :  { %718 = vst.msk [vmem:[%s1473_s1 + $0x8] sm:$0xff] %vm16_vm3, %v35_v31  }
  0x78   :  { %v103_v32 = vpop.permute.xlu1 %102  }
  0x7a   :  { %v58_v33 = vpop.permute.xlu0 %57  }
  0x7b   :  { %60 = vst.msk [vmem:[%s1473_s1] sm:$0xff] %vm59_vm4, %v58_v33  }
  0x7c   :  { %105 = vst.msk [vmem:[%s1473_s1] sm:$0xff] %vm104_vm5, %v103_v32  }
  0x7d   :  { %v125_v34 = vpop.permute.xlu1 %124  }
  0x7f   :  { %v80_v35 = vpop.permute.xlu0 %79  }
  0x80   :  { %727 = vst.msk [vmem:[%s1473_s1 + $0x8] sm:$0xff] %vm59_vm4, %v80_v35  }
  0x81   :  { %736 = vst.msk [vmem:[%s1473_s1 + $0x8] sm:$0xff] %vm104_vm5, %v125_v34  }
  0x82   :  { %v170_v36 = vpop.permute.xlu1 %169  }
  0x83   :  { %745 = vst.msk [vmem:[%s1473_s1 + $0x8] sm:$0xff] %vm149_vm6, %v170_v36  }
  0x86   :  { %v148_v37 = vpop.permute.xlu0 %147   ;;  %v215_v38 = vpop.permute.xlu1 %214  }
  0x87   :  { %150 = vst.msk [vmem:[%s1473_s1] sm:$0xff] %vm149_vm6, %v148_v37  }
  0x88   :  { %754 = vst.msk [vmem:[%s1473_s1 + $0x8] sm:$0xff] %vm194_vm7, %v215_v38  }
  0x8a   :  { %v193_v39 = vpop.permute.xlu0 %192  }
  0x8b   :  { %195 = vst.msk [vmem:[%s1473_s1] sm:$0xff] %vm194_vm7, %v193_v39   ;;  %v260_v40 = vpop.permute.xlu1 %259  }
  0x8c   :  { %763 = vst.msk [vmem:[%s1473_s1 + $0x8] sm:$0xff] %vm239_vm8, %v260_v40  }
  0x8f   :  { %v238_v41 = vpop.permute.xlu0 %237  }
  0x90   :  { %240 = vst.msk [vmem:[%s1473_s1] sm:$0xff] %vm239_vm8, %v238_v41   ;;  %v305_v42 = vpop.permute.xlu1 %304  }
  0x91   :  { %772 = vst.msk [vmem:[%s1473_s1 + $0x8] sm:$0xff] %vm284_vm9, %v305_v42  }
  0x94   :  { %v283_v43 = vpop.permute.xlu0 %282  }
  0x95   :  { %285 = vst.msk [vmem:[%s1473_s1] sm:$0xff] %vm284_vm9, %v283_v43   ;;  %v350_v44 = vpop.permute.xlu1 %349  }
  0x96   :  { %781 = vst.msk [vmem:[%s1473_s1 + $0x8] sm:$0xff] %vm329_vm10, %v350_v44  }
  0x99   :  { %v328_v45 = vpop.permute.xlu0 %327  }
  0x9a   :  { %330 = vst.msk [vmem:[%s1473_s1] sm:$0xff] %vm329_vm10, %v328_v45   ;;  %v395_v46 = vpop.permute.xlu1 %394  }
  0x9b   :  { %790 = vst.msk [vmem:[%s1473_s1 + $0x8] sm:$0xff] %vm374_vm11, %v395_v46  }
  0x9e   :  { %v373_v47 = vpop.permute.xlu0 %372  }
  0x9f   :  { %375 = vst.msk [vmem:[%s1473_s1] sm:$0xff] %vm374_vm11, %v373_v47   ;;  %v440_v48 = vpop.permute.xlu1 %439  }
  0xa0   :  { %799 = vst.msk [vmem:[%s1473_s1 + $0x8] sm:$0xff] %vm419_vm12, %v440_v48  }
  0xa3   :  { %v418_v49 = vpop.permute.xlu0 %417  }
  0xa4   :  { %420 = vst.msk [vmem:[%s1473_s1] sm:$0xff] %vm419_vm12, %v418_v49   ;;  %v485_v50 = vpop.permute.xlu1 %484  }
  0xa5   :  { %808 = vst.msk [vmem:[%s1473_s1 + $0x8] sm:$0xff] %vm464_vm13, %v485_v50  }
  0xa8   :  { %v463_v51 = vpop.permute.xlu0 %462  }
  0xa9   :  { %465 = vst.msk [vmem:[%s1473_s1] sm:$0xff] %vm464_vm13, %v463_v51   ;;  %v530_v52 = vpop.permute.xlu1 %529  }
  0xaa   :  { %817 = vst.msk [vmem:[%s1473_s1 + $0x8] sm:$0xff] %vm509_vm14, %v530_v52  }
  0xad   :  { %v508_v53 = vpop.permute.xlu0 %507  }
  0xae   :  { %510 = vst.msk [vmem:[%s1473_s1] sm:$0xff] %vm509_vm14, %v508_v53   ;;  %v575_v54 = vpop.permute.xlu1 %574  }
  0xaf   :  { %826 = vst.msk [vmem:[%s1473_s1 + $0x8] sm:$0xff] %vm554_vm15, %v575_v54  }
  0xb2   :  { %v553_v55 = vpop.permute.xlu0 %552  }
  0xb3   :  { %555 = vst.msk [vmem:[%s1473_s1] sm:$0xff] %vm554_vm15, %v553_v55   ;;  %v620_v56 = vpop.permute.xlu1 %619  }
  0xb4   :  { %835 = vst.msk [vmem:[%s1473_s1 + $0x8] sm:$0xff] %vm599_vm0, %v620_v56  }
  0xb7   :  { %v598_v57 = vpop.permute.xlu0 %597  }
  0xb8   :  { %600 = vst.msk [vmem:[%s1473_s1] sm:$0xff] %vm599_vm0, %v598_v57   ;;  %v665_v58 = vpop.permute.xlu1 %664  }
  0xb9   :  { %844 = vst.msk [vmem:[%s1473_s1 + $0x8] sm:$0xff] %vm644_vm1, %v665_v58  }
  0xbc   :  { %v643_v59 = vpop.permute.xlu0 %642  }
  0xbd   :  { %645 = vst.msk [vmem:[%s1473_s1] sm:$0xff] %vm644_vm1, %v643_v59   ;;  %v710_v60 = vpop.permute.xlu1 %709  }
  0xbe   :  { %853 = vst.msk [vmem:[%s1473_s1 + $0x8] sm:$0xff] %vm689_vm2, %v710_v60  }
  0xc1   :  { %v688_v61 = vpop.permute.xlu0 %687  }
  0xc2   :  { %690 = vst.msk [vmem:[%s1473_s1] sm:$0xff] %vm689_vm2, %v688_v61  }

// kernel: tile.64
= control target key start
LH: loop header
LB: loop body
LE: loop exit
PB: predicated region body
PF: predicated region fallthrough
CT: control target
= control target key end

     0   :  { %vm6_vm0 = vcmask 1043458   ;;  %vm10_vm1 = vcmask 1045508   ;;  %s66_s6 = smov 3  ;;  %s69_s11 = smov 12  ;;  %vm14_vm2 = vcmask 1047558   ;;  %vm16_vm3 = vcmask 64512   ;;  %s2510_s0 = inlined_call_operand.vmem [shape: f32[5,1,5,16,8], index: 0, kind: input, shape index: {}]   ;;  %s2511_s1 = inlined_call_operand.vmem [shape: f32[25,128], index: 1, kind: output, shape index: {}]  }
   0x1   :  { %v1216_v0 = vld [vmem:[%s2510_s0 + $0x18f] sm:$0x1]   ;;  %s74_s12 = smov 48  ;;  %s1457_s13 = smov 120   ;;  %v1232_v34 = vld [vmem:[%s2510_s0 + $0x18e] sm:$0x1]  }
   0x2   :  { %v1202_v1 = vld [vmem:[%s2510_s0 + $0xf] ss:$16 sm:%s66_s6]   ;;  %135 = vrot.lane.b32.xlu1 %v1216_v0, %s1457_s13  ;;  %s79_s16 = smov 192  ;;  %s111_s17 = smov 3  ;;  %v1248_v57 = vld [vmem:[%s2510_s0 + $0x18d] sm:$0x1]  }
   0x3   :  { %v1203_v2 = vld [vmem:[%s2510_s0 + $0xf] ss:$16 sm:%s69_s11]   ;;  %s114_s22 = smov 12  ;;  %s119_s23 = smov 48  ;;  %vm85_vm4 = vcmask 1048512   ;;  %vm160_vm5 = vcmask 982912  }
   0x4   :  { %v72_v3 = vsel %vm6_vm0, %v1203_v2, %v1202_v1  ;;  %v1204_v4 = vld [vmem:[%s2510_s0 + $0xf] ss:$16 sm:%s74_s12]   ;;  %s124_s28 = smov 192  ;;  %s88_s29 = smov 3  ;;  %vm235_vm6 = vcmask 917312   ;;  %vm310_vm7 = vcmask 851712  }
   0x5   :  { %v1205_v5 = vld [vmem:[%s2510_s0 + $0xf] ss:$16 sm:%s79_s16]   ;;  %v77_v6 = vsel %vm10_vm1, %v1204_v4, %v72_v3  ;;  %s91_s5 = smov 12  ;;  %s96_s6 = smov 48  ;;  %vm385_vm8 = vcmask 786112   ;;  %vm460_vm9 = vcmask 720512  }
   0x6   :  { %v1211_v7 = vld [vmem:[%s2510_s0 + $0x10f] ss:$16 sm:%s111_s17]   ;;  %v82_v9 = vsel %vm14_vm2, %v1205_v5, %v77_v6  ;;  %s101_s9 = smov 192  ;;  %s163_s15 = smov 3  ;;  %vm535_vm10 = vcmask 654912   ;;  %vm610_vm11 = vcmask 589312  }
   0x7   :  { %v1212_v8 = vld [vmem:[%s2510_s0 + $0x10f] ss:$16 sm:%s114_s22]   ;;  %83 = vrot.lane.b32.xlu0 %v82_v9, %s1457_s13  ;;  %s166_s16 = smov 12  ;;  %s171_s19 = smov 48  ;;  %vm685_vm12 = vcmask 523712   ;;  %vm760_vm13 = vcmask 458112  }
   0x8   :  { %v117_v10 = vsel %vm6_vm0, %v1212_v8, %v1211_v7  ;;  %v1213_v11 = vld [vmem:[%s2510_s0 + $0x10f] ss:$16 sm:%s119_s23]   ;;  %s176_s20 = smov 192  ;;  %v1222_v21 = vld [vmem:[%s2510_s0 + $0x8e] ss:$16 sm:%s163_s15]   ;;  %s141_s25 = smov 3 }
   0x9   :  { %v1214_v12 = vld [vmem:[%s2510_s0 + $0x10f] ss:$16 sm:%s124_s28]   ;;  %v122_v13 = vsel %vm10_vm1, %v1213_v11, %v117_v10  ;;  %v1223_v22 = vld [vmem:[%s2510_s0 + $0x8e] ss:$16 sm:%s166_s16]   ;;  %s144_s26 = smov 12  ;;  %s149_s2 = smov 48 }
   0xa   :  { %v1206_v14 = vld [vmem:[%s2510_s0 + $0x8f] ss:$16 sm:%s88_s29]   ;;  %v127_v15 = vsel %vm14_vm2, %v1214_v12, %v122_v13  ;;  %v169_v24 = vsel %vm6_vm0, %v1223_v22, %v1222_v21  ;;  %v1224_v25 = vld [vmem:[%s2510_s0 + $0x8e] ss:$16 sm:%s171_s19]   ;;  %s154_s3 = smov 192  ;;  %s194_s11 = smov 48 }
   0xb   :  { %v1207_v16 = vld [vmem:[%s2510_s0 + $0x8f] ss:$16 sm:%s91_s5]   ;;  %128 = vrot.lane.b32.xlu1 %v127_v15, %s1457_s13  ;;  %v174_v27 = vsel %vm10_vm1, %v1224_v25, %v169_v24  ;;  %s186_s5 = smov 3  ;;  %s199_s12 = smov 192  ;;  %v1264_v15 = vld [vmem:[%s2510_s0 + $0x18c] sm:$0x1]  }
   0xc   :  { %v1208_v17 = vld [vmem:[%s2510_s0 + $0x8f] ss:$16 sm:%s96_s6]   ;;  %v94_v18 = vsel %vm6_vm0, %v1207_v16, %v1206_v14  ;;  %v1225_v26 = vld [vmem:[%s2510_s0 + $0x8e] ss:$16 sm:%s176_s20]   ;;  %s189_s6 = smov 12  ;;  %s1458_s14 = smov 112  }
   0xd   :  { %v1209_v19 = vld [vmem:[%s2510_s0 + $0x8f] ss:$16 sm:%s101_s9]   ;;  %v99_v20 = vsel %vm10_vm1, %v1208_v17, %v94_v18  ;;  %v1218_v28 = vld [vmem:[%s2510_s0 + $0xe] ss:$16 sm:%s141_s25]   ;;  %v179_v29 = vsel %vm14_vm2, %v1225_v26, %v174_v27  ;;  %s238_s19 = smov 3  ;;  %s241_s24 = smov 12 }
   0xe   :  { %v104_v23 = vsel %vm14_vm2, %v1209_v19, %v99_v20  ;;  %v1219_v30 = vld [vmem:[%s2510_s0 + $0xe] ss:$16 sm:%s144_s26]   ;;  %s246_s29 = smov 48  ;;  %s251_s30 = smov 192  ;;  %v1238_v43 = vld [vmem:[%s2510_s0 + $0x8d] ss:$16 sm:%s238_s19]  }
   0xf   :  { %105 = vrot.lane.b32.xlu0 %v104_v23, %s1457_s13  ;;  %v1220_v31 = vld [vmem:[%s2510_s0 + $0xe] ss:$16 sm:%s149_s2]   ;;  %180 = vrot.lane.b32.xlu1 %v179_v29, %s1458_s14  ;;  %v147_v32 = vsel %vm6_vm0, %v1219_v30, %v1218_v28  ;;  %s216_s13 = smov 3  ;;  %s219_s4 = smov 12  ;;  %vm835_vm14 = vcmask 392512   ;;  %vm910_vm15 = vcmask 326912  }
  0x10   :  { %v1221_v33 = vld [vmem:[%s2510_s0 + $0xe] ss:$16 sm:%s154_s3]   ;;  %v152_v35 = vsel %vm10_vm1, %v1220_v31, %v147_v32  ;;  %v1239_v45 = vld [vmem:[%s2510_s0 + $0x8d] ss:$16 sm:%s241_s24]   ;;  %s224_s7 = smov 48  ;;  %s261_s19 = smov 3 }
  0x11   :  { %v1227_v36 = vld [vmem:[%s2510_s0 + $0x10e] ss:$16 sm:%s186_s5]   ;;  %v157_v38 = vsel %vm14_vm2, %v1221_v33, %v152_v35  ;;  %v244_v46 = vsel %vm6_vm0, %v1239_v45, %v1238_v43  ;;  %v1240_v47 = vld [vmem:[%s2510_s0 + $0x8d] ss:$16 sm:%s246_s29]   ;;  %s264_s20 = smov 12  ;;  %s269_s22 = smov 48 }
  0x12   :  { %v1228_v37 = vld [vmem:[%s2510_s0 + $0x10e] ss:$16 sm:%s189_s6]   ;;  %v1241_v48 = vld [vmem:[%s2510_s0 + $0x8d] ss:$16 sm:%s251_s30]   ;;  %v249_v49 = vsel %vm10_vm1, %v1240_v47, %v244_v46  ;;  %s274_s23 = smov 192  ;;  %s1459_s24 = smov 104  }
  0x13   :  { %v192_v39 = vsel %vm6_vm0, %v1228_v37, %v1227_v36  ;;  %v1229_v40 = vld [vmem:[%s2510_s0 + $0x10e] ss:$16 sm:%s194_s11]   ;;  %158 = vrot.lane.b32.xlu0 %v157_v38, %s1458_s14  ;;  %210 = vrot.lane.b32.xlu1 %v1232_v34, %s1458_s14  ;;  %v254_v52 = vsel %vm14_vm2, %v1241_v48, %v249_v49  ;;  %s313_s29 = smov 3  ;;  %s321_s9 = smov 48 }
  0x14   :  { %v1230_v41 = vld [vmem:[%s2510_s0 + $0x10e] ss:$16 sm:%s199_s12]   ;;  %v197_v42 = vsel %vm10_vm1, %v1229_v40, %v192_v39  ;;  %s229_s12 = smov 192  ;;  %v1234_v50 = vld [vmem:[%s2510_s0 + $0xd] ss:$16 sm:%s216_s13]   ;;  %s326_s10 = smov 192 }
  0x15   :  { %v202_v44 = vsel %vm14_vm2, %v1230_v41, %v197_v42  ;;  %v1235_v51 = vld [vmem:[%s2510_s0 + $0xd] ss:$16 sm:%s219_s4]   ;;  %s316_s4 = smov 12  ;;  %v1254_v1 = vld [vmem:[%s2510_s0 + $0x8c] ss:$16 sm:%s313_s29]   ;;  %s291_s15 = smov 3 }
  0x16   :  { %v222_v53 = vsel %vm6_vm0, %v1235_v51, %v1234_v50  ;;  %v1236_v54 = vld [vmem:[%s2510_s0 + $0xd] ss:$16 sm:%s224_s7]   ;;  %s294_s16 = smov 12  ;;  %v1255_v3 = vld [vmem:[%s2510_s0 + $0x8c] ss:$16 sm:%s316_s4]   ;;  %s336_s29 = smov 3 }
  0x17   :  { %203 = vrot.lane.b32.xlu0 %v202_v44, %s1458_s14  ;;  %255 = vrot.lane.b32.xlu1 %v254_v52, %s1459_s24  ;;  %v227_v55 = vsel %vm10_vm1, %v1236_v54, %v222_v53  ;;  %v1237_v56 = vld [vmem:[%s2510_s0 + $0xd] ss:$16 sm:%s229_s12]   ;;  %v319_v4 = vsel %vm6_vm0, %v1255_v3, %v1254_v1  ;;  %s339_s30 = smov 12  ;;  %s344_s3 = smov 48 }
  0x18   :  { %v232_v58 = vsel %vm14_vm2, %v1237_v56, %v227_v55  ;;  %v1243_v59 = vld [vmem:[%s2510_s0 + $0x10d] ss:$16 sm:%s261_s19]   ;;  %s299_s19 = smov 48  ;;  %v1256_v5 = vld [vmem:[%s2510_s0 + $0x8c] ss:$16 sm:%s321_s9]   ;;  %s349_s13 = smov 192 }
  0x19   :  { %v1244_v60 = vld [vmem:[%s2510_s0 + $0x10d] ss:$16 sm:%s264_s20]   ;;  %v1257_v6 = vld [vmem:[%s2510_s0 + $0x8c] ss:$16 sm:%s326_s10]   ;;  %v324_v7 = vsel %vm10_vm1, %v1256_v5, %v319_v4  ;;  %s1460_s4 = smov 96   ;;  %s388_s9 = smov 3 }
  0x1a   :  { %v267_v61 = vsel %vm6_vm0, %v1244_v60, %v1243_v59  ;;  %v1245_v62 = vld [vmem:[%s2510_s0 + $0x10d] ss:$16 sm:%s269_s22]   ;;  %v1250_v8 = vld [vmem:[%s2510_s0 + $0xc] ss:$16 sm:%s291_s15]   ;;  %v329_v10 = vsel %vm14_vm2, %v1257_v6, %v324_v7  ;;  %s396_s14 = smov 48  ;;  %s401_s21 = smov 192 }
  0x1b   :  { %v1246_v63 = vld [vmem:[%s2510_s0 + $0x10d] ss:$16 sm:%s274_s23]   ;;  %233 = vrot.lane.b32.xlu0 %v232_v58, %s1459_s24  ;;  %v272_v0 = vsel %vm10_vm1, %v1245_v62, %v267_v61  ;;  %285 = vrot.lane.b32.xlu1 %v1248_v57, %s1459_s24  ;;  %s304_s23 = smov 192  ;;  %s366_s25 = smov 3 }
  0x1c   :  { %v277_v2 = vsel %vm14_vm2, %v1246_v63, %v272_v0  ;;  %v1251_v9 = vld [vmem:[%s2510_s0 + $0xc] ss:$16 sm:%s294_s16]   ;;  %s391_s16 = smov 12  ;;  %v1270_v23 = vld [vmem:[%s2510_s0 + $0x8b] ss:$16 sm:%s388_s9]   ;;  %s369_s26 = smov 12 }
  0x1d   :  { %v297_v11 = vsel %vm6_vm0, %v1251_v9, %v1250_v8  ;;  %v1252_v12 = vld [vmem:[%s2510_s0 + $0xc] ss:$16 sm:%s299_s19]   ;;  %v1271_v25 = vld [vmem:[%s2510_s0 + $0x8b] ss:$16 sm:%s391_s16]   ;;  %s379_s6 = smov 192  ;;  %s411_s15 = smov 3 }
  0x1e   :  { %v302_v13 = vsel %vm10_vm1, %v1252_v12, %v297_v11  ;;  %v1253_v14 = vld [vmem:[%s2510_s0 + $0xc] ss:$16 sm:%s304_s23]   ;;  %v1200_v26 = vld [vmem:[%s2510_s0 + $0x180] sm:$0x1]   ;;  %v394_v27 = vsel %vm6_vm0, %v1271_v25, %v1270_v23  ;;  %s414_s16 = smov 12  ;;  %s419_s18 = smov 48 }
  0x1f   :  { %278 = vrot.lane.b32.xlu0 %v277_v2, %s1459_s24  ;;  %330 = vrot.lane.b32.xlu1 %v329_v10, %s1460_s4  ;;  %v307_v16 = vsel %vm14_vm2, %v1253_v14, %v302_v13  ;;  %v1259_v17 = vld [vmem:[%s2510_s0 + $0x10c] ss:$16 sm:%s336_s29]   ;;  %s374_s29 = smov 48  ;;  %s424_s19 = smov 192 }
  0x20   :  { %v1260_v18 = vld [vmem:[%s2510_s0 + $0x10c] ss:$16 sm:%s339_s30]   ;;  %v1272_v28 = vld [vmem:[%s2510_s0 + $0x8b] ss:$16 sm:%s396_s14]   ;;  %s1461_s20 = smov 88   ;;  %s466_s30 = smov 12 }
  0x21   :  { %v342_v19 = vsel %vm6_vm0, %v1260_v18, %v1259_v17  ;;  %v1261_v20 = vld [vmem:[%s2510_s0 + $0x10c] ss:$16 sm:%s344_s3]   ;;  %v1273_v29 = vld [vmem:[%s2510_s0 + $0x8b] ss:$16 sm:%s401_s21]   ;;  %v399_v30 = vsel %vm10_vm1, %v1272_v28, %v394_v27  ;;  %s471_s5 = smov 48  ;;  %s441_s9 = smov 3 }
  0x22   :  { %v1262_v21 = vld [vmem:[%s2510_s0 + $0x10c] ss:$16 sm:%s349_s13]   ;;  %v347_v22 = vsel %vm10_vm1, %v1261_v20, %v342_v19  ;;  %1201 = vst.msk [vmem:[%s2511_s1 + $0x18] sm:$0x1] %vm16_vm3, %v1200_v26   ;;  %v404_v33 = vsel %vm14_vm2, %v1273_v29, %v399_v30  ;;  %v1280_v38 = vld [vmem:[%s2510_s0 + $0x18b] sm:$0x1]  }
  0x23   :  { %308 = vrot.lane.b32.xlu0 %v307_v16, %s1460_s4  ;;  %360 = vrot.lane.b32.xlu1 %v1264_v15, %s1460_s4  ;;  %v352_v24 = vsel %vm14_vm2, %v1262_v21, %v347_v22  ;;  %v1266_v31 = vld [vmem:[%s2510_s0 + $0xb] ss:$16 sm:%s366_s25]   ;;  %s463_s25 = smov 3  ;;  %s444_s10 = smov 12 }
  0x24   :  { %v1267_v32 = vld [vmem:[%s2510_s0 + $0xb] ss:$16 sm:%s369_s26]   ;;  %v1286_v46 = vld [vmem:[%s2510_s0 + $0x8a] ss:$16 sm:%s463_s25]   ;;  %s486_s25 = smov 3  ;;  %s489_s26 = smov 12 }
  0x25   :  { %v372_v34 = vsel %vm6_vm0, %v1267_v32, %v1266_v31  ;;  %v1268_v35 = vld [vmem:[%s2510_s0 + $0xb] ss:$16 sm:%s374_s29]   ;;  %v1287_v48 = vld [vmem:[%s2510_s0 + $0x8a] ss:$16 sm:%s466_s30]   ;;  %s494_s28 = smov 48  ;;  %s499_s29 = smov 192 }
  0x26   :  { %v377_v36 = vsel %vm10_vm1, %v1268_v35, %v372_v34  ;;  %v1269_v37 = vld [vmem:[%s2510_s0 + $0xb] ss:$16 sm:%s379_s6]   ;;  %s476_s6 = smov 192  ;;  %v469_v49 = vsel %vm6_vm0, %v1287_v48, %v1286_v46  ;;  %v1288_v50 = vld [vmem:[%s2510_s0 + $0x8a] ss:$16 sm:%s471_s5]   ;;  %s1462_s30 = smov 80  }
  0x27   :  { %353 = vrot.lane.b32.xlu0 %v352_v24, %s1460_s4  ;;  %405 = vrot.lane.b32.xlu1 %v404_v33, %s1461_s20  ;;  %v382_v39 = vsel %vm14_vm2, %v1269_v37, %v377_v36  ;;  %v1275_v40 = vld [vmem:[%s2510_s0 + $0x10b] ss:$16 sm:%s411_s15]   ;;  %s449_s15 = smov 48  ;;  %v474_v52 = vsel %vm10_vm1, %v1288_v50, %v469_v49  ;;  %s538_s5 = smov 3 }
  0x28   :  { %v1276_v41 = vld [vmem:[%s2510_s0 + $0x10b] ss:$16 sm:%s414_s16]   ;;  %v1289_v51 = vld [vmem:[%s2510_s0 + $0x8a] ss:$16 sm:%s476_s6]   ;;  %s546_s4 = smov 48  ;;  %s551_s17 = smov 192 }
  0x29   :  { %v417_v42 = vsel %vm6_vm0, %v1276_v41, %v1275_v40  ;;  %v1277_v43 = vld [vmem:[%s2510_s0 + $0x10b] ss:$16 sm:%s419_s18]   ;;  %v1282_v53 = vld [vmem:[%s2510_s0 + $0xa] ss:$16 sm:%s441_s9]   ;;  %v479_v55 = vsel %vm14_vm2, %v1289_v51, %v474_v52  ;;  %s516_s14 = smov 3  ;;  %s519_s21 = smov 12 }
  0x2a   :  { %v1278_v44 = vld [vmem:[%s2510_s0 + $0x10b] ss:$16 sm:%s424_s19]   ;;  %v422_v45 = vsel %vm10_vm1, %v1277_v43, %v417_v42  ;;  %s454_s19 = smov 192  ;;  %v1283_v54 = vld [vmem:[%s2510_s0 + $0xa] ss:$16 sm:%s444_s10]   ;;  %s541_s10 = smov 12 }
  0x2b   :  { %383 = vrot.lane.b32.xlu0 %v382_v39, %s1461_s20  ;;  %435 = vrot.lane.b32.xlu1 %v1280_v38, %s1461_s20  ;;  %v427_v47 = vsel %vm14_vm2, %v1278_v44, %v422_v45  ;;  %v447_v56 = vsel %vm6_vm0, %v1283_v54, %v1282_v53  ;;  %v1284_v57 = vld [vmem:[%s2510_s0 + $0xa] ss:$16 sm:%s449_s15]   ;;  %s564_s6 = smov 12  ;;  %s569_s8 = smov 48 }
  0x2c   :  { %v452_v58 = vsel %vm10_vm1, %v1284_v57, %v447_v56  ;;  %v1285_v59 = vld [vmem:[%s2510_s0 + $0xa] ss:$16 sm:%s454_s19]   ;;  %v1302_v4 = vld [vmem:[%s2510_s0 + $0x89] ss:$16 sm:%s538_s5]   ;;  %s561_s5 = smov 3  ;;  %s574_s9 = smov 192 }
  0x2d   :  { %v1296_v60 = vld [vmem:[%s2510_s0 + $0x18a] sm:$0x1]   ;;  %v457_v61 = vsel %vm14_vm2, %v1285_v59, %v452_v58  ;;  %v1303_v6 = vld [vmem:[%s2510_s0 + $0x89] ss:$16 sm:%s541_s10]   ;;  %s1463_s10 = smov 72   ;;  %s626_s27 = smov 192 }
  0x2e   :  { %v1291_v62 = vld [vmem:[%s2510_s0 + $0x10a] ss:$16 sm:%s486_s25]   ;;  %s524_s25 = smov 48  ;;  %v544_v7 = vsel %vm6_vm0, %v1303_v6, %v1302_v4  ;;  %v1304_v8 = vld [vmem:[%s2510_s0 + $0x89] ss:$16 sm:%s546_s4]   ;;  %s613_s4 = smov 3 }
  0x2f   :  { %428 = vrot.lane.b32.xlu0 %v427_v47, %s1461_s20  ;;  %480 = vrot.lane.b32.xlu1 %v479_v55, %s1462_s30  ;;  %v1292_v63 = vld [vmem:[%s2510_s0 + $0x10a] ss:$16 sm:%s489_s26]   ;;  %v549_v10 = vsel %vm10_vm1, %v1304_v8, %v544_v7  ;;  %s621_s20 = smov 48  ;;  %s591_s24 = smov 3 }
  0x30   :  { %v492_v0 = vsel %vm6_vm0, %v1292_v63, %v1291_v62  ;;  %v1293_v1 = vld [vmem:[%s2510_s0 + $0x10a] ss:$16 sm:%s494_s28]   ;;  %v1305_v9 = vld [vmem:[%s2510_s0 + $0x89] ss:$16 sm:%s551_s17]   ;;  %s594_s2 = smov 12  ;;  %s639_s17 = smov 12 }
  0x31   :  { %v1294_v2 = vld [vmem:[%s2510_s0 + $0x10a] ss:$16 sm:%s499_s29]   ;;  %v497_v3 = vsel %vm10_vm1, %v1293_v1, %v492_v0  ;;  %s529_s29 = smov 192  ;;  %v1298_v11 = vld [vmem:[%s2510_s0 + $0x9] ss:$16 sm:%s516_s14]   ;;  %v554_v13 = vsel %vm14_vm2, %v1305_v9, %v549_v10  ;;  %s644_s19 = smov 48 }
  0x32   :  { %v502_v5 = vsel %vm14_vm2, %v1294_v2, %v497_v3  ;;  %v1299_v12 = vld [vmem:[%s2510_s0 + $0x9] ss:$16 sm:%s519_s21]   ;;  %s616_s21 = smov 12  ;;  %v1318_v26 = vld [vmem:[%s2510_s0 + $0x88] ss:$16 sm:%s613_s4]   ;;  %s636_s4 = smov 3 }
  0x33   :  { %458 = vrot.lane.b32.xlu0 %v457_v61, %s1462_s30  ;;  %510 = vrot.lane.b32.xlu1 %v1296_v60, %s1462_s30  ;;  %v522_v14 = vsel %vm6_vm0, %v1299_v12, %v1298_v11  ;;  %v1300_v15 = vld [vmem:[%s2510_s0 + $0x9] ss:$16 sm:%s524_s25]   ;;  %s649_s14 = smov 192  ;;  %s701_s7 = smov 192 }
  0x34   :  { %v527_v16 = vsel %vm10_vm1, %v1300_v15, %v522_v14  ;;  %v1301_v17 = vld [vmem:[%s2510_s0 + $0x9] ss:$16 sm:%s529_s29]   ;;  %v1319_v28 = vld [vmem:[%s2510_s0 + $0x88] ss:$16 sm:%s616_s21]   ;;  %s1464_s21 = smov 64   ;;  %s666_s11 = smov 3 }
  0x35   :  { %v1312_v18 = vld [vmem:[%s2510_s0 + $0x189] sm:$0x1]   ;;  %v532_v19 = vsel %vm14_vm2, %v1301_v17, %v527_v16  ;;  %v619_v29 = vsel %vm6_vm0, %v1319_v28, %v1318_v26  ;;  %v1320_v30 = vld [vmem:[%s2510_s0 + $0x88] ss:$16 sm:%s621_s20]   ;;  %s688_s20 = smov 3  ;;  %s669_s12 = smov 12 }
  0x36   :  { %v1307_v20 = vld [vmem:[%s2510_s0 + $0x109] ss:$16 sm:%s561_s5]   ;;  %s599_s5 = smov 48  ;;  %v1321_v31 = vld [vmem:[%s2510_s0 + $0x88] ss:$16 sm:%s626_s27]   ;;  %v624_v32 = vsel %vm10_vm1, %v1320_v30, %v619_v29  ;;  %s714_s27 = smov 12 }
  0x37   :  { %503 = vrot.lane.b32.xlu0 %v502_v5, %s1462_s30  ;;  %555 = vrot.lane.b32.xlu1 %v554_v13, %s1463_s10  ;;  %v1308_v21 = vld [vmem:[%s2510_s0 + $0x109] ss:$16 sm:%s564_s6]   ;;  %v629_v35 = vsel %vm14_vm2, %v1321_v31, %v624_v32  ;;  %s696_s30 = smov 48  ;;  %s719_s29 = smov 48 }
  0x38   :  { %v567_v22 = vsel %vm6_vm0, %v1308_v21, %v1307_v20  ;;  %v1309_v23 = vld [vmem:[%s2510_s0 + $0x109] ss:$16 sm:%s569_s8]   ;;  %v1314_v33 = vld [vmem:[%s2510_s0 + $0x8] ss:$16 sm:%s591_s24]   ;;  %s724_s24 = smov 192  ;;  %s776_s18 = smov 192 }
  0x39   :  { %v1310_v24 = vld [vmem:[%s2510_s0 + $0x109] ss:$16 sm:%s574_s9]   ;;  %v572_v25 = vsel %vm10_vm1, %v1309_v23, %v567_v22  ;;  %s604_s9 = smov 192  ;;  %v1315_v34 = vld [vmem:[%s2510_s0 + $0x8] ss:$16 sm:%s594_s2]   ;;  %s691_s2 = smov 12 }
  0x3a   :  { %v577_v27 = vsel %vm14_vm2, %v1310_v24, %v572_v25  ;;  %v597_v36 = vsel %vm6_vm0, %v1315_v34, %v1314_v33  ;;  %v1316_v37 = vld [vmem:[%s2510_s0 + $0x8] ss:$16 sm:%s599_s5]   ;;  %v1334_v48 = vld [vmem:[%s2510_s0 + $0x87] ss:$16 sm:%s688_s20]   ;;  %s711_s20 = smov 3  ;;  %s741_s22 = smov 3 }
  0x3b   :  { %533 = vrot.lane.b32.xlu0 %v532_v19, %s1463_s10  ;;  %585 = vrot.lane.b32.xlu1 %v1312_v18, %s1463_s10  ;;  %v602_v38 = vsel %vm10_vm1, %v1316_v37, %v597_v36  ;;  %v1317_v39 = vld [vmem:[%s2510_s0 + $0x8] ss:$16 sm:%s604_s9]   ;;  %s744_s23 = smov 12  ;;  %s794_s9 = smov 48 }
  0x3c   :  { %v1328_v40 = vld [vmem:[%s2510_s0 + $0x188] sm:$0x1]   ;;  %v607_v41 = vsel %vm14_vm2, %v1317_v39, %v602_v38  ;;  %v1335_v50 = vld [vmem:[%s2510_s0 + $0x87] ss:$16 sm:%s691_s2]   ;;  %s1465_s2 = smov 56   ;;  %s851_s28 = smov 192 }
  0x3d   :  { %v1323_v42 = vld [vmem:[%s2510_s0 + $0x108] ss:$16 sm:%s636_s4]   ;;  %s674_s4 = smov 48  ;;  %v694_v51 = vsel %vm6_vm0, %v1335_v50, %v1334_v48  ;;  %v1336_v52 = vld [vmem:[%s2510_s0 + $0x87] ss:$16 sm:%s696_s30]   ;;  %s763_s30 = smov 3 }
  0x3e   :  { %v1324_v43 = vld [vmem:[%s2510_s0 + $0x108] ss:$16 sm:%s639_s17]   ;;  %v1337_v53 = vld [vmem:[%s2510_s0 + $0x87] ss:$16 sm:%s701_s7]   ;;  %v699_v54 = vsel %vm10_vm1, %v1336_v52, %v694_v51  ;;  %s789_s7 = smov 12  ;;  %s816_s3 = smov 3 }
  0x3f   :  { %578 = vrot.lane.b32.xlu0 %v577_v27, %s1463_s10  ;;  %630 = vrot.lane.b32.xlu1 %v629_v35, %s1464_s21  ;;  %v642_v44 = vsel %vm6_vm0, %v1324_v43, %v1323_v42  ;;  %v1325_v45 = vld [vmem:[%s2510_s0 + $0x108] ss:$16 sm:%s644_s19]   ;;  %v704_v57 = vsel %vm14_vm2, %v1337_v53, %v699_v54  ;;  %s771_s10 = smov 48  ;;  %s819_s13 = smov 12 }
  0x40   :  { %v1326_v46 = vld [vmem:[%s2510_s0 + $0x108] ss:$16 sm:%s649_s14]   ;;  %v647_v47 = vsel %vm10_vm1, %v1325_v45, %v642_v44  ;;  %s679_s14 = smov 192  ;;  %v1330_v55 = vld [vmem:[%s2510_s0 + $0x7] ss:$16 sm:%s666_s11]   ;;  %s799_s11 = smov 192 }
  0x41   :  { %v652_v49 = vsel %vm14_vm2, %v1326_v46, %v647_v47  ;;  %v1331_v56 = vld [vmem:[%s2510_s0 + $0x7] ss:$16 sm:%s669_s12]   ;;  %s766_s12 = smov 12  ;;  %v1350_v6 = vld [vmem:[%s2510_s0 + $0x86] ss:$16 sm:%s763_s30]   ;;  %s786_s30 = smov 3 }
  0x42   :  { %v672_v58 = vsel %vm6_vm0, %v1331_v56, %v1330_v55  ;;  %v1332_v59 = vld [vmem:[%s2510_s0 + $0x7] ss:$16 sm:%s674_s4]   ;;  %v1351_v8 = vld [vmem:[%s2510_s0 + $0x86] ss:$16 sm:%s766_s12]   ;;  %s1466_s12 = smov 48   ;;  %s926_s8 = smov 192 }
  0x43   :  { %608 = vrot.lane.b32.xlu0 %v607_v41, %s1464_s21  ;;  %660 = vrot.lane.b32.xlu1 %v1328_v40, %s1464_s21  ;;  %v677_v60 = vsel %vm10_vm1, %v1332_v59, %v672_v58  ;;  %v1333_v61 = vld [vmem:[%s2510_s0 + $0x7] ss:$16 sm:%s679_s14]   ;;  %v769_v9 = vsel %vm6_vm0, %v1351_v8, %v1350_v6  ;;  %s869_s14 = smov 48  ;;  %s891_s15 = smov 3 }
  0x44   :  { %v1344_v62 = vld [vmem:[%s2510_s0 + $0x187] sm:$0x1]   ;;  %v682_v63 = vsel %vm14_vm2, %v1333_v61, %v677_v60  ;;  %v1352_v10 = vld [vmem:[%s2510_s0 + $0x86] ss:$16 sm:%s771_s10]   ;;  %s838_s10 = smov 3  ;;  %s894_s16 = smov 12 }
  0x45   :  { %v1339_v0 = vld [vmem:[%s2510_s0 + $0x107] ss:$16 sm:%s711_s20]   ;;  %s749_s20 = smov 48  ;;  %v1353_v11 = vld [vmem:[%s2510_s0 + $0x86] ss:$16 sm:%s776_s18]   ;;  %v774_v12 = vsel %vm10_vm1, %v1352_v10, %v769_v9  ;;  %s864_s18 = smov 12 }
  0x46   :  { %v1340_v1 = vld [vmem:[%s2510_s0 + $0x107] ss:$16 sm:%s714_s27]   ;;  %v1346_v13 = vld [vmem:[%s2510_s0 + $0x6] ss:$16 sm:%s741_s22]   ;;  %v779_v15 = vsel %vm14_vm2, %v1353_v11, %v774_v12  ;;  %s874_s22 = smov 192  ;;  %s1001_s19 = smov 192 }
  0x47   :  { %653 = vrot.lane.b32.xlu0 %v652_v49, %s1464_s21  ;;  %705 = vrot.lane.b32.xlu1 %v704_v57, %s1465_s2  ;;  %v717_v2 = vsel %vm6_vm0, %v1340_v1, %v1339_v0  ;;  %v1341_v3 = vld [vmem:[%s2510_s0 + $0x107] ss:$16 sm:%s719_s29]   ;;  %s846_s21 = smov 48  ;;  %s966_s25 = smov 3 }
  0x48   :  { %v1342_v4 = vld [vmem:[%s2510_s0 + $0x107] ss:$16 sm:%s724_s24]   ;;  %v722_v5 = vsel %vm10_vm1, %v1341_v3, %v717_v2  ;;  %s754_s24 = smov 192  ;;  %v1347_v14 = vld [vmem:[%s2510_s0 + $0x6] ss:$16 sm:%s744_s23]   ;;  %s841_s23 = smov 12 }
  0x49   :  { %v727_v7 = vsel %vm14_vm2, %v1342_v4, %v722_v5  ;;  %v747_v16 = vsel %vm6_vm0, %v1347_v14, %v1346_v13  ;;  %v1348_v17 = vld [vmem:[%s2510_s0 + $0x6] ss:$16 sm:%s749_s20]   ;;  %v1366_v28 = vld [vmem:[%s2510_s0 + $0x85] ss:$16 sm:%s838_s10]   ;;  %s861_s10 = smov 3  ;;  %s969_s26 = smov 12 }
  0x4a   :  { %v752_v18 = vsel %vm10_vm1, %v1348_v17, %v747_v16  ;;  %v1349_v19 = vld [vmem:[%s2510_s0 + $0x6] ss:$16 sm:%s754_s24]   ;;  %v1367_v30 = vld [vmem:[%s2510_s0 + $0x85] ss:$16 sm:%s841_s23]   ;;  %s1467_s23 = smov 40   ;;  %s944_s24 = smov 48 }
  0x4b   :  { %683 = vrot.lane.b32.xlu0 %v682_v63, %s1465_s2  ;;  %735 = vrot.lane.b32.xlu1 %v1344_v62, %s1465_s2  ;;  %v1360_v20 = vld [vmem:[%s2510_s0 + $0x186] sm:$0x1]   ;;  %v757_v21 = vsel %vm14_vm2, %v1349_v19, %v752_v18  ;;  %v844_v31 = vsel %vm6_vm0, %v1367_v30, %v1366_v28  ;;  %v1376_v42 = vld [vmem:[%s2510_s0 + $0x185] sm:$0x1]   ;;  %s1076_s29 = smov 192  ;;  %s1041_s5 = smov 3 }
  0x4c   :  { %v1355_v22 = vld [vmem:[%s2510_s0 + $0x106] ss:$16 sm:%s786_s30]   ;;  %s824_s30 = smov 48  ;;  %v1368_v32 = vld [vmem:[%s2510_s0 + $0x85] ss:$16 sm:%s846_s21]   ;;  %s913_s21 = smov 3 }
  0x4d   :  { %v1356_v23 = vld [vmem:[%s2510_s0 + $0x106] ss:$16 sm:%s789_s7]   ;;  %v1369_v33 = vld [vmem:[%s2510_s0 + $0x85] ss:$16 sm:%s851_s28]   ;;  %v849_v34 = vsel %vm10_vm1, %v1368_v32, %v844_v31  ;;  %s939_s28 = smov 12  ;;  %s1044_s6 = smov 12 }
  0x4e   :  { %v792_v24 = vsel %vm6_vm0, %v1356_v23, %v1355_v22  ;;  %v1357_v25 = vld [vmem:[%s2510_s0 + $0x106] ss:$16 sm:%s794_s9]   ;;  %v1362_v35 = vld [vmem:[%s2510_s0 + $0x5] ss:$16 sm:%s816_s3]   ;;  %v854_v37 = vsel %vm14_vm2, %v1369_v33, %v849_v34  ;;  %s949_s3 = smov 192  ;;  %s1151_s9 = smov 192 }
  0x4f   :  { %728 = vrot.lane.b32.xlu0 %v727_v7, %s1465_s2  ;;  %780 = vrot.lane.b32.xlu1 %v779_v15, %s1466_s12  ;;  %v1358_v26 = vld [vmem:[%s2510_s0 + $0x106] ss:$16 sm:%s799_s11]   ;;  %v797_v27 = vsel %vm10_vm1, %v1357_v25, %v792_v24  ;;  %s829_s11 = smov 192  ;;  %s921_s2 = smov 48 }
  0x50   :  { %v802_v29 = vsel %vm14_vm2, %v1358_v26, %v797_v27  ;;  %v1363_v36 = vld [vmem:[%s2510_s0 + $0x5] ss:$16 sm:%s819_s13]   ;;  %s916_s13 = smov 12  ;;  %v1382_v50 = vld [vmem:[%s2510_s0 + $0x84] ss:$16 sm:%s913_s21]   ;;  %s936_s21 = smov 3 }
  0x51   :  { %v822_v38 = vsel %vm6_vm0, %v1363_v36, %v1362_v35  ;;  %v1364_v39 = vld [vmem:[%s2510_s0 + $0x5] ss:$16 sm:%s824_s30]   ;;  %v1383_v52 = vld [vmem:[%s2510_s0 + $0x84] ss:$16 sm:%s916_s13]   ;;  %s1468_s13 = smov 32   ;;  %s1116_s4 = smov 3 }
  0x52   :  { %v827_v40 = vsel %vm10_vm1, %v1364_v39, %v822_v38  ;;  %v1365_v41 = vld [vmem:[%s2510_s0 + $0x5] ss:$16 sm:%s829_s11]   ;;  %v919_v53 = vsel %vm6_vm0, %v1383_v52, %v1382_v50  ;;  %v1384_v54 = vld [vmem:[%s2510_s0 + $0x84] ss:$16 sm:%s921_s2]   ;;  %s988_s2 = smov 3  ;;  %s1019_s11 = smov 48 }
  0x53   :  { %758 = vrot.lane.b32.xlu0 %v757_v21, %s1466_s12  ;;  %810 = vrot.lane.b32.xlu1 %v1360_v20, %s1466_s12  ;;  %v832_v43 = vsel %vm14_vm2, %v1365_v41, %v827_v40  ;;  %v1371_v44 = vld [vmem:[%s2510_s0 + $0x105] ss:$16 sm:%s861_s10]   ;;  %s899_s10 = smov 48  ;;  %v924_v56 = vsel %vm10_vm1, %v1384_v54, %v919_v53  ;;  %s1119_s17 = smov 12 }
  0x54   :  { %v1372_v45 = vld [vmem:[%s2510_s0 + $0x105] ss:$16 sm:%s864_s18]   ;;  %v1385_v55 = vld [vmem:[%s2510_s0 + $0x84] ss:$16 sm:%s926_s8]   ;;  %s1014_s8 = smov 12  ;;  %s1164_s18 = smov 12 }
  0x55   :  { %v867_v46 = vsel %vm6_vm0, %v1372_v45, %v1371_v44  ;;  %v1373_v47 = vld [vmem:[%s2510_s0 + $0x105] ss:$16 sm:%s869_s14]   ;;  %v1378_v57 = vld [vmem:[%s2510_s0 + $0x4] ss:$16 sm:%s891_s15]   ;;  %v929_v59 = vsel %vm14_vm2, %v1385_v55, %v924_v56  ;;  %s1024_s15 = smov 192 }
  0x56   :  { %v1374_v48 = vld [vmem:[%s2510_s0 + $0x105] ss:$16 sm:%s874_s22]   ;;  %v872_v49 = vsel %vm10_vm1, %v1373_v47, %v867_v46  ;;  %s904_s22 = smov 192  ;;  %v1379_v58 = vld [vmem:[%s2510_s0 + $0x4] ss:$16 sm:%s894_s16]   ;;  %s991_s16 = smov 12 }
  0x57   :  { %803 = vrot.lane.b32.xlu0 %v802_v29, %s1466_s12  ;;  %855 = vrot.lane.b32.xlu1 %v854_v37, %s1467_s23  ;;  %v877_v51 = vsel %vm14_vm2, %v1374_v48, %v872_v49  ;;  %v897_v60 = vsel %vm6_vm0, %v1379_v58, %v1378_v57  ;;  %v1380_v61 = vld [vmem:[%s2510_s0 + $0x4] ss:$16 sm:%s899_s10]   ;;  %s996_s12 = smov 48 }
  0x58   :  { %v902_v62 = vsel %vm10_vm1, %v1380_v61, %v897_v60  ;;  %v1381_v63 = vld [vmem:[%s2510_s0 + $0x4] ss:$16 sm:%s904_s22]   ;;  %v1398_v8 = vld [vmem:[%s2510_s0 + $0x83] ss:$16 sm:%s988_s2]   ;;  %s1011_s2 = smov 3  ;;  %s1094_s22 = smov 48 }
  0x59   :  { %v1392_v0 = vld [vmem:[%s2510_s0 + $0x184] sm:$0x1]   ;;  %v907_v1 = vsel %vm14_vm2, %v1381_v63, %v902_v62  ;;  %v1399_v10 = vld [vmem:[%s2510_s0 + $0x83] ss:$16 sm:%s991_s16]   ;;  %s1469_s16 = smov 24  }
  0x5a   :  { %v1387_v2 = vld [vmem:[%s2510_s0 + $0x104] ss:$16 sm:%s936_s21]   ;;  %s974_s21 = smov 48  ;;  %v994_v11 = vsel %vm6_vm0, %v1399_v10, %v1398_v8  ;;  %v1400_v12 = vld [vmem:[%s2510_s0 + $0x83] ss:$16 sm:%s996_s12]   ;;  %s1063_s12 = smov 3 }
  0x5b   :  { %833 = vrot.lane.b32.xlu0 %v832_v43, %s1467_s23  ;;  %885 = vrot.lane.b32.xlu1 %v1376_v42, %s1467_s23  ;;  %v1388_v3 = vld [vmem:[%s2510_s0 + $0x104] ss:$16 sm:%s939_s28]   ;;  %v999_v14 = vsel %vm10_vm1, %v1400_v12, %v994_v11  ;;  %s43_s28 = smov 12 }
  0x5c   :  { %v942_v4 = vsel %vm6_vm0, %v1388_v3, %v1387_v2  ;;  %v1389_v5 = vld [vmem:[%s2510_s0 + $0x104] ss:$16 sm:%s944_s24]   ;;  %v1401_v13 = vld [vmem:[%s2510_s0 + $0x83] ss:$16 sm:%s1001_s19]   ;;  %s1089_s19 = smov 12  ;;  %s53_s24 = smov 192 }
  0x5d   :  { %v1390_v6 = vld [vmem:[%s2510_s0 + $0x104] ss:$16 sm:%s949_s3]   ;;  %v947_v7 = vsel %vm10_vm1, %v1389_v5, %v942_v4  ;;  %s979_s3 = smov 192  ;;  %v1394_v15 = vld [vmem:[%s2510_s0 + $0x3] ss:$16 sm:%s966_s25]   ;;  %v1004_v17 = vsel %vm14_vm2, %v1401_v13, %v999_v14  ;;  %s1099_s25 = smov 192 }
  0x5e   :  { %v952_v9 = vsel %vm14_vm2, %v1390_v6, %v947_v7  ;;  %v1395_v16 = vld [vmem:[%s2510_s0 + $0x3] ss:$16 sm:%s969_s26]   ;;  %s1066_s26 = smov 12  ;;  %v1414_v30 = vld [vmem:[%s2510_s0 + $0x82] ss:$16 sm:%s1063_s12]   ;;  %s1086_s12 = smov 3 }
  0x5f   :  { %878 = vrot.lane.b32.xlu0 %v877_v51, %s1467_s23  ;;  %930 = vrot.lane.b32.xlu1 %v929_v59, %s1468_s13  ;;  %v972_v18 = vsel %vm6_vm0, %v1395_v16, %v1394_v15  ;;  %v1396_v19 = vld [vmem:[%s2510_s0 + $0x3] ss:$16 sm:%s974_s21]   ;;  %s1071_s23 = smov 48  ;;  %s40_s21 = smov 3 }
  0x60   :  { %v977_v20 = vsel %vm10_vm1, %v1396_v19, %v972_v18  ;;  %v1397_v21 = vld [vmem:[%s2510_s0 + $0x3] ss:$16 sm:%s979_s3]   ;;  %v1415_v32 = vld [vmem:[%s2510_s0 + $0x82] ss:$16 sm:%s1066_s26]   ;;  %s1470_s26 = smov 16   ;;  %s8_s3 = smov 48 }
  0x61   :  { %v1408_v22 = vld [vmem:[%s2510_s0 + $0x183] sm:$0x1]   ;;  %v982_v23 = vsel %vm14_vm2, %v1397_v21, %v977_v20  ;;  %v1069_v33 = vsel %vm6_vm0, %v1415_v32, %v1414_v30  ;;  %v1416_v34 = vld [vmem:[%s2510_s0 + $0x82] ss:$16 sm:%s1071_s23]   ;;  %s1138_s23 = smov 3 }
  0x62   :  { %v1403_v24 = vld [vmem:[%s2510_s0 + $0x103] ss:$16 sm:%s1011_s2]   ;;  %s1049_s2 = smov 48  ;;  %v1417_v35 = vld [vmem:[%s2510_s0 + $0x82] ss:$16 sm:%s1076_s29]   ;;  %v1074_v36 = vsel %vm10_vm1, %v1416_v34, %v1069_v33  ;;  %s4_s29 = smov 12 }
  0x63   :  { %908 = vrot.lane.b32.xlu0 %v907_v1, %s1468_s13  ;;  %960 = vrot.lane.b32.xlu1 %v1392_v0, %s1468_s13  ;;  %v1404_v25 = vld [vmem:[%s2510_s0 + $0x103] ss:$16 sm:%s1014_s8]   ;;  %v1079_v39 = vsel %vm14_vm2, %v1417_v35, %v1074_v36 }
  0x64   :  { %v1017_v26 = vsel %vm6_vm0, %v1404_v25, %v1403_v24  ;;  %v1405_v27 = vld [vmem:[%s2510_s0 + $0x103] ss:$16 sm:%s1019_s11]   ;;  %v1410_v37 = vld [vmem:[%s2510_s0 + $0x2] ss:$16 sm:%s1041_s5]   ;;  %s12_s5 = smov 192  ;;  %s1161_s11 = smov 3 }
  0x65   :  { %v1406_v28 = vld [vmem:[%s2510_s0 + $0x103] ss:$16 sm:%s1024_s15]   ;;  %v1022_v29 = vsel %vm10_vm1, %v1405_v27, %v1017_v26  ;;  %s1054_s15 = smov 192  ;;  %v1411_v38 = vld [vmem:[%s2510_s0 + $0x2] ss:$16 sm:%s1044_s6]   ;;  %s1141_s6 = smov 12 }
  0x66   :  { %v1027_v31 = vsel %vm14_vm2, %v1406_v28, %v1022_v29  ;;  %v1047_v40 = vsel %vm6_vm0, %v1411_v38, %v1410_v37  ;;  %v1412_v41 = vld [vmem:[%s2510_s0 + $0x2] ss:$16 sm:%s1049_s2]   ;;  %v1430_v52 = vld [vmem:[%s2510_s0 + $0x81] ss:$16 sm:%s1138_s23]   ;;  %s2_s23 = smov 3 }
  0x67   :  { %953 = vrot.lane.b32.xlu0 %v952_v9, %s1468_s13  ;;  %1005 = vrot.lane.b32.xlu1 %v1004_v17, %s1469_s16  ;;  %v1052_v42 = vsel %vm10_vm1, %v1412_v41, %v1047_v40  ;;  %v1413_v43 = vld [vmem:[%s2510_s0 + $0x2] ss:$16 sm:%s1054_s15]   ;;  %s1146_s13 = smov 48 }
  0x68   :  { %v1424_v44 = vld [vmem:[%s2510_s0 + $0x182] sm:$0x1]   ;;  %v1057_v45 = vsel %vm14_vm2, %v1413_v43, %v1052_v42  ;;  %v1431_v54 = vld [vmem:[%s2510_s0 + $0x81] ss:$16 sm:%s1141_s6]   ;;  %s1471_s6 = smov 8  }
  0x69   :  { %v1419_v46 = vld [vmem:[%s2510_s0 + $0x102] ss:$16 sm:%s1086_s12]   ;;  %s1124_s12 = smov 48  ;;  %v1144_v55 = vsel %vm6_vm0, %v1431_v54, %v1430_v52  ;;  %v1432_v56 = vld [vmem:[%s2510_s0 + $0x81] ss:$16 sm:%s1146_s13]   ;;  %s19_s13 = smov 3 }
  0x6a   :  { %v1420_v47 = vld [vmem:[%s2510_s0 + $0x102] ss:$16 sm:%s1089_s19]   ;;  %v1433_v57 = vld [vmem:[%s2510_s0 + $0x81] ss:$16 sm:%s1151_s9]   ;;  %v1149_v58 = vsel %vm10_vm1, %v1432_v56, %v1144_v55 }
  0x6b   :  { %983 = vrot.lane.b32.xlu0 %v982_v23, %s1469_s16  ;;  %1035 = vrot.lane.b32.xlu1 %v1408_v22, %s1469_s16  ;;  %v1092_v48 = vsel %vm6_vm0, %v1420_v47, %v1419_v46  ;;  %v1421_v49 = vld [vmem:[%s2510_s0 + $0x102] ss:$16 sm:%s1094_s22]   ;;  %v1154_v61 = vsel %vm14_vm2, %v1433_v57, %v1149_v58  ;;  %s1169_s22 = smov 48 }
  0x6c   :  { %v1422_v50 = vld [vmem:[%s2510_s0 + $0x102] ss:$16 sm:%s1099_s25]   ;;  %v1097_v51 = vsel %vm10_vm1, %v1421_v49, %v1092_v48  ;;  %s1129_s25 = smov 192  ;;  %v1426_v59 = vld [vmem:[%s2510_s0 + $0x1] ss:$16 sm:%s1116_s4]  }
  0x6d   :  { %v1102_v53 = vsel %vm14_vm2, %v1422_v50, %v1097_v51  ;;  %v1427_v60 = vld [vmem:[%s2510_s0 + $0x1] ss:$16 sm:%s1119_s17]   ;;  %v3_v5 = vld [vmem:[%s2510_s0] ss:$16 sm:%s2_s23]  }
  0x6e   :  { %v1122_v62 = vsel %vm6_vm0, %v1427_v60, %v1426_v59  ;;  %v1428_v63 = vld [vmem:[%s2510_s0 + $0x1] ss:$16 sm:%s1124_s12]   ;;  %v5_v6 = vld [vmem:[%s2510_s0] ss:$16 sm:%s4_s29]   ;;  %s27_s12 = smov 48 }
  0x6f   :  { %1028 = vrot.lane.b32.xlu0 %v1027_v31, %s1469_s16  ;;  %1080 = vrot.lane.b32.xlu1 %v1079_v39, %s1470_s26  ;;  %v1127_v1 = vsel %vm10_vm1, %v1428_v63, %v1122_v62  ;;  %v1429_v2 = vld [vmem:[%s2510_s0 + $0x1] ss:$16 sm:%s1129_s25]   ;;  %v7_v7 = vsel %vm6_vm0, %v5_v6, %v3_v5  ;;  %s1174_s25 = smov 192 }
  0x70   :  { %v1440_v3 = vld [vmem:[%s2510_s0 + $0x181] sm:$0x1]   ;;  %v1132_v4 = vsel %vm14_vm2, %v1429_v2, %v1127_v1  ;;  %v9_v8 = vld [vmem:[%s2510_s0] ss:$16 sm:%s8_s3]  }
  0x71   :  { %v13_v9 = vld [vmem:[%s2510_s0] ss:$16 sm:%s12_s5]   ;;  %v11_v11 = vsel %vm10_vm1, %v9_v8, %v7_v7  ;;  %v1435_v12 = vld [vmem:[%s2510_s0 + $0x101] ss:$16 sm:%s1161_s11]  }
  0x72   :  { %v15_v13 = vsel %vm14_vm2, %v13_v9, %v11_v11  ;;  %v1436_v14 = vld [vmem:[%s2510_s0 + $0x101] ss:$16 sm:%s1164_s18]   ;;  %v1195_v20 = vld [vmem:[%s2510_s0 + $0x100] ss:$16 sm:%s40_s21]   ;;  %s22_s18 = smov 12 }
  0x73   :  { %1058 = vrot.lane.b32.xlu0 %v1057_v45, %s1470_s26  ;;  %1110 = vrot.lane.b32.xlu1 %v1424_v44, %s1470_s26  ;;  %17 = vst.msk [vmem:[%s2511_s1] sm:$0xff] %vm16_vm3, %v15_v13   ;;  %v1167_v15 = vsel %vm6_vm0, %v1436_v14, %v1435_v12 }
  0x74   :  { %v136_v0 = vpop.permute.xlu1 %135   ;;  %v1437_v16 = vld [vmem:[%s2510_s0 + $0x101] ss:$16 sm:%s1169_s22]   ;;  %v1196_v21 = vld [vmem:[%s2510_s0 + $0x100] ss:$16 sm:%s43_s28]  }
  0x75   :  { %1217 = vst.msk [vmem:[%s2511_s1 + $0x18] sm:$0x1] %vm85_vm4, %v136_v0   ;;  %v1438_v17 = vld [vmem:[%s2510_s0 + $0x101] ss:$16 sm:%s1174_s25]   ;;  %v1172_v19 = vsel %vm10_vm1, %v1437_v16, %v1167_v15  ;;  %v46_v23 = vsel %vm6_vm0, %v1196_v21, %v1195_v20  ;;  %s32_s25 = smov 192 }
  0x76   :  { %v1177_v22 = vsel %vm14_vm2, %v1438_v17, %v1172_v19  ;;  %v1198_v25 = vld [vmem:[%s2510_s0 + $0x100] ss:$16 sm:%s53_s24]  }
  0x77   :  { %1103 = vrot.lane.b32.xlu0 %v1102_v53, %s1470_s26  ;;  %1155 = vrot.lane.b32.xlu1 %v1154_v61, %s1471_s6  ;;  %s48_s26 = smov 48  ;;  %v1190_v28 = vld [vmem:[%s2510_s0 + $0x80] ss:$16 sm:%s19_s13]  }
  0x78   :  { %v1197_v24 = vld [vmem:[%s2510_s0 + $0x100] ss:$16 sm:%s48_s26]  }
  0x79   :  { %v84_v10 = vpop.permute.xlu0 %83   ;;  %v51_v26 = vsel %vm10_vm1, %v1197_v24, %v46_v23  ;;  %v1191_v30 = vld [vmem:[%s2510_s0 + $0x80] ss:$16 sm:%s22_s18]  }
  0x7a   :  { %86 = vst.msk [vmem:[%s2511_s1] sm:$0xff] %vm85_vm4, %v84_v10   ;;  %v56_v29 = vsel %vm14_vm2, %v1198_v25, %v51_v26  ;;  %v1192_v31 = vld [vmem:[%s2510_s0 + $0x80] ss:$16 sm:%s27_s12]   ;;  %v25_v32 = vsel %vm6_vm0, %v1191_v30, %v1190_v28  ;;  %vm985_vm0 = vcmask 261312  }
  0x7b   :  { %1133 = vrot.lane.b32.xlu0 %v1132_v4, %s1471_s6  ;;  %1185 = vrot.lane.b32.xlu1 %v1440_v3, %s1471_s6  ;;  %1199 = vst.msk [vmem:[%s2511_s1 + $0x10] sm:$0xff] %vm16_vm3, %v56_v29   ;;  %v30_v35 = vsel %vm10_vm1, %v1192_v31, %v25_v32  ;;  %vm1060_vm1 = vcmask 195712  }
  0x7c   :  { %v1193_v33 = vld [vmem:[%s2510_s0 + $0x80] ss:$16 sm:%s32_s25]  }
  0x7d   :  { %v129_v18 = vpop.permute.xlu1 %128   ;;  %v35_v36 = vsel %vm14_vm2, %v1193_v33, %v30_v35  ;;  %vm1135_vm2 = vcmask 130112  }
  0x7e   :  { %1215 = vst.msk [vmem:[%s2511_s1 + $0x10] sm:$0xff] %vm85_vm4, %v129_v18  }
  0x7f   :  { %1178 = vrot.lane.b32.xlu0 %v1177_v22, %s1471_s6  ;;  %1194 = vst.msk [vmem:[%s2511_s1 + $0x8] sm:$0xff] %vm16_vm3, %v35_v36  }
  0x81   :  { %v106_v27 = vpop.permute.xlu0 %105   ;;  %v181_v34 = vpop.permute.xlu1 %180  }
  0x82   :  { %1210 = vst.msk [vmem:[%s2511_s1 + $0x8] sm:$0xff] %vm85_vm4, %v106_v27  }
  0x83   :  { %1226 = vst.msk [vmem:[%s2511_s1 + $0x8] sm:$0xff] %vm160_vm5, %v181_v34  }
  0x85   :  { %v159_v37 = vpop.permute.xlu0 %158   ;;  %v211_v38 = vpop.permute.xlu1 %210  }
  0x86   :  { %161 = vst.msk [vmem:[%s2511_s1] sm:$0xff] %vm160_vm5, %v159_v37   ;;  %1233 = vst.msk [vmem:[%s2511_s1 + $0x18] sm:$0x1] %vm160_vm5, %v211_v38  }
  0x89   :  { %v204_v39 = vpop.permute.xlu0 %203   ;;  %v256_v40 = vpop.permute.xlu1 %255  }
  0x8a   :  { %1231 = vst.msk [vmem:[%s2511_s1 + $0x10] sm:$0xff] %vm160_vm5, %v204_v39  }
  0x8b   :  { %1242 = vst.msk [vmem:[%s2511_s1 + $0x8] sm:$0xff] %vm235_vm6, %v256_v40  }
  0x8d   :  { %v234_v41 = vpop.permute.xlu0 %233   ;;  %v286_v42 = vpop.permute.xlu1 %285  }
  0x8e   :  { %236 = vst.msk [vmem:[%s2511_s1] sm:$0xff] %vm235_vm6, %v234_v41   ;;  %1249 = vst.msk [vmem:[%s2511_s1 + $0x18] sm:$0x1] %vm235_vm6, %v286_v42  }
  0x91   :  { %v279_v43 = vpop.permute.xlu0 %278   ;;  %v331_v44 = vpop.permute.xlu1 %330  }
  0x92   :  { %1247 = vst.msk [vmem:[%s2511_s1 + $0x10] sm:$0xff] %vm235_vm6, %v279_v43  }
  0x93   :  { %1258 = vst.msk [vmem:[%s2511_s1 + $0x8] sm:$0xff] %vm310_vm7, %v331_v44  }
  0x95   :  { %v309_v45 = vpop.permute.xlu0 %308   ;;  %v361_v46 = vpop.permute.xlu1 %360  }
  0x96   :  { %311 = vst.msk [vmem:[%s2511_s1] sm:$0xff] %vm310_vm7, %v309_v45   ;;  %1265 = vst.msk [vmem:[%s2511_s1 + $0x18] sm:$0x1] %vm310_vm7, %v361_v46  }
  0x99   :  { %v354_v47 = vpop.permute.xlu0 %353   ;;  %v406_v48 = vpop.permute.xlu1 %405  }
  0x9a   :  { %1263 = vst.msk [vmem:[%s2511_s1 + $0x10] sm:$0xff] %vm310_vm7, %v354_v47  }
  0x9b   :  { %1274 = vst.msk [vmem:[%s2511_s1 + $0x8] sm:$0xff] %vm385_vm8, %v406_v48  }
  0x9d   :  { %v384_v49 = vpop.permute.xlu0 %383   ;;  %v436_v50 = vpop.permute.xlu1 %435  }
  0x9e   :  { %386 = vst.msk [vmem:[%s2511_s1] sm:$0xff] %vm385_vm8, %v384_v49   ;;  %1281 = vst.msk [vmem:[%s2511_s1 + $0x18] sm:$0x1] %vm385_vm8, %v436_v50  }
  0xa1   :  { %v429_v51 = vpop.permute.xlu0 %428   ;;  %v481_v52 = vpop.permute.xlu1 %480  }
  0xa2   :  { %1279 = vst.msk [vmem:[%s2511_s1 + $0x10] sm:$0xff] %vm385_vm8, %v429_v51  }
  0xa3   :  { %1290 = vst.msk [vmem:[%s2511_s1 + $0x8] sm:$0xff] %vm460_vm9, %v481_v52  }
  0xa5   :  { %v459_v53 = vpop.permute.xlu0 %458   ;;  %v511_v54 = vpop.permute.xlu1 %510  }
  0xa6   :  { %461 = vst.msk [vmem:[%s2511_s1] sm:$0xff] %vm460_vm9, %v459_v53   ;;  %1297 = vst.msk [vmem:[%s2511_s1 + $0x18] sm:$0x1] %vm460_vm9, %v511_v54  }
  0xa9   :  { %v504_v55 = vpop.permute.xlu0 %503   ;;  %v556_v56 = vpop.permute.xlu1 %555  }
  0xaa   :  { %1295 = vst.msk [vmem:[%s2511_s1 + $0x10] sm:$0xff] %vm460_vm9, %v504_v55  }
  0xab   :  { %1306 = vst.msk [vmem:[%s2511_s1 + $0x8] sm:$0xff] %vm535_vm10, %v556_v56  }
  0xad   :  { %v534_v57 = vpop.permute.xlu0 %533   ;;  %v586_v58 = vpop.permute.xlu1 %585  }
  0xae   :  { %536 = vst.msk [vmem:[%s2511_s1] sm:$0xff] %vm535_vm10, %v534_v57   ;;  %1313 = vst.msk [vmem:[%s2511_s1 + $0x18] sm:$0x1] %vm535_vm10, %v586_v58  }
  0xb1   :  { %v579_v59 = vpop.permute.xlu0 %578   ;;  %v631_v60 = vpop.permute.xlu1 %630  }
  0xb2   :  { %1311 = vst.msk [vmem:[%s2511_s1 + $0x10] sm:$0xff] %vm535_vm10, %v579_v59  }
  0xb3   :  { %1322 = vst.msk [vmem:[%s2511_s1 + $0x8] sm:$0xff] %vm610_vm11, %v631_v60  }
  0xb5   :  { %v609_v61 = vpop.permute.xlu0 %608   ;;  %v661_v62 = vpop.permute.xlu1 %660  }
  0xb6   :  { %611 = vst.msk [vmem:[%s2511_s1] sm:$0xff] %vm610_vm11, %v609_v61   ;;  %1329 = vst.msk [vmem:[%s2511_s1 + $0x18] sm:$0x1] %vm610_vm11, %v661_v62  }
  0xb9   :  { %v654_v63 = vpop.permute.xlu0 %653   ;;  %v706_v0 = vpop.permute.xlu1 %705  }
  0xba   :  { %1327 = vst.msk [vmem:[%s2511_s1 + $0x10] sm:$0xff] %vm610_vm11, %v654_v63  }
  0xbb   :  { %1338 = vst.msk [vmem:[%s2511_s1 + $0x8] sm:$0xff] %vm685_vm12, %v706_v0  }
  0xbd   :  { %v684_v1 = vpop.permute.xlu0 %683   ;;  %v736_v2 = vpop.permute.xlu1 %735  }
  0xbe   :  { %686 = vst.msk [vmem:[%s2511_s1] sm:$0xff] %vm685_vm12, %v684_v1   ;;  %1345 = vst.msk [vmem:[%s2511_s1 + $0x18] sm:$0x1] %vm685_vm12, %v736_v2  }
  0xc1   :  { %v729_v3 = vpop.permute.xlu0 %728   ;;  %v781_v4 = vpop.permute.xlu1 %780  }
  0xc2   :  { %1343 = vst.msk [vmem:[%s2511_s1 + $0x10] sm:$0xff] %vm685_vm12, %v729_v3  }
  0xc3   :  { %1354 = vst.msk [vmem:[%s2511_s1 + $0x8] sm:$0xff] %vm760_vm13, %v781_v4  }
  0xc5   :  { %v759_v5 = vpop.permute.xlu0 %758   ;;  %v811_v6 = vpop.permute.xlu1 %810  }
  0xc6   :  { %761 = vst.msk [vmem:[%s2511_s1] sm:$0xff] %vm760_vm13, %v759_v5   ;;  %1361 = vst.msk [vmem:[%s2511_s1 + $0x18] sm:$0x1] %vm760_vm13, %v811_v6  }
  0xc9   :  { %v804_v7 = vpop.permute.xlu0 %803   ;;  %v856_v8 = vpop.permute.xlu1 %855  }
  0xca   :  { %1359 = vst.msk [vmem:[%s2511_s1 + $0x10] sm:$0xff] %vm760_vm13, %v804_v7  }
  0xcb   :  { %1370 = vst.msk [vmem:[%s2511_s1 + $0x8] sm:$0xff] %vm835_vm14, %v856_v8  }
  0xcd   :  { %v834_v9 = vpop.permute.xlu0 %833   ;;  %v886_v10 = vpop.permute.xlu1 %885  }
  0xce   :  { %836 = vst.msk [vmem:[%s2511_s1] sm:$0xff] %vm835_vm14, %v834_v9   ;;  %1377 = vst.msk [vmem:[%s2511_s1 + $0x18] sm:$0x1] %vm835_vm14, %v886_v10  }
  0xd1   :  { %v879_v11 = vpop.permute.xlu0 %878   ;;  %v931_v12 = vpop.permute.xlu1 %930  }
  0xd2   :  { %1375 = vst.msk [vmem:[%s2511_s1 + $0x10] sm:$0xff] %vm835_vm14, %v879_v11  }
  0xd3   :  { %1386 = vst.msk [vmem:[%s2511_s1 + $0x8] sm:$0xff] %vm910_vm15, %v931_v12  }
  0xd5   :  { %v909_v13 = vpop.permute.xlu0 %908   ;;  %v961_v14 = vpop.permute.xlu1 %960  }
  0xd6   :  { %911 = vst.msk [vmem:[%s2511_s1] sm:$0xff] %vm910_vm15, %v909_v13   ;;  %1393 = vst.msk [vmem:[%s2511_s1 + $0x18] sm:$0x1] %vm910_vm15, %v961_v14  }
  0xd9   :  { %v954_v15 = vpop.permute.xlu0 %953   ;;  %v1006_v16 = vpop.permute.xlu1 %1005  }
  0xda   :  { %1391 = vst.msk [vmem:[%s2511_s1 + $0x10] sm:$0xff] %vm910_vm15, %v954_v15  }
  0xdb   :  { %1402 = vst.msk [vmem:[%s2511_s1 + $0x8] sm:$0xff] %vm985_vm0, %v1006_v16  }
  0xdd   :  { %v984_v17 = vpop.permute.xlu0 %983   ;;  %v1036_v18 = vpop.permute.xlu1 %1035  }
  0xde   :  { %986 = vst.msk [vmem:[%s2511_s1] sm:$0xff] %vm985_vm0, %v984_v17   ;;  %1409 = vst.msk [vmem:[%s2511_s1 + $0x18] sm:$0x1] %vm985_vm0, %v1036_v18  }
  0xe1   :  { %v1029_v19 = vpop.permute.xlu0 %1028   ;;  %v1081_v20 = vpop.permute.xlu1 %1080  }
  0xe2   :  { %1407 = vst.msk [vmem:[%s2511_s1 + $0x10] sm:$0xff] %vm985_vm0, %v1029_v19  }
  0xe3   :  { %1418 = vst.msk [vmem:[%s2511_s1 + $0x8] sm:$0xff] %vm1060_vm1, %v1081_v20  }
  0xe5   :  { %v1059_v21 = vpop.permute.xlu0 %1058   ;;  %v1111_v22 = vpop.permute.xlu1 %1110  }
  0xe6   :  { %1061 = vst.msk [vmem:[%s2511_s1] sm:$0xff] %vm1060_vm1, %v1059_v21   ;;  %1425 = vst.msk [vmem:[%s2511_s1 + $0x18] sm:$0x1] %vm1060_vm1, %v1111_v22  }
  0xe9   :  { %v1104_v23 = vpop.permute.xlu0 %1103   ;;  %v1156_v24 = vpop.permute.xlu1 %1155  }
  0xea   :  { %1423 = vst.msk [vmem:[%s2511_s1 + $0x10] sm:$0xff] %vm1060_vm1, %v1104_v23  }
  0xeb   :  { %1434 = vst.msk [vmem:[%s2511_s1 + $0x8] sm:$0xff] %vm1135_vm2, %v1156_v24  }
  0xed   :  { %v1134_v25 = vpop.permute.xlu0 %1133   ;;  %v1186_v26 = vpop.permute.xlu1 %1185  }
  0xee   :  { %1136 = vst.msk [vmem:[%s2511_s1] sm:$0xff] %vm1135_vm2, %v1134_v25   ;;  %1441 = vst.msk [vmem:[%s2511_s1 + $0x18] sm:$0x1] %vm1135_vm2, %v1186_v26  }
  0xf1   :  { %v1179_v27 = vpop.permute.xlu0 %1178  }
  0xf2   :  { %1439 = vst.msk [vmem:[%s2511_s1 + $0x10] sm:$0xff] %vm1135_vm2, %v1179_v27  }

// kernel: tile.59
= control target key start
LH: loop header
LB: loop body
LE: loop exit
PB: predicated region body
PF: predicated region fallthrough
CT: control target
= control target key end

     0   :  { %vm6_vm0 = vcmask 1043458   ;;  %vm10_vm1 = vcmask 1045508   ;;  %s66_s6 = smov 3  ;;  %s69_s11 = smov 12  ;;  %vm14_vm2 = vcmask 1047558   ;;  %vm16_vm3 = vcmask 31744   ;;  %s2510_s0 = inlined_call_operand.vmem [shape: f32[5,1,5,16,4], index: 0, kind: input, shape index: {}]   ;;  %s2511_s1 = inlined_call_operand.vmem [shape: f32[25,64], index: 1, kind: output, shape index: {}]  }
   0x1   :  { %v1216_v0 = vld [vmem:[%s2510_s0 + $0x18f] sm:$0x1]   ;;  %s74_s12 = smov 48  ;;  %s1457_s13 = smov 60   ;;  %v1232_v34 = vld [vmem:[%s2510_s0 + $0x18e] sm:$0x1]  }
   0x2   :  { %v1202_v1 = vld [vmem:[%s2510_s0 + $0xf] ss:$16 sm:%s66_s6]   ;;  %135 = vrot.lane.b32.xlu1 %v1216_v0, %s1457_s13  ;;  %s79_s16 = smov 192  ;;  %s111_s17 = smov 3  ;;  %v1248_v57 = vld [vmem:[%s2510_s0 + $0x18d] sm:$0x1]  }
   0x3   :  { %v1203_v2 = vld [vmem:[%s2510_s0 + $0xf] ss:$16 sm:%s69_s11]   ;;  %s114_s22 = smov 12  ;;  %s119_s23 = smov 48  ;;  %vm85_vm4 = vcmask 523744   ;;  %vm160_vm5 = vcmask 490944  }
   0x4   :  { %v72_v3 = vsel %vm6_vm0, %v1203_v2, %v1202_v1  ;;  %v1204_v4 = vld [vmem:[%s2510_s0 + $0xf] ss:$16 sm:%s74_s12]   ;;  %s124_s28 = smov 192  ;;  %s88_s29 = smov 3  ;;  %vm235_vm6 = vcmask 458144   ;;  %vm310_vm7 = vcmask 425344  }
   0x5   :  { %v1205_v5 = vld [vmem:[%s2510_s0 + $0xf] ss:$16 sm:%s79_s16]   ;;  %v77_v6 = vsel %vm10_vm1, %v1204_v4, %v72_v3  ;;  %s91_s5 = smov 12  ;;  %s96_s6 = smov 48  ;;  %vm385_vm8 = vcmask 392544   ;;  %vm460_vm9 = vcmask 359744  }
   0x6   :  { %v1211_v7 = vld [vmem:[%s2510_s0 + $0x10f] ss:$16 sm:%s111_s17]   ;;  %v82_v9 = vsel %vm14_vm2, %v1205_v5, %v77_v6  ;;  %s101_s9 = smov 192  ;;  %s163_s15 = smov 3  ;;  %vm535_vm10 = vcmask 326944   ;;  %vm610_vm11 = vcmask 294144  }
   0x7   :  { %v1212_v8 = vld [vmem:[%s2510_s0 + $0x10f] ss:$16 sm:%s114_s22]   ;;  %83 = vrot.lane.b32.xlu0 %v82_v9, %s1457_s13  ;;  %s166_s16 = smov 12  ;;  %s171_s19 = smov 48  ;;  %vm685_vm12 = vcmask 261344   ;;  %vm760_vm13 = vcmask 228544  }
   0x8   :  { %v117_v10 = vsel %vm6_vm0, %v1212_v8, %v1211_v7  ;;  %v1213_v11 = vld [vmem:[%s2510_s0 + $0x10f] ss:$16 sm:%s119_s23]   ;;  %s176_s20 = smov 192  ;;  %v1222_v21 = vld [vmem:[%s2510_s0 + $0x8e] ss:$16 sm:%s163_s15]   ;;  %s141_s25 = smov 3 }
   0x9   :  { %v1214_v12 = vld [vmem:[%s2510_s0 + $0x10f] ss:$16 sm:%s124_s28]   ;;  %v122_v13 = vsel %vm10_vm1, %v1213_v11, %v117_v10  ;;  %v1223_v22 = vld [vmem:[%s2510_s0 + $0x8e] ss:$16 sm:%s166_s16]   ;;  %s144_s26 = smov 12  ;;  %s149_s2 = smov 48 }
   0xa   :  { %v1206_v14 = vld [vmem:[%s2510_s0 + $0x8f] ss:$16 sm:%s88_s29]   ;;  %v127_v15 = vsel %vm14_vm2, %v1214_v12, %v122_v13  ;;  %v169_v24 = vsel %vm6_vm0, %v1223_v22, %v1222_v21  ;;  %v1224_v25 = vld [vmem:[%s2510_s0 + $0x8e] ss:$16 sm:%s171_s19]   ;;  %s154_s3 = smov 192  ;;  %s194_s11 = smov 48 }
   0xb   :  { %v1207_v16 = vld [vmem:[%s2510_s0 + $0x8f] ss:$16 sm:%s91_s5]   ;;  %128 = vrot.lane.b32.xlu1 %v127_v15, %s1457_s13  ;;  %v174_v27 = vsel %vm10_vm1, %v1224_v25, %v169_v24  ;;  %s186_s5 = smov 3  ;;  %s199_s12 = smov 192  ;;  %v1264_v15 = vld [vmem:[%s2510_s0 + $0x18c] sm:$0x1]  }
   0xc   :  { %v1208_v17 = vld [vmem:[%s2510_s0 + $0x8f] ss:$16 sm:%s96_s6]   ;;  %v94_v18 = vsel %vm6_vm0, %v1207_v16, %v1206_v14  ;;  %v1225_v26 = vld [vmem:[%s2510_s0 + $0x8e] ss:$16 sm:%s176_s20]   ;;  %s189_s6 = smov 12  ;;  %s1458_s14 = smov 56  }
   0xd   :  { %v1209_v19 = vld [vmem:[%s2510_s0 + $0x8f] ss:$16 sm:%s101_s9]   ;;  %v99_v20 = vsel %vm10_vm1, %v1208_v17, %v94_v18  ;;  %v1218_v28 = vld [vmem:[%s2510_s0 + $0xe] ss:$16 sm:%s141_s25]   ;;  %v179_v29 = vsel %vm14_vm2, %v1225_v26, %v174_v27  ;;  %s238_s19 = smov 3  ;;  %s241_s24 = smov 12 }
   0xe   :  { %v104_v23 = vsel %vm14_vm2, %v1209_v19, %v99_v20  ;;  %v1219_v30 = vld [vmem:[%s2510_s0 + $0xe] ss:$16 sm:%s144_s26]   ;;  %s246_s29 = smov 48  ;;  %s251_s30 = smov 192  ;;  %v1238_v43 = vld [vmem:[%s2510_s0 + $0x8d] ss:$16 sm:%s238_s19]  }
   0xf   :  { %105 = vrot.lane.b32.xlu0 %v104_v23, %s1457_s13  ;;  %v1220_v31 = vld [vmem:[%s2510_s0 + $0xe] ss:$16 sm:%s149_s2]   ;;  %180 = vrot.lane.b32.xlu1 %v179_v29, %s1458_s14  ;;  %v147_v32 = vsel %vm6_vm0, %v1219_v30, %v1218_v28  ;;  %s216_s13 = smov 3  ;;  %s219_s4 = smov 12  ;;  %vm835_vm14 = vcmask 195744   ;;  %vm910_vm15 = vcmask 162944  }
  0x10   :  { %v1221_v33 = vld [vmem:[%s2510_s0 + $0xe] ss:$16 sm:%s154_s3]   ;;  %v152_v35 = vsel %vm10_vm1, %v1220_v31, %v147_v32  ;;  %v1239_v45 = vld [vmem:[%s2510_s0 + $0x8d] ss:$16 sm:%s241_s24]   ;;  %s224_s7 = smov 48  ;;  %s261_s19 = smov 3 }
  0x11   :  { %v1227_v36 = vld [vmem:[%s2510_s0 + $0x10e] ss:$16 sm:%s186_s5]   ;;  %v157_v38 = vsel %vm14_vm2, %v1221_v33, %v152_v35  ;;  %v244_v46 = vsel %vm6_vm0, %v1239_v45, %v1238_v43  ;;  %v1240_v47 = vld [vmem:[%s2510_s0 + $0x8d] ss:$16 sm:%s246_s29]   ;;  %s264_s20 = smov 12  ;;  %s269_s22 = smov 48 }
  0x12   :  { %v1228_v37 = vld [vmem:[%s2510_s0 + $0x10e] ss:$16 sm:%s189_s6]   ;;  %v1241_v48 = vld [vmem:[%s2510_s0 + $0x8d] ss:$16 sm:%s251_s30]   ;;  %v249_v49 = vsel %vm10_vm1, %v1240_v47, %v244_v46  ;;  %s274_s23 = smov 192  ;;  %s1459_s24 = smov 52  }
  0x13   :  { %v192_v39 = vsel %vm6_vm0, %v1228_v37, %v1227_v36  ;;  %v1229_v40 = vld [vmem:[%s2510_s0 + $0x10e] ss:$16 sm:%s194_s11]   ;;  %158 = vrot.lane.b32.xlu0 %v157_v38, %s1458_s14  ;;  %210 = vrot.lane.b32.xlu1 %v1232_v34, %s1458_s14  ;;  %v254_v52 = vsel %vm14_vm2, %v1241_v48, %v249_v49  ;;  %s313_s29 = smov 3  ;;  %s321_s9 = smov 48 }
  0x14   :  { %v1230_v41 = vld [vmem:[%s2510_s0 + $0x10e] ss:$16 sm:%s199_s12]   ;;  %v197_v42 = vsel %vm10_vm1, %v1229_v40, %v192_v39  ;;  %s229_s12 = smov 192  ;;  %v1234_v50 = vld [vmem:[%s2510_s0 + $0xd] ss:$16 sm:%s216_s13]   ;;  %s326_s10 = smov 192 }
  0x15   :  { %v202_v44 = vsel %vm14_vm2, %v1230_v41, %v197_v42  ;;  %v1235_v51 = vld [vmem:[%s2510_s0 + $0xd] ss:$16 sm:%s219_s4]   ;;  %s316_s4 = smov 12  ;;  %v1254_v1 = vld [vmem:[%s2510_s0 + $0x8c] ss:$16 sm:%s313_s29]   ;;  %s291_s15 = smov 3 }
  0x16   :  { %v222_v53 = vsel %vm6_vm0, %v1235_v51, %v1234_v50  ;;  %v1236_v54 = vld [vmem:[%s2510_s0 + $0xd] ss:$16 sm:%s224_s7]   ;;  %s294_s16 = smov 12  ;;  %v1255_v3 = vld [vmem:[%s2510_s0 + $0x8c] ss:$16 sm:%s316_s4]   ;;  %s336_s29 = smov 3 }
  0x17   :  { %203 = vrot.lane.b32.xlu0 %v202_v44, %s1458_s14  ;;  %255 = vrot.lane.b32.xlu1 %v254_v52, %s1459_s24  ;;  %v227_v55 = vsel %vm10_vm1, %v1236_v54, %v222_v53  ;;  %v1237_v56 = vld [vmem:[%s2510_s0 + $0xd] ss:$16 sm:%s229_s12]   ;;  %v319_v4 = vsel %vm6_vm0, %v1255_v3, %v1254_v1  ;;  %s339_s30 = smov 12  ;;  %s344_s3 = smov 48 }
  0x18   :  { %v232_v58 = vsel %vm14_vm2, %v1237_v56, %v227_v55  ;;  %v1243_v59 = vld [vmem:[%s2510_s0 + $0x10d] ss:$16 sm:%s261_s19]   ;;  %s299_s19 = smov 48  ;;  %v1256_v5 = vld [vmem:[%s2510_s0 + $0x8c] ss:$16 sm:%s321_s9]   ;;  %s349_s13 = smov 192 }
  0x19   :  { %v1244_v60 = vld [vmem:[%s2510_s0 + $0x10d] ss:$16 sm:%s264_s20]   ;;  %v1257_v6 = vld [vmem:[%s2510_s0 + $0x8c] ss:$16 sm:%s326_s10]   ;;  %v324_v7 = vsel %vm10_vm1, %v1256_v5, %v319_v4  ;;  %s1460_s4 = smov 48   ;;  %s388_s9 = smov 3 }
  0x1a   :  { %v267_v61 = vsel %vm6_vm0, %v1244_v60, %v1243_v59  ;;  %v1245_v62 = vld [vmem:[%s2510_s0 + $0x10d] ss:$16 sm:%s269_s22]   ;;  %v1250_v8 = vld [vmem:[%s2510_s0 + $0xc] ss:$16 sm:%s291_s15]   ;;  %v329_v10 = vsel %vm14_vm2, %v1257_v6, %v324_v7  ;;  %s396_s14 = smov 48  ;;  %s401_s21 = smov 192 }
  0x1b   :  { %v1246_v63 = vld [vmem:[%s2510_s0 + $0x10d] ss:$16 sm:%s274_s23]   ;;  %233 = vrot.lane.b32.xlu0 %v232_v58, %s1459_s24  ;;  %v272_v0 = vsel %vm10_vm1, %v1245_v62, %v267_v61  ;;  %285 = vrot.lane.b32.xlu1 %v1248_v57, %s1459_s24  ;;  %s304_s23 = smov 192  ;;  %s366_s25 = smov 3 }
  0x1c   :  { %v277_v2 = vsel %vm14_vm2, %v1246_v63, %v272_v0  ;;  %v1251_v9 = vld [vmem:[%s2510_s0 + $0xc] ss:$16 sm:%s294_s16]   ;;  %s391_s16 = smov 12  ;;  %v1270_v23 = vld [vmem:[%s2510_s0 + $0x8b] ss:$16 sm:%s388_s9]   ;;  %s369_s26 = smov 12 }
  0x1d   :  { %v297_v11 = vsel %vm6_vm0, %v1251_v9, %v1250_v8  ;;  %v1252_v12 = vld [vmem:[%s2510_s0 + $0xc] ss:$16 sm:%s299_s19]   ;;  %v1271_v25 = vld [vmem:[%s2510_s0 + $0x8b] ss:$16 sm:%s391_s16]   ;;  %s379_s6 = smov 192  ;;  %s411_s15 = smov 3 }
  0x1e   :  { %v302_v13 = vsel %vm10_vm1, %v1252_v12, %v297_v11  ;;  %v1253_v14 = vld [vmem:[%s2510_s0 + $0xc] ss:$16 sm:%s304_s23]   ;;  %v1200_v26 = vld [vmem:[%s2510_s0 + $0x180] sm:$0x1]   ;;  %v394_v27 = vsel %vm6_vm0, %v1271_v25, %v1270_v23  ;;  %s414_s16 = smov 12  ;;  %s419_s18 = smov 48 }
  0x1f   :  { %278 = vrot.lane.b32.xlu0 %v277_v2, %s1459_s24  ;;  %330 = vrot.lane.b32.xlu1 %v329_v10, %s1460_s4  ;;  %v307_v16 = vsel %vm14_vm2, %v1253_v14, %v302_v13  ;;  %v1259_v17 = vld [vmem:[%s2510_s0 + $0x10c] ss:$16 sm:%s336_s29]   ;;  %s374_s29 = smov 48  ;;  %s424_s19 = smov 192 }
  0x20   :  { %v1260_v18 = vld [vmem:[%s2510_s0 + $0x10c] ss:$16 sm:%s339_s30]   ;;  %v1272_v28 = vld [vmem:[%s2510_s0 + $0x8b] ss:$16 sm:%s396_s14]   ;;  %s1461_s20 = smov 44   ;;  %s466_s30 = smov 12 }
  0x21   :  { %v342_v19 = vsel %vm6_vm0, %v1260_v18, %v1259_v17  ;;  %v1261_v20 = vld [vmem:[%s2510_s0 + $0x10c] ss:$16 sm:%s344_s3]   ;;  %v1273_v29 = vld [vmem:[%s2510_s0 + $0x8b] ss:$16 sm:%s401_s21]   ;;  %v399_v30 = vsel %vm10_vm1, %v1272_v28, %v394_v27  ;;  %s471_s5 = smov 48  ;;  %s441_s9 = smov 3 }
  0x22   :  { %v1262_v21 = vld [vmem:[%s2510_s0 + $0x10c] ss:$16 sm:%s349_s13]   ;;  %v347_v22 = vsel %vm10_vm1, %v1261_v20, %v342_v19  ;;  %1201 = vst.msk [vmem:[%s2511_s1 + $0x18] sm:$0x1] %vm16_vm3, %v1200_v26   ;;  %v404_v33 = vsel %vm14_vm2, %v1273_v29, %v399_v30  ;;  %v1280_v38 = vld [vmem:[%s2510_s0 + $0x18b] sm:$0x1]  }
  0x23   :  { %308 = vrot.lane.b32.xlu0 %v307_v16, %s1460_s4  ;;  %360 = vrot.lane.b32.xlu1 %v1264_v15, %s1460_s4  ;;  %v352_v24 = vsel %vm14_vm2, %v1262_v21, %v347_v22  ;;  %v1266_v31 = vld [vmem:[%s2510_s0 + $0xb] ss:$16 sm:%s366_s25]   ;;  %s463_s25 = smov 3  ;;  %s444_s10 = smov 12 }
  0x24   :  { %v1267_v32 = vld [vmem:[%s2510_s0 + $0xb] ss:$16 sm:%s369_s26]   ;;  %v1286_v46 = vld [vmem:[%s2510_s0 + $0x8a] ss:$16 sm:%s463_s25]   ;;  %s486_s25 = smov 3  ;;  %s489_s26 = smov 12 }
  0x25   :  { %v372_v34 = vsel %vm6_vm0, %v1267_v32, %v1266_v31  ;;  %v1268_v35 = vld [vmem:[%s2510_s0 + $0xb] ss:$16 sm:%s374_s29]   ;;  %v1287_v48 = vld [vmem:[%s2510_s0 + $0x8a] ss:$16 sm:%s466_s30]   ;;  %s494_s28 = smov 48  ;;  %s499_s29 = smov 192 }
  0x26   :  { %v377_v36 = vsel %vm10_vm1, %v1268_v35, %v372_v34  ;;  %v1269_v37 = vld [vmem:[%s2510_s0 + $0xb] ss:$16 sm:%s379_s6]   ;;  %s476_s6 = smov 192  ;;  %v469_v49 = vsel %vm6_vm0, %v1287_v48, %v1286_v46  ;;  %v1288_v50 = vld [vmem:[%s2510_s0 + $0x8a] ss:$16 sm:%s471_s5]   ;;  %s1462_s30 = smov 40  }
  0x27   :  { %353 = vrot.lane.b32.xlu0 %v352_v24, %s1460_s4  ;;  %405 = vrot.lane.b32.xlu1 %v404_v33, %s1461_s20  ;;  %v382_v39 = vsel %vm14_vm2, %v1269_v37, %v377_v36  ;;  %v1275_v40 = vld [vmem:[%s2510_s0 + $0x10b] ss:$16 sm:%s411_s15]   ;;  %s449_s15 = smov 48  ;;  %v474_v52 = vsel %vm10_vm1, %v1288_v50, %v469_v49  ;;  %s538_s5 = smov 3 }
  0x28   :  { %v1276_v41 = vld [vmem:[%s2510_s0 + $0x10b] ss:$16 sm:%s414_s16]   ;;  %v1289_v51 = vld [vmem:[%s2510_s0 + $0x8a] ss:$16 sm:%s476_s6]   ;;  %s546_s4 = smov 48  ;;  %s551_s17 = smov 192 }
  0x29   :  { %v417_v42 = vsel %vm6_vm0, %v1276_v41, %v1275_v40  ;;  %v1277_v43 = vld [vmem:[%s2510_s0 + $0x10b] ss:$16 sm:%s419_s18]   ;;  %v1282_v53 = vld [vmem:[%s2510_s0 + $0xa] ss:$16 sm:%s441_s9]   ;;  %v479_v55 = vsel %vm14_vm2, %v1289_v51, %v474_v52  ;;  %s516_s14 = smov 3  ;;  %s519_s21 = smov 12 }
  0x2a   :  { %v1278_v44 = vld [vmem:[%s2510_s0 + $0x10b] ss:$16 sm:%s424_s19]   ;;  %v422_v45 = vsel %vm10_vm1, %v1277_v43, %v417_v42  ;;  %s454_s19 = smov 192  ;;  %v1283_v54 = vld [vmem:[%s2510_s0 + $0xa] ss:$16 sm:%s444_s10]   ;;  %s541_s10 = smov 12 }
  0x2b   :  { %383 = vrot.lane.b32.xlu0 %v382_v39, %s1461_s20  ;;  %435 = vrot.lane.b32.xlu1 %v1280_v38, %s1461_s20  ;;  %v427_v47 = vsel %vm14_vm2, %v1278_v44, %v422_v45  ;;  %v447_v56 = vsel %vm6_vm0, %v1283_v54, %v1282_v53  ;;  %v1284_v57 = vld [vmem:[%s2510_s0 + $0xa] ss:$16 sm:%s449_s15]   ;;  %s564_s6 = smov 12  ;;  %s569_s8 = smov 48 }
  0x2c   :  { %v452_v58 = vsel %vm10_vm1, %v1284_v57, %v447_v56  ;;  %v1285_v59 = vld [vmem:[%s2510_s0 + $0xa] ss:$16 sm:%s454_s19]   ;;  %v1302_v4 = vld [vmem:[%s2510_s0 + $0x89] ss:$16 sm:%s538_s5]   ;;  %s561_s5 = smov 3  ;;  %s574_s9 = smov 192 }
  0x2d   :  { %v1296_v60 = vld [vmem:[%s2510_s0 + $0x18a] sm:$0x1]   ;;  %v457_v61 = vsel %vm14_vm2, %v1285_v59, %v452_v58  ;;  %v1303_v6 = vld [vmem:[%s2510_s0 + $0x89] ss:$16 sm:%s541_s10]   ;;  %s1463_s10 = smov 36   ;;  %s626_s27 = smov 192 }
  0x2e   :  { %v1291_v62 = vld [vmem:[%s2510_s0 + $0x10a] ss:$16 sm:%s486_s25]   ;;  %s524_s25 = smov 48  ;;  %v544_v7 = vsel %vm6_vm0, %v1303_v6, %v1302_v4  ;;  %v1304_v8 = vld [vmem:[%s2510_s0 + $0x89] ss:$16 sm:%s546_s4]   ;;  %s613_s4 = smov 3 }
  0x2f   :  { %428 = vrot.lane.b32.xlu0 %v427_v47, %s1461_s20  ;;  %480 = vrot.lane.b32.xlu1 %v479_v55, %s1462_s30  ;;  %v1292_v63 = vld [vmem:[%s2510_s0 + $0x10a] ss:$16 sm:%s489_s26]   ;;  %v549_v10 = vsel %vm10_vm1, %v1304_v8, %v544_v7  ;;  %s621_s20 = smov 48  ;;  %s591_s24 = smov 3 }
  0x30   :  { %v492_v0 = vsel %vm6_vm0, %v1292_v63, %v1291_v62  ;;  %v1293_v1 = vld [vmem:[%s2510_s0 + $0x10a] ss:$16 sm:%s494_s28]   ;;  %v1305_v9 = vld [vmem:[%s2510_s0 + $0x89] ss:$16 sm:%s551_s17]   ;;  %s594_s2 = smov 12  ;;  %s639_s17 = smov 12 }
  0x31   :  { %v1294_v2 = vld [vmem:[%s2510_s0 + $0x10a] ss:$16 sm:%s499_s29]   ;;  %v497_v3 = vsel %vm10_vm1, %v1293_v1, %v492_v0  ;;  %s529_s29 = smov 192  ;;  %v1298_v11 = vld [vmem:[%s2510_s0 + $0x9] ss:$16 sm:%s516_s14]   ;;  %v554_v13 = vsel %vm14_vm2, %v1305_v9, %v549_v10  ;;  %s644_s19 = smov 48 }
  0x32   :  { %v502_v5 = vsel %vm14_vm2, %v1294_v2, %v497_v3  ;;  %v1299_v12 = vld [vmem:[%s2510_s0 + $0x9] ss:$16 sm:%s519_s21]   ;;  %s616_s21 = smov 12  ;;  %v1318_v26 = vld [vmem:[%s2510_s0 + $0x88] ss:$16 sm:%s613_s4]   ;;  %s636_s4 = smov 3 }
  0x33   :  { %458 = vrot.lane.b32.xlu0 %v457_v61, %s1462_s30  ;;  %510 = vrot.lane.b32.xlu1 %v1296_v60, %s1462_s30  ;;  %v522_v14 = vsel %vm6_vm0, %v1299_v12, %v1298_v11  ;;  %v1300_v15 = vld [vmem:[%s2510_s0 + $0x9] ss:$16 sm:%s524_s25]   ;;  %s649_s14 = smov 192  ;;  %s701_s7 = smov 192 }
  0x34   :  { %v527_v16 = vsel %vm10_vm1, %v1300_v15, %v522_v14  ;;  %v1301_v17 = vld [vmem:[%s2510_s0 + $0x9] ss:$16 sm:%s529_s29]   ;;  %v1319_v28 = vld [vmem:[%s2510_s0 + $0x88] ss:$16 sm:%s616_s21]   ;;  %s1464_s21 = smov 32   ;;  %s666_s11 = smov 3 }
  0x35   :  { %v1312_v18 = vld [vmem:[%s2510_s0 + $0x189] sm:$0x1]   ;;  %v532_v19 = vsel %vm14_vm2, %v1301_v17, %v527_v16  ;;  %v619_v29 = vsel %vm6_vm0, %v1319_v28, %v1318_v26  ;;  %v1320_v30 = vld [vmem:[%s2510_s0 + $0x88] ss:$16 sm:%s621_s20]   ;;  %s688_s20 = smov 3  ;;  %s669_s12 = smov 12 }
  0x36   :  { %v1307_v20 = vld [vmem:[%s2510_s0 + $0x109] ss:$16 sm:%s561_s5]   ;;  %s599_s5 = smov 48  ;;  %v1321_v31 = vld [vmem:[%s2510_s0 + $0x88] ss:$16 sm:%s626_s27]   ;;  %v624_v32 = vsel %vm10_vm1, %v1320_v30, %v619_v29  ;;  %s714_s27 = smov 12 }
  0x37   :  { %503 = vrot.lane.b32.xlu0 %v502_v5, %s1462_s30  ;;  %555 = vrot.lane.b32.xlu1 %v554_v13, %s1463_s10  ;;  %v1308_v21 = vld [vmem:[%s2510_s0 + $0x109] ss:$16 sm:%s564_s6]   ;;  %v629_v35 = vsel %vm14_vm2, %v1321_v31, %v624_v32  ;;  %s696_s30 = smov 48  ;;  %s719_s29 = smov 48 }
  0x38   :  { %v567_v22 = vsel %vm6_vm0, %v1308_v21, %v1307_v20  ;;  %v1309_v23 = vld [vmem:[%s2510_s0 + $0x109] ss:$16 sm:%s569_s8]   ;;  %v1314_v33 = vld [vmem:[%s2510_s0 + $0x8] ss:$16 sm:%s591_s24]   ;;  %s724_s24 = smov 192  ;;  %s776_s18 = smov 192 }
  0x39   :  { %v1310_v24 = vld [vmem:[%s2510_s0 + $0x109] ss:$16 sm:%s574_s9]   ;;  %v572_v25 = vsel %vm10_vm1, %v1309_v23, %v567_v22  ;;  %s604_s9 = smov 192  ;;  %v1315_v34 = vld [vmem:[%s2510_s0 + $0x8] ss:$16 sm:%s594_s2]   ;;  %s691_s2 = smov 12 }
  0x3a   :  { %v577_v27 = vsel %vm14_vm2, %v1310_v24, %v572_v25  ;;  %v597_v36 = vsel %vm6_vm0, %v1315_v34, %v1314_v33  ;;  %v1316_v37 = vld [vmem:[%s2510_s0 + $0x8] ss:$16 sm:%s599_s5]   ;;  %v1334_v48 = vld [vmem:[%s2510_s0 + $0x87] ss:$16 sm:%s688_s20]   ;;  %s711_s20 = smov 3  ;;  %s741_s22 = smov 3 }
  0x3b   :  { %533 = vrot.lane.b32.xlu0 %v532_v19, %s1463_s10  ;;  %585 = vrot.lane.b32.xlu1 %v1312_v18, %s1463_s10  ;;  %v602_v38 = vsel %vm10_vm1, %v1316_v37, %v597_v36  ;;  %v1317_v39 = vld [vmem:[%s2510_s0 + $0x8] ss:$16 sm:%s604_s9]   ;;  %s744_s23 = smov 12  ;;  %s794_s9 = smov 48 }
  0x3c   :  { %v1328_v40 = vld [vmem:[%s2510_s0 + $0x188] sm:$0x1]   ;;  %v607_v41 = vsel %vm14_vm2, %v1317_v39, %v602_v38  ;;  %v1335_v50 = vld [vmem:[%s2510_s0 + $0x87] ss:$16 sm:%s691_s2]   ;;  %s1465_s2 = smov 28   ;;  %s851_s28 = smov 192 }
  0x3d   :  { %v1323_v42 = vld [vmem:[%s2510_s0 + $0x108] ss:$16 sm:%s636_s4]   ;;  %s674_s4 = smov 48  ;;  %v694_v51 = vsel %vm6_vm0, %v1335_v50, %v1334_v48  ;;  %v1336_v52 = vld [vmem:[%s2510_s0 + $0x87] ss:$16 sm:%s696_s30]   ;;  %s763_s30 = smov 3 }
  0x3e   :  { %v1324_v43 = vld [vmem:[%s2510_s0 + $0x108] ss:$16 sm:%s639_s17]   ;;  %v1337_v53 = vld [vmem:[%s2510_s0 + $0x87] ss:$16 sm:%s701_s7]   ;;  %v699_v54 = vsel %vm10_vm1, %v1336_v52, %v694_v51  ;;  %s789_s7 = smov 12  ;;  %s816_s3 = smov 3 }
  0x3f   :  { %578 = vrot.lane.b32.xlu0 %v577_v27, %s1463_s10  ;;  %630 = vrot.lane.b32.xlu1 %v629_v35, %s1464_s21  ;;  %v642_v44 = vsel %vm6_vm0, %v1324_v43, %v1323_v42  ;;  %v1325_v45 = vld [vmem:[%s2510_s0 + $0x108] ss:$16 sm:%s644_s19]   ;;  %v704_v57 = vsel %vm14_vm2, %v1337_v53, %v699_v54  ;;  %s771_s10 = smov 48  ;;  %s819_s13 = smov 12 }
  0x40   :  { %v1326_v46 = vld [vmem:[%s2510_s0 + $0x108] ss:$16 sm:%s649_s14]   ;;  %v647_v47 = vsel %vm10_vm1, %v1325_v45, %v642_v44  ;;  %s679_s14 = smov 192  ;;  %v1330_v55 = vld [vmem:[%s2510_s0 + $0x7] ss:$16 sm:%s666_s11]   ;;  %s799_s11 = smov 192 }
  0x41   :  { %v652_v49 = vsel %vm14_vm2, %v1326_v46, %v647_v47  ;;  %v1331_v56 = vld [vmem:[%s2510_s0 + $0x7] ss:$16 sm:%s669_s12]   ;;  %s766_s12 = smov 12  ;;  %v1350_v6 = vld [vmem:[%s2510_s0 + $0x86] ss:$16 sm:%s763_s30]   ;;  %s786_s30 = smov 3 }
  0x42   :  { %v672_v58 = vsel %vm6_vm0, %v1331_v56, %v1330_v55  ;;  %v1332_v59 = vld [vmem:[%s2510_s0 + $0x7] ss:$16 sm:%s674_s4]   ;;  %v1351_v8 = vld [vmem:[%s2510_s0 + $0x86] ss:$16 sm:%s766_s12]   ;;  %s1466_s12 = smov 24   ;;  %s926_s8 = smov 192 }
  0x43   :  { %608 = vrot.lane.b32.xlu0 %v607_v41, %s1464_s21  ;;  %660 = vrot.lane.b32.xlu1 %v1328_v40, %s1464_s21  ;;  %v677_v60 = vsel %vm10_vm1, %v1332_v59, %v672_v58  ;;  %v1333_v61 = vld [vmem:[%s2510_s0 + $0x7] ss:$16 sm:%s679_s14]   ;;  %v769_v9 = vsel %vm6_vm0, %v1351_v8, %v1350_v6  ;;  %s869_s14 = smov 48  ;;  %s891_s15 = smov 3 }
  0x44   :  { %v1344_v62 = vld [vmem:[%s2510_s0 + $0x187] sm:$0x1]   ;;  %v682_v63 = vsel %vm14_vm2, %v1333_v61, %v677_v60  ;;  %v1352_v10 = vld [vmem:[%s2510_s0 + $0x86] ss:$16 sm:%s771_s10]   ;;  %s838_s10 = smov 3  ;;  %s894_s16 = smov 12 }
  0x45   :  { %v1339_v0 = vld [vmem:[%s2510_s0 + $0x107] ss:$16 sm:%s711_s20]   ;;  %s749_s20 = smov 48  ;;  %v1353_v11 = vld [vmem:[%s2510_s0 + $0x86] ss:$16 sm:%s776_s18]   ;;  %v774_v12 = vsel %vm10_vm1, %v1352_v10, %v769_v9  ;;  %s864_s18 = smov 12 }
  0x46   :  { %v1340_v1 = vld [vmem:[%s2510_s0 + $0x107] ss:$16 sm:%s714_s27]   ;;  %v1346_v13 = vld [vmem:[%s2510_s0 + $0x6] ss:$16 sm:%s741_s22]   ;;  %v779_v15 = vsel %vm14_vm2, %v1353_v11, %v774_v12  ;;  %s874_s22 = smov 192  ;;  %s1001_s19 = smov 192 }
  0x47   :  { %653 = vrot.lane.b32.xlu0 %v652_v49, %s1464_s21  ;;  %705 = vrot.lane.b32.xlu1 %v704_v57, %s1465_s2  ;;  %v717_v2 = vsel %vm6_vm0, %v1340_v1, %v1339_v0  ;;  %v1341_v3 = vld [vmem:[%s2510_s0 + $0x107] ss:$16 sm:%s719_s29]   ;;  %s846_s21 = smov 48  ;;  %s966_s25 = smov 3 }
  0x48   :  { %v1342_v4 = vld [vmem:[%s2510_s0 + $0x107] ss:$16 sm:%s724_s24]   ;;  %v722_v5 = vsel %vm10_vm1, %v1341_v3, %v717_v2  ;;  %s754_s24 = smov 192  ;;  %v1347_v14 = vld [vmem:[%s2510_s0 + $0x6] ss:$16 sm:%s744_s23]   ;;  %s841_s23 = smov 12 }
  0x49   :  { %v727_v7 = vsel %vm14_vm2, %v1342_v4, %v722_v5  ;;  %v747_v16 = vsel %vm6_vm0, %v1347_v14, %v1346_v13  ;;  %v1348_v17 = vld [vmem:[%s2510_s0 + $0x6] ss:$16 sm:%s749_s20]   ;;  %v1366_v28 = vld [vmem:[%s2510_s0 + $0x85] ss:$16 sm:%s838_s10]   ;;  %s861_s10 = smov 3  ;;  %s969_s26 = smov 12 }
  0x4a   :  { %v752_v18 = vsel %vm10_vm1, %v1348_v17, %v747_v16  ;;  %v1349_v19 = vld [vmem:[%s2510_s0 + $0x6] ss:$16 sm:%s754_s24]   ;;  %v1367_v30 = vld [vmem:[%s2510_s0 + $0x85] ss:$16 sm:%s841_s23]   ;;  %s1467_s23 = smov 20   ;;  %s944_s24 = smov 48 }
  0x4b   :  { %683 = vrot.lane.b32.xlu0 %v682_v63, %s1465_s2  ;;  %735 = vrot.lane.b32.xlu1 %v1344_v62, %s1465_s2  ;;  %v1360_v20 = vld [vmem:[%s2510_s0 + $0x186] sm:$0x1]   ;;  %v757_v21 = vsel %vm14_vm2, %v1349_v19, %v752_v18  ;;  %v844_v31 = vsel %vm6_vm0, %v1367_v30, %v1366_v28  ;;  %v1376_v42 = vld [vmem:[%s2510_s0 + $0x185] sm:$0x1]   ;;  %s1076_s29 = smov 192  ;;  %s1041_s5 = smov 3 }
  0x4c   :  { %v1355_v22 = vld [vmem:[%s2510_s0 + $0x106] ss:$16 sm:%s786_s30]   ;;  %s824_s30 = smov 48  ;;  %v1368_v32 = vld [vmem:[%s2510_s0 + $0x85] ss:$16 sm:%s846_s21]   ;;  %s913_s21 = smov 3 }
  0x4d   :  { %v1356_v23 = vld [vmem:[%s2510_s0 + $0x106] ss:$16 sm:%s789_s7]   ;;  %v1369_v33 = vld [vmem:[%s2510_s0 + $0x85] ss:$16 sm:%s851_s28]   ;;  %v849_v34 = vsel %vm10_vm1, %v1368_v32, %v844_v31  ;;  %s939_s28 = smov 12  ;;  %s1044_s6 = smov 12 }
  0x4e   :  { %v792_v24 = vsel %vm6_vm0, %v1356_v23, %v1355_v22  ;;  %v1357_v25 = vld [vmem:[%s2510_s0 + $0x106] ss:$16 sm:%s794_s9]   ;;  %v1362_v35 = vld [vmem:[%s2510_s0 + $0x5] ss:$16 sm:%s816_s3]   ;;  %v854_v37 = vsel %vm14_vm2, %v1369_v33, %v849_v34  ;;  %s949_s3 = smov 192  ;;  %s1151_s9 = smov 192 }
  0x4f   :  { %728 = vrot.lane.b32.xlu0 %v727_v7, %s1465_s2  ;;  %780 = vrot.lane.b32.xlu1 %v779_v15, %s1466_s12  ;;  %v1358_v26 = vld [vmem:[%s2510_s0 + $0x106] ss:$16 sm:%s799_s11]   ;;  %v797_v27 = vsel %vm10_vm1, %v1357_v25, %v792_v24  ;;  %s829_s11 = smov 192  ;;  %s921_s2 = smov 48 }
  0x50   :  { %v802_v29 = vsel %vm14_vm2, %v1358_v26, %v797_v27  ;;  %v1363_v36 = vld [vmem:[%s2510_s0 + $0x5] ss:$16 sm:%s819_s13]   ;;  %s916_s13 = smov 12  ;;  %v1382_v50 = vld [vmem:[%s2510_s0 + $0x84] ss:$16 sm:%s913_s21]   ;;  %s936_s21 = smov 3 }
  0x51   :  { %v822_v38 = vsel %vm6_vm0, %v1363_v36, %v1362_v35  ;;  %v1364_v39 = vld [vmem:[%s2510_s0 + $0x5] ss:$16 sm:%s824_s30]   ;;  %v1383_v52 = vld [vmem:[%s2510_s0 + $0x84] ss:$16 sm:%s916_s13]   ;;  %s1468_s13 = smov 16   ;;  %s1116_s4 = smov 3 }
  0x52   :  { %v827_v40 = vsel %vm10_vm1, %v1364_v39, %v822_v38  ;;  %v1365_v41 = vld [vmem:[%s2510_s0 + $0x5] ss:$16 sm:%s829_s11]   ;;  %v919_v53 = vsel %vm6_vm0, %v1383_v52, %v1382_v50  ;;  %v1384_v54 = vld [vmem:[%s2510_s0 + $0x84] ss:$16 sm:%s921_s2]   ;;  %s988_s2 = smov 3  ;;  %s1019_s11 = smov 48 }
  0x53   :  { %758 = vrot.lane.b32.xlu0 %v757_v21, %s1466_s12  ;;  %810 = vrot.lane.b32.xlu1 %v1360_v20, %s1466_s12  ;;  %v832_v43 = vsel %vm14_vm2, %v1365_v41, %v827_v40  ;;  %v1371_v44 = vld [vmem:[%s2510_s0 + $0x105] ss:$16 sm:%s861_s10]   ;;  %s899_s10 = smov 48  ;;  %v924_v56 = vsel %vm10_vm1, %v1384_v54, %v919_v53  ;;  %s1119_s17 = smov 12 }
  0x54   :  { %v1372_v45 = vld [vmem:[%s2510_s0 + $0x105] ss:$16 sm:%s864_s18]   ;;  %v1385_v55 = vld [vmem:[%s2510_s0 + $0x84] ss:$16 sm:%s926_s8]   ;;  %s1014_s8 = smov 12  ;;  %s1164_s18 = smov 12 }
  0x55   :  { %v867_v46 = vsel %vm6_vm0, %v1372_v45, %v1371_v44  ;;  %v1373_v47 = vld [vmem:[%s2510_s0 + $0x105] ss:$16 sm:%s869_s14]   ;;  %v1378_v57 = vld [vmem:[%s2510_s0 + $0x4] ss:$16 sm:%s891_s15]   ;;  %v929_v59 = vsel %vm14_vm2, %v1385_v55, %v924_v56  ;;  %s1024_s15 = smov 192 }
  0x56   :  { %v1374_v48 = vld [vmem:[%s2510_s0 + $0x105] ss:$16 sm:%s874_s22]   ;;  %v872_v49 = vsel %vm10_vm1, %v1373_v47, %v867_v46  ;;  %s904_s22 = smov 192  ;;  %v1379_v58 = vld [vmem:[%s2510_s0 + $0x4] ss:$16 sm:%s894_s16]   ;;  %s991_s16 = smov 12 }
  0x57   :  { %803 = vrot.lane.b32.xlu0 %v802_v29, %s1466_s12  ;;  %855 = vrot.lane.b32.xlu1 %v854_v37, %s1467_s23  ;;  %v877_v51 = vsel %vm14_vm2, %v1374_v48, %v872_v49  ;;  %v897_v60 = vsel %vm6_vm0, %v1379_v58, %v1378_v57  ;;  %v1380_v61 = vld [vmem:[%s2510_s0 + $0x4] ss:$16 sm:%s899_s10]   ;;  %s996_s12 = smov 48 }
  0x58   :  { %v902_v62 = vsel %vm10_vm1, %v1380_v61, %v897_v60  ;;  %v1381_v63 = vld [vmem:[%s2510_s0 + $0x4] ss:$16 sm:%s904_s22]   ;;  %v1398_v8 = vld [vmem:[%s2510_s0 + $0x83] ss:$16 sm:%s988_s2]   ;;  %s1011_s2 = smov 3  ;;  %s1094_s22 = smov 48 }
  0x59   :  { %v1392_v0 = vld [vmem:[%s2510_s0 + $0x184] sm:$0x1]   ;;  %v907_v1 = vsel %vm14_vm2, %v1381_v63, %v902_v62  ;;  %v1399_v10 = vld [vmem:[%s2510_s0 + $0x83] ss:$16 sm:%s991_s16]   ;;  %s1469_s16 = smov 12  }
  0x5a   :  { %v1387_v2 = vld [vmem:[%s2510_s0 + $0x104] ss:$16 sm:%s936_s21]   ;;  %s974_s21 = smov 48  ;;  %v994_v11 = vsel %vm6_vm0, %v1399_v10, %v1398_v8  ;;  %v1400_v12 = vld [vmem:[%s2510_s0 + $0x83] ss:$16 sm:%s996_s12]   ;;  %s1063_s12 = smov 3 }
  0x5b   :  { %833 = vrot.lane.b32.xlu0 %v832_v43, %s1467_s23  ;;  %885 = vrot.lane.b32.xlu1 %v1376_v42, %s1467_s23  ;;  %v1388_v3 = vld [vmem:[%s2510_s0 + $0x104] ss:$16 sm:%s939_s28]   ;;  %v999_v14 = vsel %vm10_vm1, %v1400_v12, %v994_v11  ;;  %s43_s28 = smov 12 }
  0x5c   :  { %v942_v4 = vsel %vm6_vm0, %v1388_v3, %v1387_v2  ;;  %v1389_v5 = vld [vmem:[%s2510_s0 + $0x104] ss:$16 sm:%s944_s24]   ;;  %v1401_v13 = vld [vmem:[%s2510_s0 + $0x83] ss:$16 sm:%s1001_s19]   ;;  %s1089_s19 = smov 12  ;;  %s53_s24 = smov 192 }
  0x5d   :  { %v1390_v6 = vld [vmem:[%s2510_s0 + $0x104] ss:$16 sm:%s949_s3]   ;;  %v947_v7 = vsel %vm10_vm1, %v1389_v5, %v942_v4  ;;  %s979_s3 = smov 192  ;;  %v1394_v15 = vld [vmem:[%s2510_s0 + $0x3] ss:$16 sm:%s966_s25]   ;;  %v1004_v17 = vsel %vm14_vm2, %v1401_v13, %v999_v14  ;;  %s1099_s25 = smov 192 }
  0x5e   :  { %v952_v9 = vsel %vm14_vm2, %v1390_v6, %v947_v7  ;;  %v1395_v16 = vld [vmem:[%s2510_s0 + $0x3] ss:$16 sm:%s969_s26]   ;;  %s1066_s26 = smov 12  ;;  %v1414_v30 = vld [vmem:[%s2510_s0 + $0x82] ss:$16 sm:%s1063_s12]   ;;  %s1086_s12 = smov 3 }
  0x5f   :  { %878 = vrot.lane.b32.xlu0 %v877_v51, %s1467_s23  ;;  %930 = vrot.lane.b32.xlu1 %v929_v59, %s1468_s13  ;;  %v972_v18 = vsel %vm6_vm0, %v1395_v16, %v1394_v15  ;;  %v1396_v19 = vld [vmem:[%s2510_s0 + $0x3] ss:$16 sm:%s974_s21]   ;;  %s1071_s23 = smov 48  ;;  %s40_s21 = smov 3 }
  0x60   :  { %v977_v20 = vsel %vm10_vm1, %v1396_v19, %v972_v18  ;;  %v1397_v21 = vld [vmem:[%s2510_s0 + $0x3] ss:$16 sm:%s979_s3]   ;;  %v1415_v32 = vld [vmem:[%s2510_s0 + $0x82] ss:$16 sm:%s1066_s26]   ;;  %s1470_s26 = smov 8   ;;  %s8_s3 = smov 48 }
  0x61   :  { %v1408_v22 = vld [vmem:[%s2510_s0 + $0x183] sm:$0x1]   ;;  %v982_v23 = vsel %vm14_vm2, %v1397_v21, %v977_v20  ;;  %v1069_v33 = vsel %vm6_vm0, %v1415_v32, %v1414_v30  ;;  %v1416_v34 = vld [vmem:[%s2510_s0 + $0x82] ss:$16 sm:%s1071_s23]   ;;  %s1138_s23 = smov 3 }
  0x62   :  { %v1403_v24 = vld [vmem:[%s2510_s0 + $0x103] ss:$16 sm:%s1011_s2]   ;;  %s1049_s2 = smov 48  ;;  %v1417_v35 = vld [vmem:[%s2510_s0 + $0x82] ss:$16 sm:%s1076_s29]   ;;  %v1074_v36 = vsel %vm10_vm1, %v1416_v34, %v1069_v33  ;;  %s4_s29 = smov 12 }
  0x63   :  { %908 = vrot.lane.b32.xlu0 %v907_v1, %s1468_s13  ;;  %960 = vrot.lane.b32.xlu1 %v1392_v0, %s1468_s13  ;;  %v1404_v25 = vld [vmem:[%s2510_s0 + $0x103] ss:$16 sm:%s1014_s8]   ;;  %v1079_v39 = vsel %vm14_vm2, %v1417_v35, %v1074_v36 }
  0x64   :  { %v1017_v26 = vsel %vm6_vm0, %v1404_v25, %v1403_v24  ;;  %v1405_v27 = vld [vmem:[%s2510_s0 + $0x103] ss:$16 sm:%s1019_s11]   ;;  %v1410_v37 = vld [vmem:[%s2510_s0 + $0x2] ss:$16 sm:%s1041_s5]   ;;  %s12_s5 = smov 192  ;;  %s1161_s11 = smov 3 }
  0x65   :  { %v1406_v28 = vld [vmem:[%s2510_s0 + $0x103] ss:$16 sm:%s1024_s15]   ;;  %v1022_v29 = vsel %vm10_vm1, %v1405_v27, %v1017_v26  ;;  %s1054_s15 = smov 192  ;;  %v1411_v38 = vld [vmem:[%s2510_s0 + $0x2] ss:$16 sm:%s1044_s6]   ;;  %s1141_s6 = smov 12 }
  0x66   :  { %v1027_v31 = vsel %vm14_vm2, %v1406_v28, %v1022_v29  ;;  %v1047_v40 = vsel %vm6_vm0, %v1411_v38, %v1410_v37  ;;  %v1412_v41 = vld [vmem:[%s2510_s0 + $0x2] ss:$16 sm:%s1049_s2]   ;;  %v1430_v52 = vld [vmem:[%s2510_s0 + $0x81] ss:$16 sm:%s1138_s23]   ;;  %s2_s23 = smov 3 }
  0x67   :  { %953 = vrot.lane.b32.xlu0 %v952_v9, %s1468_s13  ;;  %1005 = vrot.lane.b32.xlu1 %v1004_v17, %s1469_s16  ;;  %v1052_v42 = vsel %vm10_vm1, %v1412_v41, %v1047_v40  ;;  %v1413_v43 = vld [vmem:[%s2510_s0 + $0x2] ss:$16 sm:%s1054_s15]   ;;  %s1146_s13 = smov 48 }
  0x68   :  { %v1424_v44 = vld [vmem:[%s2510_s0 + $0x182] sm:$0x1]   ;;  %v1057_v45 = vsel %vm14_vm2, %v1413_v43, %v1052_v42  ;;  %v1431_v54 = vld [vmem:[%s2510_s0 + $0x81] ss:$16 sm:%s1141_s6]   ;;  %s1471_s6 = smov 4  }
  0x69   :  { %v1419_v46 = vld [vmem:[%s2510_s0 + $0x102] ss:$16 sm:%s1086_s12]   ;;  %s1124_s12 = smov 48  ;;  %v1144_v55 = vsel %vm6_vm0, %v1431_v54, %v1430_v52  ;;  %v1432_v56 = vld [vmem:[%s2510_s0 + $0x81] ss:$16 sm:%s1146_s13]   ;;  %s19_s13 = smov 3 }
  0x6a   :  { %v1420_v47 = vld [vmem:[%s2510_s0 + $0x102] ss:$16 sm:%s1089_s19]   ;;  %v1433_v57 = vld [vmem:[%s2510_s0 + $0x81] ss:$16 sm:%s1151_s9]   ;;  %v1149_v58 = vsel %vm10_vm1, %v1432_v56, %v1144_v55 }
  0x6b   :  { %983 = vrot.lane.b32.xlu0 %v982_v23, %s1469_s16  ;;  %1035 = vrot.lane.b32.xlu1 %v1408_v22, %s1469_s16  ;;  %v1092_v48 = vsel %vm6_vm0, %v1420_v47, %v1419_v46  ;;  %v1421_v49 = vld [vmem:[%s2510_s0 + $0x102] ss:$16 sm:%s1094_s22]   ;;  %v1154_v61 = vsel %vm14_vm2, %v1433_v57, %v1149_v58  ;;  %s1169_s22 = smov 48 }
  0x6c   :  { %v1422_v50 = vld [vmem:[%s2510_s0 + $0x102] ss:$16 sm:%s1099_s25]   ;;  %v1097_v51 = vsel %vm10_vm1, %v1421_v49, %v1092_v48  ;;  %s1129_s25 = smov 192  ;;  %v1426_v59 = vld [vmem:[%s2510_s0 + $0x1] ss:$16 sm:%s1116_s4]  }
  0x6d   :  { %v1102_v53 = vsel %vm14_vm2, %v1422_v50, %v1097_v51  ;;  %v1427_v60 = vld [vmem:[%s2510_s0 + $0x1] ss:$16 sm:%s1119_s17]   ;;  %v3_v5 = vld [vmem:[%s2510_s0] ss:$16 sm:%s2_s23]  }
  0x6e   :  { %v1122_v62 = vsel %vm6_vm0, %v1427_v60, %v1426_v59  ;;  %v1428_v63 = vld [vmem:[%s2510_s0 + $0x1] ss:$16 sm:%s1124_s12]   ;;  %v5_v6 = vld [vmem:[%s2510_s0] ss:$16 sm:%s4_s29]   ;;  %s27_s12 = smov 48 }
  0x6f   :  { %1028 = vrot.lane.b32.xlu0 %v1027_v31, %s1469_s16  ;;  %1080 = vrot.lane.b32.xlu1 %v1079_v39, %s1470_s26  ;;  %v1127_v1 = vsel %vm10_vm1, %v1428_v63, %v1122_v62  ;;  %v1429_v2 = vld [vmem:[%s2510_s0 + $0x1] ss:$16 sm:%s1129_s25]   ;;  %v7_v7 = vsel %vm6_vm0, %v5_v6, %v3_v5  ;;  %s1174_s25 = smov 192 }
  0x70   :  { %v1440_v3 = vld [vmem:[%s2510_s0 + $0x181] sm:$0x1]   ;;  %v1132_v4 = vsel %vm14_vm2, %v1429_v2, %v1127_v1  ;;  %v9_v8 = vld [vmem:[%s2510_s0] ss:$16 sm:%s8_s3]  }
  0x71   :  { %v13_v9 = vld [vmem:[%s2510_s0] ss:$16 sm:%s12_s5]   ;;  %v11_v11 = vsel %vm10_vm1, %v9_v8, %v7_v7  ;;  %v1435_v12 = vld [vmem:[%s2510_s0 + $0x101] ss:$16 sm:%s1161_s11]  }
  0x72   :  { %v15_v13 = vsel %vm14_vm2, %v13_v9, %v11_v11  ;;  %v1436_v14 = vld [vmem:[%s2510_s0 + $0x101] ss:$16 sm:%s1164_s18]   ;;  %v1195_v20 = vld [vmem:[%s2510_s0 + $0x100] ss:$16 sm:%s40_s21]   ;;  %s22_s18 = smov 12 }
  0x73   :  { %1058 = vrot.lane.b32.xlu0 %v1057_v45, %s1470_s26  ;;  %1110 = vrot.lane.b32.xlu1 %v1424_v44, %s1470_s26  ;;  %17 = vst.msk [vmem:[%s2511_s1] sm:$0xff] %vm16_vm3, %v15_v13   ;;  %v1167_v15 = vsel %vm6_vm0, %v1436_v14, %v1435_v12 }
  0x74   :  { %v136_v0 = vpop.permute.xlu1 %135   ;;  %v1437_v16 = vld [vmem:[%s2510_s0 + $0x101] ss:$16 sm:%s1169_s22]   ;;  %v1196_v21 = vld [vmem:[%s2510_s0 + $0x100] ss:$16 sm:%s43_s28]  }
  0x75   :  { %1217 = vst.msk [vmem:[%s2511_s1 + $0x18] sm:$0x1] %vm85_vm4, %v136_v0   ;;  %v1438_v17 = vld [vmem:[%s2510_s0 + $0x101] ss:$16 sm:%s1174_s25]   ;;  %v1172_v19 = vsel %vm10_vm1, %v1437_v16, %v1167_v15  ;;  %v46_v23 = vsel %vm6_vm0, %v1196_v21, %v1195_v20  ;;  %s32_s25 = smov 192 }
  0x76   :  { %v1177_v22 = vsel %vm14_vm2, %v1438_v17, %v1172_v19  ;;  %v1198_v25 = vld [vmem:[%s2510_s0 + $0x100] ss:$16 sm:%s53_s24]  }
  0x77   :  { %1103 = vrot.lane.b32.xlu0 %v1102_v53, %s1470_s26  ;;  %1155 = vrot.lane.b32.xlu1 %v1154_v61, %s1471_s6  ;;  %s48_s26 = smov 48  ;;  %v1190_v28 = vld [vmem:[%s2510_s0 + $0x80] ss:$16 sm:%s19_s13]  }
  0x78   :  { %v1197_v24 = vld [vmem:[%s2510_s0 + $0x100] ss:$16 sm:%s48_s26]  }
  0x79   :  { %v84_v10 = vpop.permute.xlu0 %83   ;;  %v51_v26 = vsel %vm10_vm1, %v1197_v24, %v46_v23  ;;  %v1191_v30 = vld [vmem:[%s2510_s0 + $0x80] ss:$16 sm:%s22_s18]  }
  0x7a   :  { %86 = vst.msk [vmem:[%s2511_s1] sm:$0xff] %vm85_vm4, %v84_v10   ;;  %v56_v29 = vsel %vm14_vm2, %v1198_v25, %v51_v26  ;;  %v1192_v31 = vld [vmem:[%s2510_s0 + $0x80] ss:$16 sm:%s27_s12]   ;;  %v25_v32 = vsel %vm6_vm0, %v1191_v30, %v1190_v28  ;;  %vm985_vm0 = vcmask 130144  }
  0x7b   :  { %1133 = vrot.lane.b32.xlu0 %v1132_v4, %s1471_s6  ;;  %1185 = vrot.lane.b32.xlu1 %v1440_v3, %s1471_s6  ;;  %1199 = vst.msk [vmem:[%s2511_s1 + $0x10] sm:$0xff] %vm16_vm3, %v56_v29   ;;  %v30_v35 = vsel %vm10_vm1, %v1192_v31, %v25_v32  ;;  %vm1060_vm1 = vcmask 97344  }
  0x7c   :  { %v1193_v33 = vld [vmem:[%s2510_s0 + $0x80] ss:$16 sm:%s32_s25]  }
  0x7d   :  { %v129_v18 = vpop.permute.xlu1 %128   ;;  %v35_v36 = vsel %vm14_vm2, %v1193_v33, %v30_v35  ;;  %vm1135_vm2 = vcmask 64544  }
  0x7e   :  { %1215 = vst.msk [vmem:[%s2511_s1 + $0x10] sm:$0xff] %vm85_vm4, %v129_v18  }
  0x7f   :  { %1178 = vrot.lane.b32.xlu0 %v1177_v22, %s1471_s6  ;;  %1194 = vst.msk [vmem:[%s2511_s1 + $0x8] sm:$0xff] %vm16_vm3, %v35_v36  }
  0x81   :  { %v106_v27 = vpop.permute.xlu0 %105   ;;  %v181_v34 = vpop.permute.xlu1 %180  }
  0x82   :  { %1210 = vst.msk [vmem:[%s2511_s1 + $0x8] sm:$0xff] %vm85_vm4, %v106_v27  }
  0x83   :  { %1226 = vst.msk [vmem:[%s2511_s1 + $0x8] sm:$0xff] %vm160_vm5, %v181_v34  }
  0x85   :  { %v159_v37 = vpop.permute.xlu0 %158   ;;  %v211_v38 = vpop.permute.xlu1 %210  }
  0x86   :  { %161 = vst.msk [vmem:[%s2511_s1] sm:$0xff] %vm160_vm5, %v159_v37   ;;  %1233 = vst.msk [vmem:[%s2511_s1 + $0x18] sm:$0x1] %vm160_vm5, %v211_v38  }
  0x89   :  { %v204_v39 = vpop.permute.xlu0 %203   ;;  %v256_v40 = vpop.permute.xlu1 %255  }
  0x8a   :  { %1231 = vst.msk [vmem:[%s2511_s1 + $0x10] sm:$0xff] %vm160_vm5, %v204_v39  }
  0x8b   :  { %1242 = vst.msk [vmem:[%s2511_s1 + $0x8] sm:$0xff] %vm235_vm6, %v256_v40  }
  0x8d   :  { %v234_v41 = vpop.permute.xlu0 %233   ;;  %v286_v42 = vpop.permute.xlu1 %285  }
  0x8e   :  { %236 = vst.msk [vmem:[%s2511_s1] sm:$0xff] %vm235_vm6, %v234_v41   ;;  %1249 = vst.msk [vmem:[%s2511_s1 + $0x18] sm:$0x1] %vm235_vm6, %v286_v42  }
  0x91   :  { %v279_v43 = vpop.permute.xlu0 %278   ;;  %v331_v44 = vpop.permute.xlu1 %330  }
  0x92   :  { %1247 = vst.msk [vmem:[%s2511_s1 + $0x10] sm:$0xff] %vm235_vm6, %v279_v43  }
  0x93   :  { %1258 = vst.msk [vmem:[%s2511_s1 + $0x8] sm:$0xff] %vm310_vm7, %v331_v44  }
  0x95   :  { %v309_v45 = vpop.permute.xlu0 %308   ;;  %v361_v46 = vpop.permute.xlu1 %360  }
  0x96   :  { %311 = vst.msk [vmem:[%s2511_s1] sm:$0xff] %vm310_vm7, %v309_v45   ;;  %1265 = vst.msk [vmem:[%s2511_s1 + $0x18] sm:$0x1] %vm310_vm7, %v361_v46  }
  0x99   :  { %v354_v47 = vpop.permute.xlu0 %353   ;;  %v406_v48 = vpop.permute.xlu1 %405  }
  0x9a   :  { %1263 = vst.msk [vmem:[%s2511_s1 + $0x10] sm:$0xff] %vm310_vm7, %v354_v47  }
  0x9b   :  { %1274 = vst.msk [vmem:[%s2511_s1 + $0x8] sm:$0xff] %vm385_vm8, %v406_v48  }
  0x9d   :  { %v384_v49 = vpop.permute.xlu0 %383   ;;  %v436_v50 = vpop.permute.xlu1 %435  }
  0x9e   :  { %386 = vst.msk [vmem:[%s2511_s1] sm:$0xff] %vm385_vm8, %v384_v49   ;;  %1281 = vst.msk [vmem:[%s2511_s1 + $0x18] sm:$0x1] %vm385_vm8, %v436_v50  }
  0xa1   :  { %v429_v51 = vpop.permute.xlu0 %428   ;;  %v481_v52 = vpop.permute.xlu1 %480  }
  0xa2   :  { %1279 = vst.msk [vmem:[%s2511_s1 + $0x10] sm:$0xff] %vm385_vm8, %v429_v51  }
  0xa3   :  { %1290 = vst.msk [vmem:[%s2511_s1 + $0x8] sm:$0xff] %vm460_vm9, %v481_v52  }
  0xa5   :  { %v459_v53 = vpop.permute.xlu0 %458   ;;  %v511_v54 = vpop.permute.xlu1 %510  }
  0xa6   :  { %461 = vst.msk [vmem:[%s2511_s1] sm:$0xff] %vm460_vm9, %v459_v53   ;;  %1297 = vst.msk [vmem:[%s2511_s1 + $0x18] sm:$0x1] %vm460_vm9, %v511_v54  }
  0xa9   :  { %v504_v55 = vpop.permute.xlu0 %503   ;;  %v556_v56 = vpop.permute.xlu1 %555  }
  0xaa   :  { %1295 = vst.msk [vmem:[%s2511_s1 + $0x10] sm:$0xff] %vm460_vm9, %v504_v55  }
  0xab   :  { %1306 = vst.msk [vmem:[%s2511_s1 + $0x8] sm:$0xff] %vm535_vm10, %v556_v56  }
  0xad   :  { %v534_v57 = vpop.permute.xlu0 %533   ;;  %v586_v58 = vpop.permute.xlu1 %585  }
  0xae   :  { %536 = vst.msk [vmem:[%s2511_s1] sm:$0xff] %vm535_vm10, %v534_v57   ;;  %1313 = vst.msk [vmem:[%s2511_s1 + $0x18] sm:$0x1] %vm535_vm10, %v586_v58  }
  0xb1   :  { %v579_v59 = vpop.permute.xlu0 %578   ;;  %v631_v60 = vpop.permute.xlu1 %630  }
  0xb2   :  { %1311 = vst.msk [vmem:[%s2511_s1 + $0x10] sm:$0xff] %vm535_vm10, %v579_v59  }
  0xb3   :  { %1322 = vst.msk [vmem:[%s2511_s1 + $0x8] sm:$0xff] %vm610_vm11, %v631_v60  }
  0xb5   :  { %v609_v61 = vpop.permute.xlu0 %608   ;;  %v661_v62 = vpop.permute.xlu1 %660  }
  0xb6   :  { %611 = vst.msk [vmem:[%s2511_s1] sm:$0xff] %vm610_vm11, %v609_v61   ;;  %1329 = vst.msk [vmem:[%s2511_s1 + $0x18] sm:$0x1] %vm610_vm11, %v661_v62  }
  0xb9   :  { %v654_v63 = vpop.permute.xlu0 %653   ;;  %v706_v0 = vpop.permute.xlu1 %705  }
  0xba   :  { %1327 = vst.msk [vmem:[%s2511_s1 + $0x10] sm:$0xff] %vm610_vm11, %v654_v63  }
  0xbb   :  { %1338 = vst.msk [vmem:[%s2511_s1 + $0x8] sm:$0xff] %vm685_vm12, %v706_v0  }
  0xbd   :  { %v684_v1 = vpop.permute.xlu0 %683   ;;  %v736_v2 = vpop.permute.xlu1 %735  }
  0xbe   :  { %686 = vst.msk [vmem:[%s2511_s1] sm:$0xff] %vm685_vm12, %v684_v1   ;;  %1345 = vst.msk [vmem:[%s2511_s1 + $0x18] sm:$0x1] %vm685_vm12, %v736_v2  }
  0xc1   :  { %v729_v3 = vpop.permute.xlu0 %728   ;;  %v781_v4 = vpop.permute.xlu1 %780  }
  0xc2   :  { %1343 = vst.msk [vmem:[%s2511_s1 + $0x10] sm:$0xff] %vm685_vm12, %v729_v3  }
  0xc3   :  { %1354 = vst.msk [vmem:[%s2511_s1 + $0x8] sm:$0xff] %vm760_vm13, %v781_v4  }
  0xc5   :  { %v759_v5 = vpop.permute.xlu0 %758   ;;  %v811_v6 = vpop.permute.xlu1 %810  }
  0xc6   :  { %761 = vst.msk [vmem:[%s2511_s1] sm:$0xff] %vm760_vm13, %v759_v5   ;;  %1361 = vst.msk [vmem:[%s2511_s1 + $0x18] sm:$0x1] %vm760_vm13, %v811_v6  }
  0xc9   :  { %v804_v7 = vpop.permute.xlu0 %803   ;;  %v856_v8 = vpop.permute.xlu1 %855  }
  0xca   :  { %1359 = vst.msk [vmem:[%s2511_s1 + $0x10] sm:$0xff] %vm760_vm13, %v804_v7  }
  0xcb   :  { %1370 = vst.msk [vmem:[%s2511_s1 + $0x8] sm:$0xff] %vm835_vm14, %v856_v8  }
  0xcd   :  { %v834_v9 = vpop.permute.xlu0 %833   ;;  %v886_v10 = vpop.permute.xlu1 %885  }
  0xce   :  { %836 = vst.msk [vmem:[%s2511_s1] sm:$0xff] %vm835_vm14, %v834_v9   ;;  %1377 = vst.msk [vmem:[%s2511_s1 + $0x18] sm:$0x1] %vm835_vm14, %v886_v10  }
  0xd1   :  { %v879_v11 = vpop.permute.xlu0 %878   ;;  %v931_v12 = vpop.permute.xlu1 %930  }
  0xd2   :  { %1375 = vst.msk [vmem:[%s2511_s1 + $0x10] sm:$0xff] %vm835_vm14, %v879_v11  }
  0xd3   :  { %1386 = vst.msk [vmem:[%s2511_s1 + $0x8] sm:$0xff] %vm910_vm15, %v931_v12  }
  0xd5   :  { %v909_v13 = vpop.permute.xlu0 %908   ;;  %v961_v14 = vpop.permute.xlu1 %960  }
  0xd6   :  { %911 = vst.msk [vmem:[%s2511_s1] sm:$0xff] %vm910_vm15, %v909_v13   ;;  %1393 = vst.msk [vmem:[%s2511_s1 + $0x18] sm:$0x1] %vm910_vm15, %v961_v14  }
  0xd9   :  { %v954_v15 = vpop.permute.xlu0 %953   ;;  %v1006_v16 = vpop.permute.xlu1 %1005  }
  0xda   :  { %1391 = vst.msk [vmem:[%s2511_s1 + $0x10] sm:$0xff] %vm910_vm15, %v954_v15  }
  0xdb   :  { %1402 = vst.msk [vmem:[%s2511_s1 + $0x8] sm:$0xff] %vm985_vm0, %v1006_v16  }
  0xdd   :  { %v984_v17 = vpop.permute.xlu0 %983   ;;  %v1036_v18 = vpop.permute.xlu1 %1035  }
  0xde   :  { %986 = vst.msk [vmem:[%s2511_s1] sm:$0xff] %vm985_vm0, %v984_v17   ;;  %1409 = vst.msk [vmem:[%s2511_s1 + $0x18] sm:$0x1] %vm985_vm0, %v1036_v18  }
  0xe1   :  { %v1029_v19 = vpop.permute.xlu0 %1028   ;;  %v1081_v20 = vpop.permute.xlu1 %1080  }
  0xe2   :  { %1407 = vst.msk [vmem:[%s2511_s1 + $0x10] sm:$0xff] %vm985_vm0, %v1029_v19  }
  0xe3   :  { %1418 = vst.msk [vmem:[%s2511_s1 + $0x8] sm:$0xff] %vm1060_vm1, %v1081_v20  }
  0xe5   :  { %v1059_v21 = vpop.permute.xlu0 %1058   ;;  %v1111_v22 = vpop.permute.xlu1 %1110  }
  0xe6   :  { %1061 = vst.msk [vmem:[%s2511_s1] sm:$0xff] %vm1060_vm1, %v1059_v21   ;;  %1425 = vst.msk [vmem:[%s2511_s1 + $0x18] sm:$0x1] %vm1060_vm1, %v1111_v22  }
  0xe9   :  { %v1104_v23 = vpop.permute.xlu0 %1103   ;;  %v1156_v24 = vpop.permute.xlu1 %1155  }
  0xea   :  { %1423 = vst.msk [vmem:[%s2511_s1 + $0x10] sm:$0xff] %vm1060_vm1, %v1104_v23  }
  0xeb   :  { %1434 = vst.msk [vmem:[%s2511_s1 + $0x8] sm:$0xff] %vm1135_vm2, %v1156_v24  }
  0xed   :  { %v1134_v25 = vpop.permute.xlu0 %1133   ;;  %v1186_v26 = vpop.permute.xlu1 %1185  }
  0xee   :  { %1136 = vst.msk [vmem:[%s2511_s1] sm:$0xff] %vm1135_vm2, %v1134_v25   ;;  %1441 = vst.msk [vmem:[%s2511_s1 + $0x18] sm:$0x1] %vm1135_vm2, %v1186_v26  }
  0xf1   :  { %v1179_v27 = vpop.permute.xlu0 %1178  }
  0xf2   :  { %1439 = vst.msk [vmem:[%s2511_s1 + $0x10] sm:$0xff] %vm1135_vm2, %v1179_v27  }

// kernel: upsample_forward.1
= control target key start
LH: loop header
LB: loop body
LE: loop exit
PB: predicated region body
PF: predicated region fallthrough
CT: control target
= control target key end

     0   :  { %s4165_s24 = smov 0   ;;  %s6475_s0 = inlined_call_operand.vmem [shape: f32[2,16,64], index: 0, kind: input, shape index: {}]   ;;  %s6476_s1 = inlined_call_operand.vmem [shape: bf16[2,64,128], index: 1, kind: input, shape index: {}]   ;;  %s6477_s2 = inlined_call_operand.vmem [shape: bf16[2,128,128], index: 2, kind: input, shape index: {}]   ;;  %s6478_s3 = inlined_call_operand.vmem [shape: f32[32,16], index: 3, kind: input, shape index: {}]   ;;  %s6479_s4 = inlined_call_operand.vmem [shape: bf16[2,128,128], index: 4, kind: input, shape index: {}]   ;;  %s6480_s5 = inlined_call_operand.vmem [shape: f32[26,64], index: 5, kind: input, shape index: {}]   ;;  %s6481_s6 = inlined_call_operand.vmem [shape: f32[46,128], index: 6, kind: input, shape index: {}]   ;;  %s6482_s7 = inlined_call_operand.vmem [shape: f32[2,2,2,16,128], index: 7, kind: output, shape index: {}]  }
   0x1 LB: > { %s3756_s25 = sadd.s32 4294967295, %s4111_s24   ;;  %p3760_p0 = scmp.ge.s32.totalorder %s4111_s24, 1  ;;  %s4111_s24 = sphi %s4165_s24, %s17_s24  }
   0x2   : > { %p237_p1 = scmp.lt.s32.totalorder %s4111_s24, 3 }
   0x4   : > { %p238_p2 = pnand %p3760_p0, %p237_p1 }
   0x6   : > { %241 = sbr.rel (%p238_p2) target bundleno = 1773 (0x6ed), region = 48 }
   0xb   : > { %p269_p3 = scmp.lt.s32.totalorder %s3756_s25, 1  ;;  %p3765_p4 = scmp.ne.s32.totalorder %s3756_s25, 0 }
   0xd   : > { %s270_s26 = scalar_select %p269_p3, %s3756_s25, 1 }
   0xe   : > { %283 = sbr.rel (%p3765_p4) target bundleno = 38 (0x26), region = 52 }
   0xf   : > { %s3860_s27 = sshll.u32 %s270_s26, 4  ;;  %s3861_s28 = sshll.u32 %s270_s26, 6 }
  0x10   : > { %s4176_s8 = scalar_lea.vmem %s6475_s0, %s3860_s27  ;;  %s4181_s11 = scalar_lea.vmem %s6482_s7, %s3861_s28 }
  0x13   : > { %vm286_vm0 = vcmask 64512   ;;  %vm296_vm1 = vcmask 57344   ;;  %vm299_vm2 = vcmask 588800   ;;  %v4113_v0 = vmov 0.0  }
  0x14   : > { %284 = vst [vmem:[#allocation2] sm:$0xff] %v4113_v0  ;;  %285 = vst [vmem:[#allocation2 + $0x8] sm:$0xff] %v4113_v0  ;;  %vm306_vm3 = vcmask 582656   ;;  %vm310_vm4 = vcmask 130048   ;;  %vm320_vm5 = vcmask 123904  }
  0x15   : > { %288 = vst [vmem:[#allocation2 + $0x18] sm:$0xff] %v4113_v0  ;;  %289 = vst [vmem:[#allocation2 + $0x20] sm:$0xff] %v4113_v0 }
  0x16   : > { %291 = vst [vmem:[#allocation2 + $0x30] sm:$0xff] %v4113_v0  ;;  %292 = vst [vmem:[#allocation2 + $0x38] sm:$0xff] %v4113_v0 }
  0x17   : > { %294 = vst [vmem:[#allocation2 + $0x48] sm:$0x1] %v4113_v0  ;;  %295 = vst [vmem:[#allocation2 + $0x50] sm:$0x1] %v4113_v0 }
  0x18   : > { %298 = vst [vmem:[#allocation3] sm:$0xff] %v4113_v0  ;;  %301 = vst [vmem:[#allocation3 + $0x10] sm:$0xff] %v4113_v0 }
  0x19   : > { %303 = vst [vmem:[#allocation3 + $0x20] sm:$0xff] %v4113_v0  ;;  %305 = vst [vmem:[#allocation3 + $0x30] sm:$0x3] %v4113_v0 }
  0x1a   : > { %308 = vst [vmem:[#allocation4] sm:$0xff] %v4113_v0  ;;  %309 = vst [vmem:[#allocation4 + $0x8] sm:$0xff] %v4113_v0 }
  0x1b   : > { %312 = vst [vmem:[#allocation4 + $0x18] sm:$0xff] %v4113_v0  ;;  %315 = vst [vmem:[#allocation4 + $0x30] sm:$0xff] %v4113_v0 }
  0x1c   : > { %318 = vst [vmem:[#allocation4 + $0x48] sm:$0x3] %v4113_v0  ;;  %319 = vst [vmem:[#allocation4 + $0x50] sm:$0x3] %v4113_v0 }
  0x1d   : > { %287 = vst.msk [vmem:[#allocation2 + $0x10] sm:$0xff] %vm286_vm0, %v4113_v0  ;;  %290 = vst.msk [vmem:[#allocation2 + $0x28] sm:$0xff] %vm286_vm0, %v4113_v0 }
  0x1e   : > { %293 = vst.msk [vmem:[#allocation2 + $0x40] sm:$0xff] %vm286_vm0, %v4113_v0 }
  0x1f   : > { %297 = vst.msk [vmem:[#allocation2 + $0x58] sm:$0x1] %vm296_vm1, %v4113_v0 }
  0x20   : > { %300 = vst.msk [vmem:[#allocation3 + $0x8] sm:$0xff] %vm299_vm2, %v4113_v0  ;;  %302 = vst.msk [vmem:[#allocation3 + $0x18] sm:$0xff] %vm299_vm2, %v4113_v0 }
  0x21   : > { %304 = vst.msk [vmem:[#allocation3 + $0x28] sm:$0xff] %vm299_vm2, %v4113_v0 }
  0x22   : > { %307 = vst.msk [vmem:[#allocation3 + $0x38] sm:$0x3] %vm306_vm3, %v4113_v0 }
  0x23   : > { %311 = vst.msk [vmem:[#allocation4 + $0x10] sm:$0xff] %vm310_vm4, %v4113_v0  ;;  %314 = vst.msk [vmem:[#allocation4 + $0x28] sm:$0xff] %vm310_vm4, %v4113_v0 }
  0x24   : > { %317 = vst.msk [vmem:[#allocation4 + $0x40] sm:$0xff] %vm310_vm4, %v4113_v0 }
  0x25   : > { %321 = vst.msk [vmem:[#allocation4 + $0x58] sm:$0x3] %vm320_vm5, %v4113_v0 }
  0x26 PF: > { %v343_v1 = vlaneseq  ;;  %vm371_vm6 = vcmask 523264   ;;  %v4191_v2 = vld [vmem:[%s4176_s8 + $0x8] sm:$0xff]  ;;  %v4196_v4 = vld [vmem:[%s4176_s8] sm:$0xff]  ;;  %v4222_v13 = vld [vmem:[%s6480_s5 + $0x10] sm:$0xff]  ;;  %s4114_s18 = smov 124   ;;  %s4115_s19 = smov 4  }
  0x27   : > { %6563 = vst [vmem:[#allocation5_spill] sm:$0xff] %v4191_v2  ;;  %835 = vst.msk [vmem:[#allocation3 + $0x28] sm:$0xff] %vm371_vm6, %v4191_v2  ;;  %v328_v5 = vld [vmem:[%s6480_s5] sm:$0xff]  ;;  %v4210_v8 = vld [vmem:[%s6480_s5 + $0x8] sm:$0xff]  ;;  %s4116_s22 = smov 8   ;;  %s4117_s23 = smov 120  }
  0x28   : > { %v344_v3 = vshrl.u32 %v343_v1, 7  ;;  %6564 = vst [vmem:[#allocation6_spill] sm:$0xff] %v4196_v4  ;;  %834 = vst.msk [vmem:[#allocation3 + $0x18] sm:$0xff] %vm371_vm6, %v4196_v4  ;;  %v4257_v28 = vld [vmem:[%s6480_s5 + $0x18] sm:$0x3]  ;;  %v4285_v40 = vld [vmem:[#allocation3 + $0x8] sm:$0xff] }
  0x29   : > { %vm651_vm7 = vcmask 1046528   ;;  %vm922_vm8 = vcmask 1045504   ;;  %v4309_v58 = vld [vmem:[#allocation3 + $0x38] sm:$0x3]  ;;  %vm961_vm9 = vcmask 1044480   ;;  %vm1004_vm10 = vcmask 1043456  }
  0x2a   : > { %v4203_v6 = vsub.s32 6, %v344_v3  ;;  %v4205_v7 = vsub.s32 1, %v344_v3  ;;  %v4212_v9 = vsub.s32 5, %v344_v3  ;;  %v4214_v10 = vsub.s32 3, %v344_v3  ;;  %s4118_s25 = smov 116   ;;  %s4119_s26 = smov 112  }
  0x2b   : > { %v4216_v11 = vsub.s32 0, %v344_v3  ;;  %v4239_v20 = vsub.s32 2, %v344_v3  ;;  %v4243_v22 = vsub.s32 7, %v344_v3  ;;  %v4249_v25 = vsub.s32 4, %v344_v3  ;;  %s4122_s29 = smov 16   ;;  %s4123_s9 = smov 104  }
  0x2c   : > { %6565 = vst [vmem:[#allocation7_spill] sm:$0xff] %v4203_v6  ;;  %6566 = vst [vmem:[#allocation8_spill] sm:$0xff] %v4205_v7  ;;  %v1078_v12 = vrot.slane %v328_v5, %v4203_v6  ;;  %v1135_v14 = vrot.slane %v4210_v8, %v4214_v10  ;;  %v1030_v15 = vrot.slane %v328_v5, %v4205_v7  ;;  %vm1059_vm11 = vcmask 1014784   ;;  %s4124_s10 = smov 96  }
  0x2d   : > { %6567 = vst [vmem:[#allocation9_spill] sm:$0xff] %v4212_v9  ;;  %6568 = vst [vmem:[#allocation10_spill] sm:$0xff] %v4214_v10  ;;  %v1184_v16 = vrot.slane %v4222_v13, %v4216_v11  ;;  %v1241_v17 = vrot.slane %v4222_v13, %v4212_v9  ;;  %v1468_v18 = vrot.slane %v4210_v8, %v4216_v11  ;;  %vm4121_vm12 = vmmov 0  }
  0x2e   : > { %6569 = vst [vmem:[#allocation11_spill] sm:$0xff] %v4216_v11  ;;  %1080 = vrot.lane.b32.xlu0 %v1078_v12, %s4114_s18  ;;  %1137 = vrot.lane.b32.xlu1 %v1135_v14, %s4114_s18  ;;  %v1439_v19 = vrot.slane %v328_v5, %v4214_v10  ;;  %6570 = vst [vmem:[#allocation12_spill] sm:$0xff] %v4239_v20  ;;  %v1502_v21 = vrot.slane %v4210_v8, %v4212_v9  ;;  %v4287_v41 = vld [vmem:[#allocation3 + $0x28] sm:$0xff]  ;;  %vm484_vm13 = vcmask 64512   ;;  %vm2639_vm14 = vcmask 850944  }
  0x2f   : > { %6571 = vst [vmem:[#allocation13_spill] sm:$0xff] %v4243_v22  ;;  %v1532_v23 = vrot.slane %v4222_v13, %v4239_v20  ;;  %v1566_v24 = vrot.slane %v4222_v13, %v4243_v22  ;;  %6572 = vst [vmem:[#allocation14_spill] sm:$0xff] %v4249_v25  ;;  %v1629_v26 = vrot.slane %v4210_v8, %v4205_v7  ;;  %v4276_v36 = vld [vmem:[#allocation3 + $0x18] sm:$0xff]  ;;  %vm2907_vm15 = vcmask 785408  }
  0x30   : > { %v1600_v27 = vrot.slane %v328_v5, %v4249_v25  ;;  %v1663_v29 = vrot.slane %v4210_v8, %v4203_v6  ;;  %v1693_v30 = vrot.slane %v4222_v13, %v4214_v10  ;;  %v1727_v31 = vrot.slane %v4257_v28, %v4216_v11 }
  0x31   : > { %v867_v32 = vrot.slane %v328_v5, %v4212_v9  ;;  %v909_v33 = vrot.slane %v4210_v8, %v4239_v20  ;;  %v847_v34 = vrot.slane %v328_v5, %v4216_v11  ;;  %v1323_v35 = vrot.slane %v328_v5, %v4243_v22 }
  0x32   : > { %1032 = vrot.lane.b32.xlu0 %v1030_v15, %s4114_s18  ;;  %1186 = vrot.lane.b32.xlu1 %v1184_v16, %s4114_s18  ;;  %v944_v37 = vrot.slane %v4210_v8, %v4243_v22  ;;  %v1298_v38 = vrot.slane %v328_v5, %v4239_v20  ;;  %v987_v39 = vrot.slane %v4222_v13, %v4249_v25  ;;  %vm565_vm0 = vcmask 982016  }
  0x33   : > { %v1325_v42 = vmul.f32 %v1323_v35, %v4276_v36  ;;  %v1324_v43 = vmul.f32 %v1323_v35, %v4285_v40  ;;  %v1326_v46 = vmul.f32 %v1323_v35, %v4287_v41  ;;  %v1353_v50 = vrot.slane %v4210_v8, %v4249_v25 }
  0x34   : > { %v1299_v44 = vmul.f32 %v1298_v38, %v4285_v40  ;;  %v1300_v45 = vmul.f32 %v1298_v38, %v4276_v36  ;;  %v1301_v49 = vmul.f32 %v1298_v38, %v4287_v41  ;;  %v1379_v56 = vrot.slane %v4222_v13, %v4205_v7  ;;  %v4353_v38 = vld [vmem:[#allocation3 + $0x20] sm:$0xff] }
  0x35   : > { %v1331_v47 = vrot.slane %v1325_v42, 1  ;;  %v1330_v48 = vrot.slane %v1324_v43, 1  ;;  %v1333_v51 = vrot.slane %v1326_v46, 1  ;;  %v1355_v53 = vmul.f32 %v1353_v50, %v4287_v41 }
  0x36   : > { %1243 = vrot.lane.b32.xlu0 %v1241_v17, %s4114_s18  ;;  %1470 = vrot.lane.b32.xlu1 %v1468_v18, %s4115_s19  ;;  %v1354_v54 = vmul.f32 %v1353_v50, %v4276_v36  ;;  %v1380_v60 = vmul.f32 %v1379_v56, %v4276_v36  ;;  %v1381_v61 = vmul.f32 %v1379_v56, %v4287_v41  ;;  %vm3351_vm1 = vcmask 130048  }
  0x37   : > { %v1332_v52 = vsel %vm651_vm7, %v1330_v48, %v1331_v47  ;;  %v1334_v55 = vsel %vm651_vm7, %v1331_v47, %v1333_v51  ;;  %v1359_v57 = vrot.slane %v1355_v53, 2  ;;  %v1382_v63 = vmul.f32 %v1379_v56, %v4309_v58 }
  0x38   : > { %v1358_v59 = vrot.slane %v1354_v54, 2  ;;  %v1409_v0 = vrot.slane %v4222_v13, %v4203_v6  ;;  %v1386_v1 = vrot.slane %v1380_v60, 3  ;;  %v1387_v3 = vrot.slane %v1381_v61, 3 }
  0x39   : > { %v1389_v5 = vrot.slane %v1382_v63, 3  ;;  %vm3332_vm2 = vcmask 1041408   ;;  %vm450_vm3 = vcmask 1040384  }
  0x3a   : > { %1441 = vrot.lane.b32.xlu0 %v1439_v19, %s4115_s19  ;;  %1504 = vrot.lane.b32.xlu1 %v1502_v21, %s4115_s19  ;;  %v1360_v62 = vsel %vm922_vm8, %v1358_v59, %v1359_v57  ;;  %v1411_v8 = vmul.f32 %v1409_v0, %v4287_v41  ;;  %v1410_v12 = vmul.f32 %v1409_v0, %v4276_v36 }
  0x3b   : > { %v1388_v14 = vsel %vm961_vm9, %v1386_v1, %v1387_v3  ;;  %v1412_v15 = vmul.f32 %v1409_v0, %v4309_v58  ;;  %v1390_v13 = vsel %vm961_vm9, %v1387_v3, %v1389_v5 }
  0x3c   : > { %v1417_v16 = vrot.slane %v1411_v8, 4  ;;  %v1416_v17 = vrot.slane %v1410_v12, 4 }
  0x3d   : > { %v1419_v18 = vrot.slane %v1412_v15, 4 }
  0x3e   : > { %1534 = vrot.lane.b32.xlu0 %v1532_v23, %s4115_s19  ;;  %1568 = vrot.lane.b32.xlu1 %v1566_v24, %s4115_s19  ;;  %v1418_v19 = vsel %vm1004_vm10, %v1416_v17, %v1417_v16 }
  0x3f   : > { %v1420_v21 = vsel %vm1004_vm10, %v1417_v16, %v1419_v18 }
  0x42   : > { %1631 = vrot.lane.b32.xlu0 %v1629_v26, %s4116_s22  ;;  %1602 = vrot.lane.b32.xlu1 %v1600_v27, %s4116_s22  ;;  %v4337_v27 = vld [vmem:[#allocation3] sm:$0xff] }
  0x46   : > { %1665 = vrot.lane.b32.xlu0 %v1663_v29, %s4116_s22  ;;  %1695 = vrot.lane.b32.xlu1 %v1693_v30, %s4116_s22 }
  0x4a   : > { %1729 = vrot.lane.b32.xlu0 %v1727_v31, %s4116_s22  ;;  %869 = vrot.lane.b32.xlu1 %v867_v32, %s4117_s23  ;;  %v4345_v32 = vld [vmem:[#allocation3 + $0x10] sm:$0xff] }
  0x4e   : > { %911 = vrot.lane.b32.xlu0 %v909_v33, %s4117_s23  ;;  %849 = vrot.lane.b32.xlu1 %v847_v34, %s4117_s23 }
  0x52   : > { %946 = vrot.lane.b32.xlu0 %v944_v37, %s4117_s23  ;;  %989 = vrot.lane.b32.xlu1 %v987_v39, %s4117_s23 }
  0x56   : > { %1305 = vrot.lane.b32.xlu0 %v1299_v44, %s4117_s23  ;;  %1307 = vrot.lane.b32.xlu1 %v1300_v45, %s4117_s23 }
  0x5a   : > { %1309 = vrot.lane.b32.xlu0 %v1301_v49, %s4117_s23  ;;  %1335 = vrot.lane.b32.xlu1 %v1332_v52, %s4117_s23 }
  0x5e   : > { %1337 = vrot.lane.b32.xlu0 %v1334_v55, %s4117_s23  ;;  %1339 = vrot.lane.b32.xlu1 %v1333_v51, %s4117_s23 }
  0x62   : > { %1361 = vrot.lane.b32.xlu0 %v1358_v59, %s4117_s23  ;;  %1363 = vrot.lane.b32.xlu1 %v1360_v62, %s4117_s23 }
  0x66   : > { %1365 = vrot.lane.b32.xlu0 %v1359_v57, %s4117_s23  ;;  %1391 = vrot.lane.b32.xlu1 %v1386_v1, %s4117_s23 }
  0x6a   : > { %1393 = vrot.lane.b32.xlu0 %v1388_v14, %s4117_s23  ;;  %1395 = vrot.lane.b32.xlu1 %v1390_v13, %s4117_s23 }
  0x6e   : > { %1421 = vrot.lane.b32.xlu0 %v1416_v17, %s4117_s23  ;;  %1423 = vrot.lane.b32.xlu1 %v1418_v19, %s4117_s23 }
  0x72   : > { %1425 = vrot.lane.b32.xlu0 %v1420_v21, %s4117_s23 }
  0xa0   : > { %v4335_v23 = vpop.permute.xlu0 %1080  ;;  %v1138_v24 = vpop.permute.xlu1 %1137 }
  0xa1   : > { %v4363_v44 = vmul.f32 %v4335_v23, %v4353_v38  ;;  %v4372_v47 = vmul.f32 %v1138_v24, %v4345_v32  ;;  %v4379_v50 = vmul.f32 %v4335_v23, %v4287_v41  ;;  %v4392_v55 = vmul.f32 %v1138_v24, %v4353_v38 }
  0xa2   : > { %v4395_v56 = vmul.f32 %v1138_v24, %v4276_v36  ;;  %v4414_v63 = vmul.f32 %v1138_v24, %v4287_v41  ;;  %v1083_v5 = vmul.f32 %v4335_v23, %v4337_v27  ;;  %v1085_v8 = vmul.f32 %v4335_v23, %v4345_v32 }
  0xa3   : > { %v6491_v49 = vrot.slane %v4363_v44, 1  ;;  %v6489_v52 = vrot.slane %v4372_v47, 2  ;;  %v6488_v54 = vrot.slane %v4379_v50, 1  ;;  %v6490_v61 = vrot.slane %v4392_v55, 2 }
  0xa4   : > { %v1033_v26 = vpop.permute.xlu0 %1032  ;;  %v4341_v31 = vpop.permute.xlu1 %1186  ;;  %v6485_v62 = vrot.slane %v4395_v56, 2  ;;  %v6487_v14 = vrot.slane %v4414_v63, 2  ;;  %v1095_v19 = vrot.slane %v1083_v5, 1  ;;  %v1096_v21 = vrot.slane %v1085_v8, 1 }
  0xa5   : > { %v1035_v29 = vmul.f32 %v1033_v26, %v4337_v27  ;;  %v1036_v30 = vmul.f32 %v1033_v26, %v4285_v40  ;;  %v1037_v34 = vmul.f32 %v1033_v26, %v4345_v32  ;;  %v1038_v35 = vmul.f32 %v1033_v26, %v4276_v36 }
  0xa6   : > { %v1039_v42 = vmul.f32 %v1033_v26, %v4353_v38  ;;  %v1040_v43 = vmul.f32 %v1033_v26, %v4287_v41  ;;  %v4407_v59 = vmul.f32 %v4341_v31, %v4345_v32  ;;  %v4427_v3 = vmul.f32 %v4341_v31, %v4276_v36 }
  0xa7   : > { %1047 = vrot.lane.b32.xlu0 %v1035_v29, %s4114_s18  ;;  %1049 = vrot.lane.b32.xlu1 %v1036_v30, %s4114_s18 }
  0xa8   : > { %v4347_v33 = vpop.permute.xlu0 %1243  ;;  %v4351_v37 = vpop.permute.xlu1 %1470  ;;  %v6483_v1 = vrot.slane %v4407_v59, 3  ;;  %v6486_v18 = vrot.slane %v4427_v3, 3 }
  0xa9   : > { %v4438_v15 = vmul.f32 %v4347_v33, %v4345_v32  ;;  %v4455_v24 = vmul.f32 %v4347_v33, %v4276_v36 }
  0xab   : > { %1051 = vrot.lane.b32.xlu0 %v1037_v34, %s4114_s18  ;;  %1053 = vrot.lane.b32.xlu1 %v1038_v35, %s4114_s18  ;;  %v6484_v29 = vrot.slane %v4438_v15, 4 }
  0xac   : > { %v4357_v39 = vpop.permute.xlu0 %1441  ;;  %v4365_v45 = vpop.permute.xlu1 %1504 }
  0xad   : > { %v1444_v46 = vmul.f32 %v4357_v39, %v4285_v40 }
  0xaf   : > { %1055 = vrot.lane.b32.xlu0 %v1039_v42, %s4114_s18  ;;  %1057 = vrot.lane.b32.xlu1 %v1040_v43, %s4114_s18  ;;  %v1084_v43 = vmul.f32 %v4335_v23, %v4285_v40 }
  0xb0   : > { %v4374_v48 = vpop.permute.xlu0 %1534  ;;  %v4381_v51 = vpop.permute.xlu1 %1568 }
  0xb3   : > { %1113 = vrot.lane.b32.xlu0 %v6491_v49, %s4114_s18  ;;  %1450 = vrot.lane.b32.xlu1 %v1444_v46, %s4118_s25  ;;  %v1086_v46 = vmul.f32 %v4335_v23, %v4276_v36 }
  0xb4   : > { %v4388_v53 = vpop.permute.xlu0 %1631  ;;  %v4397_v57 = vpop.permute.xlu1 %1602 }
  0xb7   : > { %1154 = vrot.lane.b32.xlu0 %v6489_v52, %s4114_s18  ;;  %1115 = vrot.lane.b32.xlu1 %v6488_v54, %s4114_s18  ;;  %v1099_v54 = vrot.slane %v1086_v46, 1 }
  0xb8   : > { %v4409_v60 = vpop.permute.xlu0 %1665  ;;  %v4416_v0 = vpop.permute.xlu1 %1695 }
  0xbb   : > { %1162 = vrot.lane.b32.xlu0 %v6490_v61, %s4114_s18  ;;  %1156 = vrot.lane.b32.xlu1 %v6485_v62, %s4114_s18 }
  0xbc   : > { %v4433_v12 = vpop.permute.xlu0 %1729  ;;  %v4440_v13 = vpop.permute.xlu1 %869 }
  0xbd   : > { %v872_v16 = vmul.f32 %v4440_v13, %v4337_v27  ;;  %v874_v17 = vmul.f32 %v4440_v13, %v4345_v32  ;;  %v876_v5 = vmul.f32 %v4440_v13, %v4353_v38 }
  0xbf   : > { %1211 = vrot.lane.b32.xlu0 %v6483_v1, %s4114_s18  ;;  %1164 = vrot.lane.b32.xlu1 %v6487_v14, %s4114_s18  ;;  %v884_v30 = vrot.slane %v872_v16, 1  ;;  %v885_v34 = vrot.slane %v874_v17, 1  ;;  %v1097_v1 = vsel %vm651_vm7, %v1095_v19, %v1096_v21  ;;  %v1098_v14 = vrot.slane %v1084_v43, 1 }
  0xc0   : > { %v4457_v26 = vpop.permute.xlu0 %911  ;;  %v4462_v42 = vpop.permute.xlu1 %849 }
  0xc1   : > { %v914_v35 = vmul.f32 %v4457_v26, %v4345_v32  ;;  %v916_v8 = vmul.f32 %v4457_v26, %v4353_v38  ;;  %v852_v23 = vmul.f32 %v4462_v42, %v4337_v27  ;;  %v890_v27 = vrot.slane %v876_v5, 1 }
  0xc2   : > { %v1100_v46 = vsel %vm651_vm7, %v1098_v14, %v1099_v54  ;;  %v854_v5 = vmul.f32 %v4462_v42, %v4345_v32  ;;  %v915_v22 = vmul.f32 %v4457_v26, %v4276_v36  ;;  %v917_v20 = vmul.f32 %v4457_v26, %v4287_v41 }
  0xc3   : > { %1268 = vrot.lane.b32.xlu0 %v6484_v29, %s4114_s18  ;;  %1213 = vrot.lane.b32.xlu1 %v6486_v18, %s4114_s18  ;;  %v923_v16 = vrot.slane %v914_v35, 2  ;;  %v1259_v29 = vrot.slane %v4455_v24, 4  ;;  %v886_v18 = vsel %vm651_vm7, %v884_v30, %v885_v34  ;;  %v925_v35 = vrot.slane %v916_v8, 2 }
  0xc4   : > { %v4478_v17 = vpop.permute.xlu0 %946  ;;  %v4484_v62 = vpop.permute.xlu1 %989  ;;  %v900_v52 = vadd.f32 %v886_v18, %v852_v23  ;;  %v6573_v30 = vrot.slane %v4363_v44, 1  ;;  %v1446_v24 = vmul.f32 %v4357_v39, %v4287_v41  ;;  %v853_v9 = vmul.f32 %v4462_v42, %v4285_v40 }
  0xc5   : > { %v949_v61 = vmul.f32 %v4478_v17, %v4345_v32  ;;  %v992_v19 = vmul.f32 %v4484_v62, %v4345_v32  ;;  %v926_v14 = vsel %vm922_vm8, %v923_v16, %v925_v35  ;;  %v952_v26 = vmul.f32 %v4478_v17, %v4287_v41 }
  0xc6   : > { %v935_v49 = vadd.f32 %v923_v16, %v900_v52  ;;  %v1102_v18 = vsel %vm651_vm7, %v1096_v21, %v6573_v30  ;;  %v842_v52 = vld [vmem:[#allocation3 + $0x30] sm:$0x3]  ;;  %v1192_v30 = vmul.f32 %v4341_v31, %v4287_v41  ;;  %v994_v16 = vmul.f32 %v4484_v62, %v4353_v38 }
  0xc7   : > { %1105 = vrot.lane.b32.xlu0 %v1097_v1, %s4114_s18  ;;  %1270 = vrot.lane.b32.xlu1 %v1259_v29, %s4114_s18  ;;  %v962_v25 = vrot.slane %v949_v61, 3  ;;  %v1005_v43 = vrot.slane %v992_v19, 4  ;;  %v1191_v1 = vmul.f32 %v4341_v31, %v4353_v38  ;;  %v891_v61 = vsel %vm651_vm7, %v885_v34, %v890_v27 }
  0xc8   : > { %v1193_v44 = vmul.f32 %v4341_v31, %v842_v52  ;;  %v902_v8 = vadd.f32 %v891_v61, %v854_v5  ;;  %v6574_v19 = vrot.slane %v4392_v55, 2  ;;  %v6576_v34 = vrot.slane %v4379_v50, 1 }
  0xc9   : > { %v978_v23 = vadd.f32 %v962_v25, %v935_v49  ;;  %v6575_v49 = vrot.slane %v4372_v47, 2  ;;  %v856_v55 = vmul.f32 %v4462_v42, %v4353_v38  ;;  %v6577_v61 = vrot.slane %v4414_v63, 2 }
  0xca   : > { %v937_v5 = vadd.f32 %v926_v14, %v902_v8  ;;  %v953_v8 = vmul.f32 %v4478_v17, %v842_v52  ;;  %v1205_v14 = vrot.slane %v1192_v30, 3  ;;  %v924_v2 = vrot.slane %v915_v22, 2 }
  0xcb   : > { %1109 = vrot.lane.b32.xlu0 %v1102_v18, %s4114_s18  ;;  %1107 = vrot.lane.b32.xlu1 %v1100_v46, %s4114_s18  ;;  %v4507_v21 = vadd.f32 %v1005_v43, %v978_v23  ;;  %v1151_v32 = vsel %vm922_vm8, %v6575_v49, %v6574_v19  ;;  %v951_v18 = vmul.f32 %v4478_v17, %v4353_v38  ;;  %v1203_v23 = vrot.slane %v1191_v1, 3 }
  0xcc   : > { %v1104_v46 = vsel %vm651_vm7, %v1099_v54, %v6576_v34  ;;  %v6578_v19 = vrot.slane %v4395_v56, 2  ;;  %v1207_v54 = vrot.slane %v1193_v44, 3  ;;  %v1007_v1 = vrot.slane %v994_v16, 4 }
  0xcd   : > { %v964_v47 = vrot.slane %v951_v18, 3  ;;  %v1248_v49 = vmul.f32 %v4347_v33, %v4353_v38  ;;  %v904_v18 = vadd.f32 %v890_v27, %v856_v55  ;;  %v6579_v34 = vrot.slane %v4407_v59, 3 }
  0xce   : > { %v1153_v50 = vsel %vm922_vm8, %v6578_v19, %v6577_v61  ;;  %v1194_v56 = vmul.f32 %v4341_v31, %v4309_v58  ;;  %v1008_v44 = vsel %vm1004_vm10, %v1005_v43, %v1007_v1  ;;  %v968_v16 = vrot.slane %v953_v8, 3 }
  0xcf   : > { %1158 = vrot.lane.b32.xlu0 %v1151_v32, %s4114_s18  ;;  %1111 = vrot.lane.b32.xlu1 %v1104_v46, %s4114_s18  ;;  %v965_v32 = vsel %vm961_vm9, %v962_v25, %v964_v47  ;;  %v1204_v46 = vsel %vm961_vm9, %v6579_v34, %v1203_v23  ;;  %v939_v30 = vadd.f32 %v925_v35, %v904_v18  ;;  %v6580_v27 = vrot.slane %v4427_v3, 3 }
  0xd0   : > { %v980_v63 = vadd.f32 %v965_v32, %v937_v5  ;;  %v1208_v38 = vsel %vm961_vm9, %v1203_v23, %v1207_v54  ;;  %v996_v59 = vmul.f32 %v4484_v62, %v842_v52  ;;  %v1260_v31 = vrot.slane %v1248_v49, 4 }
  0xd1   : > { %v1206_v55 = vsel %vm961_vm9, %v6580_v27, %v1205_v14  ;;  %v1250_v5 = vmul.f32 %v4347_v33, %v842_v52  ;;  %v969_v43 = vsel %vm961_vm9, %v964_v47, %v968_v16  ;;  %v1209_v61 = vrot.slane %v1194_v56, 3 }
  0xd2   : > { %v4546_v25 = vadd.f32 %v1008_v44, %v980_v63  ;;  %v1249_v35 = vmul.f32 %v4347_v33, %v4287_v41  ;;  %v982_v19 = vadd.f32 %v969_v43, %v939_v30  ;;  %v1251_v3 = vmul.f32 %v4347_v33, %v4309_v58 }
  0xd3   : > { %1215 = vrot.lane.b32.xlu0 %v1204_v46, %s4114_s18  ;;  %1160 = vrot.lane.b32.xlu1 %v1153_v50, %s4114_s18  ;;  %v1011_v50 = vrot.slane %v996_v59, 4  ;;  %v6581_v52 = vrot.slane %v4438_v15, 4  ;;  %v1210_v8 = vsel %vm961_vm9, %v1205_v14, %v1209_v61  ;;  %v1264_v49 = vrot.slane %v1250_v5, 4  ;;  %v4611_v61 = vpop.permute.xlu1 %1307 }
  0xd4   : > { %v1262_v32 = vrot.slane %v1249_v35, 4  ;;  %v1474_v33 = vmul.f32 %v4351_v37, %v4276_v36  ;;  %v1266_v34 = vrot.slane %v1251_v3, 4  ;;  %v1445_v14 = vmul.f32 %v4357_v39, %v4276_v36 }
  0xd5   : > { %v1012_v23 = vsel %vm1004_vm10, %v1007_v1, %v1011_v50  ;;  %v1261_v47 = vsel %vm1004_vm10, %v6581_v52, %v1260_v31  ;;  %v1473_v1 = vmul.f32 %v4351_v37, %v4285_v40  ;;  %v1265_v18 = vsel %vm1004_vm10, %v1260_v31, %v1264_v49 }
  0xd6   : > { %v4561_v54 = vadd.f32 %v1012_v23, %v982_v19  ;;  %v1263_v15 = vsel %vm1004_vm10, %v1259_v29, %v1262_v32  ;;  %v1267_v46 = vsel %vm1004_vm10, %v1262_v32, %v1266_v34  ;;  %v1480_v63 = vrot.slane %v1474_v33, 1 }
  0xd7   : > { %1219 = vrot.lane.b32.xlu0 %v1208_v38, %s4114_s18  ;;  %1217 = vrot.lane.b32.xlu1 %v1206_v55, %s4114_s18  ;;  %v1479_v56 = vrot.slane %v1473_v1, 1  ;;  %v1475_v44 = vmul.f32 %v4351_v37, %v4287_v41  ;;  %v1507_v29 = vmul.f32 %v4365_v45, %v4276_v36  ;;  %v1508_v30 = vmul.f32 %v4365_v45, %v4287_v41  ;;  %v4595_v37 = vpop.permute.xlu0 %1305 }
  0xd8   : > { %v1537_v39 = vmul.f32 %v4374_v48, %v4276_v36  ;;  %v1538_v45 = vmul.f32 %v4374_v48, %v4287_v41  ;;  %v1539_v31 = vmul.f32 %v4374_v48, %v4309_v58  ;;  %v1571_v19 = vmul.f32 %v4381_v51, %v4276_v36 }
  0xd9   : > { %v1481_v16 = vsel %vm651_vm7, %v1479_v56, %v1480_v63  ;;  %v1482_v38 = vrot.slane %v1475_v44, 1  ;;  %v1511_v59 = vrot.slane %v1507_v29, 2  ;;  %v1512_v27 = vrot.slane %v1508_v30, 2 }
  0xda   : > { %v1543_v35 = vrot.slane %v1537_v39, 3  ;;  %v1572_v50 = vmul.f32 %v4381_v51, %v4287_v41  ;;  %v1544_v23 = vrot.slane %v1538_v45, 3  ;;  %v1546_v3 = vrot.slane %v1539_v31, 3 }
  0xdb   : > { %1272 = vrot.lane.b32.xlu0 %v1261_v47, %s4114_s18  ;;  %1221 = vrot.lane.b32.xlu1 %v1210_v8, %s4114_s18  ;;  %v1483_v55 = vsel %vm651_vm7, %v1480_v63, %v1482_v38  ;;  %v1513_v5 = vsel %vm922_vm8, %v1511_v59, %v1512_v27  ;;  %v4609_v43 = vpop.permute.xlu0 %1309  ;;  %v1573_v48 = vmul.f32 %v4381_v51, %v4309_v58  ;;  %v4623_v47 = vpop.permute.xlu1 %1335  ;;  %v1577_v32 = vrot.slane %v1571_v19, 4 }
  0xdc   : > { %v1547_v8 = vsel %vm961_vm9, %v1544_v23, %v1546_v3  ;;  %v1545_v49 = vsel %vm961_vm9, %v1543_v35, %v1544_v23  ;;  %v1578_v1 = vrot.slane %v1572_v50, 4  ;;  %v1605_v34 = vmul.f32 %v4397_v57, %v4285_v40 }
  0xdd   : > { %v1636_v56 = vmul.f32 %v4388_v53, %v4287_v41  ;;  %v1607_v44 = vmul.f32 %v4397_v57, %v4287_v41  ;;  %v1700_v23 = vmul.f32 %v4416_v0, %v4309_v58  ;;  %v927_v4 = vrot.slane %v917_v20, 2 }
  0xde   : > { %v1579_v33 = vsel %vm1004_vm10, %v1577_v32, %v1578_v1 }
  0xdf   : > { %1276 = vrot.lane.b32.xlu0 %v1265_v18, %s4114_s18  ;;  %1274 = vrot.lane.b32.xlu1 %v1263_v15, %s4114_s18  ;;  %v4621_v52 = vpop.permute.xlu0 %1337  ;;  %v1580_v18 = vrot.slane %v1573_v48, 4  ;;  %v4634_v15 = vpop.permute.xlu1 %1339  ;;  %v928_v20 = vsel %vm922_vm8, %v924_v2, %v927_v4 }
  0xe1   : > { %v1581_v63 = vsel %vm1004_vm10, %v1578_v1, %v1580_v18  ;;  %v1734_v1 = vmul.f32 %v4433_v12, %v4309_v58 }
  0xe3   : > { %1452 = vrot.lane.b32.xlu0 %v1445_v14, %s4118_s25  ;;  %1278 = vrot.lane.b32.xlu1 %v1267_v46, %s4114_s18  ;;  %v4632_v51 = vpop.permute.xlu0 %1361  ;;  %v1634_v14 = vmul.f32 %v4388_v53, %v4285_v40  ;;  %v1635_v46 = vmul.f32 %v4388_v53, %v4276_v36  ;;  %v4653_v30 = vpop.permute.xlu1 %1363 }
  0xe4   : > { %6582 = vst [vmem:[#allocation15_spill] sm:$0xff] %v4632_v51 }
  0xe5   : > { %v1640_v53 = vrot.slane %v1634_v14, 1 }
  0xe7   : > { %1484 = vrot.lane.b32.xlu0 %v1481_v16, %s4118_s25  ;;  %1454 = vrot.lane.b32.xlu1 %v1446_v24, %s4118_s25  ;;  %v1606_v24 = vmul.f32 %v4397_v57, %v4276_v36  ;;  %v4651_v29 = vpop.permute.xlu0 %1365  ;;  %v1641_v16 = vrot.slane %v1635_v46, 1  ;;  %v4667_v45 = vpop.permute.xlu1 %1391 }
  0xe8   : > { %6584 = vst [vmem:[#allocation17_spill] sm:$0xff] %v4667_v45 }
  0xe9   : > { %v1642_v57 = vsel %vm651_vm7, %v1640_v53, %v1641_v16 }
  0xeb   : > { %1488 = vrot.lane.b32.xlu0 %v1482_v38, %s4118_s25  ;;  %1486 = vrot.lane.b32.xlu1 %v1483_v55, %s4118_s25  ;;  %v1643_v38 = vrot.slane %v1636_v56, 1  ;;  %v4665_v39 = vpop.permute.xlu0 %1393  ;;  %v4677_v50 = vpop.permute.xlu1 %1395 }
  0xec   : > { %6583 = vst [vmem:[#allocation16_spill] sm:$0xff] %v4665_v39  ;;  %6586 = vst [vmem:[#allocation19_spill] sm:$0xff] %v4677_v50 }
  0xed   : > { %v1644_v55 = vsel %vm651_vm7, %v1641_v16, %v1643_v38 }
  0xef   : > { %1516 = vrot.lane.b32.xlu0 %v1513_v5, %s4118_s25  ;;  %1514 = vrot.lane.b32.xlu1 %v1511_v59, %s4118_s25  ;;  %v1668_v59 = vmul.f32 %v4409_v60, %v4276_v36  ;;  %v1698_v5 = vmul.f32 %v4416_v0, %v4276_v36  ;;  %v4675_v19 = vpop.permute.xlu0 %1421 }
  0xf0   : > { %6585 = vst [vmem:[#allocation18_spill] sm:$0xff] %v4675_v19 }
  0xf1   : > { %v1672_v31 = vrot.slane %v1668_v59, 2  ;;  %v1704_v48 = vrot.slane %v1698_v5, 3  ;;  %v4059_v5 = vld [vmem:[%s6476_s1 + $0x28] sm:$0xff]  }
  0xf3   : > { %1548 = vrot.lane.b32.xlu0 %v1543_v35, %s4118_s25  ;;  %1518 = vrot.lane.b32.xlu1 %v1512_v27, %s4118_s25  ;;  %v1669_v27 = vmul.f32 %v4409_v60, %v4287_v41  ;;  %v1699_v35 = vmul.f32 %v4416_v0, %v4287_v41  ;;  %v1707_v0 = vrot.slane %v1700_v23, 3  ;;  %v4693_v18 = vpop.permute.xlu0 %1425  ;;  %v4060_v23 = vld [vmem:[%s6476_s1 + $0x20] sm:$0xff]  }
  0xf4   : > { %6587 = vst [vmem:[#allocation20_spill] sm:$0xff] %v4693_v18  ;;  %v997_v18 = vmul.f32 %v4484_v62, %v4309_v58 }
  0xf5   : > { %v1673_v60 = vrot.slane %v1669_v27, 2  ;;  %v4057_v27 = vld [vmem:[%s6476_s1 + $0x38] sm:$0xff]  }
  0xf7   : > { %1552 = vrot.lane.b32.xlu0 %v1547_v8, %s4118_s25  ;;  %1550 = vrot.lane.b32.xlu1 %v1545_v49, %s4118_s25  ;;  %v1674_v3 = vsel %vm922_vm8, %v1672_v31, %v1673_v60  ;;  %v1705_v8 = vrot.slane %v1699_v35, 3  ;;  %v1732_v49 = vmul.f32 %v4433_v12, %v4276_v36 }
  0xf9   : > { %v1738_v14 = vrot.slane %v1732_v49, 4  ;;  %v1708_v46 = vsel %vm961_vm9, %v1705_v8, %v1707_v0 }
  0xfb   : > { %1584 = vrot.lane.b32.xlu0 %v1579_v33, %s4118_s25  ;;  %1582 = vrot.lane.b32.xlu1 %v1577_v32, %s4118_s25  ;;  %v1733_v32 = vmul.f32 %v4433_v12, %v4287_v41  ;;  %v1706_v33 = vsel %vm961_vm9, %v1704_v48, %v1705_v8 }
  0xfd   : > { %v1739_v56 = vrot.slane %v1733_v32, 4 }
  0xff   : > { %1611 = vrot.lane.b32.xlu0 %v1605_v34, %s4119_s26  ;;  %1586 = vrot.lane.b32.xlu1 %v1581_v63, %s4118_s25  ;;  %v4695_v34 = vpop.permute.xlu1 %1423  ;;  %v1741_v63 = vrot.slane %v1734_v1, 4  ;;  %v1740_v16 = vsel %vm1004_vm10, %v1738_v14, %v1739_v56 }
 0x100   : > { %6588 = vst [vmem:[#allocation21_spill] sm:$0xff] %v4695_v34 }
 0x103   : > { %1615 = vrot.lane.b32.xlu0 %v1607_v44, %s4119_s26  ;;  %1613 = vrot.lane.b32.xlu1 %v1606_v24, %s4119_s26  ;;  %v1742_v24 = vsel %vm1004_vm10, %v1739_v56, %v1741_v63 }
 0x107   : > { %1647 = vrot.lane.b32.xlu0 %v1644_v55, %s4119_s26  ;;  %1645 = vrot.lane.b32.xlu1 %v1642_v57, %s4119_s26  ;;  %v6494_v55 = vmov 0.0   ;;  %v4058_v57 = vld [vmem:[%s6476_s1 + $0x30] sm:$0xff]  }
 0x108   : > { %3931 = vmatprep.subr.bf16.mxu1 %v6494_v55  ;;  %3919 = vmatprep.subr.bf16.mxu0 %v6494_v55 }
 0x109   : > { %3932 = vmatpush3.bf16.msra.mxu1 %v4057_v27 }
 0x10a   : > { %3933 = vmatprep.subr.bf16.mxu1 %v6494_v55 }
 0x10b   : > { %1675 = vrot.lane.b32.xlu0 %v1672_v31, %s4119_s26  ;;  %1649 = vrot.lane.b32.xlu1 %v1643_v38, %s4119_s26  ;;  %v1761_v38 = vrot.slane %v4257_v28, %v4205_v7 }
 0x10d   : > { %3934 = vmatpush3.bf16.msra.mxu1 %v4058_v57 }
 0x10e   : > { %3935 = vmatprep.subr.bf16.mxu1 %v6494_v55 }
 0x10f   : > { %1679 = vrot.lane.b32.xlu0 %v1673_v60, %s4119_s26  ;;  %1677 = vrot.lane.b32.xlu1 %v1674_v3, %s4119_s26 }
 0x111   : > { %3936 = vmatpush3.bf16.msra.mxu1 %v4059_v5 }
 0x112   : > { %3937 = vmatprep.subr.bf16.mxu1 %v6494_v55 }
 0x113   : > { %1711 = vrot.lane.b32.xlu0 %v1706_v33, %s4119_s26  ;;  %1709 = vrot.lane.b32.xlu1 %v1704_v48, %s4119_s26 }
 0x115   : > { %3938 = vmatpush3.bf16.msra.mxu1 %v4060_v23 }
 0x117   : > { %1743 = vrot.lane.b32.xlu0 %v1738_v14, %s4119_s26  ;;  %1713 = vrot.lane.b32.xlu1 %v1708_v46, %s4119_s26 }
 0x119   : > { %v4700_v12 = vpop.permute.xlu0 %1047  ;;  %v4702_v44 = vpop.permute.xlu1 %1049 }
 0x11b   : > { %1747 = vrot.lane.b32.xlu0 %v1742_v24, %s4119_s26  ;;  %1745 = vrot.lane.b32.xlu1 %v1740_v16, %s4119_s26  ;;  %v873_v24 = vmul.f32 %v4440_v13, %v4285_v40  ;;  %v875_v16 = vmul.f32 %v4440_v13, %v4276_v36  ;;  %v954_v40 = vmul.f32 %v4478_v17, %v4309_v58 }
 0x11d   : > { %v4710_v53 = vpop.permute.xlu0 %1051  ;;  %v4712_v59 = vpop.permute.xlu1 %1053  ;;  %v887_v5 = vrot.slane %v873_v24, 1  ;;  %v888_v23 = vrot.slane %v875_v16, 1  ;;  %v855_v24 = vmul.f32 %v4462_v42, %v4276_v36  ;;  %v857_v16 = vmul.f32 %v4462_v42, %v4287_v41 }
 0x11e   : > { %v966_v42 = vrot.slane %v952_v26, 3  ;;  %v970_v34 = vrot.slane %v954_v40, 3 }
 0x11f   : > { %1763 = vrot.lane.b32.xlu1 %v1761_v38, %s4117_s23  ;;  %v877_v38 = vmul.f32 %v4440_v13, %v4287_v41  ;;  %v889_v13 = vsel %vm651_vm7, %v887_v5, %v888_v23  ;;  %v950_v5 = vmul.f32 %v4478_v17, %v4276_v36 }
 0x120   : > { %v901_v6 = vadd.f32 %v889_v13, %v853_v9  ;;  %v993_v9 = vmul.f32 %v4484_v62, %v4276_v36 }
 0x121   : > { %v4723_v28 = vpop.permute.xlu0 %1055  ;;  %v4725_v31 = vpop.permute.xlu1 %1057  ;;  %v892_v55 = vrot.slane %v877_v38, 1  ;;  %v963_v22 = vrot.slane %v950_v5, 3 }
 0x122   : > { %v936_v51 = vadd.f32 %v924_v2, %v901_v6  ;;  %v1006_v26 = vrot.slane %v993_v9, 4 }
 0x123   : > { %v893_v38 = vsel %vm651_vm7, %v888_v23, %v892_v55  ;;  %v905_v45 = vadd.f32 %v892_v55, %v857_v16  ;;  %v995_v23 = vmul.f32 %v4484_v62, %v4287_v41  ;;  %v971_v16 = vsel %vm961_vm9, %v966_v42, %v970_v34 }
 0x124   : > { %v903_v19 = vadd.f32 %v893_v38, %v855_v24  ;;  %v1013_v38 = vrot.slane %v997_v18, 4  ;;  %v979_v41 = vadd.f32 %v963_v22, %v936_v51  ;;  %v967_v40 = vsel %vm961_vm9, %v963_v22, %v966_v42 }
 0x125   : > { %v4731_v35 = vpop.permute.xlu0 %1113  ;;  %v4733_v60 = vpop.permute.xlu1 %1450  ;;  %v940_v39 = vadd.f32 %v927_v4, %v905_v45  ;;  %v1009_v55 = vrot.slane %v995_v23, 4  ;;  %v1060_v4 = vsel %vm1059_vm11, %v4700_v12, %v4702_v44  ;;  %v1061_v12 = vsel %vm1059_vm11, %v4710_v53, %v4712_v59 }
 0x126   : > { %6589 = vst [vmem:[#allocation22_spill] sm:$0xff] %v4733_v60  ;;  %v938_v24 = vadd.f32 %v928_v20, %v903_v19  ;;  %v1022_v2 = vadd.f32 %v1006_v26, %v979_v41  ;;  %v1062_v19 = vsel %vm1059_vm11, %v4723_v28, %v4725_v31  ;;  %v1069_v42 = vadd.f32 %v1060_v4, %v4507_v21 }
 0x127   : > { %v983_v5 = vadd.f32 %v971_v16, %v940_v39  ;;  %v1014_v36 = vsel %vm1004_vm10, %v1009_v55, %v1013_v38  ;;  %v1010_v62 = vsel %vm1004_vm10, %v1006_v26, %v1009_v55  ;;  %v1073_v28 = vadd.f32 %v1062_v19, %v4561_v54 }
 0x128   : > { %v981_v50 = vadd.f32 %v967_v40, %v938_v24  ;;  %v1070_v18 = vadd.f32 %v4702_v44, %v1022_v2  ;;  %v1071_v54 = vadd.f32 %v1061_v12, %v4546_v25 }
 0x129   : > { %v4739_v3 = vpop.permute.xlu0 %1154  ;;  %v4741_v48 = vpop.permute.xlu1 %1115  ;;  %v1026_v39 = vadd.f32 %v1014_v36, %v983_v5 }
 0x12a   : > { %v1024_v23 = vadd.f32 %v1010_v62, %v981_v50  ;;  %v1119_v22 = vsel %vm1059_vm11, %v4731_v35, %v4741_v48 }
 0x12b   : > { %v1074_v44 = vadd.f32 %v4725_v31, %v1026_v39  ;;  %v1130_v31 = vadd.f32 %v1119_v22, %v1073_v28 }
 0x12c   : > { %v1072_v21 = vadd.f32 %v4712_v59, %v1024_v23 }
 0x12d   : > { %v4744_v8 = vpop.permute.xlu0 %1162  ;;  %v4746_v49 = vpop.permute.xlu1 %1156 }
 0x12e   : > { %v1166_v24 = vsel %vm1059_vm11, %v4739_v3, %v4746_v49 }
 0x131   : > { %v4748_v32 = vpop.permute.xlu0 %1211  ;;  %v4750_v1 = vpop.permute.xlu1 %1164 }
 0x132   : > { %v1168_v50 = vsel %vm1059_vm11, %v4744_v8, %v4750_v1 }
 0x133   : > { %v1179_v16 = vadd.f32 %v1168_v50, %v1130_v31  ;;  %v6590_v31 = vld [vmem:[#allocation19_spill] sm:$0xff] }
 0x135   : > { %v4752_v33 = vpop.permute.xlu0 %1268  ;;  %v4754_v0 = vpop.permute.xlu1 %1213 }
 0x136   : > { %v1223_v36 = vsel %vm1059_vm11, %v4748_v32, %v4754_v0 }
 0x139   : > { %v4756_v14 = vpop.permute.xlu0 %1105  ;;  %v4758_v46 = vpop.permute.xlu1 %1270 }
 0x13d   : > { %v4760_v56 = vpop.permute.xlu0 %1109  ;;  %v4762_v63 = vpop.permute.xlu1 %1107 }
 0x13e   : > { %v1117_v34 = vsel %vm1059_vm11, %v4756_v14, %v4762_v63  ;;  %v1127_v9 = vadd.f32 %v4762_v63, %v1070_v18  ;;  %v1131_v63 = vadd.f32 %v4741_v48, %v1074_v44 }
 0x13f   : > { %v1126_v53 = vadd.f32 %v1117_v34, %v1069_v42 }
 0x140   : > { %v1176_v25 = vadd.f32 %v4746_v49, %v1127_v9 }
 0x141   : > { %v4770_v27 = vpop.permute.xlu0 %1158  ;;  %v4772_v57 = vpop.permute.xlu1 %1111  ;;  %v1175_v26 = vadd.f32 %v1166_v24, %v1126_v53 }
 0x142   : > { %v1118_v35 = vsel %vm1059_vm11, %v4760_v56, %v4772_v57  ;;  %v1129_v59 = vadd.f32 %v4772_v57, %v1072_v21  ;;  %v1180_v56 = vadd.f32 %v4750_v1, %v1131_v63 }
 0x143   : > { %v1128_v38 = vadd.f32 %v1118_v35, %v1071_v54 }
 0x145   : > { %v4780_v10 = vpop.permute.xlu0 %1215  ;;  %v4782_v11 = vpop.permute.xlu1 %1160 }
 0x146   : > { %v1167_v8 = vsel %vm1059_vm11, %v4770_v27, %v4782_v11  ;;  %v1178_v3 = vadd.f32 %v4782_v11, %v1129_v59  ;;  %v6591_v59 = vld [vmem:[#allocation16_spill] sm:$0xff] }
 0x149   : > { %v1220_v7 = vpop.permute.xlu0 %1219  ;;  %v4796_v60 = vpop.permute.xlu1 %1217 }
 0x14a   : > { %v1224_v57 = vsel %vm1059_vm11, %v4780_v10, %v4796_v60  ;;  %v1235_v1 = vadd.f32 %v4796_v60, %v1178_v3  ;;  %v1232_v10 = vadd.f32 %v1223_v36, %v1175_v26  ;;  %v1280_v60 = vsel %vm1059_vm11, %v4752_v33, %v4758_v46  ;;  %v6594_v3 = vld [vmem:[#allocation21_spill] sm:$0xff] }
 0x14c   : > { %v1289_v34 = vadd.f32 %v1280_v60, %v1232_v10 }
 0x14d   : > { %v1273_v17 = vpop.permute.xlu0 %1272  ;;  %v1222_v13 = vpop.permute.xlu1 %1221 }
 0x14e   : > { %v1225_v55 = vsel %vm1059_vm11, %v1220_v7, %v1222_v13  ;;  %v1177_v7 = vadd.f32 %v1167_v8, %v1128_v38  ;;  %v1237_v5 = vadd.f32 %v1222_v13, %v1180_v56  ;;  %v1314_v33 = vadd.f32 %v4595_v37, %v1289_v34  ;;  %v6592_v8 = vld [vmem:[#allocation15_spill] sm:$0xff]  ;;  %v6593_v38 = vld [vmem:[#allocation20_spill] sm:$0xff]  ;;  %v6597_v34 = vld [vmem:[#allocation22_spill] sm:$0xff] }
 0x14f   : > { %v1236_v40 = vadd.f32 %v1225_v55, %v1179_v16 }
 0x150   : > { %v1234_v2 = vadd.f32 %v1224_v57, %v1177_v7  ;;  %v1344_v53 = vadd.f32 %v4623_v47, %v1314_v33  ;;  %v6595_v57 = vld [vmem:[#allocation17_spill] sm:$0xff] }
 0x151   : > { %v1277_v58 = vpop.permute.xlu0 %1276  ;;  %v1275_v6 = vpop.permute.xlu1 %1274 }
 0x152   : > { %v1281_v49 = vsel %vm1059_vm11, %v1273_v17, %v1275_v6  ;;  %v1292_v19 = vadd.f32 %v1275_v6, %v1235_v1  ;;  %v1370_v55 = vadd.f32 %v6592_v8, %v1344_v53 }
 0x153   : > { %v1291_v39 = vadd.f32 %v1281_v49, %v1234_v2 }
 0x154   : > { %v1317_v23 = vadd.f32 %v4611_v61, %v1292_v19 }
 0x155   : > { %v4812_v45 = vpop.permute.xlu0 %1452  ;;  %v1279_v51 = vpop.permute.xlu1 %1278 }
 0x156   : > { %v1282_v27 = vsel %vm1059_vm11, %v1277_v58, %v1279_v51  ;;  %v1233_v58 = vadd.f32 %v4754_v0, %v1176_v25  ;;  %v1294_v18 = vadd.f32 %v1279_v51, %v1237_v5  ;;  %v1316_v0 = vadd.f32 %v4611_v61, %v1291_v39 }
 0x157   : > { %v1293_v4 = vadd.f32 %v1282_v27, %v1236_v40  ;;  %v1347_v44 = vadd.f32 %v4621_v52, %v1317_v23  ;;  %v1400_v27 = vadd.f32 %v6595_v57, %v1370_v55 }
 0x158   : > { %v1290_v42 = vadd.f32 %v4758_v46, %v1233_v58  ;;  %v1319_v12 = vadd.f32 %v4609_v43, %v1294_v18  ;;  %v1346_v46 = vadd.f32 %v4621_v52, %v1316_v0 }
 0x159   : > { %v4831_v20 = vpop.permute.xlu0 %1484  ;;  %v4833_v14 = vpop.permute.xlu1 %1454  ;;  %v1318_v17 = vadd.f32 %v4609_v43, %v1293_v4  ;;  %v1373_v61 = vadd.f32 %v4653_v30, %v1347_v44  ;;  %v6596_v4 = vld [vmem:[#allocation18_spill] sm:$0xff] }
 0x15a   : > { %v1315_v28 = vadd.f32 %v4595_v37, %v1290_v42  ;;  %v1349_v9 = vadd.f32 %v4634_v15, %v1319_v12  ;;  %v1372_v37 = vadd.f32 %v4653_v30, %v1346_v46  ;;  %v1430_v10 = vadd.f32 %v6596_v4, %v1400_v27 }
 0x15b   : > { %v1348_v6 = vadd.f32 %v4634_v15, %v1318_v17  ;;  %v1403_v52 = vadd.f32 %v6591_v59, %v1373_v61 }
 0x15c   : > { %v1345_v35 = vadd.f32 %v4623_v47, %v1315_v28  ;;  %v1375_v54 = vadd.f32 %v4651_v29, %v1349_v9  ;;  %v1402_v25 = vadd.f32 %v6591_v59, %v1372_v37  ;;  %v1459_v42 = vadd.f32 %v6597_v34, %v1430_v10 }
 0x15d   : > { %v4854_v41 = vpop.permute.xlu0 %1488  ;;  %v4856_v48 = vpop.permute.xlu1 %1486  ;;  %v1374_v21 = vadd.f32 %v4651_v29, %v1348_v6  ;;  %v1433_v30 = vadd.f32 %v6594_v3, %v1403_v52 }
 0x15e   : > { %v1371_v16 = vadd.f32 %v6592_v8, %v1345_v35  ;;  %v1405_v56 = vadd.f32 %v6590_v31, %v1375_v54  ;;  %v1432_v1 = vadd.f32 %v6594_v3, %v1402_v25  ;;  %v1493_v33 = vadd.f32 %v4831_v20, %v1459_v42 }
 0x15f   : > { %v1404_v63 = vadd.f32 %v6590_v31, %v1374_v21  ;;  %v1462_v2 = vadd.f32 %v4812_v45, %v1433_v30 }
 0x160   : > { %v1401_v7 = vadd.f32 %v6595_v57, %v1371_v16  ;;  %v1435_v40 = vadd.f32 %v6593_v38, %v1405_v56  ;;  %v1461_v18 = vadd.f32 %v4812_v45, %v1432_v1 }
 0x161   : > { %v4868_v11 = vpop.permute.xlu0 %1516  ;;  %v4870_v62 = vpop.permute.xlu1 %1514  ;;  %v1434_v47 = vadd.f32 %v6593_v38, %v1404_v63  ;;  %v1496_v0 = vadd.f32 %v4856_v48, %v1462_v2 }
 0x162   : > { %v1431_v58 = vadd.f32 %v6596_v4, %v1401_v7  ;;  %v1464_v19 = vadd.f32 %v4833_v14, %v1435_v40  ;;  %v1495_v6 = vadd.f32 %v4856_v48, %v1461_v18  ;;  %v1523_v46 = vadd.f32 %v4870_v62, %v1493_v33  ;;  %v4061_v33 = vld [vmem:[%s6476_s1 + $0x18] sm:$0xff]  }
 0x163   : > { %v1463_v5 = vadd.f32 %v4833_v14, %v1434_v47  ;;  %v1526_v9 = vadd.f32 %v4868_v11, %v1496_v0  ;;  %3920 = vmatpush3.bf16.msra.mxu0 %v4061_v33  ;;  %v6608_v33 = vld [vmem:[#allocation14_spill] sm:$0xff] }
 0x164   : > { %v1460_v23 = vadd.f32 %v6597_v34, %v1431_v58  ;;  %v1498_v12 = vadd.f32 %v4854_v41, %v1464_v19 }
 0x165   : > { %v4877_v13 = vpop.permute.xlu0 %1548  ;;  %v1519_v32 = vpop.permute.xlu1 %1518  ;;  %v1497_v39 = vadd.f32 %v4854_v41, %v1463_v5  ;;  %v1525_v41 = vadd.f32 %v4868_v11, %v1495_v6  ;;  %v6598_v6 = vmov 0.0  }
 0x166   : > { %v1494_v14 = vadd.f32 %v4831_v20, %v1460_v23  ;;  %v1528_v61 = vadd.f32 %v1519_v32, %v1498_v12  ;;  %v1557_v53 = vadd.f32 %v4877_v13, %v1523_v46  ;;  %3939 = vmatprep.mubr.msk.bf16.mxu1 %vm4121_vm12, %v6598_v6  ;;  %3927 = vmatprep.mubr.msk.bf16.mxu0 %vm4121_vm12, %v6598_v6 }
 0x167   : > { %v1527_v28 = vadd.f32 %v1519_v32, %v1497_v39  ;;  %3921 = vmatprep.subr.bf16.mxu0 %v6598_v6 }
 0x168   : > { %v1524_v21 = vadd.f32 %v4870_v62, %v1494_v14 }
 0x169   : > { %v1553_v51 = vpop.permute.xlu0 %1552  ;;  %v1551_v22 = vpop.permute.xlu1 %1550 }
 0x16a   : > { %v1558_v48 = vadd.f32 %v4877_v13, %v1524_v21  ;;  %v1562_v35 = vadd.f32 %v1553_v51, %v1528_v61  ;;  %v1560_v54 = vadd.f32 %v1551_v22, %v1526_v9  ;;  %v1561_v37 = vadd.f32 %v1553_v51, %v1527_v28  ;;  %v4062_v21 = vld [vmem:[%s6476_s1 + $0x10] sm:$0xff]  }
 0x16b   : > { %v1559_v20 = vadd.f32 %v1551_v22, %v1525_v41  ;;  %3922 = vmatpush3.bf16.msra.mxu0 %v4062_v21 }
 0x16c   : > { %3923 = vmatprep.subr.bf16.mxu0 %v6598_v6 }
 0x16d   : > { %v1585_v50 = vpop.permute.xlu0 %1584  ;;  %v1583_v43 = vpop.permute.xlu1 %1582 }
 0x16e   : > { %v1594_v59 = vadd.f32 %v1585_v50, %v1560_v54  ;;  %v1591_v52 = vadd.f32 %v1583_v43, %v1557_v53  ;;  %v1592_v8 = vadd.f32 %v1583_v43, %v1558_v48  ;;  %v1593_v16 = vadd.f32 %v1585_v50, %v1559_v20 }
 0x171   : > { %v1612_v24 = vpop.permute.xlu0 %1611  ;;  %v1587_v15 = vpop.permute.xlu1 %1586 }
 0x172   : > { %v1596_v55 = vadd.f32 %v1587_v15, %v1562_v35  ;;  %v1595_v56 = vadd.f32 %v1587_v15, %v1561_v37  ;;  %v1620_v62 = vadd.f32 %v1612_v24, %v1591_v52  ;;  %v1621_v32 = vadd.f32 %v1612_v24, %v1592_v8 }
 0x175   : > { %v1616_v26 = vpop.permute.xlu0 %1615  ;;  %v1614_v29 = vpop.permute.xlu1 %1613 }
 0x176   : > { %v1625_v25 = vadd.f32 %v1616_v26, %v1596_v55  ;;  %v1623_v11 = vadd.f32 %v1614_v29, %v1594_v59  ;;  %v1624_v38 = vadd.f32 %v1616_v26, %v1595_v56  ;;  %v1622_v47 = vadd.f32 %v1614_v29, %v1593_v16  ;;  %v4063_v59 = vld [vmem:[%s6476_s1 + $0x8] sm:$0xff]   ;;  %v4945_v56 = vld [vmem:[%s6481_s6 + $0x10] sm:$0xff] }
 0x177   : > { %3924 = vmatpush3.bf16.msra.mxu0 %v4063_v59  ;;  %v5076_v59 = vld [vmem:[#allocation4 + $0x8] sm:$0xff] }
 0x178   : > { %3925 = vmatprep.subr.bf16.mxu0 %v6598_v6 }
 0x179   : > { %v1648_v49 = vpop.permute.xlu0 %1647  ;;  %v1646_v36 = vpop.permute.xlu1 %1645 }
 0x17a   : > { %v1657_v30 = vadd.f32 %v1648_v49, %v1623_v11  ;;  %v1654_v57 = vadd.f32 %v1646_v36, %v1620_v62  ;;  %v1655_v51 = vadd.f32 %v1646_v36, %v1621_v32  ;;  %v1656_v27 = vadd.f32 %v1648_v49, %v1622_v47  ;;  %v4064_v11 = vld [vmem:[%s6476_s1] sm:$0xff]   ;;  %v6599_v47 = vld [vmem:[#allocation8_spill] sm:$0xff] }
 0x17b   : > { %3926 = vmatpush3.bf16.msra.mxu0 %v4064_v11 }
 0x17c   : > { %3943 = vmatprep.subr.bf16.mxu0 %v6598_v6 }
 0x17d   : > { %v1676_v60 = vpop.permute.xlu0 %1675  ;;  %v1650_v17 = vpop.permute.xlu1 %1649 }
 0x17e   : > { %v1659_v22 = vadd.f32 %v1650_v17, %v1625_v25  ;;  %v1658_v7 = vadd.f32 %v1650_v17, %v1624_v38  ;;  %v1684_v40 = vadd.f32 %v1676_v60, %v1654_v57  ;;  %v1685_v1 = vadd.f32 %v1676_v60, %v1655_v51  ;;  %v4962_v57 = vld [vmem:[%s6481_s6 + $0x20] sm:$0xff]  ;;  %v4967_v51 = vld [vmem:[%s6481_s6 + $0x18] sm:$0xff] }
 0x181   : > { %v1680_v45 = vpop.permute.xlu0 %1679  ;;  %v1678_v44 = vpop.permute.xlu1 %1677 }
 0x182   : > { %v1689_v43 = vadd.f32 %v1680_v45, %v1659_v22  ;;  %v1687_v5 = vadd.f32 %v1678_v44, %v1657_v30  ;;  %v1688_v50 = vadd.f32 %v1680_v45, %v1658_v7  ;;  %v1686_v15 = vadd.f32 %v1678_v44, %v1656_v27  ;;  %v6601_v22 = vld [vmem:[#allocation6_spill] sm:$0xff]  ;;  %v6602_v27 = vld [vmem:[#allocation5_spill] sm:$0xff] }
 0x183   : > { %v334_v7 = vpack.c.bf16 %v6602_v27, %v6601_v22 }
 0x185   : > { %v1712_v31 = vpop.permute.xlu0 %1711  ;;  %v1710_v63 = vpop.permute.xlu1 %1709  ;;  %3928 = vmatmul.mubr.msk.bf16.vlgmr.msra.gmra.mxu0 %vm371_vm6, %v334_v7 }
 0x186   : > { %v1721_v4 = vadd.f32 %v1712_v31, %v1687_v5  ;;  %v1718_v10 = vadd.f32 %v1710_v63, %v1684_v40  ;;  %v1719_v26 = vadd.f32 %v1710_v63, %v1685_v1  ;;  %v1720_v58 = vadd.f32 %v1712_v31, %v1686_v15  ;;  %v4065_v40 = vld [vmem:[%s6477_s2 + $0x78] sm:$0xff]   ;;  %v6603_v1 = vld [vmem:[#allocation11_spill] sm:$0xff]  ;;  %v6604_v5 = vld [vmem:[#allocation10_spill] sm:$0xff]  ;;  %3959 = vmatprep.mubr.msk.bf16.mxu0 %vm4121_vm12, %v6598_v6 }
 0x187   : > { %3944 = vmatpush3.bf16.msra.mxu0 %v4065_v40  ;;  %v4066_v15 = vld [vmem:[%s6477_s2 + $0x70] sm:$0xff]  }
 0x188   : > { %3945 = vmatprep.subr.bf16.mxu0 %v6598_v6 }
 0x189   : > { %v1744_v3 = vpop.permute.xlu0 %1743  ;;  %v1714_v13 = vpop.permute.xlu1 %1713 }
 0x18a   : > { %v1723_v29 = vadd.f32 %v1714_v13, %v1689_v43  ;;  %v1722_v19 = vadd.f32 %v1714_v13, %v1688_v50  ;;  %v1752_v18 = vadd.f32 %v1744_v3, %v1718_v10  ;;  %v1753_v39 = vadd.f32 %v1744_v3, %v1719_v26  ;;  %v6600_v13 = vld [vmem:[#allocation7_spill] sm:$0xff]  ;;  %v4068_v10 = vld [vmem:[%s6477_s2 + $0x60] sm:$0xff]   ;;  %v4069_v26 = vld [vmem:[%s6477_s2 + $0x58] sm:$0xff]  }
 0x18b   : > { %v2202_v3 = vrot.slane %v4945_v56, %v6599_v47  ;;  %v2249_v30 = vrot.slane %v4945_v56, %v6600_v13  ;;  %v2355_v43 = vrot.slane %v4962_v57, %v6603_v1  ;;  %v2306_v50 = vrot.slane %v4967_v51, %v6604_v5  ;;  %3946 = vmatpush3.bf16.msra.mxu0 %v4066_v15 }
 0x18c   : > { %3947 = vmatprep.subr.bf16.mxu0 %v6598_v6 }
 0x18d   : > { %v1748_v2 = vpop.permute.xlu0 %1747  ;;  %v1746_v24 = vpop.permute.xlu1 %1745 }
 0x18e   : > { %v1757_v36 = vadd.f32 %v1748_v2, %v1723_v29  ;;  %v1755_v34 = vadd.f32 %v1746_v24, %v1721_v4  ;;  %v1756_v49 = vadd.f32 %v1748_v2, %v1722_v19  ;;  %v1754_v17 = vadd.f32 %v1746_v24, %v1720_v58  ;;  %v6605_v2 = vld [vmem:[#allocation9_spill] sm:$0xff]  ;;  %v4067_v4 = vld [vmem:[%s6477_s2 + $0x68] sm:$0xff]  }
 0x18f   : > { %v2412_v24 = vrot.slane %v4962_v57, %v6605_v2  ;;  %3948 = vmatpush3.bf16.msra.mxu0 %v4067_v4 }
 0x190   : > { %3949 = vmatprep.subr.bf16.mxu0 %v6598_v6 }
 0x191   : > { %v1764_v42 = vpop.permute.xlu1 %1763 }
 0x192   : > { %v1767_v60 = vadd.f32 %v1764_v42, %v1753_v39  ;;  %v1769_v23 = vadd.f32 %v1764_v42, %v1755_v34  ;;  %v1771_v12 = vadd.f32 %v1764_v42, %v1757_v36  ;;  %v1766_v0 = vadd.f32 %v1764_v42, %v1752_v18  ;;  %v4070_v18 = vld [vmem:[%s6477_s2 + $0x50] sm:$0xff]   ;;  %v4071_v39 = vld [vmem:[%s6477_s2 + $0x48] sm:$0xff]   ;;  %v4072_v36 = vld [vmem:[%s6477_s2 + $0x40] sm:$0xff]  }
 0x193   : > { %v1768_v14 = vadd.f32 %v1764_v42, %v1754_v17  ;;  %v1770_v28 = vadd.f32 %v1764_v42, %v1756_v49  ;;  %3950 = vmatpush3.bf16.msra.mxu0 %v4068_v10  ;;  %v2610_v34 = vrot.slane %v4945_v56, %v6604_v5  ;;  %v2658_v49 = vrot.slane %v4967_v51, %v6603_v1  ;;  %v6606_v42 = vld [vmem:[#allocation12_spill] sm:$0xff] }
 0x194   : > { %v1773_v45 = vmax.f32 %v1767_v60, 0.0  ;;  %v1775_v44 = vmax.f32 %v1769_v23, 0.0  ;;  %v1777_v9 = vmax.f32 %v1771_v12, 0.0  ;;  %v1772_v46 = vmax.f32 %v1766_v0, 0.0  ;;  %3951 = vmatprep.subr.bf16.mxu0 %v6598_v6  ;;  %v6607_v12 = vld [vmem:[#allocation13_spill] sm:$0xff] }
 0x195   : > { %v1774_v61 = vmax.f32 %v1768_v14, 0.0  ;;  %v1776_v41 = vmax.f32 %v1770_v28, 0.0  ;;  %v2715_v17 = vrot.slane %v4967_v51, %v6605_v2  ;;  %v2764_v60 = vrot.slane %v4962_v57, %v6606_v42  ;;  %v5044_v28 = vld [vmem:[%s6481_s6 + $0x28] sm:$0x3f] }
 0x196   : > { %v1779_v53 = vmin.f32 %v1773_v45, 6.0  ;;  %v1781_v48 = vmin.f32 %v1775_v44, 6.0  ;;  %v1783_v35 = vmin.f32 %v1777_v9, 6.0  ;;  %v1778_v54 = vmin.f32 %v1772_v46, 6.0 }
 0x197   : > { %v1780_v37 = vmin.f32 %v1774_v61, 6.0  ;;  %v1782_v20 = vmin.f32 %v1776_v41, 6.0  ;;  %3952 = vmatpush3.bf16.msra.mxu0 %v4069_v26  ;;  %v2926_v23 = vrot.slane %v4967_v51, %v6599_v47  ;;  %v2821_v0 = vrot.slane %v4962_v57, %v6607_v12 }
 0x198   : > { %v1785_v31 = vpack.c.bf16 %v1781_v48, %v1779_v53  ;;  %v1787_v63 = vpack.c.bf16 %v1783_v35, %v1783_v35  ;;  %3953 = vmatprep.subr.bf16.mxu0 %v6598_v6  ;;  %v2878_v14 = vrot.slane %v4945_v56, %v6608_v33  ;;  %v3089_v45 = vrot.slane %v5044_v28, %v6603_v1  ;;  %v5066_v53 = vld [vmem:[#allocation4 + $0x18] sm:$0xff] }
 0x199   : > { %v1784_v52 = vpack.c.bf16 %v1780_v37, %v1778_v54  ;;  %v1786_v8 = vpack.c.bf16 %v1782_v20, %v1782_v20  ;;  %v3032_v44 = vrot.slane %v4962_v57, %v6604_v5  ;;  %v2084_v9 = vrot.slane %v4967_v51, %v6606_v42 }
 0x19a   : > { %v1809_v55 = vrot.slane %v1785_v31, 3  ;;  %v1810_v16 = vrot.slane %v1787_v63, 3  ;;  %v2042_v46 = vrot.slane %v4945_v56, %v6605_v2  ;;  %v2118_v21 = vrot.slane %v4967_v51, %v6607_v12  ;;  %v2013_v63 = vld [vmem:[#allocation4 + $0x30] sm:$0xff] }
 0x19b   : > { %v1806_v62 = vrot.slane %v1784_v52, 3  ;;  %v1807_v32 = vrot.slane %v1786_v8, 3  ;;  %3954 = vmatpush3.bf16.msra.mxu0 %v4070_v18  ;;  %v2022_v61 = vrot.slane %v4945_v56, %v6603_v1  ;;  %v346_v48 = vrot.slane %v5044_v28, %v6599_v47 }
 0x19c   : > { %v1811_v25 = vsel %vm961_vm9, %v1809_v55, %v1810_v16  ;;  %3955 = vmatprep.subr.bf16.mxu0 %v6598_v6  ;;  %v2160_v31 = vrot.slane %v4962_v57, %v6608_v33 }
 0x19d   : > { %1814 = vrot.lane.b32.xlu1 %v1811_v25, %s4116_s22  ;;  %v1808_v38 = vsel %vm961_vm9, %v1806_v62, %v1807_v32 }
 0x19e   : > { %1812 = vrot.lane.b32.xlu0 %v1808_v38, %s4116_s22 }
 0x19f   : > { %3956 = vmatpush3.bf16.msra.mxu0 %v4071_v39 }
 0x1a0   : > { %3957 = vmatprep.subr.bf16.mxu0 %v6598_v6  ;;  %v2983_v6 = vrot.slane %v4967_v51, %v6600_v13 }
 0x1a1   : > { %2204 = vrot.lane.b32.xlu1 %v2202_v3, %s4117_s23  ;;  %v2007_v3 = vld [vmem:[#allocation4] sm:$0xff] }
 0x1a2   : > { %2251 = vrot.lane.b32.xlu0 %v2249_v30, %s4117_s23 }
 0x1a3   : > { %3958 = vmatpush3.bf16.msra.mxu0 %v4072_v36 }
 0x1a5   : > { %2357 = vrot.lane.b32.xlu1 %v2355_v43, %s4117_s23 }
 0x1a6   : > { %2308 = vrot.lane.b32.xlu0 %v2306_v50, %s4117_s23 }
 0x1a9   : > { %2660 = vrot.lane.b32.xlu1 %v2658_v49, %s4116_s22  ;;  %v2016_v49 = vld [vmem:[#allocation4 + $0x48] sm:$0x3] }
 0x1aa   : > { %2414 = vrot.lane.b32.xlu0 %v2412_v24, %s4117_s23 }
 0x1ad   : > { %2717 = vrot.lane.b32.xlu1 %v2715_v17, %s4116_s22 }
 0x1ae   : > { %2612 = vrot.lane.b32.xlu0 %v2610_v34, %s4116_s22 }
 0x1b1   : > { %2823 = vrot.lane.b32.xlu1 %v2821_v0, %s4116_s22 }
 0x1b2   : > { %2766 = vrot.lane.b32.xlu0 %v2764_v60, %s4116_s22 }
 0x1b5   : > { %2880 = vrot.lane.b32.xlu1 %v2878_v14, %s4122_s29 }
 0x1b6   : > { %2928 = vrot.lane.b32.xlu0 %v2926_v23, %s4122_s29 }
 0x1b9   : > { %3034 = vrot.lane.b32.xlu1 %v3032_v44, %s4122_s29 }
 0x1ba   : > { %2985 = vrot.lane.b32.xlu0 %v2983_v6, %s4122_s29 }
 0x1bd   : > { %2044 = vrot.lane.b32.xlu1 %v2042_v46, %s4119_s26 }
 0x1be   : > { %3091 = vrot.lane.b32.xlu0 %v3089_v45, %s4122_s29 }
 0x1c1   : > { %2024 = vrot.lane.b32.xlu1 %v2022_v61, %s4119_s26 }
 0x1c2   : > { %2086 = vrot.lane.b32.xlu0 %v2084_v9, %s4119_s26 }
 0x1c5   : > { %2162 = vrot.lane.b32.xlu1 %v2160_v31, %s4119_s26  ;;  %v5138_v31 = vld [vmem:[#allocation4 + $0x10] sm:$0xff] }
 0x1c6   : > { %2120 = vrot.lane.b32.xlu0 %v2118_v21, %s4119_s26 }
 0x20f   : > { %v1815_v29 = vpop.permute.xlu1 %1814 }
 0x210   : > { %v1813_v58 = vpop.permute.xlu0 %1812 }
 0x211   : > { %v1817_v19 = vsel %vm484_vm13, %v1813_v58, %v1815_v29 }
 0x212   : > { %3940 = vmatmul.mubr.msk.bf16.vlgmr.msra.gmra.mxu1 %vm371_vm6, %v1817_v19 }
 0x213   : > { %v5064_v41 = vpop.permute.xlu1 %2204 }
 0x214   : > { %6609 = vst [vmem:[#allocation19_spill] sm:$0xff] %v5064_v41  ;;  %v2209_v20 = vmul.f32 %v5064_v41, %v5066_v53  ;;  %v5078_v55 = vpop.permute.xlu0 %2251  ;;  %v2211_v25 = vmul.f32 %v5064_v41, %v2013_v63  ;;  %v2208_v11 = vmul.f32 %v5064_v41, %v5076_v59  ;;  %v2207_v7 = vmul.f32 %v5064_v41, %v2007_v3 }
 0x215   : > { %v2256_v30 = vmul.f32 %v5078_v55, %v5066_v53  ;;  %v2258_v22 = vmul.f32 %v5078_v55, %v2013_v63  ;;  %v2254_v15 = vmul.f32 %v5078_v55, %v2007_v3 }
 0x216   : > { %2223 = vrot.lane.b32.xlu0 %v2209_v20, %s4117_s23  ;;  %2221 = vrot.lane.b32.xlu1 %v2208_v11, %s4117_s23  ;;  %v1800_v20 = vrot.slane %v5044_v28, %v6604_v5 }
 0x217   : > { %v2267_v40 = vrot.slane %v2256_v30, 1  ;;  %v2272_v43 = vrot.slane %v2258_v22, 1  ;;  %v2266_v4 = vrot.slane %v2254_v15, 1  ;;  %v5104_v39 = vpop.permute.xlu1 %2357 }
 0x218   : > { %v5094_v24 = vpop.permute.xlu0 %2308  ;;  %v2360_v36 = vmul.f32 %v5104_v39, %v5066_v53  ;;  %v2362_v34 = vmul.f32 %v5104_v39, %v2013_v63  ;;  %v2364_v23 = vmul.f32 %v5104_v39, %v2016_v49 }
 0x219   : > { %v2273_v50 = vsel %vm651_vm7, %v2267_v40, %v2272_v43  ;;  %v2311_v10 = vmul.f32 %v5094_v24, %v5066_v53  ;;  %v2313_v26 = vmul.f32 %v5094_v24, %v2013_v63  ;;  %v2268_v29 = vsel %vm651_vm7, %v2266_v4, %v2267_v40 }
 0x21a   : > { %2227 = vrot.lane.b32.xlu0 %v2211_v25, %s4117_s23  ;;  %v2372_v17 = vrot.slane %v2360_v36, 3  ;;  %v2374_v60 = vrot.slane %v2362_v34, 3  ;;  %v2378_v6 = vrot.slane %v2364_v23, 3 }
 0x21b   : > { %v2319_v58 = vrot.slane %v2311_v10, 2  ;;  %v2321_v19 = vrot.slane %v2313_v26, 2 }
 0x21c   : > { %v2375_v0 = vsel %vm961_vm9, %v2372_v17, %v2374_v60  ;;  %v5114_v14 = vpop.permute.xlu0 %2414  ;;  %v2379_v45 = vsel %vm961_vm9, %v2374_v60, %v2378_v6 }
 0x21d   : > { %v2322_v18 = vsel %vm922_vm8, %v2319_v58, %v2321_v19  ;;  %v2417_v44 = vmul.f32 %v5114_v14, %v5066_v53  ;;  %v2419_v9 = vmul.f32 %v5114_v14, %v2013_v63  ;;  %v2421_v61 = vmul.f32 %v5114_v14, %v2016_v49  ;;  %v5140_v63 = vld [vmem:[#allocation4 + $0x28] sm:$0xff] }
 0x21e   : > { %2219 = vrot.lane.b32.xlu0 %v2207_v7, %s4117_s23  ;;  %v5130_v53 = vrot.slane %v4945_v56, %v6606_v42 }
 0x21f   : > { %v2429_v46 = vrot.slane %v2417_v44, 4  ;;  %v2431_v21 = vrot.slane %v2419_v9, 4  ;;  %v5182_v9 = vld [vmem:[#allocation4 + $0x58] sm:$0x3] }
 0x220   : > { %6610 = vst [vmem:[#allocation16_spill] sm:$0xff] %v5130_v53  ;;  %6613 = vst [vmem:[#allocation21_spill] sm:$0xff] %v5182_v9 }
 0x222   : > { %2280 = vrot.lane.b32.xlu0 %v2273_v50, %s4117_s23 }
 0x226   : > { %2284 = vrot.lane.b32.xlu0 %v2272_v43, %s4117_s23 }
 0x22a   : > { %2276 = vrot.lane.b32.xlu0 %v2268_v29, %s4117_s23 }
 0x22e   : > { %2329 = vrot.lane.b32.xlu0 %v2322_v18, %s4117_s23 }
 0x232   : > { %2333 = vrot.lane.b32.xlu0 %v2321_v19, %s4117_s23 }
 0x236   : > { %2325 = vrot.lane.b32.xlu0 %v2319_v58, %s4117_s23 }
 0x23a   : > { %2386 = vrot.lane.b32.xlu0 %v2375_v0, %s4117_s23 }
 0x23e   : > { %2390 = vrot.lane.b32.xlu0 %v2379_v45, %s4117_s23 }
 0x242   : > { %2382 = vrot.lane.b32.xlu0 %v2372_v17, %s4117_s23 }
 0x245   : > { %v409_v35 = vpop.f32.mrf.mxu0 }
 0x246   : > { %v410_v54 = vadd.f32 %v409_v35, %v346_v48  ;;  %v2435_v35 = vrot.slane %v2421_v61, 4 }
 0x247   : > { %v3929_v37 = vpop.f32.mrf.mxu0 }
 0x248   : > { %v416_v52 = vmax.f32 %v410_v54, 0.0  ;;  %v2436_v54 = vsel %vm1004_vm10, %v2431_v21, %v2435_v35  ;;  %v2470_v37 = vmul.f32 %v5130_v53, %v5076_v59 }
 0x249   : > { %v412_v8 = vpop.f32.mrf.mxu0 }
 0x24a   : > { %v413_v16 = vadd.f32 %v412_v8, %v346_v48  ;;  %v418_v62 = vmin.f32 %v416_v52, 6.0  ;;  %v2432_v48 = vsel %vm1004_vm10, %v2429_v46, %v2431_v21  ;;  %v5142_v52 = vld [vmem:[#allocation4 + $0x40] sm:$0xff] }
 0x24b   : > { %v3930_v32 = vpop.f32.mrf.mxu0  ;;  %2443 = vrot.lane.b32.xlu0 %v2432_v48, %s4117_s23  ;;  %6611 = vst [vmem:[#allocation15_spill] sm:$0xff] %v5142_v52 }
 0x24c   : > { %v417_v38 = vmax.f32 %v413_v16, 0.0  ;;  %420 = vst [vmem:[#allocation2 + $0x20] sm:$0xff] %v418_v62  ;;  %v5144_v62 = vpop.permute.xlu0 %2612  ;;  %v5146_v32 = vpop.permute.xlu1 %2660 }
 0x24d   : > { %6612 = vst [vmem:[#allocation20_spill] sm:$0xff] %v5146_v32  ;;  %v2616_v11 = vmul.f32 %v5144_v62, %v5138_v31  ;;  %v2668_v3 = vmul.f32 %v5146_v32, %v5142_v52  ;;  %v2618_v30 = vmul.f32 %v5144_v62, %v5140_v63  ;;  %v2664_v40 = vmul.f32 %v5146_v32, %v5138_v31 }
 0x24e   : > { %v419_v27 = vmin.f32 %v417_v38, 6.0  ;;  %v2666_v38 = vmul.f32 %v5146_v32, %v5140_v63  ;;  %v2620_v15 = vmul.f32 %v5144_v62, %v5142_v52 }
 0x24f   : > { %2447 = vrot.lane.b32.xlu0 %v2436_v54, %s4117_s23  ;;  %v2683_v7 = vrot.slane %v2668_v3, 1  ;;  %2633 = vrot.lane.b32.xlu1 %v2618_v30, %s4123_s9  ;;  %v2678_v58 = vrot.slane %v2664_v40, 1 }
 0x250   : > { %421 = vst [vmem:[#allocation2 + $0x38] sm:$0xff] %v419_v27  ;;  %v2679_v27 = vrot.slane %v2666_v38, 1  ;;  %v5163_v26 = vpop.permute.xlu1 %2717  ;;  %v5175_v6 = vpop.permute.xlu0 %2766 }
 0x251   : > { %v2721_v36 = vmul.f32 %v5163_v26, %v5140_v63  ;;  %v2723_v34 = vmul.f32 %v5163_v26, %v5142_v52  ;;  %v2770_v45 = vmul.f32 %v5175_v6, %v5140_v63  ;;  %v2772_v44 = vmul.f32 %v5175_v6, %v5142_v52 }
 0x252   : > { %v2684_v10 = vsel %vm651_vm7, %v2679_v27, %v2683_v7  ;;  %v2680_v17 = vsel %vm651_vm7, %v2678_v58, %v2679_v27  ;;  %v2774_v61 = vmul.f32 %v5175_v6, %v5182_v9 }
 0x253   : > { %2439 = vrot.lane.b32.xlu0 %v2429_v46, %s4117_s23  ;;  %2637 = vrot.lane.b32.xlu1 %v2620_v15, %s4123_s9  ;;  %v2729_v60 = vrot.slane %v2721_v36, 2  ;;  %v2732_v23 = vrot.slane %v2723_v34, 2  ;;  %v2782_v46 = vrot.slane %v2770_v45, 3  ;;  %v2785_v21 = vrot.slane %v2772_v44, 3 }
 0x254   : > { %v2789_v35 = vrot.slane %v2774_v61, 3  ;;  %v5189_v54 = vpop.permute.xlu1 %2823  ;;  %v2615_v36 = vmul.f32 %v5144_v62, %v5076_v59 }
 0x255   : > { %v2733_v0 = vsel %vm922_vm8, %v2729_v60, %v2732_v23  ;;  %v2786_v48 = vsel %vm961_vm9, %v2782_v46, %v2785_v21 }
 0x257   : > { %2476 = vrot.lane.b32.xlu0 %v2470_v37, %s4119_s26  ;;  %v2790_v37 = vsel %vm961_vm9, %v2785_v21, %v2789_v35  ;;  %2627 = vrot.lane.b32.xlu1 %v2615_v36, %s4123_s9 }
 0x25b   : > { %2629 = vrot.lane.b32.xlu0 %v2616_v11, %s4123_s9  ;;  %v2831_v11 = vmul.f32 %v5189_v54, %v5182_v9 }
 0x25d   : > { %v2846_v3 = vrot.slane %v2831_v11, 4 }
 0x25f   : > { %2691 = vrot.lane.b32.xlu0 %v2684_v10, %s4123_s9 }
 0x263   : > { %2695 = vrot.lane.b32.xlu0 %v2683_v7, %s4123_s9  ;;  %v5210_v7 = vpop.permute.xlu0 %2928 }
 0x264   : > { %6615 = vst [vmem:[#allocation18_spill] sm:$0xff] %v5210_v7  ;;  %v2932_v58 = vmul.f32 %v5210_v7, %v5138_v31 }
 0x267   : > { %2687 = vrot.lane.b32.xlu0 %v2680_v17, %s4123_s9 }
 0x26b   : > { %2740 = vrot.lane.b32.xlu0 %v2733_v0, %s4123_s9 }
 0x26f   : > { %2744 = vrot.lane.b32.xlu0 %v2732_v23, %s4123_s9 }
 0x273   : > { %2736 = vrot.lane.b32.xlu0 %v2729_v60, %s4123_s9 }
 0x277   : > { %2797 = vrot.lane.b32.xlu0 %v2786_v48, %s4123_s9 }
 0x27b   : > { %2801 = vrot.lane.b32.xlu0 %v2790_v37, %s4123_s9 }
 0x27f   : > { %2793 = vrot.lane.b32.xlu0 %v2782_v46, %s4123_s9 }
 0x2d2   : > { %v1879_v8 = vpop.f32.mrf.mxu1 }
 0x2d3   : > { %v1880_v16 = vadd.f32 %v1879_v8, %v1800_v20  ;;  %v2829_v8 = vmul.f32 %v5189_v54, %v5142_v52 }
 0x2d4   : > { %v3941_v25 = vpop.f32.mrf.mxu1 }
 0x2d5   : > { %v1886_v43 = vmax.f32 %v1880_v16, 0.0  ;;  %v2842_v25 = vrot.slane %v2829_v8, 4 }
 0x2d6   : > { %v1882_v22 = vpop.f32.mrf.mxu1 }
 0x2d7   : > { %v1883_v50 = vadd.f32 %v1882_v22, %v1800_v20  ;;  %v1888_v19 = vmin.f32 %v1886_v43, 6.0  ;;  %v2827_v20 = vmul.f32 %v5189_v54, %v5140_v63  ;;  %v2847_v30 = vsel %vm1004_vm10, %v2842_v25, %v2846_v3  ;;  %v5205_v22 = vpop.permute.xlu1 %2880 }
 0x2d8   : > { %v3942_v4 = vpop.f32.mrf.mxu1  ;;  %6614 = vst [vmem:[#allocation17_spill] sm:$0xff] %v5205_v22  ;;  %v2886_v27 = vmul.f32 %v5205_v22, %v5140_v63  ;;  %v2888_v40 = vmul.f32 %v5205_v22, %v5142_v52  ;;  %v2934_v43 = vmul.f32 %v5210_v7, %v5140_v63  ;;  %v2884_v15 = vmul.f32 %v5205_v22, %v5138_v31 }
 0x2d9   : > { %v1887_v29 = vmax.f32 %v1883_v50, 0.0  ;;  %v2839_v16 = vrot.slane %v2827_v20, 4  ;;  %v2936_v50 = vmul.f32 %v5210_v7, %v5142_v52  ;;  %v2883_v0 = vmul.f32 %v5205_v22, %v5076_v59 }
 0x2da   : > { %v2947_v4 = vrot.slane %v2934_v43, 1  ;;  %v2017_v43 = vld [vmem:[#allocation4 + $0x50] sm:$0x3] }
 0x2db   : > { %v1889_v18 = vmin.f32 %v1887_v29, 6.0  ;;  %v2843_v38 = vsel %vm1004_vm10, %v2839_v16, %v2842_v25  ;;  %v2951_v10 = vrot.slane %v2936_v50, 1  ;;  %2895 = vrot.lane.b32.xlu1 %v2883_v0, %s4124_s10 }
 0x2dc   : > { %2854 = vrot.lane.b32.xlu0 %v2843_v38, %s4123_s9  ;;  %v5272_v38 = vpop.permute.xlu1 %3034 }
 0x2dd   : > { %v1890_v49 = vpack.c.bf16 %v1889_v18, %v1888_v19  ;;  %v2952_v29 = vsel %vm651_vm7, %v2947_v4, %v2951_v10  ;;  %v2946_v19 = vrot.slane %v2932_v58, 1  ;;  %v5228_v18 = vpop.permute.xlu0 %2985  ;;  %v5288_v58 = vmul.f32 %v5114_v14, %v2017_v43 }
 0x2de   : > { %6616 = vst [vmem:[#allocation22_spill] sm:$0xff] %v5228_v18  ;;  %v2991_v17 = vmul.f32 %v5228_v18, %v5142_v52  ;;  %v5329_v42 = vmul.f32 %v5272_v38, %v2017_v43 }
 0x2df   : > { %3960 = vmatmul.mubr.bf16.vlgmr.msra.gmra.mxu0 %v1890_v49  ;;  %v2948_v34 = vsel %vm651_vm7, %v2946_v19, %v2947_v4  ;;  %v2989_v49 = vmul.f32 %v5228_v18, %v5140_v63 }
 0x2e0   : > { %2858 = vrot.lane.b32.xlu0 %v2847_v30, %s4123_s9  ;;  %v3000_v60 = vrot.slane %v2991_v17, 2  ;;  %v5276_v30 = vpop.permute.xlu1 %2044 }
 0x2e1   : > { %v2997_v31 = vrot.slane %v2989_v49, 2  ;;  %v5246_v45 = vpop.permute.xlu0 %3091  ;;  %6630 = vst [vmem:[#allocation34_spill] sm:$0xff] %v5276_v30 }
 0x2e3   : > { %v3001_v23 = vsel %vm922_vm8, %v2997_v31, %v3000_v60 }
 0x2e4   : > { %2850 = vrot.lane.b32.xlu0 %v2839_v16, %s4123_s9 }
 0x2e5   : > { %v5248_v44 = vpop.permute.xlu0 %2086 }
 0x2e6   : > { %6617 = vst [vmem:[#allocation6_spill] sm:$0xff] %v5248_v44 }
 0x2e8   : > { %2901 = vrot.lane.b32.xlu0 %v2886_v27, %s4124_s10  ;;  %v1911_v27 = vrot.slane %v5044_v28, %v6608_v33 }
 0x2e9   : > { %v5250_v46 = vpop.permute.xlu0 %2120 }
 0x2ea   : > { %6618 = vst [vmem:[#allocation5_spill] sm:$0xff] %v5250_v46 }
 0x2ec   : > { %2905 = vrot.lane.b32.xlu0 %v2888_v40, %s4124_s10 }
 0x2ed   : > { %v5252_v21 = vpop.permute.xlu0 %2223 }
 0x2ee   : > { %6619 = vst [vmem:[#allocation23_spill] sm:$0xff] %v5252_v21 }
 0x2f0   : > { %2897 = vrot.lane.b32.xlu0 %v2884_v15, %s4124_s10 }
 0x2f1   : > { %v5254_v61 = vpop.permute.xlu0 %2227 }
 0x2f2   : > { %6620 = vst [vmem:[#allocation24_spill] sm:$0xff] %v5254_v61 }
 0x2f4   : > { %2959 = vrot.lane.b32.xlu0 %v2952_v29, %s4124_s10  ;;  %v5285_v29 = vmul.f32 %v5104_v39, %v2017_v43 }
 0x2f5   : > { %v5256_v48 = vpop.permute.xlu0 %2219 }
 0x2f6   : > { %6621 = vst [vmem:[#allocation25_spill] sm:$0xff] %v5256_v48 }
 0x2f8   : > { %2963 = vrot.lane.b32.xlu0 %v2951_v10, %s4124_s10  ;;  %v5282_v10 = vpop.permute.xlu1 %2024 }
 0x2f9   : > { %v5258_v35 = vpop.permute.xlu0 %2280 }
 0x2fa   : > { %6622 = vst [vmem:[#allocation26_spill] sm:$0xff] %v5258_v35  ;;  %v5412_v35 = vmul.f32 %v5272_v38, %v5182_v9 }
 0x2fc   : > { %2955 = vrot.lane.b32.xlu0 %v2948_v34, %s4124_s10 }
 0x2fd   : > { %v5260_v37 = vpop.permute.xlu0 %2284 }
 0x2fe   : > { %6623 = vst [vmem:[#allocation27_spill] sm:$0xff] %v5260_v37 }
 0x300   : > { %3008 = vrot.lane.b32.xlu0 %v3001_v23, %s4124_s10 }
 0x301   : > { %v5262_v20 = vpop.permute.xlu0 %2276 }
 0x302   : > { %6624 = vst [vmem:[#allocation28_spill] sm:$0xff] %v5262_v20 }
 0x304   : > { %3012 = vrot.lane.b32.xlu0 %v3000_v60, %s4124_s10  ;;  %v2550_v60 = vrot.slane %v4962_v57, %v6599_v47  ;;  %v5333_v47 = vrot.slane %v4945_v56, %v6607_v12 }
 0x305   : > { %v5264_v8 = vpop.permute.xlu0 %2329 }
 0x306   : > { %6625 = vst [vmem:[#allocation29_spill] sm:$0xff] %v5264_v8 }
 0x308   : > { %3004 = vrot.lane.b32.xlu0 %v2997_v31, %s4124_s10  ;;  %v2580_v31 = vrot.slane %v4962_v57, %v6600_v13  ;;  %v5313_v57 = vmul.f32 %v5175_v6, %v2017_v43 }
 0x309   : > { %v5266_v16 = vpop.permute.xlu0 %2333 }
 0x30a   : > { %6626 = vst [vmem:[#allocation30_spill] sm:$0xff] %v5266_v16 }
 0x30d   : > { %v5268_v25 = vpop.permute.xlu0 %2325 }
 0x30e   : > { %6627 = vst [vmem:[#allocation31_spill] sm:$0xff] %v5268_v25 }
 0x311   : > { %v5270_v11 = vpop.permute.xlu0 %2386 }
 0x312   : > { %6628 = vst [vmem:[#allocation32_spill] sm:$0xff] %v5270_v11 }
 0x315   : > { %v5274_v3 = vpop.permute.xlu0 %2390 }
 0x316   : > { %6629 = vst [vmem:[#allocation33_spill] sm:$0xff] %v5274_v3 }
 0x319   : > { %v5280_v40 = vpop.permute.xlu0 %2382 }
 0x31a   : > { %6631 = vst [vmem:[#allocation35_spill] sm:$0xff] %v5280_v40 }
 0x31d   : > { %v5292_v28 = vpop.permute.xlu0 %2443 }
 0x31e   : > { %6632 = vst [vmem:[#allocation36_spill] sm:$0xff] %v5292_v28 }
 0x39f   : > { %v1994_v50 = vpop.f32.mrf.mxu0 }
 0x3a0   : > { %v1995_v15 = vadd.f32 %v1994_v50, %v1911_v27 }
 0x3a1   : > { %v3961_v4 = vpop.f32.mrf.mxu0 }
 0x3a2   : > { %v2001_v19 = vmax.f32 %v1995_v15, 0.0  ;;  %v2524_v4 = vrot.slane %v4967_v51, %v6608_v33  ;;  %v5323_v51 = vmul.f32 %v5250_v46, %v2017_v43  ;;  %v5355_v33 = vpop.permute.xlu0 %2447 }
 0x3a3   : > { %v1997_v36 = vpop.f32.mrf.mxu0  ;;  %6634 = vst [vmem:[#allocation38_spill] sm:$0xff] %v5355_v33 }
 0x3a4   : > { %v5290_v34 = vmin.f32 %v2001_v19, 6.0  ;;  %v1998_v49 = vadd.f32 %v1997_v36, %v1911_v27  ;;  %v5306_v19 = vpop.permute.xlu1 %2162  ;;  %v5308_v36 = vmul.f32 %v2550_v60, %v2017_v43 }
 0x3a5   : > { %v3962_v17 = vpop.f32.mrf.mxu0  ;;  %6633 = vst [vmem:[#allocation37_spill] sm:$0xff] %v5306_v19  ;;  %v5326_v23 = vmul.f32 %v5306_v19, %v2017_v43 }
 0x3a6   : > { %v2002_v50 = vmax.f32 %v1998_v49, 0.0  ;;  %v2471_v15 = vmul.f32 %v5130_v53, %v5290_v34  ;;  %v2210_v27 = vmul.f32 %v5064_v41, %v5290_v34  ;;  %v5310_v17 = vmul.f32 %v2580_v31, %v2017_v43  ;;  %v5408_v33 = vpop.permute.xlu0 %2439 }
 0x3a7   : > { %v5316_v49 = vmul.f32 %v5189_v54, %v2017_v43  ;;  %v2617_v13 = vmul.f32 %v5144_v62, %v5290_v34  ;;  %v2885_v5 = vmul.f32 %v5205_v22, %v5290_v34  ;;  %v2525_v56 = vmul.f32 %v2524_v4, %v5290_v34  ;;  %6637 = vst [vmem:[#allocation41_spill] sm:$0xff] %v5408_v33 }
 0x3a8   : > { %v5318_v0 = vmin.f32 %v2002_v50, 6.0  ;;  %2478 = vrot.lane.b32.xlu0 %v2471_v15, %s4119_s26  ;;  %2225 = vrot.lane.b32.xlu1 %v2210_v27, %s4117_s23  ;;  %v5337_v50 = vmul.f32 %v5272_v38, %v5140_v63  ;;  %v5341_v15 = vmul.f32 %v5272_v38, %v5142_v52  ;;  %v5344_v27 = vmul.f32 %v5246_v45, %v2017_v43 }
 0x3a9   : > { %v5353_v1 = vmul.f32 %v5094_v24, %v5290_v34  ;;  %v2560_v12 = vrot.slane %v5308_v36, 3  ;;  %v5363_v8 = vmul.f32 %v5276_v30, %v5290_v34  ;;  %v2581_v28 = vmul.f32 %v2580_v31, %v5290_v34 }
 0x3aa   : > { %v2529_v3 = vrot.slane %v2525_v56, 2  ;;  %v5384_v36 = vmul.f32 %v5248_v44, %v5290_v34  ;;  %v5388_v43 = vmul.f32 %v5250_v46, %v5290_v34  ;;  %v5392_v56 = vmul.f32 %v5306_v19, %v5290_v34  ;;  %v5452_v22 = vpop.permute.xlu0 %2476 }
 0x3ab   : > { %6635 = vst [vmem:[#allocation39_spill] sm:$0xff] %v5363_v8  ;;  %v2320_v16 = vrot.slane %v5353_v1, 2  ;;  %v5395_v1 = vmul.f32 %v2550_v60, %v5318_v0  ;;  %v5399_v21 = vmul.f32 %v5276_v30, %v5318_v0  ;;  %v5406_v11 = vmul.f32 %v5114_v14, %v5290_v34  ;;  %6638 = vst [vmem:[#allocation42_spill] sm:$0xff] %v5452_v22 }
 0x3ac   : > { %2631 = vrot.lane.b32.xlu0 %v2617_v13, %s4123_s9  ;;  %2899 = vrot.lane.b32.xlu1 %v2885_v5, %s4124_s10  ;;  %v5377_v13 = vmul.f32 %v5104_v39, %v5290_v34  ;;  %v5380_v5 = vmul.f32 %v2524_v4, %v5318_v0  ;;  %v2587_v37 = vrot.slane %v2581_v28, 4  ;;  %v2497_v40 = vmul.f32 %v5333_v47, %v5318_v0 }
 0x3ad   : > { %v5417_v4 = vmul.f32 %v2550_v60, %v5290_v34  ;;  %v5420_v61 = vmul.f32 %v2580_v31, %v5318_v0  ;;  %v5426_v33 = vmul.f32 %v5163_v26, %v5290_v34  ;;  %v5430_v28 = vmul.f32 %v5175_v6, %v5290_v34 }
 0x3ae   : > { %6636 = vst [vmem:[#allocation40_spill] sm:$0xff] %v5380_v5  ;;  %v2373_v25 = vrot.slane %v5377_v13, 3  ;;  %v2558_v31 = vrot.slane %v5395_v1, 3  ;;  %v2619_v20 = vmul.f32 %v5144_v62, %v5318_v0  ;;  %v2430_v30 = vrot.slane %v5406_v11, 4 }
 0x3af   : > { %v5444_v48 = vmul.f32 %v5189_v54, %v5290_v34  ;;  %v2504_v60 = vrot.slane %v2497_v40, 1  ;;  %v2557_v2 = vrot.slane %v5417_v4, 3  ;;  %v2588_v1 = vrot.slane %v5420_v61, 4 }
 0x3b0   : > { %2532 = vrot.lane.b32.xlu0 %v2529_v3, %s4119_s26  ;;  %2327 = vrot.lane.b32.xlu1 %v2320_v16, %s4117_s23  ;;  %v5450_v13 = vmul.f32 %v5333_v47, %v5290_v34  ;;  %v6639_v53 = vrot.slane %v5380_v5, 2  ;;  %v2728_v11 = vrot.slane %v5426_v33, 2  ;;  %v5461_v40 = vmul.f32 %v5094_v24, %v5318_v0 }
 0x3b1   : > { %v2561_v61 = vsel %vm961_vm9, %v2558_v31, %v2560_v12  ;;  %v5466_v4 = vmul.f32 %v5228_v18, %v5290_v34  ;;  %v5470_v22 = vmul.f32 %v5146_v32, %v5318_v0  ;;  %v5481_v12 = vmul.f32 %v5078_v55, %v5290_v34 }
 0x3b2   : > { %v2531_v62 = vsel %vm922_vm8, %v2529_v3, %v6639_v53  ;;  %6640 = vst [vmem:[#allocation43_spill] sm:$0xff] %v5461_v40  ;;  %v5474_v53 = vmul.f32 %v5163_v26, %v5318_v0  ;;  %v5485_v24 = vmul.f32 %v5146_v32, %v5290_v34  ;;  %v6540_v3 = vrot.slane %v5461_v40, 2 }
 0x3b3   : > { %v5489_v41 = vsel %vm1004_vm10, %v2587_v37, %v2588_v1  ;;  %v2363_v33 = vmul.f32 %v5104_v39, %v5318_v0  ;;  %v5501_v5 = vmul.f32 %v5210_v7, %v5318_v0  ;;  %v2420_v26 = vmul.f32 %v5114_v14, %v5318_v0 }
 0x3b4   : > { %2592 = vrot.lane.b32.xlu0 %v2587_v37, %s4119_s26  ;;  %2384 = vrot.lane.b32.xlu1 %v2373_v25, %s4117_s23  ;;  %v5506_v37 = vsel %vm922_vm8, %v2320_v16, %v6540_v3  ;;  %v2030_v39 = vmul.f32 %v5282_v10, %v5290_v34  ;;  %v6642_v18 = vrot.slane %v5399_v21, 1  ;;  %v6643_v52 = vrot.slane %v5363_v8, 1  ;;  %v5520_v16 = vpop.permute.xlu0 %2629 }
 0x3b5   : > { %6641 = vst [vmem:[#allocation44_spill] sm:$0xff] %v5506_v37  ;;  %v2376_v32 = vrot.slane %v2363_v33, 3  ;;  %6644 = vst [vmem:[#allocation45_spill] sm:$0xff] %v5520_v16  ;;  %v2433_v3 = vrot.slane %v2420_v26, 4  ;;  %v2092_v14 = vmul.f32 %v5248_v44, %v5318_v0  ;;  %v2126_v33 = vmul.f32 %v5250_v46, %v5318_v0 }
 0x3b6   : > { %v2168_v9 = vmul.f32 %v5306_v19, %v5318_v0  ;;  %v6647_v26 = vrot.slane %v5450_v13, 1 }
 0x3b7   : > { %v5529_v8 = vsel %vm961_vm9, %v2373_v25, %v2376_v32  ;;  %v5542_v44 = vsel %vm1004_vm10, %v2430_v30, %v2433_v3  ;;  %v2101_v46 = vrot.slane %v2092_v14, 2  ;;  %v2139_v40 = vrot.slane %v2126_v33, 3 }
 0x3b8   : > { %2635 = vrot.lane.b32.xlu0 %v2619_v20, %s4123_s9  ;;  %2441 = vrot.lane.b32.xlu1 %v2430_v30, %s4117_s23  ;;  %v5494_v20 = vmul.f32 %v5210_v7, %v5290_v34  ;;  %v2068_v7 = vsel %vm651_vm7, %v6643_v52, %v6642_v18  ;;  %6645 = vst [vmem:[#allocation46_spill] sm:$0xff] %v5529_v8  ;;  %v6646_v52 = vrot.slane %v5285_v29, 3  ;;  %v2181_v19 = vrot.slane %v2168_v9, 4 }
 0x3b9   : > { %v2078_v37 = vadd.f32 %v2068_v7, %v2030_v39  ;;  %v5539_v16 = vsel %vm651_vm7, %v6647_v26, %v2504_v60  ;;  %v6549_v25 = vrot.slane %v5501_v5, 1  ;;  %v6648_v8 = vrot.slane %v5288_v58, 4 }
 0x3ba   : > { %v5534_v18 = vsel %vm961_vm9, %v2376_v32, %v6646_v52  ;;  %v5551_v32 = vsel %vm961_vm9, %v2557_v2, %v2558_v31  ;;  %v5555_v7 = vmul.f32 %v5272_v38, %v5290_v34  ;;  %v6551_v9 = vrot.slane %v5485_v24, 1  ;;  %v5579_v52 = vpop.permute.xlu0 %2691 }
 0x3bb   : > { %v5548_v29 = vsel %vm1004_vm10, %v2433_v3, %v6648_v8  ;;  %v6649_v30 = vrot.slane %v5384_v36, 2  ;;  %v6650_v8 = vrot.slane %v5388_v43, 3  ;;  %v6550_v3 = vrot.slane %v5494_v20, 1  ;;  %6653 = vst [vmem:[#allocation47_spill] sm:$0xff] %v5579_v52 }
 0x3bc   : > { %2510 = vrot.lane.b32.xlu0 %v2504_v60, %s4119_s26  ;;  %2562 = vrot.lane.b32.xlu1 %v2557_v2, %s4119_s26  ;;  %v6651_v2 = vrot.slane %v5392_v56, 4  ;;  %v6652_v14 = vrot.slane %v5310_v17, 4  ;;  %v6654_v26 = vrot.slane %v5470_v22, 1  ;;  %v2828_v17 = vmul.f32 %v5189_v54, %v5318_v0 }
 0x3bd   : > { %v2102_v58 = vsel %vm922_vm8, %v6649_v30, %v2101_v46  ;;  %v2140_v60 = vsel %vm961_vm9, %v6650_v8, %v2139_v40  ;;  %v3049_v8 = vrot.slane %v5555_v7, 3 }
 0x3be   : > { %v2182_v31 = vsel %vm1004_vm10, %v6651_v2, %v2181_v19  ;;  %v2112_v39 = vadd.f32 %v2102_v58, %v2078_v37  ;;  %v5577_v33 = vsel %vm1004_vm10, %v2588_v1, %v6652_v14  ;;  %v5586_v30 = vsel %vm651_vm7, %v6551_v9, %v6654_v26 }
 0x3bf   : > { %v6655_v37 = vrot.slane %v5474_v53, 2  ;;  %v5603_v2 = vsel %vm651_vm7, %v6550_v3, %v6549_v25  ;;  %v6658_v26 = vrot.slane %v5326_v23, 4  ;;  %v6659_v3 = vrot.slane %v5399_v21, 1 }
 0x3c0   : > { %2534 = vrot.lane.b32.xlu0 %v2531_v62, %s4119_s26  ;;  %2734 = vrot.lane.b32.xlu1 %v2728_v11, %s4123_s9  ;;  %v5572_v62 = vmul.f32 %v5246_v45, %v5290_v34  ;;  %v2771_v34 = vmul.f32 %v5175_v6, %v5318_v0  ;;  %v2154_v1 = vadd.f32 %v2140_v60, %v2112_v39  ;;  %v6656_v6 = vrot.slane %v5430_v28, 3 }
 0x3c1   : > { %v5591_v58 = vsel %vm922_vm8, %v2728_v11, %v6655_v37  ;;  %v2032_v11 = vmul.f32 %v5282_v10, %v5318_v0  ;;  %v2840_v60 = vrot.slane %v2828_v17, 4  ;;  %v6657_v39 = vrot.slane %v5323_v51, 3 }
 0x3c2   : > { %v2783_v54 = vrot.slane %v2771_v34, 3  ;;  %v2186_v37 = vsel %vm1004_vm10, %v2181_v19, %v6658_v26  ;;  %v5617_v25 = vadd.f32 %v2182_v31, %v2154_v1  ;;  %v3096_v34 = vmul.f32 %v5246_v45, %v5318_v0 }
 0x3c3   : > { %v2144_v14 = vsel %vm961_vm9, %v2139_v40, %v6657_v39  ;;  %v2080_v9 = vadd.f32 %v6659_v3, %v2032_v11  ;;  %v6660_v17 = vmov %v6656_v6  ;;  %v6661_v23 = vrot.slane %v5313_v57, 3 }
 0x3c4   : > { %2566 = vrot.lane.b32.xlu0 %v2561_v61, %s4119_s26  ;;  %2791 = vrot.lane.b32.xlu1 %v6656_v6, %s4123_s9  ;;  %v3039_v61 = vmul.f32 %v5272_v38, %v5318_v0  ;;  %v5628_v51 = vsel %vm961_vm9, %v6660_v17, %v2783_v54  ;;  %v6662_v40 = vrot.slane %v5444_v48, 4  ;;  %v6663_v38 = vrot.slane %v5316_v49, 4  ;;  %v5651_v6 = vpop.permute.xlu0 %2695 }
 0x3c5   : > { %v5633_v19 = vsel %vm961_vm9, %v2783_v54, %v6661_v23  ;;  %v3106_v28 = vrot.slane %v5572_v62, 4  ;;  %v2114_v3 = vadd.f32 %v2101_v46, %v2080_v9  ;;  %v3108_v11 = vrot.slane %v3096_v34, 4 }
 0x3c6   : > { %v5638_v21 = vsel %vm1004_vm10, %v6662_v40, %v2840_v60  ;;  %v5643_v31 = vsel %vm1004_vm10, %v2840_v60, %v6663_v38  ;;  %v3051_v1 = vrot.slane %v3039_v61, 3  ;;  %v6664_v57 = vmov %v6662_v40 }
 0x3c7   : > { %v2255_v49 = vmul.f32 %v5078_v55, %v5076_v59  ;;  %v6665_v54 = vrot.slane %v5341_v15, 3  ;;  %v6666_v60 = vrot.slane %v5337_v50, 3  ;;  %v3057_v9 = vrot.slane %v5412_v35, 3  ;;  %v6671_v15 = vld [vmem:[#allocation20_spill] sm:$0xff] }
 0x3c8   : > { %2594 = vrot.lane.b32.xlu0 %v5489_v41, %s4119_s26  ;;  %2848 = vrot.lane.b32.xlu1 %v6664_v57, %s4123_s9  ;;  %v2156_v39 = vadd.f32 %v2144_v14, %v2114_v3  ;;  %v5664_v41 = vsel %vm961_vm9, %v3049_v8, %v3051_v1  ;;  %v6667_v48 = vrot.slane %v5329_v42, 3  ;;  %v5674_v61 = vsel %vm1004_vm10, %v3106_v28, %v3108_v11 }
 0x3c9   : > { %v3054_v46 = vsel %vm961_vm9, %v6666_v60, %v6665_v54  ;;  %v2996_v34 = vrot.slane %v5466_v4, 2  ;;  %v6668_v35 = vrot.slane %v5344_v27, 4  ;;  %v2270_v17 = vrot.slane %v5481_v12, 1 }
 0x3ca   : > { %v5669_v26 = vsel %vm961_vm9, %v3051_v1, %v6667_v48  ;;  %v2495_v42 = vmul.f32 %v5333_v47, %v5076_v59  ;;  %v5685_v23 = vadd.f32 %v2186_v37, %v2156_v39  ;;  %v2269_v40 = vrot.slane %v2255_v49, 1  ;;  %v6670_v1 = vld [vmem:[#allocation15_spill] sm:$0xff]  ;;  %v5698_v47 = vpop.permute.xlu0 %2687  ;;  %v6674_v48 = vld [vmem:[#allocation18_spill] sm:$0xff] }
 0x3cb   : > { %v5680_v14 = vsel %vm1004_vm10, %v3108_v11, %v6668_v35  ;;  %v6669_v38 = vmov %v6665_v54  ;;  %v3095_v3 = vmul.f32 %v5246_v45, %v5140_v63  ;;  %v3097_v11 = vmul.f32 %v5246_v45, %v6670_v1  ;;  %v6672_v63 = vld [vmem:[#allocation21_spill] sm:$0xff] }
 0x3cc   : > { %3002 = vrot.lane.b32.xlu1 %v2996_v34, %s4124_s10  ;;  %3065 = vrot.lane.b32.xlu0 %v3054_v46, %s4124_s10  ;;  %v3058_v27 = vsel %vm961_vm9, %v6669_v38, %v3057_v9  ;;  %v2271_v37 = vsel %vm651_vm7, %v2269_v40, %v2270_v17  ;;  %v2501_v57 = vrot.slane %v2495_v42, 1  ;;  %v2663_v49 = vmul.f32 %v6671_v15, %v5076_v59 }
 0x3cd   : > { %v3107_v54 = vrot.slane %v3095_v3, 4  ;;  %v3110_v60 = vrot.slane %v3097_v11, 4  ;;  %v3099_v46 = vmul.f32 %v5246_v45, %v6672_v63  ;;  %v6673_v9 = vrot.slane %v5450_v13, 1 }
 0x3ce   : > { %v2931_v35 = vmul.f32 %v6674_v48, %v5076_v59  ;;  %v5714_v42 = vpop.permute.xlu0 %2740  ;;  %v6676_v40 = vrot.slane %v5337_v50, 3  ;;  %v2675_v38 = vrot.slane %v2663_v49, 1  ;;  %v6677_v45 = vrot.slane %v5485_v24, 1  ;;  %v6679_v24 = vld [vmem:[#allocation19_spill] sm:$0xff] }
 0x3cf   : > { %v2503_v39 = vsel %vm651_vm7, %v2501_v57, %v6673_v9  ;;  %6675 = vst [vmem:[#allocation15_spill] sm:$0xff] %v5714_v42  ;;  %v3114_v3 = vrot.slane %v3099_v46, 4  ;;  %v6678_v50 = vrot.slane %v5494_v20, 1  ;;  %v2212_v15 = vmul.f32 %v6679_v24, %v5318_v0  ;;  %v6682_v46 = vld [vmem:[#allocation17_spill] sm:$0xff] }
 0x3d0   : > { %2278 = vrot.lane.b32.xlu1 %v2271_v37, %s4117_s23  ;;  %3069 = vrot.lane.b32.xlu0 %v3058_v27, %s4124_s10  ;;  %v3111_v27 = vsel %vm1004_vm10, %v3107_v54, %v3110_v60  ;;  %v2677_v13 = vsel %vm651_vm7, %v2675_v38, %v6677_v45  ;;  %v2943_v1 = vrot.slane %v2931_v35, 1  ;;  %v2887_v9 = vmul.f32 %v6682_v46, %v5318_v0 }
 0x3d1   : > { %v3115_v11 = vsel %vm1004_vm10, %v3110_v60, %v3114_v3  ;;  %v6680_v60 = vld [vmem:[#allocation16_spill] sm:$0xff]  ;;  %v6691_v24 = vrot.slane %v5501_v5, 1 }
 0x3d2   : > { %v5727_v37 = vpop.permute.xlu0 %2744  ;;  %v2945_v57 = vsel %vm651_vm7, %v2943_v1, %v6678_v50  ;;  %v2472_v63 = vmul.f32 %v6680_v60, %v5318_v0 }
 0x3d4   : > { %2506 = vrot.lane.b32.xlu1 %v2503_v39, %s4119_s26  ;;  %3061 = vrot.lane.b32.xlu0 %v6676_v40, %s4124_s10  ;;  %v2259_v39 = vmul.f32 %v5078_v55, %v5318_v0  ;;  %v6688_v55 = vrot.slane %v5470_v22, 1 }
 0x3d6   : > { %v5736_v49 = vpop.permute.xlu0 %2736  ;;  %v2274_v48 = vrot.slane %v2259_v39, 1  ;;  %v6696_v39 = vld [vmem:[#allocation46_spill] sm:$0xff] }
 0x3d8   : > { %2685 = vrot.lane.b32.xlu1 %v2677_v13, %s4123_s9  ;;  %3122 = vrot.lane.b32.xlu0 %v3111_v27, %s4124_s10  ;;  %v6685_v27 = vld [vmem:[#allocation40_spill] sm:$0xff]  ;;  %v6689_v13 = vrot.slane %v5474_v53, 2 }
 0x3d9   : > { %v6686_v3 = vrot.slane %v6685_v27, 2 }
 0x3da   : > { %v5743_v20 = vpop.permute.xlu0 %2797 }
 0x3db   : > { %6681 = vst [vmem:[#allocation20_spill] sm:$0xff] %v5743_v20 }
 0x3dc   : > { %2953 = vrot.lane.b32.xlu1 %v2945_v57, %s4124_s10  ;;  %3126 = vrot.lane.b32.xlu0 %v3115_v11, %s4124_s10  ;;  %v6690_v11 = vld [vmem:[#allocation22_spill] sm:$0xff]  ;;  %v5775_v57 = vpop.permute.xlu1 %2221 }
 0x3dd   : > { %v5773_v50 = vmul.f32 %v6690_v11, %v5318_v0  ;;  %v2275_v0 = vsel %vm651_vm7, %v2270_v17, %v2274_v48  ;;  %v6702_v11 = vld [vmem:[#allocation39_spill] sm:$0xff] }
 0x3de   : > { %v5750_v35 = vpop.permute.xlu0 %2801 }
 0x3e0   : > { %2229 = vrot.lane.b32.xlu1 %v2212_v15, %s4117_s23  ;;  %3118 = vrot.lane.b32.xlu0 %v3107_v54, %s4124_s10  ;;  %v6683_v54 = vld [vmem:[#allocation43_spill] sm:$0xff]  ;;  %v2998_v15 = vrot.slane %v5773_v50, 2  ;;  %v5783_v60 = vpop.permute.xlu1 %2633 }
 0x3e1   : > { %v6684_v40 = vrot.slane %v6683_v54, 2  ;;  %6692 = vst [vmem:[#allocation18_spill] sm:$0xff] %v5783_v60 }
 0x3e2   : > { %v5756_v38 = vpop.permute.xlu0 %2793 }
 0x3e4   : > { %2480 = vrot.lane.b32.xlu1 %v2472_v63, %s4119_s26  ;;  %v5794_v5 = vpop.permute.xlu1 %2637  ;;  %v6694_v63 = vld [vmem:[#allocation44_spill] sm:$0xff] }
 0x3e6   : > { %v5761_v45 = vpop.permute.xlu0 %2854 }
 0x3e7   : > { %6687 = vst [vmem:[#allocation21_spill] sm:$0xff] %v5761_v45 }
 0x3e8   : > { %2903 = vrot.lane.b32.xlu1 %v2887_v9, %s4124_s10  ;;  %v5800_v9 = vpop.permute.xlu1 %2627 }
 0x3ea   : > { %v5769_v1 = vpop.permute.xlu0 %2858 }
 0x3ec   : > { %2286 = vrot.lane.b32.xlu1 %v2274_v48, %s4117_s23  ;;  %v5806_v12 = vpop.permute.xlu1 %2895 }
 0x3ed   : > { %6697 = vst [vmem:[#allocation17_spill] sm:$0xff] %v5806_v12 }
 0x3ee   : > { %v5781_v22 = vpop.permute.xlu0 %2850 }
 0x3f0   : > { %2335 = vrot.lane.b32.xlu1 %v6684_v40, %s4117_s23 }
 0x3f2   : > { %v5792_v53 = vpop.permute.xlu0 %2901 }
 0x3f3   : > { %6693 = vst [vmem:[#allocation19_spill] sm:$0xff] %v5792_v53  ;;  %v4100_v53 = vld [vmem:[#allocation4 + $0x30] sm:$0xff] }
 0x3f4   : > { %2536 = vrot.lane.b32.xlu1 %v6686_v3, %s4119_s26 }
 0x3f6   : > { %v5798_v46 = vpop.permute.xlu0 %2905 }
 0x3f7   : > { %6695 = vst [vmem:[#allocation16_spill] sm:$0xff] %v5798_v46 }
 0x3f8   : > { %2693 = vrot.lane.b32.xlu1 %v6688_v55, %s4123_s9 }
 0x3fa   : > { %v5808_v17 = vpop.permute.xlu0 %2897 }
 0x3fc   : > { %2742 = vrot.lane.b32.xlu1 %v6689_v13, %s4123_s9 }
 0x3fe   : > { %v5814_v54 = vpop.permute.xlu0 %2959 }
 0x3ff   : > { %6698 = vst [vmem:[#allocation43_spill] sm:$0xff] %v5814_v54 }
 0x400   : > { %2961 = vrot.lane.b32.xlu1 %v6691_v24, %s4124_s10  ;;  %v6703_v24 = vrot.slane %v6702_v11, 1 }
 0x404   : > { %3010 = vrot.lane.b32.xlu1 %v2998_v15, %s4124_s10 }
 0x408   : > { %2282 = vrot.lane.b32.xlu1 %v2275_v0, %s4117_s23 }
 0x40c   : > { %2331 = vrot.lane.b32.xlu1 %v6694_v63, %s4117_s23 }
 0x410   : > { %2388 = vrot.lane.b32.xlu1 %v6696_v39, %s4117_s23 }
 0x414   : > { %2392 = vrot.lane.b32.xlu1 %v5534_v18, %s4117_s23  ;;  %v5822_v18 = vpop.permute.xlu0 %2963 }
 0x415   : > { %6700 = vst [vmem:[#allocation22_spill] sm:$0xff] %v5822_v18 }
 0x418   : > { %2445 = vrot.lane.b32.xlu1 %v5542_v44, %s4117_s23  ;;  %v6701_v44 = vld [vmem:[#allocation34_spill] sm:$0xff]  ;;  %v5832_v13 = vpop.permute.xlu0 %2955 }
 0x419   : > { %v2048_v3 = vmul.f32 %v6701_v44, %v5076_v59 }
 0x41a   : > { %v5812_v48 = vpop.permute.xlu1 %2225 }
 0x41c   : > { %2449 = vrot.lane.b32.xlu1 %v5548_v29, %s4117_s23  ;;  %v2062_v29 = vrot.slane %v2048_v3, 1  ;;  %v5847_v63 = vpop.permute.xlu0 %3008 }
 0x41d   : > { %6704 = vst [vmem:[#allocation44_spill] sm:$0xff] %v5847_v63 }
 0x41e   : > { %v5818_v40 = vpop.permute.xlu1 %2899  ;;  %v2064_v0 = vsel %vm651_vm7, %v2062_v29, %v6703_v24  ;;  %v6709_v29 = vrot.slane %v5388_v43, 3 }
 0x41f   : > { %6699 = vst [vmem:[#allocation40_spill] sm:$0xff] %v5818_v40 }
 0x420   : > { %2508 = vrot.lane.b32.xlu1 %v5539_v16, %s4119_s26  ;;  %v5855_v3 = vpop.permute.xlu0 %3012 }
 0x421   : > { %6706 = vst [vmem:[#allocation34_spill] sm:$0xff] %v5855_v3 }
 0x422   : > { %v5824_v27 = vpop.permute.xlu1 %2327 }
 0x424   : > { %2564 = vrot.lane.b32.xlu1 %v5551_v32, %s4119_s26  ;;  %v2028_v32 = vmul.f32 %v5282_v10, %v5076_v59  ;;  %v6707_v59 = vrot.slane %v5384_v36, 2 }
 0x426   : > { %v5830_v55 = vpop.permute.xlu1 %2384  ;;  %v2076_v7 = vadd.f32 %v2064_v0, %v2028_v32 }
 0x428   : > { %3059 = vrot.lane.b32.xlu1 %v3049_v8, %s4124_s10  ;;  %v2110_v62 = vadd.f32 %v6707_v59, %v2076_v7 }
 0x42a   : > { %v5837_v16 = vpop.permute.xlu1 %2441  ;;  %v2152_v11 = vadd.f32 %v6709_v29, %v2110_v62 }
 0x42c   : > { %3116 = vrot.lane.b32.xlu1 %v3106_v28, %s4124_s10 }
 0x42e   : > { %v5849_v39 = vpop.permute.xlu1 %2562 }
 0x430   : > { %2596 = vrot.lane.b32.xlu1 %v5577_v33, %s4119_s26  ;;  %v5867_v33 = vpop.permute.xlu0 %3004 }
 0x431   : > { %6710 = vst [vmem:[#allocation48_spill] sm:$0xff] %v5867_v33 }
 0x432   : > { %v5853_v8 = vpop.permute.xlu1 %2734 }
 0x433   : > { %6705 = vst [vmem:[#allocation46_spill] sm:$0xff] %v5853_v8 }
 0x434   : > { %2689 = vrot.lane.b32.xlu1 %v5586_v30, %s4123_s9  ;;  %v6712_v30 = vrot.slane %v5392_v56, 4  ;;  %v5877_v0 = vpop.permute.xlu0 %2478 }
 0x436   : > { %v5861_v28 = vpop.permute.xlu1 %2791  ;;  %v2194_v24 = vadd.f32 %v6712_v30, %v2152_v11  ;;  %v6715_v11 = vld [vmem:[#allocation42_spill] sm:$0xff] }
 0x437   : > { %6708 = vst [vmem:[#allocation39_spill] sm:$0xff] %v5861_v28 }
 0x438   : > { %2738 = vrot.lane.b32.xlu1 %v5591_v58, %s4123_s9  ;;  %v2241_v43 = vadd.f32 %v5775_v57, %v2194_v24  ;;  %v5888_v56 = vpop.permute.xlu0 %2631 }
 0x439   : > { %6714 = vst [vmem:[#allocation51_spill] sm:$0xff] %v5888_v56 }
 0x43a   : > { %v5869_v32 = vpop.permute.xlu1 %2848 }
 0x43b   : > { %6711 = vst [vmem:[#allocation49_spill] sm:$0xff] %v5869_v32 }
 0x43c   : > { %2795 = vrot.lane.b32.xlu1 %v5628_v51, %s4123_s9  ;;  %v5899_v24 = vpop.permute.xlu0 %2532 }
 0x43e   : > { %v5875_v36 = vpop.permute.xlu1 %3002 }
 0x43f   : > { %6713 = vst [vmem:[#allocation50_spill] sm:$0xff] %v5875_v36  ;;  %v6724_v36 = vld [vmem:[#allocation5_spill] sm:$0xff] }
 0x440   : > { %2799 = vrot.lane.b32.xlu1 %v5633_v19, %s4123_s9 }
 0x442   : > { %v5882_v58 = vpop.permute.xlu1 %2278 }
 0x443   : > { %v2298_v7 = vadd.f32 %v5882_v58, %v2241_v43 }
 0x444   : > { %2852 = vrot.lane.b32.xlu1 %v5638_v21, %s4123_s9 }
 0x445   : > { %v2347_v51 = vadd.f32 %v5824_v27, %v2298_v7 }
 0x446   : > { %v5890_v59 = vpop.permute.xlu1 %2506 }
 0x447   : > { %v2404_v62 = vadd.f32 %v5830_v55, %v2347_v51 }
 0x448   : > { %2856 = vrot.lane.b32.xlu1 %v5643_v31, %s4123_s9  ;;  %v2999_v31 = vsel %vm922_vm8, %v2996_v34, %v2998_v15 }
 0x449   : > { %v2461_v19 = vadd.f32 %v5837_v16, %v2404_v62  ;;  %v5914_v62 = vpop.permute.xlu0 %2592 }
 0x44a   : > { %v5896_v29 = vpop.permute.xlu1 %2685 }
 0x44b   : > { %v2486_v30 = vadd.f32 %v6715_v11, %v2461_v19  ;;  %v2697_v34 = vsel %vm2639_vm14, %v5896_v29, %v5698_v47  ;;  %v2860_v47 = vsel %vm2639_vm14, %v5869_v32, %v5781_v22  ;;  %v4097_v22 = vld [vmem:[%s6481_s6 + $0x28] sm:$0x3f] }
 0x44c   : > { %2957 = vrot.lane.b32.xlu1 %v5603_v2, %s4124_s10  ;;  %v4101_v32 = vld [vmem:[#allocation4 + $0x48] sm:$0x3] }
 0x44d   : > { %v2516_v21 = vadd.f32 %v5890_v59, %v2486_v30  ;;  %v6717_v30 = vld [vmem:[#allocation45_spill] sm:$0xff]  ;;  %v2127_v20 = vmul.f32 %v4101_v32, %v6724_v36  ;;  %v6006_v60 = vpop.permute.xlu0 %2635 }
 0x44e   : > { %v5904_v43 = vpop.permute.xlu1 %2953 }
 0x44f   : > { %6716 = vst [vmem:[#allocation42_spill] sm:$0xff] %v5904_v43  ;;  %v2542_v7 = vadd.f32 %v5899_v24, %v2516_v21  ;;  %v2640_v21 = vsel %vm2639_vm14, %v5800_v9, %v6717_v30 }
 0x450   : > { %3006 = vrot.lane.b32.xlu1 %v2999_v31, %s4124_s10 }
 0x451   : > { %v2572_v51 = vadd.f32 %v5849_v39, %v2542_v7  ;;  %v2746_v7 = vsel %vm2639_vm14, %v5853_v8, %v5736_v49 }
 0x452   : > { %v5916_v2 = vpop.permute.xlu1 %2229 }
 0x453   : > { %v2602_v19 = vadd.f32 %v5914_v62, %v2572_v51 }
 0x454   : > { %3063 = vrot.lane.b32.xlu1 %v5664_v41, %s4124_s10  ;;  %v2803_v41 = vsel %vm2639_vm14, %v5861_v28, %v5756_v38  ;;  %v2965_v38 = vsel %vm2907_vm15, %v5904_v43, %v5832_v13 }
 0x455   : > { %v2650_v4 = vadd.f32 %v2640_v21, %v2602_v19 }
 0x456   : > { %v5927_v50 = vpop.permute.xlu1 %2480 }
 0x457   : > { %v2707_v15 = vadd.f32 %v2697_v34, %v2650_v4 }
 0x458   : > { %3067 = vrot.lane.b32.xlu1 %v5669_v26, %s4124_s10  ;;  %v2908_v26 = vsel %vm2907_vm15, %v5806_v12, %v5808_v17  ;;  %v2051_v12 = vmul.f32 %v4100_v53, %v6701_v44 }
 0x459   : > { %v2756_v31 = vadd.f32 %v2746_v7, %v2707_v15 }
 0x45a   : > { %v5937_v51 = vpop.permute.xlu1 %2903 }
 0x45b   : > { %6718 = vst [vmem:[#allocation45_spill] sm:$0xff] %v5937_v51  ;;  %v2813_v19 = vadd.f32 %v2803_v41, %v2756_v31 }
 0x45c   : > { %3120 = vrot.lane.b32.xlu1 %v5674_v61, %s4124_s10  ;;  %v6719_v61 = vld [vmem:[#allocation9_spill] sm:$0xff] }
 0x45d   : > { %v2870_v49 = vadd.f32 %v2860_v47, %v2813_v19  ;;  %v3146_v4 = vrot.slane %v4097_v22, %v6719_v61  ;;  %v4099_v19 = vld [vmem:[#allocation4 + $0x18] sm:$0xff]  ;;  %v6723_v22 = vld [vmem:[#allocation6_spill] sm:$0xff] }
 0x45e   : > { %v5947_v30 = vpop.permute.xlu1 %2286  ;;  %v2049_v47 = vmul.f32 %v4099_v19, %v6701_v44  ;;  %v2123_v33 = vmul.f32 %v4099_v19, %v6724_v36 }
 0x45f   : > { %v2918_v21 = vadd.f32 %v2908_v26, %v2870_v49 }
 0x460   : > { %3124 = vrot.lane.b32.xlu1 %v5680_v14, %s4124_s10  ;;  %v4098_v14 = vld [vmem:[#allocation4] sm:$0xff] }
 0x461   : > { %v5958_v34 = vadd.f32 %v2965_v38, %v2918_v21  ;;  %v2047_v41 = vmul.f32 %v4098_v14, %v6701_v44  ;;  %v2060_v21 = vrot.slane %v2049_v47, 1  ;;  %v2027_v61 = vmul.f32 %v4098_v14, %v5282_v10 }
 0x462   : > { %v5960_v15 = vpop.permute.xlu1 %2335 }
 0x463   : > { %6720 = vst [vmem:[#allocation52_spill] sm:$0xff] %v5958_v34  ;;  %v2059_v26 = vrot.slane %v2047_v41, 1  ;;  %v6725_v41 = vld [vmem:[#allocation37_spill] sm:$0xff] }
 0x464   : > { %3148 = vrot.lane.b32.xlu1 %v3146_v4, %s4119_s26  ;;  %v2089_v4 = vmul.f32 %v4099_v19, %v6723_v22  ;;  %v5986_v47 = vmul.f32 %v4099_v19, %v6725_v41  ;;  %v2167_v56 = vmul.f32 %v4100_v53, %v6725_v41 }
 0x465   : > { %v2061_v34 = vsel %vm651_vm7, %v2059_v26, %v2060_v21 }
 0x466   : > { %v5963_v17 = vpop.permute.xlu1 %2536  ;;  %v2097_v63 = vrot.slane %v2089_v4, 2  ;;  %v2075_v43 = vadd.f32 %v2061_v34, %v2027_v61  ;;  %v2177_v26 = vrot.slane %v5986_v47, 4  ;;  %v2091_v4 = vmul.f32 %v4100_v53, %v6723_v22  ;;  %v6726_v22 = vld [vmem:[#allocation25_spill] sm:$0xff] }
 0x467   : > { %v2065_v61 = vrot.slane %v2051_v12, 1  ;;  %v2031_v34 = vmul.f32 %v4100_v53, %v5282_v10  ;;  %v2231_v12 = vsel %vm565_vm0, %v6726_v22, %v5775_v57  ;;  %v2029_v57 = vmul.f32 %v4099_v19, %v5282_v10 }
 0x468   : > { %v2109_v40 = vadd.f32 %v2097_v63, %v2075_v43  ;;  %v2245_v43 = vadd.f32 %v5916_v2, %v5685_v23  ;;  %v2099_v47 = vrot.slane %v2091_v4, 2 }
 0x469   : > { %v2079_v28 = vadd.f32 %v2065_v61, %v2031_v34  ;;  %v2066_v34 = vsel %vm651_vm7, %v2060_v21, %v2065_v61 }
 0x46a   : > { %v5965_v7 = vpop.permute.xlu1 %2693  ;;  %v2077_v46 = vadd.f32 %v2066_v34, %v2029_v57 }
 0x46e   : > { %v5967_v13 = vpop.permute.xlu1 %2742 }
 0x472   : > { %v5969_v31 = vpop.permute.xlu1 %2961 }
 0x473   : > { %6721 = vst [vmem:[#allocation53_spill] sm:$0xff] %v5969_v31  ;;  %v2141_v31 = vrot.slane %v2127_v20, 3 }
 0x476   : > { %v5973_v49 = vpop.permute.xlu1 %3010 }
 0x477   : > { %6722 = vst [vmem:[#allocation54_spill] sm:$0xff] %v5973_v49  ;;  %v2135_v49 = vrot.slane %v2123_v33, 3  ;;  %v2125_v33 = vmul.f32 %v4100_v53, %v6724_v36  ;;  %v2169_v36 = vmul.f32 %v4101_v32, %v6725_v41  ;;  %v2179_v53 = vrot.slane %v2167_v56, 4  ;;  %v6018_v41 = vpop.permute.xlu0 %2510 }
 0x479   : > { %v2151_v14 = vadd.f32 %v2135_v49, %v2109_v40  ;;  %v2302_v40 = vadd.f32 %v5947_v30, %v2245_v43  ;;  %v2137_v23 = vrot.slane %v2125_v33, 3  ;;  %v6727_v43 = vld [vmem:[#allocation28_spill] sm:$0xff]  ;;  %v2113_v33 = vadd.f32 %v2099_v47, %v2079_v28 }
 0x47a   : > { %v5975_v38 = vpop.permute.xlu1 %2282  ;;  %v2183_v51 = vrot.slane %v2169_v36, 4  ;;  %v2100_v28 = vsel %vm922_vm8, %v2097_v63, %v2099_v47 }
 0x47b   : > { %v2193_v42 = vadd.f32 %v2177_v26, %v2151_v14  ;;  %v2351_v52 = vadd.f32 %v5960_v15, %v2302_v40  ;;  %v2288_v14 = vsel %vm565_vm0, %v6727_v43, %v5882_v58  ;;  %v2142_v20 = vsel %vm961_vm9, %v2137_v23, %v2141_v31  ;;  %v6728_v58 = vld [vmem:[#allocation31_spill] sm:$0xff]  ;;  %v6729_v31 = vld [vmem:[#allocation24_spill] sm:$0xff]  ;;  %v6036_v63 = vpop.permute.xlu0 %2534 }
 0x47c   : > { %v2233_v21 = vsel %vm565_vm0, %v6729_v31, %v5916_v2  ;;  %v2111_v61 = vadd.f32 %v2100_v28, %v2077_v46  ;;  %v6732_v46 = vld [vmem:[#allocation30_spill] sm:$0xff] }
 0x47d   : > { %v2240_v8 = vadd.f32 %v2231_v12, %v2193_v42  ;;  %v2155_v42 = vadd.f32 %v2142_v20, %v2113_v33  ;;  %v6730_v12 = vld [vmem:[#allocation35_spill] sm:$0xff]  ;;  %v2339_v34 = vsel %vm565_vm0, %v6732_v46, %v5960_v15  ;;  %v6733_v33 = vld [vmem:[#allocation41_spill] sm:$0xff] }
 0x47e   : > { %v5980_v3 = vpop.permute.xlu1 %2331  ;;  %v2394_v36 = vsel %vm565_vm0, %v6730_v12, %v5830_v55  ;;  %v6735_v15 = vld [vmem:[#allocation23_spill] sm:$0xff] }
 0x47f   : > { %v2297_v22 = vadd.f32 %v2288_v14, %v2240_v8  ;;  %v2184_v8 = vsel %vm1004_vm10, %v2179_v53, %v2183_v51  ;;  %v2138_v14 = vsel %vm961_vm9, %v2135_v49, %v2137_v23  ;;  %v6731_v51 = vld [vmem:[#allocation27_spill] sm:$0xff]  ;;  %v2567_v28 = vpop.permute.xlu0 %2566 }
 0x480   : > { %v2153_v55 = vadd.f32 %v2138_v14, %v2111_v61  ;;  %v6738_v14 = vld [vmem:[#allocation29_spill] sm:$0xff] }
 0x482   : > { %v5983_v54 = vpop.permute.xlu1 %2388 }
 0x486   : > { %v5989_v45 = vpop.permute.xlu1 %2392 }
 0x487   : > { %v2408_v4 = vadd.f32 %v5989_v45, %v2351_v52  ;;  %v2337_v52 = vsel %vm565_vm0, %v6728_v58, %v5824_v27  ;;  %v2197_v27 = vadd.f32 %v2184_v8, %v2155_v42 }
 0x488   : > { %v2346_v19 = vadd.f32 %v2337_v52, %v2297_v22  ;;  %v2180_v22 = vsel %vm1004_vm10, %v2177_v26, %v2179_v53  ;;  %v6737_v53 = vld [vmem:[#allocation26_spill] sm:$0xff] }
 0x489   : > { %v2244_v2 = vadd.f32 %v2233_v21, %v2197_v27  ;;  %v2195_v8 = vadd.f32 %v2180_v22, %v2153_v55 }
 0x48a   : > { %v5998_v44 = vpop.permute.xlu1 %2445  ;;  %v2403_v47 = vadd.f32 %v2394_v36, %v2346_v19  ;;  %v6736_v19 = vld [vmem:[#allocation38_spill] sm:$0xff]  ;;  %v2243_v36 = vadd.f32 %v5812_v48, %v5617_v25  ;;  %v2699_v25 = vsel %vm2639_vm14, %v5965_v7, %v5651_v6 }
 0x48e   : > { %v2450_v18 = vpop.permute.xlu1 %2449 }
 0x48f   : > { %v2465_v40 = vadd.f32 %v2450_v18, %v2408_v4  ;;  %v2290_v4 = vsel %vm565_vm0, %v6731_v51, %v5947_v30  ;;  %v6734_v30 = vld [vmem:[#allocation33_spill] sm:$0xff]  ;;  %v2300_v51 = vadd.f32 %v5975_v38, %v2243_v36 }
 0x490   : > { %v2301_v49 = vadd.f32 %v2290_v4, %v2244_v2  ;;  %v2396_v58 = vsel %vm565_vm0, %v6734_v30, %v5989_v45  ;;  %v2289_v45 = vsel %vm565_vm0, %v6737_v53, %v5975_v38  ;;  %v2748_v38 = vsel %vm2639_vm14, %v5967_v13, %v5727_v37  ;;  %v2595_v37 = vpop.permute.xlu0 %2594 }
 0x491   : > { %v2490_v10 = vadd.f32 %v5927_v50, %v2465_v40  ;;  %v2451_v40 = vsel %vm565_vm0, %v6733_v33, %v5837_v16  ;;  %v2453_v16 = vsel %vm565_vm0, %v6736_v19, %v2450_v18  ;;  %v2642_v18 = vsel %vm2639_vm14, %v6006_v60, %v5794_v5 }
 0x492   : > { %v6016_v32 = vpop.permute.xlu1 %2508  ;;  %v2460_v20 = vadd.f32 %v2451_v40, %v2403_v47  ;;  %v2350_v42 = vadd.f32 %v2339_v34, %v2301_v49  ;;  %v2338_v47 = vsel %vm565_vm0, %v6738_v14, %v5980_v3  ;;  %v2349_v55 = vadd.f32 %v5980_v3, %v2300_v51 }
 0x493   : > { %v2520_v43 = vadd.f32 %v6018_v41, %v2490_v10  ;;  %v2232_v10 = vsel %vm565_vm0, %v6735_v15, %v5812_v48  ;;  %v6739_v48 = vld [vmem:[#allocation32_spill] sm:$0xff] }
 0x494   : > { %v2407_v31 = vadd.f32 %v2396_v58, %v2350_v42  ;;  %v2485_v26 = vadd.f32 %v6715_v11, %v2460_v20  ;;  %v2242_v12 = vadd.f32 %v2232_v10, %v2195_v8  ;;  %v2395_v46 = vsel %vm565_vm0, %v6739_v48, %v5983_v54  ;;  %v6746_v48 = vld [vmem:[#allocation18_spill] sm:$0xff] }
 0x495   : > { %v2546_v23 = vadd.f32 %v5963_v17, %v2520_v43 }
 0x496   : > { %v6026_v56 = vpop.permute.xlu1 %2564  ;;  %v2464_v27 = vadd.f32 %v2453_v16, %v2407_v31  ;;  %v2299_v11 = vadd.f32 %v2289_v45, %v2242_v12  ;;  %v2515_v2 = vadd.f32 %v5890_v59, %v2485_v26  ;;  %v6740_v59 = vld [vmem:[#allocation36_spill] sm:$0xff] }
 0x497   : > { %v2576_v21 = vadd.f32 %v2567_v28, %v2546_v23  ;;  %v2452_v49 = vsel %vm565_vm0, %v6740_v59, %v5998_v44  ;;  %v2406_v23 = vadd.f32 %v5983_v54, %v2349_v55  ;;  %v6749_v59 = vld [vmem:[#allocation39_spill] sm:$0xff] }
 0x498   : > { %v2348_v5 = vadd.f32 %v2338_v47, %v2299_v11  ;;  %v2489_v33 = vadd.f32 %v5927_v50, %v2464_v27  ;;  %v2541_v20 = vadd.f32 %v5899_v24, %v2515_v2  ;;  %v6743_v11 = vld [vmem:[#allocation46_spill] sm:$0xff]  ;;  %v6745_v2 = vld [vmem:[#allocation53_spill] sm:$0xff] }
 0x499   : > { %v2463_v3 = vadd.f32 %v5998_v44, %v2406_v23  ;;  %v6100_v44 = vpop.permute.xlu0 %3065 }
 0x49a   : > { %v6041_v57 = vpop.permute.xlu1 %3059  ;;  %v2405_v6 = vadd.f32 %v2395_v46, %v2348_v5  ;;  %v2519_v50 = vadd.f32 %v6018_v41, %v2489_v33  ;;  %v2571_v42 = vadd.f32 %v5849_v39, %v2541_v20  ;;  %v6748_v5 = vld [vmem:[#allocation47_spill] sm:$0xff] }
 0x49b   : > { %v2488_v19 = vadd.f32 %v5877_v0, %v2463_v3 }
 0x49c   : > { %v2462_v58 = vadd.f32 %v2452_v49, %v2405_v6  ;;  %v2545_v16 = vadd.f32 %v5963_v17, %v2519_v50  ;;  %v2601_v8 = vadd.f32 %v5914_v62, %v2571_v42  ;;  %v6750_v6 = vld [vmem:[#allocation15_spill] sm:$0xff]  ;;  %v6751_v50 = vld [vmem:[#allocation20_spill] sm:$0xff] }
 0x49d   : > { %v2518_v24 = vadd.f32 %v6016_v32, %v2488_v19  ;;  %v3070_v45 = vpop.permute.xlu0 %3069 }
 0x49e   : > { %v6054_v52 = vpop.permute.xlu1 %3116  ;;  %v2487_v10 = vadd.f32 %v5877_v0, %v2462_v58  ;;  %v2575_v41 = vadd.f32 %v2567_v28, %v2545_v16  ;;  %v2649_v53 = vadd.f32 %v5800_v9, %v2601_v8  ;;  %v6741_v9 = vld [vmem:[#allocation16_spill] sm:$0xff]  ;;  %v6753_v8 = vld [vmem:[#allocation21_spill] sm:$0xff] }
 0x4a0   : > { %v2517_v54 = vadd.f32 %v6016_v32, %v2487_v10  ;;  %v2706_v28 = vadd.f32 %v5896_v29, %v2649_v53  ;;  %v6744_v29 = vld [vmem:[#allocation22_spill] sm:$0xff] }
 0x4a2   : > { %v2597_v61 = vpop.permute.xlu1 %2596  ;;  %v2543_v39 = vadd.f32 %v6036_v63, %v2517_v54  ;;  %v6752_v54 = vld [vmem:[#allocation49_spill] sm:$0xff] }
 0x4a3   : > { %v2606_v43 = vadd.f32 %v2597_v61, %v2576_v21  ;;  %v2544_v21 = vadd.f32 %v6036_v63, %v2518_v24  ;;  %v2605_v26 = vadd.f32 %v2597_v61, %v2575_v41 }
 0x4a4   : > { %v2573_v32 = vadd.f32 %v6026_v56, %v2543_v39 }
 0x4a5   : > { %v2654_v4 = vadd.f32 %v2642_v18, %v2606_v43  ;;  %v2574_v62 = vadd.f32 %v6026_v56, %v2544_v21  ;;  %v2653_v12 = vadd.f32 %v6006_v60, %v2605_v26  ;;  %v6742_v43 = vld [vmem:[#allocation45_spill] sm:$0xff]  ;;  %v2755_v56 = vadd.f32 %v6743_v11, %v2706_v28 }
 0x4a6   : > { %v2690_v34 = vpop.permute.xlu1 %2689  ;;  %v2910_v18 = vsel %vm2907_vm15, %v6742_v43, %v6741_v9  ;;  %v6759_v9 = vld [vmem:[#allocation50_spill] sm:$0xff] }
 0x4a7   : > { %v2711_v40 = vadd.f32 %v2699_v25, %v2654_v4  ;;  %v2604_v14 = vadd.f32 %v2595_v37, %v2574_v62  ;;  %v2710_v47 = vadd.f32 %v5965_v7, %v2653_v12  ;;  %v3062_v4 = vpop.permute.xlu0 %3061  ;;  %v2967_v25 = vsel %vm2907_vm15, %v6745_v2, %v6744_v29  ;;  %v6755_v12 = vld [vmem:[#allocation19_spill] sm:$0xff] }
 0x4a8   : > { %v2698_v55 = vsel %vm2639_vm14, %v2690_v34, %v6748_v5  ;;  %v2812_v49 = vadd.f32 %v6749_v59, %v2755_v56  ;;  %v6762_v56 = vld [vmem:[#allocation34_spill] sm:$0xff] }
 0x4a9   : > { %v2760_v22 = vadd.f32 %v2748_v38, %v2711_v40  ;;  %v2759_v38 = vadd.f32 %v5967_v13, %v2710_v47 }
 0x4aa   : > { %v2739_v30 = vpop.permute.xlu1 %2738  ;;  %v2869_v24 = vadd.f32 %v6752_v54, %v2812_v49 }
 0x4ab   : > { %v2747_v23 = vsel %vm2639_vm14, %v2739_v30, %v6750_v6 }
 0x4ae   : > { %v2796_v15 = vpop.permute.xlu1 %2795 }
 0x4af   : > { %v2804_v42 = vsel %vm2639_vm14, %v2796_v15, %v6751_v50 }
 0x4b2   : > { %v2800_v31 = vpop.permute.xlu1 %2799 }
 0x4b3   : > { %v2805_v17 = vsel %vm2639_vm14, %v2800_v31, %v5750_v35  ;;  %v2603_v35 = vadd.f32 %v2595_v37, %v2573_v32  ;;  %v2816_v3 = vadd.f32 %v2800_v31, %v2759_v38  ;;  %v3123_v37 = vpop.permute.xlu0 %3122  ;;  %v6754_v31 = vld [vmem:[#allocation17_spill] sm:$0xff] }
 0x4b4   : > { %v2817_v36 = vadd.f32 %v2805_v17, %v2760_v22  ;;  %v2917_v17 = vadd.f32 %v6754_v31, %v2869_v24  ;;  %v3322_v31 = vld [vmem:[%s6478_s3] sm:$0xff] }
 0x4b5   : > { %3991 = vmatprep.mubr.msk.f32.mxu0 %vm3351_vm1, %v3322_v31 }
 0x4b6   : > { %v2853_v0 = vpop.permute.xlu1 %2852 }
 0x4b7   : > { %v2861_v13 = vsel %vm2639_vm14, %v2853_v0, %v6753_v8  ;;  %v3127_v62 = vpop.permute.xlu0 %3126 }
 0x4ba   : > { %v2857_v27 = vpop.permute.xlu1 %2856 }
 0x4bb   : > { %v2862_v63 = vsel %vm2639_vm14, %v2857_v27, %v5769_v1  ;;  %v6747_v1 = vld [vmem:[#allocation51_spill] sm:$0xff]  ;;  %v2873_v16 = vadd.f32 %v2857_v27, %v2816_v3 }
 0x4bc   : > { %v2874_v61 = vadd.f32 %v2862_v63, %v2817_v36  ;;  %v2641_v46 = vsel %vm2639_vm14, %v6747_v1, %v6746_v48  ;;  %v2651_v40 = vadd.f32 %v6747_v1, %v2603_v35  ;;  %v6757_v36 = vld [vmem:[#allocation43_spill] sm:$0xff] }
 0x4bd   : > { %v2652_v7 = vadd.f32 %v2641_v46, %v2604_v14  ;;  %v6761_v14 = vld [vmem:[#allocation44_spill] sm:$0xff] }
 0x4be   : > { %v2922_v51 = vadd.f32 %v2910_v18, %v2874_v61  ;;  %v2958_v60 = vpop.permute.xlu1 %2957  ;;  %v2708_v20 = vadd.f32 %v2690_v34, %v2651_v40  ;;  %v2921_v34 = vadd.f32 %v6742_v43, %v2873_v16  ;;  %v6760_v18 = vld [vmem:[#allocation42_spill] sm:$0xff]  ;;  %v6764_v46 = vld [vmem:[#allocation52_spill] sm:$0xff]  ;;  %v3119_v40 = vpop.permute.xlu0 %3118 }
 0x4bf   : > { %v2709_v58 = vadd.f32 %v2698_v55, %v2652_v7  ;;  %v2966_v27 = vsel %vm2907_vm15, %v2958_v60, %v6757_v36  ;;  %v2974_v35 = vadd.f32 %v6760_v18, %v2917_v17  ;;  %v3071_v7 = vsel %vm2907_vm15, %v6041_v57, %v3062_v4 }
 0x4c0   : > { %v2979_v33 = vadd.f32 %v2967_v25, %v2922_v51  ;;  %v2757_v10 = vadd.f32 %v2739_v30, %v2708_v20  ;;  %v6756_v30 = vld [vmem:[#allocation40_spill] sm:$0xff]  ;;  %v6763_v51 = vld [vmem:[#allocation54_spill] sm:$0xff] }
 0x4c1   : > { %v2758_v19 = vadd.f32 %v2747_v23, %v2709_v58  ;;  %v2909_v28 = vsel %vm2907_vm15, %v6756_v30, %v6755_v12  ;;  %v3016_v29 = vsel %vm2907_vm15, %v6763_v51, %v6762_v56  ;;  %v3023_v6 = vadd.f32 %v6759_v9, %v2974_v35  ;;  %v6765_v56 = vld [vmem:[#allocation13_spill] sm:$0xff] }
 0x4c2   : > { %v3007_v22 = vpop.permute.xlu1 %3006  ;;  %v2814_v39 = vadd.f32 %v2796_v15, %v2757_v10  ;;  %v2978_v15 = vadd.f32 %v6745_v2, %v2921_v34  ;;  %v3028_v55 = vadd.f32 %v3016_v29, %v2979_v33  ;;  %v6766_v29 = vld [vmem:[#allocation14_spill] sm:$0xff] }
 0x4c3   : > { %v2815_v21 = vadd.f32 %v2804_v42, %v2758_v19  ;;  %v3015_v47 = vsel %vm2907_vm15, %v3007_v22, %v6761_v14  ;;  %v3080_v4 = vadd.f32 %v6041_v57, %v3023_v6 }
 0x4c4   : > { %v2871_v26 = vadd.f32 %v2853_v0, %v2814_v39  ;;  %v6758_v0 = vld [vmem:[#allocation48_spill] sm:$0xff]  ;;  %v3027_v49 = vadd.f32 %v6763_v51, %v2978_v15 }
 0x4c5   : > { %v2872_v53 = vadd.f32 %v2861_v13, %v2815_v21  ;;  %v3014_v43 = vsel %vm2907_vm15, %v6759_v9, %v6758_v0  ;;  %v3137_v16 = vadd.f32 %v6054_v52, %v3080_v4 }
 0x4c6   : > { %v3064_v41 = vpop.permute.xlu1 %3063  ;;  %v2919_v63 = vadd.f32 %v6756_v30, %v2871_v26  ;;  %v3024_v2 = vadd.f32 %v3014_v43, %v6764_v46  ;;  %v6767_v46 = vld [vmem:[#allocation11_spill] sm:$0xff] }
 0x4c7   : > { %v2920_v61 = vadd.f32 %v2909_v28, %v2872_v53  ;;  %v3072_v5 = vsel %vm2907_vm15, %v3064_v41, %v6100_v44 }
 0x4c8   : > { %v2976_v25 = vadd.f32 %v2958_v60, %v2919_v63  ;;  %v3128_v60 = vsel %vm2907_vm15, %v6054_v52, %v3119_v40 }
 0x4c9   : > { %v2977_v48 = vadd.f32 %v2966_v27, %v2920_v61 }
 0x4ca   : > { %v3068_v32 = vpop.permute.xlu1 %3067  ;;  %v3025_v38 = vadd.f32 %v3007_v22, %v2976_v25  ;;  %v3081_v22 = vadd.f32 %v3071_v7, %v3024_v2 }
 0x4cb   : > { %v3073_v1 = vsel %vm2907_vm15, %v3068_v32, %v3070_v45  ;;  %v3026_v59 = vadd.f32 %v3015_v47, %v2977_v48  ;;  %v3084_v33 = vadd.f32 %v3068_v32, %v3027_v49  ;;  %v6177_v47 = vld [vmem:[%s6481_s6 + $0x8] sm:$0xff] }
 0x4cc   : > { %v3085_v45 = vadd.f32 %v3073_v1, %v3028_v55  ;;  %v3082_v58 = vadd.f32 %v3064_v41, %v3025_v38  ;;  %v3138_v54 = vadd.f32 %v3128_v60, %v3081_v22  ;;  %v494_v51 = vrot.slane %v6177_v47, %v6765_v56  ;;  %v4073_v38 = vld [vmem:[%s6477_s2 + $0x38] sm:$0xff]   ;;  %v4074_v60 = vld [vmem:[%s6477_s2 + $0x30] sm:$0xff]   ;;  %v6230_v22 = vld [vmem:[#allocation2 + $0x40] sm:$0xff] }
 0x4cd   : > { %v3083_v44 = vadd.f32 %v3072_v5, %v3026_v59  ;;  %v594_v48 = vrot.slane %v6177_v47, %v6766_v29  ;;  %v744_v2 = vrot.slane %v6177_v47, %v6767_v46  ;;  %v6768_v5 = vld [vmem:[#allocation10_spill] sm:$0xff]  ;;  %3963 = vmatprep.subr.bf16.mxu1 %v4073_v38 }
 0x4ce   : > { %v3121_v11 = vpop.permute.xlu1 %3120  ;;  %v664_v7 = vrot.slane %v6177_v47, %v6768_v5  ;;  %3964 = vmatpush3.bf16.msra.mxu1 %v4073_v38 }
 0x4cf   : > { %v3129_v23 = vsel %vm2907_vm15, %v3121_v11, %v3123_v37  ;;  %v3139_v42 = vadd.f32 %v3121_v11, %v3082_v58  ;;  %v6182_v11 = vld [vmem:[%s6481_s6] sm:$0xff]  ;;  %v3323_v58 = vld [vmem:[%s6478_s3 + $0x8] sm:$0xff]  ;;  %3965 = vmatprep.subr.bf16.mxu1 %v4074_v60 }
 0x4d0   : > { %v3140_v10 = vadd.f32 %v3129_v23, %v3083_v44  ;;  %v544_v25 = vrot.slane %v6182_v11, %v6766_v29  ;;  %v463_v1 = vrot.slane %v6182_v11, %v6765_v56  ;;  %v694_v55 = vrot.slane %v6182_v11, %v6768_v5  ;;  %v6221_v44 = vld [vmem:[#allocation2 + $0x28] sm:$0xff] }
 0x4d1   : > { %v793_v40 = vrot.slane %v6182_v11, %v6767_v46 }
 0x4d2   : > { %v3125_v20 = vpop.permute.xlu1 %3124  ;;  %3966 = vmatpush3.bf16.msra.mxu1 %v4074_v60 }
 0x4d3   : > { %v3130_v3 = vsel %vm2907_vm15, %v3125_v20, %v3127_v62  ;;  %v3141_v19 = vadd.f32 %v3125_v20, %v3084_v33  ;;  %v3324_v33 = vld [vmem:[%s6478_s3 + $0x10] sm:$0xff] }
 0x4d4   : > { %v3142_v50 = vadd.f32 %v3130_v3, %v3085_v45  ;;  %v4075_v3 = vld [vmem:[%s6477_s2 + $0x28] sm:$0xff]  }
 0x4d5   : > { %3967 = vmatprep.subr.bf16.mxu1 %v4075_v3 }
 0x4d6   : > { %v3149_v24 = vpop.permute.xlu1 %3148  ;;  %3968 = vmatpush3.bf16.msra.mxu1 %v4075_v3 }
 0x4d7   : > { %v3154_v8 = vadd.f32 %v3149_v24, %v3140_v10  ;;  %v3156_v13 = vadd.f32 %v3149_v24, %v3142_v50  ;;  %v3153_v37 = vadd.f32 %v3149_v24, %v3139_v42  ;;  %v3155_v39 = vadd.f32 %v3149_v24, %v3141_v19  ;;  %v6232_v42 = vld [vmem:[#allocation2 + $0x20] sm:$0xff] }
 0x4d8   : > { %v3152_v41 = vadd.f32 %v3149_v24, %v3138_v54  ;;  %v3151_v21 = vadd.f32 %v3149_v24, %v3137_v16  ;;  %v3325_v16 = vld [vmem:[%s6478_s3 + $0x18] sm:$0xff]  ;;  %v4076_v24 = vld [vmem:[%s6477_s2 + $0x20] sm:$0xff]  }
 0x4d9   : > { %v3160_v26 = vmax.f32 %v3154_v8, 0.0  ;;  %v3162_v53 = vmax.f32 %v3156_v13, 0.0  ;;  %v3159_v34 = vmax.f32 %v3153_v37, 0.0  ;;  %v3161_v57 = vmax.f32 %v3155_v39, 0.0  ;;  %v6247_v8 = vld [vmem:[#allocation2 + $0x18] sm:$0xff]  ;;  %v422_v39 = vld [vmem:[#allocation2] sm:$0xff]  ;;  %3969 = vmatprep.subr.bf16.mxu1 %v4076_v24 }
 0x4da   : > { %v3158_v17 = vmax.f32 %v3152_v41, 0.0  ;;  %v3157_v32 = vmax.f32 %v3151_v21, 0.0  ;;  %v6249_v13 = vld [vmem:[#allocation2 + $0x38] sm:$0xff]  ;;  %3970 = vmatpush3.bf16.msra.mxu1 %v4076_v24 }
 0x4db   : > { %v3166_v52 = vmin.f32 %v3160_v26, 6.0  ;;  %v3168_v62 = vmin.f32 %v3162_v53, 6.0  ;;  %v3165_v12 = vmin.f32 %v3159_v34, 6.0  ;;  %v3167_v30 = vmin.f32 %v3161_v57, 6.0  ;;  %v4077_v26 = vld [vmem:[%s6477_s2 + $0x18] sm:$0xff]   ;;  %v6258_v53 = vld [vmem:[#allocation2 + $0x30] sm:$0xff] }
 0x4dc   : > { %v3164_v28 = vmin.f32 %v3158_v17, 6.0  ;;  %v3163_v36 = vmin.f32 %v3157_v32, 6.0  ;;  %v6262_v17 = vld [vmem:[#allocation2 + $0x8] sm:$0xff]  ;;  %3971 = vmatprep.subr.bf16.mxu1 %v4077_v26  ;;  %v4082_v24 = vld [vmem:[%s6479_s4 + $0x78] sm:$0xff]  }
 0x4dd   : > { %v3337_v27 = vrot.slane %v3166_v52, 6  ;;  %v3341_v63 = vrot.slane %v3168_v62, 6  ;;  %v3334_v61 = vrot.slane %v3165_v12, 6  ;;  %v3339_v15 = vrot.slane %v3167_v30, 6  ;;  %v4078_v12 = vld [vmem:[%s6477_s2 + $0x10] sm:$0xff]  }
 0x4de   : > { %v3336_v0 = vrot.slane %v3164_v28, 6  ;;  %v3333_v18 = vrot.slane %v3163_v36, 6  ;;  %3972 = vmatpush3.bf16.msra.mxu1 %v4077_v26 }
 0x4df   : > { %v3342_v9 = vsel %vm3332_vm2, %v3337_v27, %v3341_v63  ;;  %v3340_v43 = vsel %vm3332_vm2, %v3334_v61, %v3339_v15  ;;  %v424_v63 = vld [vmem:[#allocation2 + $0x10] sm:$0xff]  ;;  %3973 = vmatprep.subr.bf16.mxu1 %v4078_v12 }
 0x4e0   : > { %3349 = vrot.lane.b32.xlu1 %v3342_v9, %s4122_s29  ;;  %3347 = vrot.lane.b32.xlu0 %v3340_v43, %s4122_s29  ;;  %v3338_v35 = vsel %vm3332_vm2, %v3336_v0, %v3337_v27  ;;  %v3335_v14 = vsel %vm3332_vm2, %v3333_v18, %v3334_v61  ;;  %v4079_v43 = vld [vmem:[%s6477_s2 + $0x8] sm:$0xff]  }
 0x4e2   : > { %3974 = vmatpush3.bf16.msra.mxu1 %v4078_v12 }
 0x4e3   : > { %3975 = vmatprep.subr.bf16.mxu1 %v4079_v43 }
 0x4e4   : > { %3345 = vrot.lane.b32.xlu1 %v3338_v35, %s4122_s29  ;;  %3343 = vrot.lane.b32.xlu0 %v3335_v14, %s4122_s29 }
 0x4e6   : > { %3976 = vmatpush3.bf16.msra.mxu1 %v4079_v43 }
 0x4e8   : > { %496 = vrot.lane.b32.xlu0 %v494_v51, %s4117_s23  ;;  %546 = vrot.lane.b32.xlu1 %v544_v25, %s4116_s22 }
 0x4ec   : > { %596 = vrot.lane.b32.xlu1 %v594_v48, %s4116_s22  ;;  %465 = vrot.lane.b32.xlu0 %v463_v1, %s4117_s23 }
 0x4f0   : > { %746 = vrot.lane.b32.xlu1 %v744_v2, %s4116_s22  ;;  %696 = vrot.lane.b32.xlu0 %v694_v55, %s4117_s23  ;;  %v4080_v55 = vld [vmem:[%s6477_s2] sm:$0xff]  }
 0x4f1   : > { %3977 = vmatprep.subr.bf16.mxu1 %v4080_v55 }
 0x4f2   : > { %3978 = vmatpush3.bf16.msra.mxu1 %v4080_v55 }
 0x4f4   : > { %795 = vrot.lane.b32.xlu1 %v793_v40, %s4116_s22  ;;  %666 = vrot.lane.b32.xlu0 %v664_v7, %s4117_s23 }
 0x552   : > { %v3350_v59 = vpop.permute.xlu1 %3349  ;;  %v3348_v49 = vpop.permute.xlu0 %3347 }
 0x553   : > { %v3353_v6 = vsel %vm3351_vm1, %v3348_v49, %v3350_v59 }
 0x554   : > { %3987 = vmatprep.subr.mxu0 %v3353_v6 }
 0x555   : > { %3988 = vmatpush3.msra.mxu0 %v3353_v6 }
 0x556   : > { %v3346_v45 = vpop.permute.xlu1 %3345  ;;  %v3344_v23 = vpop.permute.xlu0 %3343 }
 0x557   : > { %v3352_v20 = vsel %vm3351_vm1, %v3344_v23, %v3346_v45 }
 0x558   : > { %3989 = vmatprep.subr.mxu0 %v3352_v20 }
 0x559   : > { %3990 = vmatpush3.msra.mxu0 %v3352_v20 }
 0x55a   : > { %3992 = vmatmul.mubr.msk.f32.vlgmr.msra.gmra.mxu0 %vm3351_vm1, %v3323_v58  ;;  %v497_v4 = vpop.permute.xlu0 %496  ;;  %v547_v50 = vpop.permute.xlu1 %546  ;;  %4017 = vmatprep.subr.bf16.mxu0 %v4082_v24 }
 0x55b   : > { %v549_v10 = vmul.f32 %v6232_v42, %v547_v50  ;;  %v550_v19 = vmul.f32 %v547_v50, %v6221_v44  ;;  %3994 = vmatprep.mubr.msk.f32.mxu0 %vm3351_vm1, %v3324_v33  ;;  %v552_v54 = vmul.f32 %v547_v50, %v6230_v22  ;;  %v551_v37 = vmul.f32 %v6249_v13, %v547_v50 }
 0x55c   : > { %v499_v34 = vmul.f32 %v497_v4, %v422_v39  ;;  %v501_v57 = vmul.f32 %v497_v4, %v6247_v8  ;;  %v500_v32 = vmul.f32 %v497_v4, %v6262_v17  ;;  %v502_v52 = vmul.f32 %v6232_v42, %v497_v4  ;;  %4018 = vmatpush3.bf16.msra.mxu0 %v4082_v24 }
 0x55d   : > { %559 = vrot.lane.b32.xlu1 %v550_v19, %s4117_s23  ;;  %557 = vrot.lane.b32.xlu0 %v549_v10, %s4117_s23  ;;  %v504_v27 = vmul.f32 %v6249_v13, %v497_v4  ;;  %v503_v0 = vmul.f32 %v497_v4, %v6258_v53 }
 0x55e   : > { %3995 = vmatmul.mubr.msk.f32.gmra.mxu0 %vm3351_vm1, %v3325_v16  ;;  %v466_v41 = vpop.permute.xlu0 %465  ;;  %v511_v30 = vrot.slane %v499_v34, 7  ;;  %v512_v28 = vrot.slane %v501_v57, 7  ;;  %v514_v61 = vrot.slane %v500_v32, 7  ;;  %v515_v15 = vrot.slane %v502_v52, 7  ;;  %v597_v9 = vpop.permute.xlu1 %596  ;;  %v431_v57 = vld [vmem:[#allocation2 + $0x48] sm:$0x1] }
 0x55f   : > { %v468_v21 = vmul.f32 %v466_v41, %v6247_v8  ;;  %v469_v31 = vmul.f32 %v6232_v42, %v466_v41  ;;  %v470_v62 = vmul.f32 %v466_v41, %v6258_v53  ;;  %v471_v36 = vmul.f32 %v6249_v13, %v466_v41  ;;  %v6333_v52 = vld [vmem:[#allocation2 + $0x50] sm:$0x1] }
 0x560   : > { %v513_v18 = vsel %vm450_vm3, %v511_v30, %v512_v28  ;;  %v600_v35 = vmul.f32 %v597_v9, %v424_v63  ;;  %v602_v14 = vmul.f32 %v597_v9, %v6221_v44  ;;  %v519_v56 = vrot.slane %v504_v27, 7  ;;  %v4085_v27 = vld [vmem:[%s6479_s4 + $0x68] sm:$0xff]  }
 0x561   : > { %563 = vrot.lane.b32.xlu1 %v552_v54, %s4117_s23  ;;  %561 = vrot.lane.b32.xlu0 %v551_v37, %s4117_s23  ;;  %v516_v51 = vsel %vm450_vm3, %v514_v61, %v515_v15  ;;  %v517_v29 = vrot.slane %v503_v0, 7  ;;  %v599_v25 = vmul.f32 %v597_v9, %v6262_v17  ;;  %v601_v48 = vmul.f32 %v6232_v42, %v597_v9  ;;  %v6316_v54 = vld [vmem:[%s6479_s4 + $0x38] sm:$0xff]  }
 0x562   : > { %v614_v1 = vrot.slane %v600_v35, 7  ;;  %v615_v46 = vrot.slane %v602_v14, 7  ;;  %v604_v2 = vmul.f32 %v597_v9, %v6230_v22  ;;  %v520_v5 = vsel %vm450_vm3, %v515_v15, %v519_v56  ;;  %v747_v20 = vpop.permute.xlu1 %746  ;;  %v697_v3 = vpop.permute.xlu0 %696  ;;  %3997 = vmatprep.subr.bf16.mxu1 %v6316_v54 }
 0x563   : > { %v518_v40 = vsel %vm450_vm3, %v512_v28, %v517_v29  ;;  %v611_v7 = vrot.slane %v599_v25, 7  ;;  %v612_v38 = vrot.slane %v601_v48, 7  ;;  %v603_v59 = vmul.f32 %v6249_v13, %v597_v9  ;;  %v433_v9 = vld [vmem:[#allocation2 + $0x58] sm:$0x1] }
 0x564   : > { %v616_v49 = vsel %vm450_vm3, %v614_v1, %v615_v46  ;;  %v619_v6 = vrot.slane %v604_v2, 7  ;;  %v750_v33 = vmul.f32 %v747_v20, %v6221_v44  ;;  %v749_v4 = vmul.f32 %v6232_v42, %v747_v20  ;;  %v4090_v2 = vld [vmem:[%s6479_s4 + $0x58] sm:$0xff]  }
 0x565   : > { %478 = vrot.lane.b32.xlu1 %v469_v31, %s4116_s22  ;;  %476 = vrot.lane.b32.xlu0 %v468_v21, %s4116_s22  ;;  %v613_v60 = vsel %vm450_vm3, %v611_v7, %v612_v38  ;;  %v617_v45 = vrot.slane %v603_v59, 7  ;;  %v752_v50 = vmul.f32 %v747_v20, %v6230_v22  ;;  %v751_v10 = vmul.f32 %v6249_v13, %v747_v20  ;;  %v6769_v20 = vld [vmem:[#allocation9_spill] sm:$0xff] }
 0x566   : > { %v620_v23 = vsel %vm450_vm3, %v615_v46, %v619_v6  ;;  %v667_v19 = vpop.permute.xlu0 %666  ;;  %v699_v37 = vmul.f32 %v697_v3, %v6247_v8  ;;  %v701_v39 = vmul.f32 %v697_v3, %v6258_v53  ;;  %v700_v21 = vmul.f32 %v6232_v42, %v697_v3  ;;  %v4094_v6 = vld [vmem:[%s6479_s4 + $0x48] sm:$0xff]  }
 0x567   : > { %v618_v58 = vsel %vm450_vm3, %v612_v38, %v617_v45  ;;  %v669_v16 = vmul.f32 %v667_v19, %v6247_v8  ;;  %v670_v41 = vmul.f32 %v6232_v42, %v667_v19  ;;  %v702_v26 = vmul.f32 %v6249_v13, %v697_v3  ;;  %v4083_v8 = vld [vmem:[%s6479_s4 + $0x70] sm:$0xff]  }
 0x568   : > { %v671_v34 = vmul.f32 %v667_v19, %v6258_v53  ;;  %v711_v31 = vrot.slane %v699_v37, 1  ;;  %v712_v32 = vrot.slane %v701_v39, 1  ;;  %v704_v12 = vmul.f32 %v697_v3, %v6333_v52  ;;  %4019 = vmatprep.subr.bf16.mxu0 %v4083_v8 }
 0x569   : > { %482 = vrot.lane.b32.xlu1 %v471_v36, %s4116_s22  ;;  %480 = vrot.lane.b32.xlu0 %v470_v62, %s4116_s22  ;;  %v672_v62 = vmul.f32 %v6249_v13, %v667_v19  ;;  %v714_v30 = vrot.slane %v700_v21, 1  ;;  %v715_v53 = vrot.slane %v702_v26, 1  ;;  %v703_v28 = vmul.f32 %v697_v3, %v431_v57  ;;  %v796_v36 = vpop.permute.xlu1 %795 }
 0x56a   : > { %4020 = vmatpush3.bf16.msra.mxu0 %v4083_v8  ;;  %v713_v63 = vsel %vm651_vm7, %v711_v31, %v712_v32  ;;  %v799_v61 = vmul.f32 %v796_v36, %v6221_v44  ;;  %v801_v15 = vmul.f32 %v796_v36, %v6230_v22  ;;  %v719_v0 = vrot.slane %v704_v12, 1  ;;  %v4088_v22 = vld [vmem:[%s6479_s4 + $0x60] sm:$0xff]  }
 0x56b   : > { %4021 = vmatprep.subr.bf16.mxu0 %v4085_v27  ;;  %v716_v43 = vsel %vm651_vm7, %v714_v30, %v715_v53  ;;  %v798_v35 = vmul.f32 %v6232_v42, %v796_v36  ;;  %v800_v14 = vmul.f32 %v6249_v13, %v796_v36  ;;  %v803_v44 = vmul.f32 %v796_v36, %v433_v9 }
 0x56c   : > { %v813_v56 = vrot.slane %v799_v61, 1  ;;  %v720_v29 = vsel %vm651_vm7, %v715_v53, %v719_v0  ;;  %v802_v46 = vmul.f32 %v796_v36, %v6333_v52  ;;  %v437_v24 = vrot.slane %v6182_v11, %v6769_v20 }
 0x56d   : > { %523 = vrot.lane.b32.xlu1 %v516_v51, %s4116_s22  ;;  %521 = vrot.lane.b32.xlu0 %v513_v18, %s4116_s22  ;;  %v717_v18 = vrot.slane %v703_v28, 1  ;;  %v814_v51 = vrot.slane %v801_v15, 1  ;;  %v810_v48 = vrot.slane %v798_v35, 1  ;;  %v811_v1 = vrot.slane %v800_v14, 1 }
 0x56e   : > { %4022 = vmatpush3.bf16.msra.mxu0 %v4085_v27  ;;  %v818_v55 = vrot.slane %v803_v44, 1  ;;  %v816_v38 = vrot.slane %v802_v46, 1  ;;  %v439_v57 = vmul.f32 %v6249_v13, %v437_v24 }
 0x56f   : > { %v718_v25 = vsel %vm651_vm7, %v712_v32, %v717_v18  ;;  %4023 = vmatprep.subr.bf16.mxu0 %v4088_v22  ;;  %v812_v7 = vsel %vm651_vm7, %v810_v48, %v811_v1  ;;  %v6770_v32 = vld [vmem:[#allocation7_spill] sm:$0xff] }
 0x570   : > { %v819_v59 = vsel %vm651_vm7, %v814_v51, %v818_v55  ;;  %v538_v36 = vrot.slane %v6182_v11, %v6770_v32 }
 0x571   : > { %527 = vrot.lane.b32.xlu1 %v520_v5, %s4116_s22  ;;  %525 = vrot.lane.b32.xlu0 %v518_v40, %s4116_s22  ;;  %v815_v5 = vsel %vm651_vm7, %v813_v56, %v814_v51  ;;  %v4092_v40 = vld [vmem:[%s6479_s4 + $0x50] sm:$0xff]  }
 0x572   : > { %4024 = vmatpush3.bf16.msra.mxu0 %v4088_v22  ;;  %v539_v22 = vmul.f32 %v6232_v42, %v538_v36 }
 0x573   : > { %4025 = vmatprep.subr.bf16.mxu0 %v4090_v2 }
 0x575   : > { %623 = vrot.lane.b32.xlu1 %v616_v49, %s4117_s23  ;;  %621 = vrot.lane.b32.xlu0 %v613_v60, %s4117_s23  ;;  %v817_v49 = vsel %vm651_vm7, %v811_v1, %v816_v38  ;;  %v4096_v60 = vld [vmem:[%s6479_s4 + $0x40] sm:$0xff]  }
 0x576   : > { %4026 = vmatpush3.bf16.msra.mxu0 %v4090_v2 }
 0x577   : > { %4027 = vmatprep.subr.bf16.mxu0 %v4092_v40 }
 0x579   : > { %627 = vrot.lane.b32.xlu1 %v620_v23, %s4117_s23  ;;  %625 = vrot.lane.b32.xlu0 %v618_v58, %s4117_s23  ;;  %v443_v58 = vrot.slane %v6177_v47, %v6769_v20 }
 0x57a   : > { %4028 = vmatpush3.bf16.msra.mxu0 %v4092_v40 }
 0x57b   : > { %4029 = vmatprep.subr.bf16.mxu0 %v4094_v6 }
 0x57d   : > { %759 = vrot.lane.b32.xlu1 %v750_v33, %s4117_s23  ;;  %757 = vrot.lane.b32.xlu0 %v749_v4, %s4117_s23  ;;  %v444_v4 = vmul.f32 %v443_v58, %v6262_v17 }
 0x57e   : > { %4030 = vmatpush3.bf16.msra.mxu0 %v4094_v6 }
 0x57f   : > { %4031 = vmatprep.subr.bf16.mxu0 %v4096_v60  ;;  %v451_v37 = vrot.slane %v444_v4, 7 }
 0x581   : > { %763 = vrot.lane.b32.xlu1 %v752_v50, %s4117_s23  ;;  %761 = vrot.lane.b32.xlu0 %v751_v10, %s4117_s23  ;;  %v445_v50 = vmul.f32 %v6232_v42, %v443_v58  ;;  %v446_v10 = vmul.f32 %v6249_v13, %v443_v58 }
 0x582   : > { %4032 = vmatpush3.bf16.msra.mxu0 %v4096_v60 }
 0x583   : > { %v452_v39 = vrot.slane %v445_v50, 7 }
 0x585   : > { %679 = vrot.lane.b32.xlu1 %v670_v41, %s4116_s22  ;;  %677 = vrot.lane.b32.xlu0 %v669_v16, %s4116_s22  ;;  %v454_v41 = vrot.slane %v446_v10, 7  ;;  %v453_v8 = vsel %vm450_vm3, %v451_v37, %v452_v39  ;;  %v4084_v10 = vld [vmem:[%s6479_s4 + $0x30] sm:$0xff]  }
 0x587   : > { %v455_v31 = vsel %vm450_vm3, %v452_v39, %v454_v41  ;;  %v4086_v39 = vld [vmem:[%s6479_s4 + $0x28] sm:$0xff]  }
 0x589   : > { %683 = vrot.lane.b32.xlu1 %v672_v62, %s4116_s22  ;;  %681 = vrot.lane.b32.xlu0 %v671_v34, %s4116_s22  ;;  %v438_v34 = vmul.f32 %v6232_v42, %v437_v24  ;;  %v575_v62 = vrot.slane %v6177_v47, %v6770_v32 }
 0x58b   : > { %v458_v27 = vadd.f32 %v453_v8, %v438_v34  ;;  %v576_v15 = vmul.f32 %v575_v62, %v6262_v17  ;;  %v577_v0 = vmul.f32 %v6232_v42, %v575_v62  ;;  %v578_v9 = vmul.f32 %v6249_v13, %v575_v62 }
 0x58d   : > { %723 = vrot.lane.b32.xlu1 %v716_v43, %s4116_s22  ;;  %721 = vrot.lane.b32.xlu0 %v713_v63, %s4116_s22  ;;  %v459_v63 = vadd.f32 %v455_v31, %v439_v57  ;;  %v582_v48 = vrot.slane %v576_v15, 7  ;;  %v583_v1 = vrot.slane %v577_v0, 7  ;;  %v585_v46 = vrot.slane %v578_v9, 7 }
 0x58f   : > { %v584_v38 = vsel %vm450_vm3, %v582_v48, %v583_v1 }
 0x591   : > { %727 = vrot.lane.b32.xlu1 %v720_v29, %s4116_s22  ;;  %725 = vrot.lane.b32.xlu0 %v718_v25, %s4116_s22  ;;  %v540_v29 = vmul.f32 %v6249_v13, %v538_v36 }
 0x595   : > { %822 = vrot.lane.b32.xlu1 %v815_v5, %s4117_s23  ;;  %820 = vrot.lane.b32.xlu0 %v812_v7, %s4117_s23 }
 0x599   : > { %826 = vrot.lane.b32.xlu1 %v819_v59, %s4117_s23  ;;  %824 = vrot.lane.b32.xlu0 %v817_v49, %s4117_s23  ;;  %v586_v49 = vsel %vm450_vm3, %v583_v1, %v585_v46 }
 0x5cf   : > { %v560_v45 = vpop.permute.xlu1 %559  ;;  %v558_v23 = vpop.permute.xlu0 %557 }
 0x5d0   : > { %v566_v56 = vsel %vm565_vm0, %v558_v23, %v560_v45 }
 0x5d1   : > { %v570_v2 = vadd.f32 %v566_v56, %v539_v22 }
 0x5d3   : > { %v564_v33 = vpop.permute.xlu1 %563  ;;  %v562_v3 = vpop.permute.xlu0 %561  ;;  %v589_v6 = vadd.f32 %v584_v38, %v570_v2 }
 0x5d4   : > { %v567_v51 = vsel %vm565_vm0, %v562_v3, %v564_v33 }
 0x5d5   : > { %v571_v5 = vadd.f32 %v567_v51, %v540_v29 }
 0x5d7   : > { %v479_v19 = vpop.permute.xlu1 %478  ;;  %v477_v16 = vpop.permute.xlu0 %476  ;;  %v590_v45 = vadd.f32 %v586_v49, %v571_v5 }
 0x5d8   : > { %v485_v53 = vsel %vm484_vm13, %v477_v16, %v479_v19  ;;  %v6771_v19 = vld [vmem:[#allocation8_spill] sm:$0xff] }
 0x5d9   : > { %v489_v43 = vadd.f32 %v485_v53, %v458_v27  ;;  %v644_v16 = vrot.slane %v6182_v11, %v6771_v19  ;;  %v638_v8 = vrot.slane %v6177_v47, %v6771_v19  ;;  %v4089_v53 = vld [vmem:[%s6479_s4 + $0x18] sm:$0xff]  }
 0x5db   : > { %v483_v21 = vpop.permute.xlu1 %482  ;;  %v481_v26 = vpop.permute.xlu0 %480  ;;  %v645_v41 = vmul.f32 %v6232_v42, %v644_v16  ;;  %v640_v36 = vmul.f32 %v6249_v13, %v638_v8 }
 0x5dc   : > { %v486_v28 = vsel %vm484_vm13, %v481_v26, %v483_v21  ;;  %v646_v21 = vmul.f32 %v6249_v13, %v644_v16  ;;  %v647_v26 = vmul.f32 %v644_v16, %v6333_v52 }
 0x5dd   : > { %v490_v18 = vadd.f32 %v486_v28, %v459_v63  ;;  %v652_v31 = vrot.slane %v645_v41, 1  ;;  %v639_v28 = vmul.f32 %v6232_v42, %v638_v8 }
 0x5de   : > { %v653_v32 = vrot.slane %v646_v21, 1  ;;  %v655_v62 = vrot.slane %v647_v26, 1 }
 0x5df   : > { %v524_v12 = vpop.permute.xlu1 %523  ;;  %v522_v30 = vpop.permute.xlu0 %521 }
 0x5e0   : > { %v529_v61 = vsel %vm484_vm13, %v522_v30, %v524_v12  ;;  %v654_v27 = vsel %vm651_vm7, %v652_v31, %v653_v32  ;;  %v656_v63 = vsel %vm651_vm7, %v653_v32, %v655_v62 }
 0x5e1   : > { %v533_v25 = vadd.f32 %v529_v61, %v489_v43  ;;  %v6772_v61 = vld [vmem:[#allocation12_spill] sm:$0xff]  ;;  %v4091_v43 = vld [vmem:[%s6479_s4 + $0x10] sm:$0xff]   ;;  %v659_v56 = vadd.f32 %v654_v27, %v639_v28  ;;  %v660_v51 = vadd.f32 %v656_v63, %v640_v36 }
 0x5e2   : > { %v774_v15 = vrot.slane %v6182_v11, %v6772_v61 }
 0x5e3   : > { %v528_v35 = vpop.permute.xlu1 %527  ;;  %v526_v14 = vpop.permute.xlu0 %525 }
 0x5e4   : > { %v530_v44 = vsel %vm484_vm13, %v526_v14, %v528_v35  ;;  %v738_v14 = vrot.slane %v6177_v47, %v6772_v61  ;;  %v775_v11 = vmul.f32 %v6232_v42, %v774_v15  ;;  %v776_v22 = vmul.f32 %v6249_v13, %v774_v15  ;;  %v4093_v47 = vld [vmem:[%s6479_s4 + $0x8] sm:$0xff]  }
 0x5e5   : > { %v534_v17 = vadd.f32 %v530_v44, %v490_v18  ;;  %v777_v29 = vmul.f32 %v774_v15, %v6333_v52 }
 0x5e6   : > { %v740_v52 = vmul.f32 %v6249_v13, %v738_v14  ;;  %v781_v38 = vrot.slane %v775_v11, 1 }
 0x5e7   : > { %v624_v55 = vpop.permute.xlu1 %623  ;;  %v622_v40 = vpop.permute.xlu0 %621  ;;  %v3169_v7 = vpack.c.bf16 %v534_v17, %v533_v25  ;;  %v784_v49 = vrot.slane %v777_v29, 1 }
 0x5e8   : > { %v629_v59 = vsel %vm565_vm0, %v622_v40, %v624_v55  ;;  %v739_v55 = vmul.f32 %v6232_v42, %v738_v14 }
 0x5e9   : > { %3979 = vmatprep.mubr.bf16.mxu1 %v3169_v7  ;;  %v633_v58 = vadd.f32 %v629_v59, %v589_v6  ;;  %v782_v59 = vrot.slane %v776_v22, 1 }
 0x5eb   : > { %v628_v60 = vpop.permute.xlu1 %627  ;;  %v626_v23 = vpop.permute.xlu0 %625  ;;  %v783_v42 = vsel %vm651_vm7, %v781_v38, %v782_v59 }
 0x5ec   : > { %v630_v20 = vsel %vm565_vm0, %v626_v23, %v628_v60 }
 0x5ed   : > { %v634_v33 = vadd.f32 %v630_v20, %v590_v45 }
 0x5ef   : > { %v3170_v3 = vpack.c.bf16 %v634_v33, %v633_v58  ;;  %v760_v4 = vpop.permute.xlu1 %759  ;;  %v758_v50 = vpop.permute.xlu0 %757  ;;  %v4095_v58 = vld [vmem:[%s6479_s4] sm:$0xff]   ;;  %v785_v33 = vsel %vm651_vm7, %v782_v59, %v784_v49 }
 0x5f0   : > { %v765_v46 = vsel %vm565_vm0, %v758_v50, %v760_v4 }
 0x5f1   : > { %3980 = vmatmul.mubr.bf16.vlgmr.msra.gmra.mxu1 %v3170_v3  ;;  %v769_v6 = vadd.f32 %v765_v46, %v739_v55 }
 0x5f2   : > { %3998 = vmatpush3.bf16.msra.mxu1 %v6316_v54  ;;  %v4087_v54 = vld [vmem:[%s6479_s4 + $0x20] sm:$0xff]  }
 0x5f3   : > { %v764_v24 = vpop.permute.xlu1 %763  ;;  %v762_v37 = vpop.permute.xlu0 %761  ;;  %3999 = vmatprep.subr.bf16.mxu1 %v4084_v10  ;;  %v788_v3 = vadd.f32 %v783_v42, %v769_v6 }
 0x5f4   : > { %v766_v2 = vsel %vm565_vm0, %v762_v37, %v764_v24 }
 0x5f5   : > { %v770_v60 = vadd.f32 %v766_v2, %v740_v52 }
 0x5f6   : > { %4000 = vmatpush3.bf16.msra.mxu1 %v4084_v10 }
 0x5f7   : > { %v680_v34 = vpop.permute.xlu1 %679  ;;  %v678_v57 = vpop.permute.xlu0 %677  ;;  %4001 = vmatprep.subr.bf16.mxu1 %v4086_v39  ;;  %v789_v50 = vadd.f32 %v785_v33, %v770_v60 }
 0x5f8   : > { %v685_v18 = vsel %vm484_vm13, %v678_v57, %v680_v34 }
 0x5f9   : > { %v689_v25 = vadd.f32 %v685_v18, %v659_v56 }
 0x5fa   : > { %4002 = vmatpush3.bf16.msra.mxu1 %v4086_v39 }
 0x5fb   : > { %v684_v12 = vpop.permute.xlu1 %683  ;;  %v682_v30 = vpop.permute.xlu0 %681  ;;  %4003 = vmatprep.subr.bf16.mxu1 %v4087_v54 }
 0x5fc   : > { %v686_v35 = vsel %vm484_vm13, %v682_v30, %v684_v12  ;;  %v4104_v30 = vld [vmem:[%s6481_s6 + $0x28] sm:$0x3f] }
 0x5fd   : > { %v690_v17 = vadd.f32 %v686_v35, %v660_v51 }
 0x5fe   : > { %4004 = vmatpush3.bf16.msra.mxu1 %v4087_v54 }
 0x5ff   : > { %v724_v0 = vpop.permute.xlu1 %723  ;;  %v722_v9 = vpop.permute.xlu0 %721  ;;  %4005 = vmatprep.subr.bf16.mxu1 %v4089_v53 }
 0x600   : > { %v729_v44 = vsel %vm484_vm13, %v722_v9, %v724_v0 }
 0x601   : > { %v733_v40 = vadd.f32 %v729_v44, %v689_v25 }
 0x602   : > { %4006 = vmatpush3.bf16.msra.mxu1 %v4089_v53  ;;  %v3192_v53 = vrot.slane %v4104_v30, %v6772_v61 }
 0x603   : > { %v728_v48 = vpop.permute.xlu1 %727  ;;  %v726_v1 = vpop.permute.xlu0 %725  ;;  %4007 = vmatprep.subr.bf16.mxu1 %v4091_v43 }
 0x604   : > { %v730_v5 = vsel %vm484_vm13, %v726_v1, %v728_v48 }
 0x605   : > { %v734_v7 = vadd.f32 %v730_v5, %v690_v17 }
 0x606   : > { %4008 = vmatpush3.bf16.msra.mxu1 %v4091_v43 }
 0x607   : > { %v823_v45 = vpop.permute.xlu1 %822  ;;  %v821_v23 = vpop.permute.xlu0 %820  ;;  %v3171_v20 = vpack.c.bf16 %v734_v7, %v733_v40  ;;  %4009 = vmatprep.subr.bf16.mxu1 %v4093_v47 }
 0x608   : > { %v828_v13 = vsel %vm565_vm0, %v821_v23, %v823_v45 }
 0x609   : > { %3983 = vmatprep.mubr.bf16.mxu1 %v3171_v20  ;;  %v832_v16 = vadd.f32 %v828_v13, %v788_v3 }
 0x60a   : > { %4010 = vmatpush3.bf16.msra.mxu1 %v4093_v47 }
 0x60b   : > { %v827_v4 = vpop.permute.xlu1 %826  ;;  %v825_v10 = vpop.permute.xlu0 %824  ;;  %4011 = vmatprep.subr.bf16.mxu1 %v4095_v58 }
 0x60c   : > { %v829_v19 = vsel %vm565_vm0, %v825_v10, %v827_v4 }
 0x60d   : > { %v833_v24 = vadd.f32 %v829_v19, %v789_v50 }
 0x60e   : > { %4012 = vmatpush3.bf16.msra.mxu1 %v4095_v58 }
 0x60f   : > { %v3172_v37 = vpack.c.bf16 %v833_v24, %v832_v16 }
 0x611   : > { %3984 = vmatmul.mubr.bf16.gmra.mxu1 %v3172_v37 }
 0x61a   : > { %v3993_v39 = vpop.f32.mrf.mxu0 }
 0x61c   : > { %v3434_v41 = vpop.f32.mrf.mxu0 }
 0x61d   : > { %v3453_v21 = vpack.c.bf16 %v3993_v39, %v3434_v41 }
 0x61e   : > { %v3996_v26 = vpop.f32.mrf.mxu0 }
 0x61f   : > { %4013 = vmatprep.mubr.bf16.mxu1 %v3453_v21  ;;  %4033 = vmatprep.mubr.bf16.mxu0 %v3453_v21 }
 0x620   : > { %v3444_v34 = vpop.f32.mrf.mxu0 }
 0x621   : > { %v3454_v57 = vpack.c.bf16 %v3996_v26, %v3444_v34 }
 0x623   : > { %4014 = vmatmul.mubr.bf16.vlgmr.msra.gmra.mxu1 %v3454_v57  ;;  %4034 = vmatmul.mubr.bf16.vlgmr.msra.gmra.mxu0 %v3454_v57 }
 0x6b1   : > { %v3981_v54 = vpop.f32.mrf.mxu1 }
 0x6b2   : > { %v3284_v63 = vadd.f32 %v3981_v54, %v3192_v53 }
 0x6b3   : > { %v3275_v8 = vpop.f32.mrf.mxu1 }
 0x6b4   : > { %v3276_v15 = vadd.f32 %v3275_v8, %v3192_v53  ;;  %v3308_v14 = vmax.f32 %v3284_v63, 0.0 }
 0x6b5   : > { %v3982_v31 = vpop.f32.mrf.mxu1 }
 0x6b6   : > { %v3306_v56 = vmax.f32 %v3276_v15, 0.0  ;;  %v3287_v51 = vadd.f32 %v3982_v31, %v3192_v53  ;;  %v3316_v25 = vmin.f32 %v3308_v14, 6.0 }
 0x6b7   : > { %v3278_v32 = vpop.f32.mrf.mxu1 }
 0x6b8   : > { %v3279_v44 = vadd.f32 %v3278_v32, %v3192_v53  ;;  %v3314_v17 = vmin.f32 %v3306_v56, 6.0  ;;  %v3309_v47 = vmax.f32 %v3287_v51, 0.0 }
 0x6ba   : > { %v3307_v46 = vmax.f32 %v3279_v44, 0.0  ;;  %v3317_v60 = vmin.f32 %v3309_v47, 6.0 }
 0x6bc   : > { %v3315_v45 = vmin.f32 %v3307_v46, 6.0 }
 0x6d1   : > { %v3985_v62 = vpop.f32.mrf.mxu1 }
 0x6d2   : > { %v3300_v36 = vadd.f32 %v3985_v62, %v3192_v53 }
 0x6d3   : > { %v3291_v12 = vpop.f32.mrf.mxu1 }
 0x6d4   : > { %v3292_v27 = vadd.f32 %v3291_v12, %v3192_v53  ;;  %v3312_v9 = vmax.f32 %v3300_v36, 0.0 }
 0x6d5   : > { %v3986_v28 = vpop.f32.mrf.mxu1 }
 0x6d6   : > { %v3310_v43 = vmax.f32 %v3292_v27, 0.0  ;;  %v3303_v18 = vadd.f32 %v3986_v28, %v3192_v53  ;;  %v3320_v11 = vmin.f32 %v3312_v9, 6.0 }
 0x6d7   : > { %v3294_v0 = vpop.f32.mrf.mxu1 }
 0x6d8   : > { %v3295_v35 = vadd.f32 %v3294_v0, %v3192_v53  ;;  %v3318_v22 = vmin.f32 %v3310_v43, 6.0  ;;  %v3313_v29 = vmax.f32 %v3303_v18, 0.0 }
 0x6da   : > { %v3311_v61 = vmax.f32 %v3295_v35, 0.0  ;;  %v3321_v40 = vmin.f32 %v3313_v29, 6.0 }
 0x6dc   : > { %v3319_v7 = vmin.f32 %v3311_v61, 6.0 }
 0x6e3   : > { %v4015_v48 = vpop.f32.mrf.mxu1  ;;  %v4035_v1 = vpop.f32.mrf.mxu0 }
 0x6e4   : > { %v3691_v2 = vadd.f32 %v4015_v48, %v3318_v22  ;;  %v3696_v5 = vadd.f32 %v4035_v1, %v3320_v11 }
 0x6e5   : > { %v3553_v55 = vpop.f32.mrf.mxu1  ;;  %v3667_v52 = vpop.f32.mrf.mxu0 }
 0x6e6   : > { %3854 = vst [vmem:[%s4181_s11 + $0x20] sm:$0xff] %v3691_v2  ;;  %3856 = vst [vmem:[%s4181_s11 + $0x30] sm:$0xff] %v3696_v5  ;;  %v3682_v38 = vadd.f32 %v3553_v55, %v3314_v17  ;;  %v3686_v59 = vadd.f32 %v3667_v52, %v3316_v25 }
 0x6e7   : > { %v4016_v49 = vpop.f32.mrf.mxu1  ;;  %v4036_v6 = vpop.f32.mrf.mxu0 }
 0x6e8   : > { %3684 = vst [vmem:[%s4181_s11] sm:$0xff] %v3682_v38  ;;  %3852 = vst [vmem:[%s4181_s11 + $0x10] sm:$0xff] %v3686_v59  ;;  %v3692_v23 = vadd.f32 %v4016_v49, %v3319_v7  ;;  %v3697_v20 = vadd.f32 %v4036_v6, %v3321_v40 }
 0x6e9   : > { %v3556_v58 = vpop.f32.mrf.mxu1  ;;  %v3670_v42 = vpop.f32.mrf.mxu0 }
 0x6ea   : > { %3855 = vst [vmem:[%s4181_s11 + $0x28] sm:$0xff] %v3692_v23  ;;  %3857 = vst [vmem:[%s4181_s11 + $0x38] sm:$0xff] %v3697_v20  ;;  %v3683_v13 = vadd.f32 %v3556_v58, %v3315_v45  ;;  %v3687_v33 = vadd.f32 %v3670_v42, %v3317_v60 }
 0x6ec   : > { %3685 = vst [vmem:[%s4181_s11 + $0x8] sm:$0xff] %v3683_v13  ;;  %3853 = vst [vmem:[%s4181_s11 + $0x18] sm:$0xff] %v3687_v33 }
 0x6ed PF: > { %s17_s24 = sadd.s32 1, %s4111_s24  }
 0x6ee   : > { %p14_p5 = scmp.ge.s32.totalorder %s17_s24, 4  }
 0x6f0   :  { %16 = sbr.rel (!%p14_p5) target bundleno = 1 (0x1), region = 88 }

</bundles_post_ra>
